<compile_context>
chip_gen: v6e
topology: v6e:2x2x1
jax: 0.10.0
libtpu: 0.0.40
codegen_flags: <defaults>
</compile_context>

<pallas_src>
import functools

import jax
import jax.numpy as jnp
from jax.experimental import pallas as pl
from jax.experimental.pallas import tpu as pltpu


def _fused_cnn_kernel(x_ref, w1_ref, b1_ref, w2_ref, b2_ref, w3_ref, b3_ref,
                      o_ref, xp1, xp2, xp3, *, H, W, Cin, C):
    """Fused 3-layer CNN for one batch element.

    x_ref  : (1, H, W, Cin)        NHWC input tile
    w1_ref : (9, Cin, C)           conv1 weights, tap index = dy*3 + dx
    b1_ref : (1, C)                conv1 bias
    w2_ref : (9, C, C)             conv2 weights
    b2_ref : (1, C)                conv2 bias
    w3_ref : (9, 1, C)             conv3 weights (row-vector per tap)
    b3_ref : (1, 1)                conv3 bias
    o_ref  : (1, 1, H*W)           lane-dense flattened output
    xp1    : (H+2, W+2, Cin) VMEM  zero-padded input
    xp2    : (H+2, W+2, C)   VMEM  zero-padded relu(conv1) activation
    xp3    : (H+2, W+2, C)   VMEM  zero-padded relu(conv2) activation
    """
    HW = H * W

    # In-kernel zero padding: zero the (tiny) padded buffers, then write the
    # interiors.  Done every grid step so it stays correct under megacore
    # sharding of the batch axis.
    xp1[...] = jnp.zeros_like(xp1)
    xp2[...] = jnp.zeros_like(xp2)
    xp3[...] = jnp.zeros_like(xp3)
    xp1[1:H + 1, 1:W + 1, :] = x_ref[0].astype(jnp.float32)

    def conv_taps(src_ref, w_ref, cin, cout):
        """'Same' 3x3 conv as 9 whole-image matmuls accumulated in f32."""
        acc = jnp.zeros((HW, cout), jnp.float32)
        for dy in range(3):
            for dx in range(3):
                patch = src_ref[dy:dy + H, dx:dx + W, :].reshape(HW, cin)
                acc = acc + jnp.dot(patch, w_ref[dy * 3 + dx],
                                    preferred_element_type=jnp.float32)
        return acc

    # Layer 1: Cin -> C, bias + ReLU epilogue, keep activation in VMEM.
    a1 = conv_taps(xp1, w1_ref, Cin, C) + b1_ref[...]
    a1 = jnp.maximum(a1, 0.0)
    xp2[1:H + 1, 1:W + 1, :] = a1.reshape(H, W, C)

    # Layer 2: C -> C, bias + ReLU epilogue, keep activation in VMEM.
    a2 = conv_taps(xp2, w2_ref, C, C) + b2_ref[...]
    a2 = jnp.maximum(a2, 0.0)
    xp3[1:H + 1, 1:W + 1, :] = a2.reshape(H, W, C)

    # Layer 3: C -> 1.  Compute as (1, C) @ (H*W, C)^T per tap so the result is
    # already a lane-dense (1, H*W) row (no last-dim-1 masked stores).
    acc3 = jnp.zeros((1, HW), jnp.float32)
    for dy in range(3):
        for dx in range(3):
            patch = xp3[dy:dy + H, dx:dx + W, :].reshape(HW, C)
            acc3 = acc3 + jax.lax.dot_general(
                w3_ref[dy * 3 + dx], patch,
                dimension_numbers=(((1,), (1,)), ((), ())),
                preferred_element_type=jnp.float32)
    acc3 = acc3 + b3_ref[...]
    o_ref[...] = acc3.reshape(1, 1, HW).astype(o_ref.dtype)


def fused_cnn_forward_nhwc(x_nhwc, w1k, b1k, w2k, b2k, w3k, b3k):
    """Single pallas_call running all three conv layers per batch element."""
    N, H, W, Cin = x_nhwc.shape
    C = w1k.shape[2]
    HW = H * W

    kernel = functools.partial(_fused_cnn_kernel, H=H, W=W, Cin=Cin, C=C)

    return pl.pallas_call(
        kernel,
        out_shape=jax.ShapeDtypeStruct((N, 1, HW), x_nhwc.dtype),
        grid_spec=pltpu.PrefetchScalarGridSpec(
            num_scalar_prefetch=0,
            grid=(N,),
            in_specs=[
                pl.BlockSpec((1, H, W, Cin), lambda n: (n, 0, 0, 0)),
                pl.BlockSpec((9, Cin, C), lambda n: (0, 0, 0)),
                pl.BlockSpec((1, C), lambda n: (0, 0)),
                pl.BlockSpec((9, C, C), lambda n: (0, 0, 0)),
                pl.BlockSpec((1, C), lambda n: (0, 0)),
                pl.BlockSpec((9, 1, C), lambda n: (0, 0, 0)),
                pl.BlockSpec((1, 1), lambda n: (0, 0)),
            ],
            out_specs=pl.BlockSpec((1, 1, HW), lambda n: (n, 0, 0)),
            scratch_shapes=[
                pltpu.VMEM((H + 2, W + 2, Cin), jnp.float32),
                pltpu.VMEM((H + 2, W + 2, C), jnp.float32),
                pltpu.VMEM((H + 2, W + 2, C), jnp.float32),
            ],
        ),
        compiler_params=pltpu.CompilerParams(
            dimension_semantics=("parallel",)),
    )(x_nhwc, w1k, b1k, w2k, b2k, w3k, b3k)


class CNNPallas:
    """Pallas port of airnetSNL CNN: inChannels -> n_cnn -> n_cnn -> 1."""

    def __init__(self, n_cnn: int, imgSize: int, inChannels: int, key):
        self.n_cnn = n_cnn
        self.imgSize = imgSize
        self.inChannels = inChannels

        def init_conv(key, c_out, c_in):
            kw, kb = jax.random.split(key)
            fan_in = c_in * 3 * 3
            bound = 1.0 / jnp.sqrt(fan_in)  # PyTorch Conv2d default init range
            w = jax.random.uniform(kw, (c_out, c_in, 3, 3), jnp.float32,
                                   -bound, bound)
            b = jax.random.uniform(kb, (c_out,), jnp.float32, -bound, bound)
            return w, b

        k1, k2, k3 = jax.random.split(key, 3)
        self.w1, self.b1 = init_conv(k1, n_cnn, inChannels)
        self.w2, self.b2 = init_conv(k2, n_cnn, n_cnn)
        self.w3, self.b3 = init_conv(k3, 1, n_cnn)

        # Precompute kernel-layout weights/biases once (hoisted out of forward):
        #   OIHW -> (tap=ky*3+kx, Cin, Cout) for conv1/conv2,
        #   OIHW -> (tap, 1, Cin) row vectors for conv3 (Cout == 1).
        self._w1k = jnp.transpose(self.w1, (2, 3, 1, 0)).reshape(
            9, inChannels, n_cnn)
        self._w2k = jnp.transpose(self.w2, (2, 3, 1, 0)).reshape(
            9, n_cnn, n_cnn)
        self._w3k = jnp.transpose(self.w3, (2, 3, 0, 1)).reshape(9, 1, n_cnn)
        self._b1k = self.b1.reshape(1, n_cnn)
        self._b2k = self.b2.reshape(1, n_cnn)
        self._b3k = self.b3.reshape(1, 1)

    def __call__(self, x_nchw):
        N, _, H, W = x_nchw.shape
        # NCHW (PyTorch) -> NHWC (kernel layout); glue only.
        x = jnp.transpose(x_nchw, (0, 2, 3, 1))
        out_flat = fused_cnn_forward_nhwc(
            x, self._w1k, self._b1k, self._w2k, self._b2k,
            self._w3k, self._b3k)
        # (N, 1, H*W) -> NCHW (N, 1, H, W)
        return out_flat.reshape(N, 1, H, W)


def _ref_forward(x_nchw, model):
    """Pure-JAX reference (lax conv, NCHW) for correctness checking."""
    def conv(x, w, b):
        y = jax.lax.conv_general_dilated(
            x, w, window_strides=(1, 1), padding="SAME",
            dimension_numbers=("NCHW", "OIHW", "NCHW"))
        return y + b[None, :, None, None]

    x = jax.nn.relu(conv(x_nchw, model.w1, model.b1))
    x = jax.nn.relu(conv(x, model.w2, model.b2))
    return conv(x, model.w3, model.b3)


if __name__ == "__main__":
    # Small shapes consistent with the module: batch=2, inChannels=4, imgSize=16.
    n_cnn, img_size, in_channels, batch = 8, 16, 4, 2

    key = jax.random.PRNGKey(0)
    k_x, k_p = jax.random.split(key)
    x = jax.random.normal(k_x, (batch, in_channels, img_size, img_size),
                          jnp.float32)

    model = CNNPallas(n_cnn, img_size, in_channels, k_p)

    out = model(x)
    out = jax.block_until_ready(out)

    assert out.shape == (batch, 1, img_size, img_size), out.shape
    ref = jax.block_until_ready(_ref_forward(x, model))
    assert jnp.allclose(out, ref, atol=1e-4, rtol=1e-4), (
        float(jnp.max(jnp.abs(out - ref))))

    print("KERNEL_OK")
</pallas_src>

<mosaic_0001>
module attributes {stable_mosaic.version = 11 : i64} {
  func.func @_fused_cnn_kernel(%arg0: i32, %arg1: memref<1x16x16x4xf32, #tpu.memory_space<vmem>>, %arg2: memref<9x4x8xf32, #tpu.memory_space<vmem>>, %arg3: memref<1x8xf32, #tpu.memory_space<vmem>>, %arg4: memref<9x8x8xf32, #tpu.memory_space<vmem>>, %arg5: memref<1x8xf32, #tpu.memory_space<vmem>>, %arg6: memref<9x1x8xf32, #tpu.memory_space<vmem>>, %arg7: memref<1x1xf32, #tpu.memory_space<vmem>>, %arg8: memref<1x1x256xf32, #tpu.memory_space<vmem>>, %arg9: memref<18x18x4xf32, #tpu.memory_space<vmem>>, %arg10: memref<18x18x8xf32, #tpu.memory_space<vmem>>, %arg11: memref<18x18x8xf32, #tpu.memory_space<vmem>>) attributes {dimension_semantics = [#tpu.dimension_semantics<parallel>], iteration_bounds = array<i64: 2>, scalar_prefetch = 0 : i64, scratch_operands = 3 : i64, tpu.core_type = #tpu.core_type<tc>, window_params = [{transform_indices = @transform_0, window_bounds = array<i64: 1, 16, 16, 4>}, {pipeline_mode = #tpu.pipeline_mode<synchronous>, transform_indices = @transform_1, window_bounds = array<i64: 9, 4, 8>}, {pipeline_mode = #tpu.pipeline_mode<synchronous>, transform_indices = @transform_2, window_bounds = array<i64: 1, 8>}, {pipeline_mode = #tpu.pipeline_mode<synchronous>, transform_indices = @transform_3, window_bounds = array<i64: 9, 8, 8>}, {pipeline_mode = #tpu.pipeline_mode<synchronous>, transform_indices = @transform_4, window_bounds = array<i64: 1, 8>}, {pipeline_mode = #tpu.pipeline_mode<synchronous>, transform_indices = @transform_5, window_bounds = array<i64: 9, 1, 8>}, {pipeline_mode = #tpu.pipeline_mode<synchronous>, transform_indices = @transform_6, window_bounds = array<i64: 1, 1>}, {transform_indices = @transform_7, window_bounds = array<i64: 1, 1, 256>}]} {
    %cst = arith.constant 0.000000e+00 : f32
    %0 = vector.broadcast %cst : f32 to vector<18x18x4xf32>
    %c0 = arith.constant 0 : index
    %c0_0 = arith.constant 0 : index
    %c0_1 = arith.constant 0 : index
    %1 = vector.load %arg9[%c0, %c0_0, %c0_1] : memref<18x18x4xf32, #tpu.memory_space<vmem>>, vector<18x18x4xf32>
    tpu.vector_store %arg9[%c0, %c0_0, %c0_1], %0 {strides = array<i32>} : memref<18x18x4xf32, #tpu.memory_space<vmem>>, vector<18x18x4xf32>,
    %cst_2 = arith.constant 0.000000e+00 : f32
    %2 = vector.broadcast %cst_2 : f32 to vector<18x18x8xf32>
    %c0_3 = arith.constant 0 : index
    %c0_4 = arith.constant 0 : index
    %c0_5 = arith.constant 0 : index
    %3 = vector.load %arg10[%c0_3, %c0_4, %c0_5] : memref<18x18x8xf32, #tpu.memory_space<vmem>>, vector<18x18x8xf32>
    tpu.vector_store %arg10[%c0_3, %c0_4, %c0_5], %2 {strides = array<i32>} : memref<18x18x8xf32, #tpu.memory_space<vmem>>, vector<18x18x8xf32>,
    %cst_6 = arith.constant 0.000000e+00 : f32
    %4 = vector.broadcast %cst_6 : f32 to vector<18x18x8xf32>
    %c0_7 = arith.constant 0 : index
    %c0_8 = arith.constant 0 : index
    %c0_9 = arith.constant 0 : index
    %5 = vector.load %arg11[%c0_7, %c0_8, %c0_9] : memref<18x18x8xf32, #tpu.memory_space<vmem>>, vector<18x18x8xf32>
    tpu.vector_store %arg11[%c0_7, %c0_8, %c0_9], %4 {strides = array<i32>} : memref<18x18x8xf32, #tpu.memory_space<vmem>>, vector<18x18x8xf32>,
    %c0_10 = arith.constant 0 : index
    %c0_11 = arith.constant 0 : index
    %c0_12 = arith.constant 0 : index
    %c0_13 = arith.constant 0 : index
    %6 = vector.load %arg1[%c0_10, %c0_11, %c0_12, %c0_13] : memref<1x16x16x4xf32, #tpu.memory_space<vmem>>, vector<1x16x16x4xf32>
    %7 = vector.shape_cast %6 : vector<1x16x16x4xf32> to vector<16x16x4xf32>
    %c1 = arith.constant 1 : index
    %c1_14 = arith.constant 1 : index
    %c0_15 = arith.constant 0 : index
    %8 = vector.load %arg9[%c1, %c1_14, %c0_15] : memref<18x18x4xf32, #tpu.memory_space<vmem>>, vector<16x16x4xf32>
    tpu.vector_store %arg9[%c1, %c1_14, %c0_15], %7 {strides = array<i32>} : memref<18x18x4xf32, #tpu.memory_space<vmem>>, vector<16x16x4xf32>,
    %cst_16 = arith.constant 0.000000e+00 : f32
    %9 = vector.broadcast %cst_16 : f32 to vector<256x8xf32>
    %c0_17 = arith.constant 0 : index
    %c0_18 = arith.constant 0 : index
    %c0_19 = arith.constant 0 : index
    %10 = vector.load %arg9[%c0_17, %c0_18, %c0_19] : memref<18x18x4xf32, #tpu.memory_space<vmem>>, vector<16x16x4xf32>
    %11 = vector.shape_cast %10 : vector<16x16x4xf32> to vector<256x4xf32>
    %c0_20 = arith.constant 0 : index
    %c0_21 = arith.constant 0 : index
    %c0_22 = arith.constant 0 : index
    %12 = vector.load %arg2[%c0_20, %c0_21, %c0_22] : memref<9x4x8xf32, #tpu.memory_space<vmem>>, vector<1x4x8xf32>
    %13 = vector.shape_cast %12 : vector<1x4x8xf32> to vector<4x8xf32>
    %cst_23 = arith.constant dense<0.000000e+00> : vector<256x8xf32>
    %14 = tpu.matmul %11, %13, %cst_23 {dimension_numbers = #tpu.dot_dimension_numbers<[1], [0], [0], [1], [0, 0, 1, 1], [], []>} : vector<256x4xf32>, vector<4x8xf32>, vector<256x8xf32> -> vector<256x8xf32>
    %15 = arith.addf %9, %14 : vector<256x8xf32>
    %c0_24 = arith.constant 0 : index
    %c1_25 = arith.constant 1 : index
    %c0_26 = arith.constant 0 : index
    %16 = vector.load %arg9[%c0_24, %c1_25, %c0_26] : memref<18x18x4xf32, #tpu.memory_space<vmem>>, vector<16x16x4xf32>
    %17 = vector.shape_cast %16 : vector<16x16x4xf32> to vector<256x4xf32>
    %c1_27 = arith.constant 1 : index
    %c0_28 = arith.constant 0 : index
    %c0_29 = arith.constant 0 : index
    %18 = vector.load %arg2[%c1_27, %c0_28, %c0_29] : memref<9x4x8xf32, #tpu.memory_space<vmem>>, vector<1x4x8xf32>
    %19 = vector.shape_cast %18 : vector<1x4x8xf32> to vector<4x8xf32>
    %cst_30 = arith.constant dense<0.000000e+00> : vector<256x8xf32>
    %20 = tpu.matmul %17, %19, %cst_30 {dimension_numbers = #tpu.dot_dimension_numbers<[1], [0], [0], [1], [0, 0, 1, 1], [], []>} : vector<256x4xf32>, vector<4x8xf32>, vector<256x8xf32> -> vector<256x8xf32>
    %21 = arith.addf %15, %20 : vector<256x8xf32>
    %c0_31 = arith.constant 0 : index
    %c2 = arith.constant 2 : index
    %c0_32 = arith.constant 0 : index
    %22 = vector.load %arg9[%c0_31, %c2, %c0_32] : memref<18x18x4xf32, #tpu.memory_space<vmem>>, vector<16x16x4xf32>
    %23 = vector.shape_cast %22 : vector<16x16x4xf32> to vector<256x4xf32>
    %c2_33 = arith.constant 2 : index
    %c0_34 = arith.constant 0 : index
    %c0_35 = arith.constant 0 : index
    %24 = vector.load %arg2[%c2_33, %c0_34, %c0_35] : memref<9x4x8xf32, #tpu.memory_space<vmem>>, vector<1x4x8xf32>
    %25 = vector.shape_cast %24 : vector<1x4x8xf32> to vector<4x8xf32>
    %cst_36 = arith.constant dense<0.000000e+00> : vector<256x8xf32>
    %26 = tpu.matmul %23, %25, %cst_36 {dimension_numbers = #tpu.dot_dimension_numbers<[1], [0], [0], [1], [0, 0, 1, 1], [], []>} : vector<256x4xf32>, vector<4x8xf32>, vector<256x8xf32> -> vector<256x8xf32>
    %27 = arith.addf %21, %26 : vector<256x8xf32>
    %c1_37 = arith.constant 1 : index
    %c0_38 = arith.constant 0 : index
    %c0_39 = arith.constant 0 : index
    %28 = vector.load %arg9[%c1_37, %c0_38, %c0_39] : memref<18x18x4xf32, #tpu.memory_space<vmem>>, vector<16x16x4xf32>
    %29 = vector.shape_cast %28 : vector<16x16x4xf32> to vector<256x4xf32>
    %c3 = arith.constant 3 : index
    %c0_40 = arith.constant 0 : index
    %c0_41 = arith.constant 0 : index
    %30 = vector.load %arg2[%c3, %c0_40, %c0_41] : memref<9x4x8xf32, #tpu.memory_space<vmem>>, vector<1x4x8xf32>
    %31 = vector.shape_cast %30 : vector<1x4x8xf32> to vector<4x8xf32>
    %cst_42 = arith.constant dense<0.000000e+00> : vector<256x8xf32>
    %32 = tpu.matmul %29, %31, %cst_42 {dimension_numbers = #tpu.dot_dimension_numbers<[1], [0], [0], [1], [0, 0, 1, 1], [], []>} : vector<256x4xf32>, vector<4x8xf32>, vector<256x8xf32> -> vector<256x8xf32>
    %33 = arith.addf %27, %32 : vector<256x8xf32>
    %c1_43 = arith.constant 1 : index
    %c1_44 = arith.constant 1 : index
    %c0_45 = arith.constant 0 : index
    %34 = vector.load %arg9[%c1_43, %c1_44, %c0_45] : memref<18x18x4xf32, #tpu.memory_space<vmem>>, vector<16x16x4xf32>
    %35 = vector.shape_cast %34 : vector<16x16x4xf32> to vector<256x4xf32>
    %c4 = arith.constant 4 : index
    %c0_46 = arith.constant 0 : index
    %c0_47 = arith.constant 0 : index
    %36 = vector.load %arg2[%c4, %c0_46, %c0_47] : memref<9x4x8xf32, #tpu.memory_space<vmem>>, vector<1x4x8xf32>
    %37 = vector.shape_cast %36 : vector<1x4x8xf32> to vector<4x8xf32>
    %cst_48 = arith.constant dense<0.000000e+00> : vector<256x8xf32>
    %38 = tpu.matmul %35, %37, %cst_48 {dimension_numbers = #tpu.dot_dimension_numbers<[1], [0], [0], [1], [0, 0, 1, 1], [], []>} : vector<256x4xf32>, vector<4x8xf32>, vector<256x8xf32> -> vector<256x8xf32>
    %39 = arith.addf %33, %38 : vector<256x8xf32>
    %c1_49 = arith.constant 1 : index
    %c2_50 = arith.constant 2 : index
    %c0_51 = arith.constant 0 : index
    %40 = vector.load %arg9[%c1_49, %c2_50, %c0_51] : memref<18x18x4xf32, #tpu.memory_space<vmem>>, vector<16x16x4xf32>
    %41 = vector.shape_cast %40 : vector<16x16x4xf32> to vector<256x4xf32>
    %c5 = arith.constant 5 : index
    %c0_52 = arith.constant 0 : index
    %c0_53 = arith.constant 0 : index
    %42 = vector.load %arg2[%c5, %c0_52, %c0_53] : memref<9x4x8xf32, #tpu.memory_space<vmem>>, vector<1x4x8xf32>
    %43 = vector.shape_cast %42 : vector<1x4x8xf32> to vector<4x8xf32>
    %cst_54 = arith.constant dense<0.000000e+00> : vector<256x8xf32>
    %44 = tpu.matmul %41, %43, %cst_54 {dimension_numbers = #tpu.dot_dimension_numbers<[1], [0], [0], [1], [0, 0, 1, 1], [], []>} : vector<256x4xf32>, vector<4x8xf32>, vector<256x8xf32> -> vector<256x8xf32>
    %45 = arith.addf %39, %44 : vector<256x8xf32>
    %c2_55 = arith.constant 2 : index
    %c0_56 = arith.constant 0 : index
    %c0_57 = arith.constant 0 : index
    %46 = vector.load %arg9[%c2_55, %c0_56, %c0_57] : memref<18x18x4xf32, #tpu.memory_space<vmem>>, vector<16x16x4xf32>
    %47 = vector.shape_cast %46 : vector<16x16x4xf32> to vector<256x4xf32>
    %c6 = arith.constant 6 : index
    %c0_58 = arith.constant 0 : index
    %c0_59 = arith.constant 0 : index
    %48 = vector.load %arg2[%c6, %c0_58, %c0_59] : memref<9x4x8xf32, #tpu.memory_space<vmem>>, vector<1x4x8xf32>
    %49 = vector.shape_cast %48 : vector<1x4x8xf32> to vector<4x8xf32>
    %cst_60 = arith.constant dense<0.000000e+00> : vector<256x8xf32>
    %50 = tpu.matmul %47, %49, %cst_60 {dimension_numbers = #tpu.dot_dimension_numbers<[1], [0], [0], [1], [0, 0, 1, 1], [], []>} : vector<256x4xf32>, vector<4x8xf32>, vector<256x8xf32> -> vector<256x8xf32>
    %51 = arith.addf %45, %50 : vector<256x8xf32>
    %c2_61 = arith.constant 2 : index
    %c1_62 = arith.constant 1 : index
    %c0_63 = arith.constant 0 : index
    %52 = vector.load %arg9[%c2_61, %c1_62, %c0_63] : memref<18x18x4xf32, #tpu.memory_space<vmem>>, vector<16x16x4xf32>
    %53 = vector.shape_cast %52 : vector<16x16x4xf32> to vector<256x4xf32>
    %c7 = arith.constant 7 : index
    %c0_64 = arith.constant 0 : index
    %c0_65 = arith.constant 0 : index
    %54 = vector.load %arg2[%c7, %c0_64, %c0_65] : memref<9x4x8xf32, #tpu.memory_space<vmem>>, vector<1x4x8xf32>
    %55 = vector.shape_cast %54 : vector<1x4x8xf32> to vector<4x8xf32>
    %cst_66 = arith.constant dense<0.000000e+00> : vector<256x8xf32>
    %56 = tpu.matmul %53, %55, %cst_66 {dimension_numbers = #tpu.dot_dimension_numbers<[1], [0], [0], [1], [0, 0, 1, 1], [], []>} : vector<256x4xf32>, vector<4x8xf32>, vector<256x8xf32> -> vector<256x8xf32>
    %57 = arith.addf %51, %56 : vector<256x8xf32>
    %c2_67 = arith.constant 2 : index
    %c2_68 = arith.constant 2 : index
    %c0_69 = arith.constant 0 : index
    %58 = vector.load %arg9[%c2_67, %c2_68, %c0_69] : memref<18x18x4xf32, #tpu.memory_space<vmem>>, vector<16x16x4xf32>
    %59 = vector.shape_cast %58 : vector<16x16x4xf32> to vector<256x4xf32>
    %c8 = arith.constant 8 : index
    %c0_70 = arith.constant 0 : index
    %c0_71 = arith.constant 0 : index
    %60 = vector.load %arg2[%c8, %c0_70, %c0_71] : memref<9x4x8xf32, #tpu.memory_space<vmem>>, vector<1x4x8xf32>
    %61 = vector.shape_cast %60 : vector<1x4x8xf32> to vector<4x8xf32>
    %cst_72 = arith.constant dense<0.000000e+00> : vector<256x8xf32>
    %62 = tpu.matmul %59, %61, %cst_72 {dimension_numbers = #tpu.dot_dimension_numbers<[1], [0], [0], [1], [0, 0, 1, 1], [], []>} : vector<256x4xf32>, vector<4x8xf32>, vector<256x8xf32> -> vector<256x8xf32>
    %63 = arith.addf %57, %62 : vector<256x8xf32>
    %c0_73 = arith.constant 0 : index
    %c0_74 = arith.constant 0 : index
    %64 = vector.load %arg3[%c0_73, %c0_74] : memref<1x8xf32, #tpu.memory_space<vmem>>, vector<1x8xf32>
    %65 = vector.broadcast %64 : vector<1x8xf32> to vector<256x8xf32>
    %66 = arith.addf %63, %65 : vector<256x8xf32>
    %cst_75 = arith.constant 0.000000e+00 : f32
    %67 = vector.broadcast %cst_75 : f32 to vector<256x8xf32>
    %68 = arith.maximumf %66, %67 : vector<256x8xf32>
    %69 = vector.shape_cast %68 : vector<256x8xf32> to vector<16x16x8xf32>
    %c1_76 = arith.constant 1 : index
    %c1_77 = arith.constant 1 : index
    %c0_78 = arith.constant 0 : index
    %70 = vector.load %arg10[%c1_76, %c1_77, %c0_78] : memref<18x18x8xf32, #tpu.memory_space<vmem>>, vector<16x16x8xf32>
    tpu.vector_store %arg10[%c1_76, %c1_77, %c0_78], %69 {strides = array<i32>} : memref<18x18x8xf32, #tpu.memory_space<vmem>>, vector<16x16x8xf32>,
    %cst_79 = arith.constant 0.000000e+00 : f32
    %71 = vector.broadcast %cst_79 : f32 to vector<256x8xf32>
    %c0_80 = arith.constant 0 : index
    %c0_81 = arith.constant 0 : index
    %c0_82 = arith.constant 0 : index
    %72 = vector.load %arg10[%c0_80, %c0_81, %c0_82] : memref<18x18x8xf32, #tpu.memory_space<vmem>>, vector<16x16x8xf32>
    %73 = vector.shape_cast %72 : vector<16x16x8xf32> to vector<256x8xf32>
    %c0_83 = arith.constant 0 : index
    %c0_84 = arith.constant 0 : index
    %c0_85 = arith.constant 0 : index
    %74 = vector.load %arg4[%c0_83, %c0_84, %c0_85] : memref<9x8x8xf32, #tpu.memory_space<vmem>>, vector<1x8x8xf32>
    %75 = vector.shape_cast %74 : vector<1x8x8xf32> to vector<8x8xf32>
    %cst_86 = arith.constant dense<0.000000e+00> : vector<256x8xf32>
    %76 = tpu.matmul %73, %75, %cst_86 {dimension_numbers = #tpu.dot_dimension_numbers<[1], [0], [0], [1], [0, 0, 1, 1], [], []>} : vector<256x8xf32>, vector<8x8xf32>, vector<256x8xf32> -> vector<256x8xf32>
    %77 = arith.addf %71, %76 : vector<256x8xf32>
    %c0_87 = arith.constant 0 : index
    %c1_88 = arith.constant 1 : index
    %c0_89 = arith.constant 0 : index
    %78 = vector.load %arg10[%c0_87, %c1_88, %c0_89] : memref<18x18x8xf32, #tpu.memory_space<vmem>>, vector<16x16x8xf32>
    %79 = vector.shape_cast %78 : vector<16x16x8xf32> to vector<256x8xf32>
    %c1_90 = arith.constant 1 : index
    %c0_91 = arith.constant 0 : index
    %c0_92 = arith.constant 0 : index
    %80 = vector.load %arg4[%c1_90, %c0_91, %c0_92] : memref<9x8x8xf32, #tpu.memory_space<vmem>>, vector<1x8x8xf32>
    %81 = vector.shape_cast %80 : vector<1x8x8xf32> to vector<8x8xf32>
    %cst_93 = arith.constant dense<0.000000e+00> : vector<256x8xf32>
    %82 = tpu.matmul %79, %81, %cst_93 {dimension_numbers = #tpu.dot_dimension_numbers<[1], [0], [0], [1], [0, 0, 1, 1], [], []>} : vector<256x8xf32>, vector<8x8xf32>, vector<256x8xf32> -> vector<256x8xf32>
    %83 = arith.addf %77, %82 : vector<256x8xf32>
    %c0_94 = arith.constant 0 : index
    %c2_95 = arith.constant 2 : index
    %c0_96 = arith.constant 0 : index
    %84 = vector.load %arg10[%c0_94, %c2_95, %c0_96] : memref<18x18x8xf32, #tpu.memory_space<vmem>>, vector<16x16x8xf32>
    %85 = vector.shape_cast %84 : vector<16x16x8xf32> to vector<256x8xf32>
    %c2_97 = arith.constant 2 : index
    %c0_98 = arith.constant 0 : index
    %c0_99 = arith.constant 0 : index
    %86 = vector.load %arg4[%c2_97, %c0_98, %c0_99] : memref<9x8x8xf32, #tpu.memory_space<vmem>>, vector<1x8x8xf32>
    %87 = vector.shape_cast %86 : vector<1x8x8xf32> to vector<8x8xf32>
    %cst_100 = arith.constant dense<0.000000e+00> : vector<256x8xf32>
    %88 = tpu.matmul %85, %87, %cst_100 {dimension_numbers = #tpu.dot_dimension_numbers<[1], [0], [0], [1], [0, 0, 1, 1], [], []>} : vector<256x8xf32>, vector<8x8xf32>, vector<256x8xf32> -> vector<256x8xf32>
    %89 = arith.addf %83, %88 : vector<256x8xf32>
    %c1_101 = arith.constant 1 : index
    %c0_102 = arith.constant 0 : index
    %c0_103 = arith.constant 0 : index
    %90 = vector.load %arg10[%c1_101, %c0_102, %c0_103] : memref<18x18x8xf32, #tpu.memory_space<vmem>>, vector<16x16x8xf32>
    %91 = vector.shape_cast %90 : vector<16x16x8xf32> to vector<256x8xf32>
    %c3_104 = arith.constant 3 : index
    %c0_105 = arith.constant 0 : index
    %c0_106 = arith.constant 0 : index
    %92 = vector.load %arg4[%c3_104, %c0_105, %c0_106] : memref<9x8x8xf32, #tpu.memory_space<vmem>>, vector<1x8x8xf32>
    %93 = vector.shape_cast %92 : vector<1x8x8xf32> to vector<8x8xf32>
    %cst_107 = arith.constant dense<0.000000e+00> : vector<256x8xf32>
    %94 = tpu.matmul %91, %93, %cst_107 {dimension_numbers = #tpu.dot_dimension_numbers<[1], [0], [0], [1], [0, 0, 1, 1], [], []>} : vector<256x8xf32>, vector<8x8xf32>, vector<256x8xf32> -> vector<256x8xf32>
    %95 = arith.addf %89, %94 : vector<256x8xf32>
    %c1_108 = arith.constant 1 : index
    %c1_109 = arith.constant 1 : index
    %c0_110 = arith.constant 0 : index
    %96 = vector.load %arg10[%c1_108, %c1_109, %c0_110] : memref<18x18x8xf32, #tpu.memory_space<vmem>>, vector<16x16x8xf32>
    %97 = vector.shape_cast %96 : vector<16x16x8xf32> to vector<256x8xf32>
    %c4_111 = arith.constant 4 : index
    %c0_112 = arith.constant 0 : index
    %c0_113 = arith.constant 0 : index
    %98 = vector.load %arg4[%c4_111, %c0_112, %c0_113] : memref<9x8x8xf32, #tpu.memory_space<vmem>>, vector<1x8x8xf32>
    %99 = vector.shape_cast %98 : vector<1x8x8xf32> to vector<8x8xf32>
    %cst_114 = arith.constant dense<0.000000e+00> : vector<256x8xf32>
    %100 = tpu.matmul %97, %99, %cst_114 {dimension_numbers = #tpu.dot_dimension_numbers<[1], [0], [0], [1], [0, 0, 1, 1], [], []>} : vector<256x8xf32>, vector<8x8xf32>, vector<256x8xf32> -> vector<256x8xf32>
    %101 = arith.addf %95, %100 : vector<256x8xf32>
    %c1_115 = arith.constant 1 : index
    %c2_116 = arith.constant 2 : index
    %c0_117 = arith.constant 0 : index
    %102 = vector.load %arg10[%c1_115, %c2_116, %c0_117] : memref<18x18x8xf32, #tpu.memory_space<vmem>>, vector<16x16x8xf32>
    %103 = vector.shape_cast %102 : vector<16x16x8xf32> to vector<256x8xf32>
    %c5_118 = arith.constant 5 : index
    %c0_119 = arith.constant 0 : index
    %c0_120 = arith.constant 0 : index
    %104 = vector.load %arg4[%c5_118, %c0_119, %c0_120] : memref<9x8x8xf32, #tpu.memory_space<vmem>>, vector<1x8x8xf32>
    %105 = vector.shape_cast %104 : vector<1x8x8xf32> to vector<8x8xf32>
    %cst_121 = arith.constant dense<0.000000e+00> : vector<256x8xf32>
    %106 = tpu.matmul %103, %105, %cst_121 {dimension_numbers = #tpu.dot_dimension_numbers<[1], [0], [0], [1], [0, 0, 1, 1], [], []>} : vector<256x8xf32>, vector<8x8xf32>, vector<256x8xf32> -> vector<256x8xf32>
    %107 = arith.addf %101, %106 : vector<256x8xf32>
    %c2_122 = arith.constant 2 : index
    %c0_123 = arith.constant 0 : index
    %c0_124 = arith.constant 0 : index
    %108 = vector.load %arg10[%c2_122, %c0_123, %c0_124] : memref<18x18x8xf32, #tpu.memory_space<vmem>>, vector<16x16x8xf32>
    %109 = vector.shape_cast %108 : vector<16x16x8xf32> to vector<256x8xf32>
    %c6_125 = arith.constant 6 : index
    %c0_126 = arith.constant 0 : index
    %c0_127 = arith.constant 0 : index
    %110 = vector.load %arg4[%c6_125, %c0_126, %c0_127] : memref<9x8x8xf32, #tpu.memory_space<vmem>>, vector<1x8x8xf32>
    %111 = vector.shape_cast %110 : vector<1x8x8xf32> to vector<8x8xf32>
    %cst_128 = arith.constant dense<0.000000e+00> : vector<256x8xf32>
    %112 = tpu.matmul %109, %111, %cst_128 {dimension_numbers = #tpu.dot_dimension_numbers<[1], [0], [0], [1], [0, 0, 1, 1], [], []>} : vector<256x8xf32>, vector<8x8xf32>, vector<256x8xf32> -> vector<256x8xf32>
    %113 = arith.addf %107, %112 : vector<256x8xf32>
    %c2_129 = arith.constant 2 : index
    %c1_130 = arith.constant 1 : index
    %c0_131 = arith.constant 0 : index
    %114 = vector.load %arg10[%c2_129, %c1_130, %c0_131] : memref<18x18x8xf32, #tpu.memory_space<vmem>>, vector<16x16x8xf32>
    %115 = vector.shape_cast %114 : vector<16x16x8xf32> to vector<256x8xf32>
    %c7_132 = arith.constant 7 : index
    %c0_133 = arith.constant 0 : index
    %c0_134 = arith.constant 0 : index
    %116 = vector.load %arg4[%c7_132, %c0_133, %c0_134] : memref<9x8x8xf32, #tpu.memory_space<vmem>>, vector<1x8x8xf32>
    %117 = vector.shape_cast %116 : vector<1x8x8xf32> to vector<8x8xf32>
    %cst_135 = arith.constant dense<0.000000e+00> : vector<256x8xf32>
    %118 = tpu.matmul %115, %117, %cst_135 {dimension_numbers = #tpu.dot_dimension_numbers<[1], [0], [0], [1], [0, 0, 1, 1], [], []>} : vector<256x8xf32>, vector<8x8xf32>, vector<256x8xf32> -> vector<256x8xf32>
    %119 = arith.addf %113, %118 : vector<256x8xf32>
    %c2_136 = arith.constant 2 : index
    %c2_137 = arith.constant 2 : index
    %c0_138 = arith.constant 0 : index
    %120 = vector.load %arg10[%c2_136, %c2_137, %c0_138] : memref<18x18x8xf32, #tpu.memory_space<vmem>>, vector<16x16x8xf32>
    %121 = vector.shape_cast %120 : vector<16x16x8xf32> to vector<256x8xf32>
    %c8_139 = arith.constant 8 : index
    %c0_140 = arith.constant 0 : index
    %c0_141 = arith.constant 0 : index
    %122 = vector.load %arg4[%c8_139, %c0_140, %c0_141] : memref<9x8x8xf32, #tpu.memory_space<vmem>>, vector<1x8x8xf32>
    %123 = vector.shape_cast %122 : vector<1x8x8xf32> to vector<8x8xf32>
    %cst_142 = arith.constant dense<0.000000e+00> : vector<256x8xf32>
    %124 = tpu.matmul %121, %123, %cst_142 {dimension_numbers = #tpu.dot_dimension_numbers<[1], [0], [0], [1], [0, 0, 1, 1], [], []>} : vector<256x8xf32>, vector<8x8xf32>, vector<256x8xf32> -> vector<256x8xf32>
    %125 = arith.addf %119, %124 : vector<256x8xf32>
    %c0_143 = arith.constant 0 : index
    %c0_144 = arith.constant 0 : index
    %126 = vector.load %arg5[%c0_143, %c0_144] : memref<1x8xf32, #tpu.memory_space<vmem>>, vector<1x8xf32>
    %127 = vector.broadcast %126 : vector<1x8xf32> to vector<256x8xf32>
    %128 = arith.addf %125, %127 : vector<256x8xf32>
    %cst_145 = arith.constant 0.000000e+00 : f32
    %129 = vector.broadcast %cst_145 : f32 to vector<256x8xf32>
    %130 = arith.maximumf %128, %129 : vector<256x8xf32>
    %131 = vector.shape_cast %130 : vector<256x8xf32> to vector<16x16x8xf32>
    %c1_146 = arith.constant 1 : index
    %c1_147 = arith.constant 1 : index
    %c0_148 = arith.constant 0 : index
    %132 = vector.load %arg11[%c1_146, %c1_147, %c0_148] : memref<18x18x8xf32, #tpu.memory_space<vmem>>, vector<16x16x8xf32>
    tpu.vector_store %arg11[%c1_146, %c1_147, %c0_148], %131 {strides = array<i32>} : memref<18x18x8xf32, #tpu.memory_space<vmem>>, vector<16x16x8xf32>,
    %cst_149 = arith.constant 0.000000e+00 : f32
    %133 = vector.broadcast %cst_149 : f32 to vector<1x256xf32>
    %c0_150 = arith.constant 0 : index
    %c0_151 = arith.constant 0 : index
    %c0_152 = arith.constant 0 : index
    %134 = vector.load %arg11[%c0_150, %c0_151, %c0_152] : memref<18x18x8xf32, #tpu.memory_space<vmem>>, vector<16x16x8xf32>
    %135 = vector.shape_cast %134 : vector<16x16x8xf32> to vector<256x8xf32>
    %c0_153 = arith.constant 0 : index
    %c0_154 = arith.constant 0 : index
    %c0_155 = arith.constant 0 : index
    %136 = vector.load %arg6[%c0_153, %c0_154, %c0_155] : memref<9x1x8xf32, #tpu.memory_space<vmem>>, vector<1x1x8xf32>
    %137 = vector.shape_cast %136 : vector<1x1x8xf32> to vector<1x8xf32>
    %cst_156 = arith.constant dense<0.000000e+00> : vector<1x256xf32>
    %138 = tpu.matmul %137, %135, %cst_156 {dimension_numbers = #tpu.dot_dimension_numbers<[1], [1], [0], [0], [0, 0, 1, 0], [], []>} : vector<1x8xf32>, vector<256x8xf32>, vector<1x256xf32> -> vector<1x256xf32>
    %139 = arith.addf %133, %138 : vector<1x256xf32>
    %c0_157 = arith.constant 0 : index
    %c1_158 = arith.constant 1 : index
    %c0_159 = arith.constant 0 : index
    %140 = vector.load %arg11[%c0_157, %c1_158, %c0_159] : memref<18x18x8xf32, #tpu.memory_space<vmem>>, vector<16x16x8xf32>
    %141 = vector.shape_cast %140 : vector<16x16x8xf32> to vector<256x8xf32>
    %c1_160 = arith.constant 1 : index
    %c0_161 = arith.constant 0 : index
    %c0_162 = arith.constant 0 : index
    %142 = vector.load %arg6[%c1_160, %c0_161, %c0_162] : memref<9x1x8xf32, #tpu.memory_space<vmem>>, vector<1x1x8xf32>
    %143 = vector.shape_cast %142 : vector<1x1x8xf32> to vector<1x8xf32>
    %cst_163 = arith.constant dense<0.000000e+00> : vector<1x256xf32>
    %144 = tpu.matmul %143, %141, %cst_163 {dimension_numbers = #tpu.dot_dimension_numbers<[1], [1], [0], [0], [0, 0, 1, 0], [], []>} : vector<1x8xf32>, vector<256x8xf32>, vector<1x256xf32> -> vector<1x256xf32>
    %145 = arith.addf %139, %144 : vector<1x256xf32>
    %c0_164 = arith.constant 0 : index
    %c2_165 = arith.constant 2 : index
    %c0_166 = arith.constant 0 : index
    %146 = vector.load %arg11[%c0_164, %c2_165, %c0_166] : memref<18x18x8xf32, #tpu.memory_space<vmem>>, vector<16x16x8xf32>
    %147 = vector.shape_cast %146 : vector<16x16x8xf32> to vector<256x8xf32>
    %c2_167 = arith.constant 2 : index
    %c0_168 = arith.constant 0 : index
    %c0_169 = arith.constant 0 : index
    %148 = vector.load %arg6[%c2_167, %c0_168, %c0_169] : memref<9x1x8xf32, #tpu.memory_space<vmem>>, vector<1x1x8xf32>
    %149 = vector.shape_cast %148 : vector<1x1x8xf32> to vector<1x8xf32>
    %cst_170 = arith.constant dense<0.000000e+00> : vector<1x256xf32>
    %150 = tpu.matmul %149, %147, %cst_170 {dimension_numbers = #tpu.dot_dimension_numbers<[1], [1], [0], [0], [0, 0, 1, 0], [], []>} : vector<1x8xf32>, vector<256x8xf32>, vector<1x256xf32> -> vector<1x256xf32>
    %151 = arith.addf %145, %150 : vector<1x256xf32>
    %c1_171 = arith.constant 1 : index
    %c0_172 = arith.constant 0 : index
    %c0_173 = arith.constant 0 : index
    %152 = vector.load %arg11[%c1_171, %c0_172, %c0_173] : memref<18x18x8xf32, #tpu.memory_space<vmem>>, vector<16x16x8xf32>
    %153 = vector.shape_cast %152 : vector<16x16x8xf32> to vector<256x8xf32>
    %c3_174 = arith.constant 3 : index
    %c0_175 = arith.constant 0 : index
    %c0_176 = arith.constant 0 : index
    %154 = vector.load %arg6[%c3_174, %c0_175, %c0_176] : memref<9x1x8xf32, #tpu.memory_space<vmem>>, vector<1x1x8xf32>
    %155 = vector.shape_cast %154 : vector<1x1x8xf32> to vector<1x8xf32>
    %cst_177 = arith.constant dense<0.000000e+00> : vector<1x256xf32>
    %156 = tpu.matmul %155, %153, %cst_177 {dimension_numbers = #tpu.dot_dimension_numbers<[1], [1], [0], [0], [0, 0, 1, 0], [], []>} : vector<1x8xf32>, vector<256x8xf32>, vector<1x256xf32> -> vector<1x256xf32>
    %157 = arith.addf %151, %156 : vector<1x256xf32>
    %c1_178 = arith.constant 1 : index
    %c1_179 = arith.constant 1 : index
    %c0_180 = arith.constant 0 : index
    %158 = vector.load %arg11[%c1_178, %c1_179, %c0_180] : memref<18x18x8xf32, #tpu.memory_space<vmem>>, vector<16x16x8xf32>
    %159 = vector.shape_cast %158 : vector<16x16x8xf32> to vector<256x8xf32>
    %c4_181 = arith.constant 4 : index
    %c0_182 = arith.constant 0 : index
    %c0_183 = arith.constant 0 : index
    %160 = vector.load %arg6[%c4_181, %c0_182, %c0_183] : memref<9x1x8xf32, #tpu.memory_space<vmem>>, vector<1x1x8xf32>
    %161 = vector.shape_cast %160 : vector<1x1x8xf32> to vector<1x8xf32>
    %cst_184 = arith.constant dense<0.000000e+00> : vector<1x256xf32>
    %162 = tpu.matmul %161, %159, %cst_184 {dimension_numbers = #tpu.dot_dimension_numbers<[1], [1], [0], [0], [0, 0, 1, 0], [], []>} : vector<1x8xf32>, vector<256x8xf32>, vector<1x256xf32> -> vector<1x256xf32>
    %163 = arith.addf %157, %162 : vector<1x256xf32>
    %c1_185 = arith.constant 1 : index
    %c2_186 = arith.constant 2 : index
    %c0_187 = arith.constant 0 : index
    %164 = vector.load %arg11[%c1_185, %c2_186, %c0_187] : memref<18x18x8xf32, #tpu.memory_space<vmem>>, vector<16x16x8xf32>
    %165 = vector.shape_cast %164 : vector<16x16x8xf32> to vector<256x8xf32>
    %c5_188 = arith.constant 5 : index
    %c0_189 = arith.constant 0 : index
    %c0_190 = arith.constant 0 : index
    %166 = vector.load %arg6[%c5_188, %c0_189, %c0_190] : memref<9x1x8xf32, #tpu.memory_space<vmem>>, vector<1x1x8xf32>
    %167 = vector.shape_cast %166 : vector<1x1x8xf32> to vector<1x8xf32>
    %cst_191 = arith.constant dense<0.000000e+00> : vector<1x256xf32>
    %168 = tpu.matmul %167, %165, %cst_191 {dimension_numbers = #tpu.dot_dimension_numbers<[1], [1], [0], [0], [0, 0, 1, 0], [], []>} : vector<1x8xf32>, vector<256x8xf32>, vector<1x256xf32> -> vector<1x256xf32>
    %169 = arith.addf %163, %168 : vector<1x256xf32>
    %c2_192 = arith.constant 2 : index
    %c0_193 = arith.constant 0 : index
    %c0_194 = arith.constant 0 : index
    %170 = vector.load %arg11[%c2_192, %c0_193, %c0_194] : memref<18x18x8xf32, #tpu.memory_space<vmem>>, vector<16x16x8xf32>
    %171 = vector.shape_cast %170 : vector<16x16x8xf32> to vector<256x8xf32>
    %c6_195 = arith.constant 6 : index
    %c0_196 = arith.constant 0 : index
    %c0_197 = arith.constant 0 : index
    %172 = vector.load %arg6[%c6_195, %c0_196, %c0_197] : memref<9x1x8xf32, #tpu.memory_space<vmem>>, vector<1x1x8xf32>
    %173 = vector.shape_cast %172 : vector<1x1x8xf32> to vector<1x8xf32>
    %cst_198 = arith.constant dense<0.000000e+00> : vector<1x256xf32>
    %174 = tpu.matmul %173, %171, %cst_198 {dimension_numbers = #tpu.dot_dimension_numbers<[1], [1], [0], [0], [0, 0, 1, 0], [], []>} : vector<1x8xf32>, vector<256x8xf32>, vector<1x256xf32> -> vector<1x256xf32>
    %175 = arith.addf %169, %174 : vector<1x256xf32>
    %c2_199 = arith.constant 2 : index
    %c1_200 = arith.constant 1 : index
    %c0_201 = arith.constant 0 : index
    %176 = vector.load %arg11[%c2_199, %c1_200, %c0_201] : memref<18x18x8xf32, #tpu.memory_space<vmem>>, vector<16x16x8xf32>
    %177 = vector.shape_cast %176 : vector<16x16x8xf32> to vector<256x8xf32>
    %c7_202 = arith.constant 7 : index
    %c0_203 = arith.constant 0 : index
    %c0_204 = arith.constant 0 : index
    %178 = vector.load %arg6[%c7_202, %c0_203, %c0_204] : memref<9x1x8xf32, #tpu.memory_space<vmem>>, vector<1x1x8xf32>
    %179 = vector.shape_cast %178 : vector<1x1x8xf32> to vector<1x8xf32>
    %cst_205 = arith.constant dense<0.000000e+00> : vector<1x256xf32>
    %180 = tpu.matmul %179, %177, %cst_205 {dimension_numbers = #tpu.dot_dimension_numbers<[1], [1], [0], [0], [0, 0, 1, 0], [], []>} : vector<1x8xf32>, vector<256x8xf32>, vector<1x256xf32> -> vector<1x256xf32>
    %181 = arith.addf %175, %180 : vector<1x256xf32>
    %c2_206 = arith.constant 2 : index
    %c2_207 = arith.constant 2 : index
    %c0_208 = arith.constant 0 : index
    %182 = vector.load %arg11[%c2_206, %c2_207, %c0_208] : memref<18x18x8xf32, #tpu.memory_space<vmem>>, vector<16x16x8xf32>
    %183 = vector.shape_cast %182 : vector<16x16x8xf32> to vector<256x8xf32>
    %c8_209 = arith.constant 8 : index
    %c0_210 = arith.constant 0 : index
    %c0_211 = arith.constant 0 : index
    %184 = vector.load %arg6[%c8_209, %c0_210, %c0_211] : memref<9x1x8xf32, #tpu.memory_space<vmem>>, vector<1x1x8xf32>
    %185 = vector.shape_cast %184 : vector<1x1x8xf32> to vector<1x8xf32>
    %cst_212 = arith.constant dense<0.000000e+00> : vector<1x256xf32>
    %186 = tpu.matmul %185, %183, %cst_212 {dimension_numbers = #tpu.dot_dimension_numbers<[1], [1], [0], [0], [0, 0, 1, 0], [], []>} : vector<1x8xf32>, vector<256x8xf32>, vector<1x256xf32> -> vector<1x256xf32>
    %187 = arith.addf %181, %186 : vector<1x256xf32>
    %c0_213 = arith.constant 0 : index
    %c0_214 = arith.constant 0 : index
    %188 = vector.load %arg7[%c0_213, %c0_214] : memref<1x1xf32, #tpu.memory_space<vmem>>, vector<1x1xf32>
    %189 = vector.broadcast %188 : vector<1x1xf32> to vector<1x256xf32>
    %190 = arith.addf %187, %189 : vector<1x256xf32>
    %191 = vector.shape_cast %190 : vector<1x256xf32> to vector<1x1x256xf32>
    %c0_215 = arith.constant 0 : index
    %c0_216 = arith.constant 0 : index
    %c0_217 = arith.constant 0 : index
    %192 = vector.load %arg8[%c0_215, %c0_216, %c0_217] : memref<1x1x256xf32, #tpu.memory_space<vmem>>, vector<1x1x256xf32>
    tpu.vector_store %arg8[%c0_215, %c0_216, %c0_217], %191 {strides = array<i32>} : memref<1x1x256xf32, #tpu.memory_space<vmem>>, vector<1x1x256xf32>,
    return
  }
  func.func @transform_0(%arg0: i32) -> (i32, i32, i32, i32) {
    %c0_i32 = arith.constant 0 : i32
    %c0_i32_0 = arith.constant 0 : i32
    %c0_i32_1 = arith.constant 0 : i32
    %c0_i32_2 = arith.constant 0 : i32
    return %arg0, %c0_i32, %c0_i32_0, %c0_i32_1 : i32, i32, i32, i32
  }
  func.func @transform_1(%arg0: i32) -> (i32, i32, i32) {
    %c0_i32 = arith.constant 0 : i32
    %c0_i32_0 = arith.constant 0 : i32
    %c0_i32_1 = arith.constant 0 : i32
    %c0_i32_2 = arith.constant 0 : i32
    return %c0_i32, %c0_i32_0, %c0_i32_1 : i32, i32, i32
  }
  func.func @transform_2(%arg0: i32) -> (i32, i32) {
    %c0_i32 = arith.constant 0 : i32
    %c0_i32_0 = arith.constant 0 : i32
    %c0_i32_1 = arith.constant 0 : i32
    return %c0_i32, %c0_i32_0 : i32, i32
  }
  func.func @transform_3(%arg0: i32) -> (i32, i32, i32) {
    %c0_i32 = arith.constant 0 : i32
    %c0_i32_0 = arith.constant 0 : i32
    %c0_i32_1 = arith.constant 0 : i32
    %c0_i32_2 = arith.constant 0 : i32
    return %c0_i32, %c0_i32_0, %c0_i32_1 : i32, i32, i32
  }
  func.func @transform_4(%arg0: i32) -> (i32, i32) {
    %c0_i32 = arith.constant 0 : i32
    %c0_i32_0 = arith.constant 0 : i32
    %c0_i32_1 = arith.constant 0 : i32
    return %c0_i32, %c0_i32_0 : i32, i32
  }
  func.func @transform_5(%arg0: i32) -> (i32, i32, i32) {
    %c0_i32 = arith.constant 0 : i32
    %c0_i32_0 = arith.constant 0 : i32
    %c0_i32_1 = arith.constant 0 : i32
    %c0_i32_2 = arith.constant 0 : i32
    return %c0_i32, %c0_i32_0, %c0_i32_1 : i32, i32, i32
  }
  func.func @transform_6(%arg0: i32) -> (i32, i32) {
    %c0_i32 = arith.constant 0 : i32
    %c0_i32_0 = arith.constant 0 : i32
    %c0_i32_1 = arith.constant 0 : i32
    return %c0_i32, %c0_i32_0 : i32, i32
  }
  func.func @transform_7(%arg0: i32) -> (i32, i32, i32) {
    %c0_i32 = arith.constant 0 : i32
    %c0_i32_0 = arith.constant 0 : i32
    %c0_i32_1 = arith.constant 0 : i32
    return %arg0, %c0_i32, %c0_i32_0 : i32, i32, i32
  }
}

</mosaic_0001>

<bundles_post_ra>
// kernel: tpu_custom_call.1
= control target key start
LH: loop header
LB: loop body
LE: loop exit
PB: predicated region body
PF: predicated region fallthrough
CT: control target
= control target key end

     0   :  { %s16573_s0 = inlined_call_operand.vmem [shape: f32[2,16,16,4], index: 0, kind: input, shape index: {}]   ;;  %s16574_s1 = inlined_call_operand.vmem [shape: f32[9,4,8], index: 1, kind: input, shape index: {}]   ;;  %s16575_s2 = inlined_call_operand.vmem [shape: f32[1,8], index: 2, kind: input, shape index: {}]   ;;  %s16576_s3 = inlined_call_operand.vmem [shape: f32[9,8,8], index: 3, kind: input, shape index: {}]   ;;  %s16577_s4 = inlined_call_operand.vmem [shape: f32[1,8], index: 4, kind: input, shape index: {}]   ;;  %s16578_s5 = inlined_call_operand.vmem [shape: f32[9,1,8], index: 5, kind: input, shape index: {}]   ;;  %s16579_s6 = inlined_call_operand.<no memory space> [shape: f32[1,1], index: 6, kind: input, shape index: {}]   ;;  %s16580_s7 = inlined_call_operand.hbm [shape: f32[2,1,256], index: 7, kind: output, shape index: {}]  }
   0x1   :  { %v12_v0 = vstv %s16579_s6 }
   0x2   :  { %13 = vst [vmem:[#allocation5] sm:$0x1] %v12_v0 }
   0x3   :  { %14 = vsyncpa [#allocation7], 0 }
   0x4   :  { %16 = vsyncpa [#allocation7 + $0x1], 0  ;;  %s12420_s26 = smov 0   ;;  %s12422_s27 = smov 0  }
   0x5   :  { %s12424_s28 = smov 0   ;;  %s12426_s29 = smov 0  }
   0x6 LB: > { %s12441_s6 = sadd.s32 4294967295, %s12371_s29   ;;  %s9543_s30 = sadd.s32 4294967294, %s12371_s29   ;;  %s12371_s29 = sphi %s12426_s29, %s17204_s29   ;;  %s12367_s28 = sphi %s12424_s28, %s17203_s28   ;;  %s12363_s27 = sphi %s12422_s27, %s17202_s27   ;;  %s12359_s26 = sphi %s12420_s26, %s17201_s26  }
   0x7   : > { %s12445_s8 = sadd.s32 1, %s12371_s29   ;;  %s181_s9 = sadd.s32 1, %s12367_s28 }
   0x8   : > { %s178_s10 = ssub.s32 %s12371_s29, %s12445_s8  ;;  %p191_p0 = scmp.ne.s32.totalorder %s12367_s28, %s12363_s27 }
   0x9   : > { %p179_p1 = scmp.eq.s32.totalorder %s178_s10, 0  ;;  %p192_p2 = scmp.eq.s32.totalorder %s12441_s6, 1 }
   0xa   : > { %p197_p3 = scmp.ne.s32.totalorder %s12363_s27, %s12359_s26  ;;  %p198_p4 = scmp.eq.s32.totalorder %s9543_s30, 1 }
   0xb   : > { %s12456_s11 = scalar_select %p179_p1, %s12367_s28, %s181_s9  }
   0xc   : > { %p12458_p5 = por %p192_p2, %p191_p0  ;;  %p12462_p6 = por %p198_p4, %p197_p3 }
   0xd   : > { %p9546_p7 = scmp.ge.s32.totalorder %s12371_s29, 1  ;;  %p242_p8 = scmp.lt.s32.totalorder %s12371_s29, 3 }
   0xf   : > { %p243_p9 = pnand %p9546_p7, %p242_p8 }
  0x11   : > { %246 = sbr.rel (%p243_p9) target bundleno = 1580 (0x62c), region = 48 }
  0x16   : > { %v9550_v1 = vld [vmem:[%s16574_s1 + $0x4] sm:$0xf]  ;;  %vm673_vm0 = vcmask 1043456   ;;  %vm279_vm1 = vcmask 31744   ;;  %p274_p10 = scmp.lt.s32.totalorder %s12441_s6, 1  ;;  %v16581_v2 = vmov 0.0  }
  0x17   : > { %12265 = vmatprep.subr.msk.mxu1 %vm673_vm0, %v9550_v1  ;;  %11365 = vmatprep.subr.msk.mxu0 %vm673_vm0, %v9550_v1  ;;  %280 = vst.msk [vmem:[#allocation2] sm:$0xff] %vm279_vm1, %v16581_v2  ;;  %281 = vst.msk [vmem:[#allocation2 + $0x8] sm:$0xff] %vm279_vm1, %v16581_v2  ;;  %v12549_v3 = vld [vmem:[%s16574_s1] sm:$0xf]  ;;  %vm282_vm2 = vcmask 25600   ;;  %vm335_vm3 = vcmask 64512  }
  0x18   : > { %284 = vst.msk [vmem:[#allocation2 + $0x18] sm:$0xff] %vm279_vm1, %v16581_v2  ;;  %285 = vst.msk [vmem:[#allocation2 + $0x20] sm:$0xff] %vm279_vm1, %v16581_v2  ;;  %v9617_v4 = vld [vmem:[%s16574_s1 + $0x8] sm:$0xf]  ;;  %12266 = vmatpush3.msk.msra.mxu1 %vm673_vm0, %v9550_v1  ;;  %11366 = vmatpush3.msk.msra.mxu0 %vm673_vm0, %v9550_v1  ;;  %s275_s20 = scalar_select %p274_p10, %s12441_s6, 1  ;;  %vm338_vm4 = vcmask 58368  }
  0x19   : > { %287 = vst.msk [vmem:[#allocation2 + $0x30] sm:$0xff] %vm279_vm1, %v16581_v2  ;;  %288 = vst.msk [vmem:[#allocation2 + $0x38] sm:$0xff] %vm279_vm1, %v16581_v2  ;;  %11415 = vmatprep.subr.msk.mxu1 %vm673_vm0, %v12549_v3  ;;  %11465 = vmatprep.subr.msk.mxu0 %vm673_vm0, %v9617_v4  ;;  %v12615_v11 = vld [vmem:[%s16574_s1 + $0x10] sm:$0xf]  ;;  %v12674_v35 = vld [vmem:[%s16574_s1 + $0xc] sm:$0xf] }
  0x1a   : > { %290 = vst.msk [vmem:[#allocation2 + $0x48] sm:$0xff] %vm279_vm1, %v16581_v2  ;;  %291 = vst.msk [vmem:[#allocation2 + $0x50] sm:$0xff] %vm279_vm1, %v16581_v2  ;;  %s10463_s21 = sshll.u32 %s275_s20, 8  ;;  %s271_s19 = sand.u32 1, %s12363_s27  }
  0x1b   : > { %293 = vst.msk [vmem:[#allocation2 + $0x60] sm:$0xff] %vm279_vm1, %v16581_v2  ;;  %294 = vst.msk [vmem:[#allocation2 + $0x68] sm:$0xff] %vm279_vm1, %v16581_v2  ;;  %s12601_s24 = scalar_lea.vmem %s16573_s0, %s10463_s21  ;;  %s9547_s20 = sshll.u32 %s271_s19, 1 }
  0x1c   : > { %296 = vst.msk [vmem:[#allocation2 + $0x78] sm:$0xff] %vm279_vm1, %v16581_v2  ;;  %297 = vst.msk [vmem:[#allocation2 + $0x80] sm:$0xff] %vm279_vm1, %v16581_v2  ;;  %v459_v5 = vld [vmem:[%s12601_s24 + $0x70] sm:$0xff]  ;;  %v460_v6 = vld [vmem:[%s12601_s24 + $0x78] sm:$0xff]  ;;  %s10464_s21 = sshll.u32 %s12441_s6, 5  ;;  %s273_s22 = scalar_lea.vmem [#allocation6], %s9547_s20 }
  0x1d   : > { %299 = vst.msk [vmem:[#allocation2 + $0x90] sm:$0xff] %vm279_vm1, %v16581_v2  ;;  %300 = vst.msk [vmem:[#allocation2 + $0x98] sm:$0xff] %vm279_vm1, %v16581_v2  ;;  %v445_v7 = vld [vmem:[%s12601_s24] sm:$0xff]  ;;  %v446_v9 = vld [vmem:[%s12601_s24 + $0x8] sm:$0xff]  ;;  %s9484_s23 = sshll.u32 %s273_s22, 4  ;;  %s9482_s30 = scalar_lea.hbm %s16580_s7, %s10464_s21  ;;  %s9485_s23 = int_to_ptr.vmem [resolvable:$true] %s9484_s23 }
  0x1e   : > { %302 = vst.msk [vmem:[#allocation2 + $0xa8] sm:$0xff] %vm279_vm1, %v16581_v2  ;;  %303 = vst.msk [vmem:[#allocation2 + $0xb0] sm:$0xff] %vm279_vm1, %v16581_v2  ;;  %v461_v8 = vld [vmem:[%s12601_s24 + $0x80] sm:$0xff]  ;;  %v462_v10 = vld [vmem:[%s12601_s24 + $0x88] sm:$0xff]  ;;  %s9470_s9 = scalar_lea.sflag [#allocation7], %s271_s19  ;;  %s12311_s10 = scalar_lea.vmem %s9485_s23, 32 }
  0x1f   : > { %305 = vst.msk [vmem:[#allocation2 + $0xc0] sm:$0xff] %vm279_vm1, %v16581_v2  ;;  %306 = vst.msk [vmem:[#allocation2 + $0xc8] sm:$0xff] %vm279_vm1, %v16581_v2  ;;  %v543_v12 = vld [vmem:[#allocation2 + $0x1] sm:$0xff]  ;;  %v447_v13 = vld [vmem:[%s12601_s24 + $0x10] sm:$0xff]  ;;  %p12312_p11 = scmp.ne.s32.totalorder %s9485_s23, %s12311_s10  ;;  %s12376_s14 = smov [#allocation6]  }
  0x20   : > { %308 = vst.msk [vmem:[#allocation2 + $0xd8] sm:$0xff] %vm279_vm1, %v16581_v2  ;;  %309 = vst.msk [vmem:[#allocation2 + $0xe0] sm:$0xff] %vm279_vm1, %v16581_v2  ;;  %v463_v14 = vld [vmem:[%s12601_s24 + $0x90] sm:$0xff]  ;;  %11367 = vmatprep.mubr.msk.f32.mxu0 %vm279_vm1, %v543_v12  ;;  %v448_v16 = vld [vmem:[%s12601_s24 + $0x18] sm:$0xff]  ;;  %s12315_s15 = sshll.u32 %s12376_s14, 4  ;;  %s12316_s15 = int_to_ptr.vmem [resolvable:$false] %s12315_s15 }
  0x21   : > { %311 = vst.msk [vmem:[#allocation2 + $0xf0] sm:$0xff] %vm279_vm1, %v16581_v2  ;;  %312 = vst.msk [vmem:[#allocation2 + $0xf8] sm:$0xff] %vm279_vm1, %v16581_v2  ;;  %v464_v17 = vld [vmem:[%s12601_s24 + $0x98] sm:$0xff]  ;;  %v449_v18 = vld [vmem:[%s12601_s24 + $0x20] sm:$0xff]  ;;  %p12313_p12 = pnand %p12312_p11, %p12458_p5  ;;  %s12317_s6 = scalar_lea.vmem %s12316_s15, 64 }
  0x22   : > { %314 = vst.msk [vmem:[#allocation2 + $0x108] sm:$0xff] %vm279_vm1, %v16581_v2  ;;  %315 = vst.msk [vmem:[#allocation2 + $0x110] sm:$0xff] %vm279_vm1, %v16581_v2  ;;  %v465_v19 = vld [vmem:[%s12601_s24 + $0xa0] sm:$0xff]  ;;  %v450_v20 = vld [vmem:[%s12601_s24 + $0x28] sm:$0xff]  ;;  %p12318_p0 = scmp.lt.s32.totalorder %s9485_s23, %s12316_s15  ;;  %p12319_p1 = scmp.lt.s32.totalorder %s12317_s6, %s12311_s10 }
  0x23   : > { %317 = vst.msk [vmem:[#allocation2 + $0x120] sm:$0xff] %vm279_vm1, %v16581_v2  ;;  %318 = vst.msk [vmem:[#allocation2 + $0x128] sm:$0xff] %vm279_vm1, %v16581_v2  ;;  %v466_v21 = vld [vmem:[%s12601_s24 + $0xa8] sm:$0xff]  ;;  %v451_v22 = vld [vmem:[%s12601_s24 + $0x30] sm:$0xff]  ;;  %p12314_p13 = pneg %p12313_p12 }
  0x24   : > { %320 = vst.msk [vmem:[#allocation2 + $0x138] sm:$0xff] %vm279_vm1, %v16581_v2  ;;  %321 = vst.msk [vmem:[#allocation2 + $0x140] sm:$0xff] %vm279_vm1, %v16581_v2  ;;  %v467_v23 = vld [vmem:[%s12601_s24 + $0xb0] sm:$0xff]  ;;  %v452_v24 = vld [vmem:[%s12601_s24 + $0x38] sm:$0xff]  ;;  %p12320_p2 = por %p12319_p1, %p12318_p0 }
  0x25   : > { %323 = vst.msk [vmem:[#allocation2 + $0x150] sm:$0xff] %vm279_vm1, %v16581_v2  ;;  %324 = vst.msk [vmem:[#allocation2 + $0x158] sm:$0xff] %vm279_vm1, %v16581_v2  ;;  %v468_v25 = vld [vmem:[%s12601_s24 + $0xb8] sm:$0xff]  ;;  %v453_v26 = vld [vmem:[%s12601_s24 + $0x40] sm:$0xff] }
  0x26   : > { %326 = vst.msk [vmem:[#allocation2 + $0x168] sm:$0xff] %vm279_vm1, %v16581_v2  ;;  %327 = vst.msk [vmem:[#allocation2 + $0x170] sm:$0xff] %vm279_vm1, %v16581_v2  ;;  %v469_v27 = vld [vmem:[%s12601_s24 + $0xc0] sm:$0xff]  ;;  %v454_v28 = vld [vmem:[%s12601_s24 + $0x48] sm:$0xff]  ;;  %p12321_p3 = pnand %p12320_p2, %p12314_p13 }
  0x27   : > { %329 = vst.msk [vmem:[#allocation2 + $0x180] sm:$0xff] %vm279_vm1, %v16581_v2  ;;  %330 = vst.msk [vmem:[#allocation2 + $0x188] sm:$0xff] %vm279_vm1, %v16581_v2  ;;  %v470_v29 = vld [vmem:[%s12601_s24 + $0xc8] sm:$0xff]  ;;  %v455_v37 = vld [vmem:[%s12601_s24 + $0x50] sm:$0xff] }
  0x28   : > { %332 = vst.msk [vmem:[#allocation2 + $0x198] sm:$0xff] %vm279_vm1, %v16581_v2  ;;  %333 = vst.msk [vmem:[#allocation2 + $0x1a0] sm:$0xff] %vm279_vm1, %v16581_v2  ;;  %v471_v40 = vld [vmem:[%s12601_s24 + $0xd0] sm:$0xff]  ;;  %v456_v47 = vld [vmem:[%s12601_s24 + $0x58] sm:$0xff] }
  0x29   : > { %283 = vst.msk [vmem:[#allocation2 + $0x10] sm:$0x3] %vm282_vm2, %v16581_v2  ;;  %286 = vst.msk [vmem:[#allocation2 + $0x28] sm:$0x3] %vm282_vm2, %v16581_v2  ;;  %v472_v48 = vld [vmem:[%s12601_s24 + $0xd8] sm:$0xff]  ;;  %v457_v49 = vld [vmem:[%s12601_s24 + $0x60] sm:$0xff] }
  0x2a   : > { %289 = vst.msk [vmem:[#allocation2 + $0x40] sm:$0x3] %vm282_vm2, %v16581_v2  ;;  %292 = vst.msk [vmem:[#allocation2 + $0x58] sm:$0x3] %vm282_vm2, %v16581_v2  ;;  %v473_v50 = vld [vmem:[%s12601_s24 + $0xe0] sm:$0xff]  ;;  %v458_v51 = vld [vmem:[%s12601_s24 + $0x68] sm:$0xff] }
  0x2b   : > { %295 = vst.msk [vmem:[#allocation2 + $0x70] sm:$0x3] %vm282_vm2, %v16581_v2  ;;  %298 = vst.msk [vmem:[#allocation2 + $0x88] sm:$0x3] %vm282_vm2, %v16581_v2  ;;  %v474_v52 = vld [vmem:[%s12601_s24 + $0xe8] sm:$0xff] }
  0x2c   : > { %301 = vst.msk [vmem:[#allocation2 + $0xa0] sm:$0x3] %vm282_vm2, %v16581_v2  ;;  %304 = vst.msk [vmem:[#allocation2 + $0xb8] sm:$0x3] %vm282_vm2, %v16581_v2  ;;  %v511_v12 = vld [vmem:[#allocation2 + $0x8] sm:$0xff] }
  0x2d   : > { %307 = vst.msk [vmem:[#allocation2 + $0xd0] sm:$0x3] %vm282_vm2, %v16581_v2  ;;  %310 = vst.msk [vmem:[#allocation2 + $0xe8] sm:$0x3] %vm282_vm2, %v16581_v2 }
  0x2e   : > { %313 = vst.msk [vmem:[#allocation2 + $0x100] sm:$0x3] %vm282_vm2, %v16581_v2  ;;  %316 = vst.msk [vmem:[#allocation2 + $0x118] sm:$0x3] %vm282_vm2, %v16581_v2 }
  0x2f   : > { %319 = vst.msk [vmem:[#allocation2 + $0x130] sm:$0x3] %vm282_vm2, %v16581_v2  ;;  %322 = vst.msk [vmem:[#allocation2 + $0x148] sm:$0x3] %vm282_vm2, %v16581_v2 }
  0x30   : > { %325 = vst.msk [vmem:[#allocation2 + $0x160] sm:$0x3] %vm282_vm2, %v16581_v2  ;;  %328 = vst.msk [vmem:[#allocation2 + $0x178] sm:$0x3] %vm282_vm2, %v16581_v2  ;;  %v544_v15 = vld [vmem:[#allocation2 + $0x9] sm:$0xff] }
  0x31   : > { %331 = vst.msk [vmem:[#allocation2 + $0x190] sm:$0x3] %vm282_vm2, %v16581_v2  ;;  %334 = vst.msk [vmem:[#allocation2 + $0x1a8] sm:$0x3] %vm282_vm2, %v16581_v2  ;;  %11368 = vmatmul.mubr.msk.f32.vlgmr.msra.gmra.mxu0 %vm279_vm1, %v544_v15 }
  0x32   : > { %492 = vst.msk [vmem:[#allocation2 + $0xc1] sm:$0xff] %vm279_vm1, %v459_v5  ;;  %493 = vst.msk [vmem:[#allocation2 + $0xc9] sm:$0xff] %vm279_vm1, %v460_v6  ;;  %11466 = vmatpush3.msk.msra.mxu0 %vm673_vm0, %v9617_v4  ;;  %v1226_v5 = vld [vmem:[#allocation2 + $0x2] sm:$0xff] }
  0x33   : > { %478 = vst.msk [vmem:[#allocation2 + $0x19] sm:$0xff] %vm279_vm1, %v445_v7  ;;  %494 = vst.msk [vmem:[#allocation2 + $0xd9] sm:$0xff] %vm279_vm1, %v461_v8  ;;  %11565 = vmatprep.subr.msk.mxu0 %vm673_vm0, %v12615_v11  ;;  %v1227_v7 = vld [vmem:[#allocation2 + $0xa] sm:$0xff]  ;;  %v510_v8 = vld [vmem:[#allocation2] sm:$0xff] }
  0x34   : > { %479 = vst.msk [vmem:[#allocation2 + $0x21] sm:$0xff] %vm279_vm1, %v446_v9  ;;  %495 = vst.msk [vmem:[#allocation2 + $0xe1] sm:$0xff] %vm279_vm1, %v462_v10  ;;  %v12806_v10 = vld [vmem:[%s16574_s1 + $0x18] sm:$0xf] }
  0x35   : > { %480 = vst.msk [vmem:[#allocation2 + $0x31] sm:$0xff] %vm279_vm1, %v447_v13  ;;  %496 = vst.msk [vmem:[#allocation2 + $0xf1] sm:$0xff] %vm279_vm1, %v463_v14 }
  0x36   : > { %481 = vst.msk [vmem:[#allocation2 + $0x39] sm:$0xff] %vm279_vm1, %v448_v16  ;;  %497 = vst.msk [vmem:[#allocation2 + $0xf9] sm:$0xff] %vm279_vm1, %v464_v17  ;;  %v12827_v16 = vld [vmem:[%s16574_s1 + $0x14] sm:$0xf]  ;;  %v476_v17 = vld [vmem:[%s12601_s24 + $0xf8] sm:$0xff] }
  0x37   : > { %482 = vst.msk [vmem:[#allocation2 + $0x49] sm:$0xff] %vm279_vm1, %v449_v18  ;;  %498 = vst.msk [vmem:[#allocation2 + $0x109] sm:$0xff] %vm279_vm1, %v465_v19 }
  0x38   : > { %483 = vst.msk [vmem:[#allocation2 + $0x51] sm:$0xff] %vm279_vm1, %v450_v20  ;;  %499 = vst.msk [vmem:[#allocation2 + $0x111] sm:$0xff] %vm279_vm1, %v466_v21 }
  0x39   : > { %484 = vst.msk [vmem:[#allocation2 + $0x61] sm:$0xff] %vm279_vm1, %v451_v22  ;;  %500 = vst.msk [vmem:[#allocation2 + $0x121] sm:$0xff] %vm279_vm1, %v467_v23  ;;  %v12654_v30 = vld [vmem:[#allocation2 + $0xc1] sm:$0xff]  ;;  %v12656_v31 = vld [vmem:[#allocation2 + $0xc9] sm:$0xff] }
  0x3a   : > { %485 = vst.msk [vmem:[#allocation2 + $0x69] sm:$0xff] %vm279_vm1, %v452_v24  ;;  %501 = vst.msk [vmem:[#allocation2 + $0x129] sm:$0xff] %vm279_vm1, %v468_v25  ;;  %v12658_v32 = vld [vmem:[#allocation2 + $0x19] sm:$0xff]  ;;  %11391 = vmatprep.mubr.msk.f32.mxu1 %vm279_vm1, %v12654_v30 }
  0x3b   : > { %486 = vst.msk [vmem:[#allocation2 + $0x79] sm:$0xff] %vm279_vm1, %v453_v26  ;;  %502 = vst.msk [vmem:[#allocation2 + $0x139] sm:$0xff] %vm279_vm1, %v469_v27  ;;  %11370 = vmatprep.mubr.msk.f32.mxu0 %vm279_vm1, %v12658_v32  ;;  %v12667_v33 = vld [vmem:[#allocation2 + $0xd9] sm:$0xff]  ;;  %v12669_v34 = vld [vmem:[#allocation2 + $0x21] sm:$0xff]  ;;  %11392 = vmatmul.mubr.msk.f32.vlgmr.msra.gmra.mxu1 %vm279_vm1, %v12656_v31 }
  0x3c   : > { %487 = vst.msk [vmem:[#allocation2 + $0x81] sm:$0xff] %vm279_vm1, %v454_v28  ;;  %503 = vst.msk [vmem:[#allocation2 + $0x141] sm:$0xff] %vm279_vm1, %v470_v29  ;;  %11371 = vmatmul.mubr.msk.f32.gmra.mxu0 %vm279_vm1, %v12669_v34  ;;  %v12680_v36 = vld [vmem:[#allocation2 + $0x31] sm:$0xff]  ;;  %11416 = vmatpush3.msk.msra.mxu1 %vm673_vm0, %v12549_v3  ;;  %v12687_v38 = vld [vmem:[#allocation2 + $0xe1] sm:$0xff] }
  0x3d   : > { %11394 = vmatprep.mubr.msk.f32.mxu1 %vm279_vm1, %v12667_v33  ;;  %v12689_v39 = vld [vmem:[#allocation2 + $0x39] sm:$0xff]  ;;  %488 = vst.msk [vmem:[#allocation2 + $0x91] sm:$0xff] %vm279_vm1, %v455_v37  ;;  %11373 = vmatprep.mubr.msk.f32.mxu0 %vm279_vm1, %v12680_v36  ;;  %v12695_v41 = vld [vmem:[#allocation2 + $0xf1] sm:$0xff]  ;;  %504 = vst.msk [vmem:[#allocation2 + $0x151] sm:$0xff] %vm279_vm1, %v471_v40 }
  0x3e   : > { %v12697_v42 = vld [vmem:[#allocation2 + $0x49] sm:$0xff]  ;;  %11515 = vmatprep.subr.msk.mxu1 %vm673_vm0, %v12674_v35  ;;  %v12706_v43 = vld [vmem:[#allocation2 + $0xf9] sm:$0xff]  ;;  %489 = vst.msk [vmem:[#allocation2 + $0x99] sm:$0xff] %vm279_vm1, %v456_v47  ;;  %505 = vst.msk [vmem:[#allocation2 + $0x159] sm:$0xff] %vm279_vm1, %v472_v48 }
  0x3f   : > { %11395 = vmatmul.mubr.msk.f32.gmra.mxu1 %vm279_vm1, %v12687_v38  ;;  %v12712_v44 = vld [vmem:[#allocation2 + $0x109] sm:$0xff]  ;;  %v12714_v45 = vld [vmem:[#allocation2 + $0x51] sm:$0xff]  ;;  %490 = vst.msk [vmem:[#allocation2 + $0xa9] sm:$0xff] %vm279_vm1, %v457_v49  ;;  %506 = vst.msk [vmem:[#allocation2 + $0x169] sm:$0xff] %vm279_vm1, %v473_v50 }
  0x40   : > { %11374 = vmatmul.mubr.msk.f32.gmra.mxu0 %vm279_vm1, %v12689_v39  ;;  %11397 = vmatprep.mubr.msk.f32.mxu1 %vm279_vm1, %v12695_v41  ;;  %v12716_v46 = vld [vmem:[#allocation2 + $0x61] sm:$0xff]  ;;  %491 = vst.msk [vmem:[#allocation2 + $0xb1] sm:$0xff] %vm279_vm1, %v458_v51  ;;  %507 = vst.msk [vmem:[#allocation2 + $0x171] sm:$0xff] %vm279_vm1, %v474_v52  ;;  %v12736_v53 = vld [vmem:[#allocation2 + $0x111] sm:$0xff] }
  0x41   : > { %11376 = vmatprep.mubr.msk.f32.mxu0 %vm279_vm1, %v12697_v42  ;;  %v12740_v54 = vld [vmem:[#allocation2 + $0x69] sm:$0xff]  ;;  %v12742_v55 = vld [vmem:[#allocation2 + $0x121] sm:$0xff]  ;;  %v12816_v14 = vld [vmem:[#allocation2 + $0x18] sm:$0xff]  ;;  %509 = vst.msk [vmem:[#allocation2 + $0x189] sm:$0xff] %vm279_vm1, %v476_v17 }
  0x42   : > { %v12744_v56 = vld [vmem:[#allocation2 + $0x79] sm:$0xff]  ;;  %v12752_v57 = vld [vmem:[#allocation2 + $0x129] sm:$0xff] }
  0x43   : > { %11398 = vmatmul.mubr.msk.f32.gmra.mxu1 %vm279_vm1, %v12706_v43  ;;  %v12756_v58 = vld [vmem:[#allocation2 + $0x81] sm:$0xff]  ;;  %v12758_v59 = vld [vmem:[#allocation2 + $0x139] sm:$0xff]  ;;  %v12844_v20 = vld [vmem:[#allocation2 + $0x30] sm:$0xff] }
  0x44   : > { %11377 = vmatmul.mubr.msk.f32.gmra.mxu0 %vm279_vm1, %v12714_v45  ;;  %11400 = vmatprep.mubr.msk.f32.mxu1 %vm279_vm1, %v12712_v44  ;;  %v12760_v60 = vld [vmem:[#allocation2 + $0x91] sm:$0xff]  ;;  %v12768_v61 = vld [vmem:[#allocation2 + $0x141] sm:$0xff] }
  0x45   : > { %11379 = vmatprep.mubr.msk.f32.mxu0 %vm279_vm1, %v12716_v46  ;;  %v12772_v62 = vld [vmem:[#allocation2 + $0x99] sm:$0xff]  ;;  %v12774_v63 = vld [vmem:[#allocation2 + $0x151] sm:$0xff]  ;;  %v12814_v13 = vld [vmem:[#allocation2 + $0x22] sm:$0xff] }
  0x46   : > { %v12776_v0 = vld [vmem:[#allocation2 + $0xa9] sm:$0xff]  ;;  %v12784_v1 = vld [vmem:[#allocation2 + $0x159] sm:$0xff]  ;;  %16715 = vst [vmem:[#allocation10_spill] sm:$0xff] %v12814_v13 }
  0x47   : > { %11401 = vmatmul.mubr.msk.f32.gmra.mxu1 %vm279_vm1, %v12736_v53  ;;  %v12788_v3 = vld [vmem:[#allocation2 + $0xb1] sm:$0xff]  ;;  %v12790_v4 = vld [vmem:[#allocation2 + $0x169] sm:$0xff]  ;;  %v12801_v9 = vld [vmem:[#allocation2 + $0x1a] sm:$0xff] }
  0x48   : > { %11380 = vmatmul.mubr.msk.f32.gmra.mxu0 %vm279_vm1, %v12740_v54  ;;  %11403 = vmatprep.mubr.msk.f32.mxu1 %vm279_vm1, %v12742_v55  ;;  %v12798_v6 = vld [vmem:[#allocation2 + $0x171] sm:$0xff]  ;;  %16714 = vst [vmem:[#allocation9_spill] sm:$0xff] %v12801_v9  ;;  %v12838_v18 = vld [vmem:[#allocation2 + $0x20] sm:$0xff]  ;;  %v12864_v24 = vld [vmem:[#allocation2 + $0x48] sm:$0xff] }
  0x49   : > { %11382 = vmatprep.mubr.msk.f32.mxu0 %vm279_vm1, %v12744_v56  ;;  %v12822_v15 = vld [vmem:[#allocation2 + $0x32] sm:$0xff]  ;;  %v12840_v19 = vld [vmem:[#allocation2 + $0x3a] sm:$0xff]  ;;  %v12848_v21 = vld [vmem:[#allocation2 + $0x4a] sm:$0xff] }
  0x4a   : > { %16716 = vst [vmem:[#allocation11_spill] sm:$0xff] %v12822_v15  ;;  %16717 = vst [vmem:[#allocation12_spill] sm:$0xff] %v12840_v19  ;;  %v12858_v22 = vld [vmem:[#allocation2 + $0x38] sm:$0xff]  ;;  %v12866_v25 = vld [vmem:[#allocation2 + $0x62] sm:$0xff] }
  0x4b   : > { %11404 = vmatmul.mubr.msk.f32.gmra.mxu1 %vm279_vm1, %v12752_v57  ;;  %16718 = vst [vmem:[#allocation13_spill] sm:$0xff] %v12848_v21  ;;  %v12862_v23 = vld [vmem:[#allocation2 + $0x52] sm:$0xff]  ;;  %16720 = vst [vmem:[#allocation15_spill] sm:$0xff] %v12866_v25  ;;  %v12878_v27 = vld [vmem:[#allocation2 + $0x6a] sm:$0xff] }
  0x4c   : > { %11383 = vmatmul.mubr.msk.f32.gmra.mxu0 %vm279_vm1, %v12756_v58  ;;  %11406 = vmatprep.mubr.msk.f32.mxu1 %vm279_vm1, %v12758_v59  ;;  %16719 = vst [vmem:[#allocation14_spill] sm:$0xff] %v12862_v23  ;;  %v12874_v26 = vld [vmem:[#allocation2 + $0x50] sm:$0xff]  ;;  %16721 = vst [vmem:[#allocation16_spill] sm:$0xff] %v12878_v27  ;;  %v12880_v28 = vld [vmem:[#allocation2 + $0x60] sm:$0xff] }
  0x4d   : > { %11385 = vmatprep.mubr.msk.f32.mxu0 %vm279_vm1, %v12760_v60  ;;  %v12882_v29 = vld [vmem:[#allocation2 + $0x7a] sm:$0xff]  ;;  %v12894_v37 = vld [vmem:[#allocation2 + $0x82] sm:$0xff]  ;;  %v12898_v47 = vld [vmem:[#allocation2 + $0x92] sm:$0xff] }
  0x4e   : > { %16722 = vst [vmem:[#allocation17_spill] sm:$0xff] %v12882_v29  ;;  %16723 = vst [vmem:[#allocation18_spill] sm:$0xff] %v12894_v37  ;;  %v12896_v40 = vld [vmem:[#allocation2 + $0x78] sm:$0xff]  ;;  %v12906_v48 = vld [vmem:[#allocation2 + $0x80] sm:$0xff] }
  0x4f   : > { %11407 = vmatmul.mubr.msk.f32.gmra.mxu1 %vm279_vm1, %v12768_v61  ;;  %16724 = vst [vmem:[#allocation19_spill] sm:$0xff] %v12898_v47  ;;  %v12910_v49 = vld [vmem:[#allocation2 + $0x9a] sm:$0xff]  ;;  %v12912_v50 = vld [vmem:[#allocation2 + $0x90] sm:$0xff] }
  0x50   : > { %11386 = vmatmul.mubr.msk.f32.gmra.mxu0 %vm279_vm1, %v12772_v62  ;;  %11409 = vmatprep.mubr.msk.f32.mxu1 %vm279_vm1, %v12774_v63  ;;  %16725 = vst [vmem:[#allocation20_spill] sm:$0xff] %v12910_v49  ;;  %v12914_v51 = vld [vmem:[#allocation2 + $0xaa] sm:$0xff]  ;;  %v12922_v52 = vld [vmem:[#allocation2 + $0x98] sm:$0xff]  ;;  %v12944_v17 = vld [vmem:[#allocation2 + $0xc0] sm:$0xff] }
  0x51   : > { %11388 = vmatprep.mubr.msk.f32.mxu0 %vm279_vm1, %v12776_v0  ;;  %16726 = vst [vmem:[#allocation21_spill] sm:$0xff] %v12914_v51  ;;  %v12946_v2 = vld [vmem:[#allocation2 + $0xda] sm:$0xff] }
  0x52   : > { %16730 = vst [vmem:[#allocation25_spill] sm:$0xff] %v12946_v2 }
  0x53   : > { %11410 = vmatmul.mubr.msk.f32.gmra.mxu1 %vm279_vm1, %v12784_v1 }
  0x54   : > { %11389 = vmatmul.mubr.msk.f32.gmra.mxu0 %vm279_vm1, %v12788_v3  ;;  %11412 = vmatprep.mubr.msk.f32.mxu1 %vm279_vm1, %v12790_v4 }
  0x55   : > { %11467 = vmatprep.mubr.msk.f32.mxu0 %vm279_vm1, %v1226_v5  ;;  %v12926_v5 = vld [vmem:[#allocation2 + $0xb2] sm:$0xff] }
  0x56   : > { %16727 = vst [vmem:[#allocation22_spill] sm:$0xff] %v12926_v5 }
  0x57   : > { %11413 = vmatmul.mubr.msk.f32.gmra.mxu1 %vm279_vm1, %v12798_v6 }
  0x58   : > { %11468 = vmatmul.mubr.msk.f32.vlgmr.msra.gmra.mxu0 %vm279_vm1, %v1227_v7  ;;  %11417 = vmatprep.mubr.msk.f32.mxu1 %vm279_vm1, %v510_v8  ;;  %v12928_v7 = vld [vmem:[#allocation2 + $0xa8] sm:$0xff] }
  0x59   : > { %11566 = vmatpush3.msk.msra.mxu0 %vm673_vm0, %v12615_v11  ;;  %11470 = vmatprep.mubr.msk.f32.mxu0 %vm279_vm1, %v12801_v9  ;;  %v475_v11 = vld [vmem:[%s12601_s24 + $0xf0] sm:$0xff]  ;;  %v12930_v8 = vld [vmem:[#allocation2 + $0xc2] sm:$0xff] }
  0x5a   : > { %11665 = vmatprep.subr.msk.mxu0 %vm673_vm0, %v12806_v10  ;;  %508 = vst.msk [vmem:[#allocation2 + $0x181] sm:$0xff] %vm279_vm1, %v475_v11  ;;  %16728 = vst [vmem:[#allocation23_spill] sm:$0xff] %v12930_v8  ;;  %v12942_v11 = vld [vmem:[#allocation2 + $0xca] sm:$0xff] }
  0x5b   : > { %11418 = vmatmul.mubr.msk.f32.vlgmr.msra.gmra.mxu1 %vm279_vm1, %v511_v12  ;;  %v12938_v12 = vld [vmem:[#allocation2 + $0xb0] sm:$0xff]  ;;  %16729 = vst [vmem:[#allocation24_spill] sm:$0xff] %v12942_v11  ;;  %v13056_v9 = vld [vmem:[#allocation2 + $0x168] sm:$0xff] }
  0x5c   : > { %11471 = vmatmul.mubr.msk.f32.gmra.mxu0 %vm279_vm1, %v12814_v13  ;;  %11516 = vmatpush3.msk.msra.mxu1 %vm673_vm0, %v12674_v35  ;;  %v12890_v35 = vld [vmem:[#allocation2 + $0x68] sm:$0xff] }
  0x5d   : > { %11420 = vmatprep.mubr.msk.f32.mxu1 %vm279_vm1, %v12816_v14  ;;  %11473 = vmatprep.mubr.msk.f32.mxu0 %vm279_vm1, %v12822_v15  ;;  %v13040_v15 = vld [vmem:[#allocation2 + $0x150] sm:$0xff] }
  0x5e   : > { %11615 = vmatprep.subr.msk.mxu1 %vm673_vm0, %v12827_v16  ;;  %v13042_v13 = vld [vmem:[#allocation2 + $0x16a] sm:$0xff] }
  0x5f   : > { %11421 = vmatmul.mubr.msk.f32.gmra.mxu1 %vm279_vm1, %v12838_v18  ;;  %16742 = vst [vmem:[#allocation37_spill] sm:$0xff] %v13042_v13 }
  0x60   : > { %11474 = vmatmul.mubr.msk.f32.gmra.mxu0 %vm279_vm1, %v12840_v19  ;;  %11423 = vmatprep.mubr.msk.f32.mxu1 %vm279_vm1, %v12844_v20  ;;  %v13026_v19 = vld [vmem:[#allocation2 + $0x152] sm:$0xff] }
  0x61   : > { %11476 = vmatprep.mubr.msk.f32.mxu0 %vm279_vm1, %v12848_v21  ;;  %v13024_v21 = vld [vmem:[#allocation2 + $0x138] sm:$0xff]  ;;  %16740 = vst [vmem:[#allocation35_spill] sm:$0xff] %v13026_v19 }
  0x63   : > { %11424 = vmatmul.mubr.msk.f32.gmra.mxu1 %vm279_vm1, %v12858_v22 }
  0x64   : > { %11477 = vmatmul.mubr.msk.f32.gmra.mxu0 %vm279_vm1, %v12862_v23  ;;  %11426 = vmatprep.mubr.msk.f32.mxu1 %vm279_vm1, %v12864_v24  ;;  %v13010_v23 = vld [vmem:[#allocation2 + $0x13a] sm:$0xff] }
  0x65   : > { %11479 = vmatprep.mubr.msk.f32.mxu0 %vm279_vm1, %v12866_v25  ;;  %v13008_v25 = vld [vmem:[#allocation2 + $0x120] sm:$0xff]  ;;  %16738 = vst [vmem:[#allocation33_spill] sm:$0xff] %v13010_v23 }
  0x67   : > { %11427 = vmatmul.mubr.msk.f32.gmra.mxu1 %vm279_vm1, %v12874_v26 }
  0x68   : > { %11480 = vmatmul.mubr.msk.f32.gmra.mxu0 %vm279_vm1, %v12878_v27  ;;  %11429 = vmatprep.mubr.msk.f32.mxu1 %vm279_vm1, %v12880_v28  ;;  %v12994_v27 = vld [vmem:[#allocation2 + $0x122] sm:$0xff] }
  0x69   : > { %11482 = vmatprep.mubr.msk.f32.mxu0 %vm279_vm1, %v12882_v29  ;;  %v12992_v29 = vld [vmem:[#allocation2 + $0x108] sm:$0xff]  ;;  %16736 = vst [vmem:[#allocation31_spill] sm:$0xff] %v12994_v27 }
  0x6b   : > { %11430 = vmatmul.mubr.msk.f32.gmra.mxu1 %vm279_vm1, %v12890_v35 }
  0x6c   : > { %11483 = vmatmul.mubr.msk.f32.gmra.mxu0 %vm279_vm1, %v12894_v37  ;;  %11432 = vmatprep.mubr.msk.f32.mxu1 %vm279_vm1, %v12896_v40  ;;  %v12978_v37 = vld [vmem:[#allocation2 + $0x10a] sm:$0xff] }
  0x6d   : > { %11485 = vmatprep.mubr.msk.f32.mxu0 %vm279_vm1, %v12898_v47  ;;  %v12976_v47 = vld [vmem:[#allocation2 + $0xf0] sm:$0xff]  ;;  %16734 = vst [vmem:[#allocation29_spill] sm:$0xff] %v12978_v37 }
  0x6f   : > { %11433 = vmatmul.mubr.msk.f32.gmra.mxu1 %vm279_vm1, %v12906_v48 }
  0x70   : > { %11486 = vmatmul.mubr.msk.f32.gmra.mxu0 %vm279_vm1, %v12910_v49  ;;  %11435 = vmatprep.mubr.msk.f32.mxu1 %vm279_vm1, %v12912_v50  ;;  %v12962_v49 = vld [vmem:[#allocation2 + $0xf2] sm:$0xff] }
  0x71   : > { %11488 = vmatprep.mubr.msk.f32.mxu0 %vm279_vm1, %v12914_v51  ;;  %v12960_v51 = vld [vmem:[#allocation2 + $0xd8] sm:$0xff]  ;;  %16732 = vst [vmem:[#allocation27_spill] sm:$0xff] %v12962_v49 }
  0x73   : > { %11436 = vmatmul.mubr.msk.f32.gmra.mxu1 %vm279_vm1, %v12922_v52 }
  0x74   : > { %11489 = vmatmul.mubr.msk.f32.gmra.mxu0 %vm279_vm1, %v12926_v5  ;;  %11438 = vmatprep.mubr.msk.f32.mxu1 %vm279_vm1, %v12928_v7  ;;  %v12954_v5 = vld [vmem:[#allocation2 + $0xc8] sm:$0xff] }
  0x75   : > { %11491 = vmatprep.mubr.msk.f32.mxu0 %vm279_vm1, %v12930_v8  ;;  %v12958_v8 = vld [vmem:[#allocation2 + $0xe2] sm:$0xff] }
  0x76   : > { %16731 = vst [vmem:[#allocation26_spill] sm:$0xff] %v12958_v8 }
  0x77   : > { %11439 = vmatmul.mubr.msk.f32.gmra.mxu1 %vm279_vm1, %v12938_v12 }
  0x78   : > { %11492 = vmatmul.mubr.msk.f32.gmra.mxu0 %vm279_vm1, %v12942_v11  ;;  %11441 = vmatprep.mubr.msk.f32.mxu1 %vm279_vm1, %v12944_v17  ;;  %v12970_v11 = vld [vmem:[#allocation2 + $0xe0] sm:$0xff] }
  0x79   : > { %11494 = vmatprep.mubr.msk.f32.mxu0 %vm279_vm1, %v12946_v2  ;;  %v12974_v2 = vld [vmem:[#allocation2 + $0xfa] sm:$0xff] }
  0x7a   : > { %16733 = vst [vmem:[#allocation28_spill] sm:$0xff] %v12974_v2 }
  0x7b   : > { %11442 = vmatmul.mubr.msk.f32.gmra.mxu1 %vm279_vm1, %v12954_v5 }
  0x7c   : > { %11495 = vmatmul.mubr.msk.f32.gmra.mxu0 %vm279_vm1, %v12958_v8  ;;  %11444 = vmatprep.mubr.msk.f32.mxu1 %vm279_vm1, %v12960_v51  ;;  %v12986_v8 = vld [vmem:[#allocation2 + $0xf8] sm:$0xff] }
  0x7d   : > { %11497 = vmatprep.mubr.msk.f32.mxu0 %vm279_vm1, %v12962_v49  ;;  %v12990_v49 = vld [vmem:[#allocation2 + $0x112] sm:$0xff] }
  0x7e   : > { %16735 = vst [vmem:[#allocation30_spill] sm:$0xff] %v12990_v49 }
  0x7f   : > { %11445 = vmatmul.mubr.msk.f32.gmra.mxu1 %vm279_vm1, %v12970_v11 }
  0x80   : > { %11498 = vmatmul.mubr.msk.f32.gmra.mxu0 %vm279_vm1, %v12974_v2  ;;  %11447 = vmatprep.mubr.msk.f32.mxu1 %vm279_vm1, %v12976_v47  ;;  %v13002_v2 = vld [vmem:[#allocation2 + $0x110] sm:$0xff] }
  0x81   : > { %11500 = vmatprep.mubr.msk.f32.mxu0 %vm279_vm1, %v12978_v37  ;;  %v13006_v37 = vld [vmem:[#allocation2 + $0x12a] sm:$0xff] }
  0x82   : > { %16737 = vst [vmem:[#allocation32_spill] sm:$0xff] %v13006_v37 }
  0x83   : > { %11448 = vmatmul.mubr.msk.f32.gmra.mxu1 %vm279_vm1, %v12986_v8 }
  0x84   : > { %11501 = vmatmul.mubr.msk.f32.gmra.mxu0 %vm279_vm1, %v12990_v49  ;;  %11450 = vmatprep.mubr.msk.f32.mxu1 %vm279_vm1, %v12992_v29  ;;  %v13018_v49 = vld [vmem:[#allocation2 + $0x128] sm:$0xff] }
  0x85   : > { %11503 = vmatprep.mubr.msk.f32.mxu0 %vm279_vm1, %v12994_v27  ;;  %v13022_v27 = vld [vmem:[#allocation2 + $0x142] sm:$0xff] }
  0x86   : > { %16739 = vst [vmem:[#allocation34_spill] sm:$0xff] %v13022_v27 }
  0x87   : > { %11451 = vmatmul.mubr.msk.f32.gmra.mxu1 %vm279_vm1, %v13002_v2 }
  0x88   : > { %11504 = vmatmul.mubr.msk.f32.gmra.mxu0 %vm279_vm1, %v13006_v37  ;;  %11453 = vmatprep.mubr.msk.f32.mxu1 %vm279_vm1, %v13008_v25  ;;  %v13034_v37 = vld [vmem:[#allocation2 + $0x140] sm:$0xff] }
  0x89   : > { %11506 = vmatprep.mubr.msk.f32.mxu0 %vm279_vm1, %v13010_v23  ;;  %v13038_v23 = vld [vmem:[#allocation2 + $0x15a] sm:$0xff] }
  0x8a   : > { %16741 = vst [vmem:[#allocation36_spill] sm:$0xff] %v13038_v23 }
  0x8b   : > { %11454 = vmatmul.mubr.msk.f32.gmra.mxu1 %vm279_vm1, %v13018_v49 }
  0x8c   : > { %11507 = vmatmul.mubr.msk.f32.gmra.mxu0 %vm279_vm1, %v13022_v27  ;;  %11456 = vmatprep.mubr.msk.f32.mxu1 %vm279_vm1, %v13024_v21  ;;  %v13050_v27 = vld [vmem:[#allocation2 + $0x158] sm:$0xff] }
  0x8d   : > { %11509 = vmatprep.mubr.msk.f32.mxu0 %vm279_vm1, %v13026_v19  ;;  %v13054_v19 = vld [vmem:[#allocation2 + $0x172] sm:$0xff] }
  0x8f   : > { %11457 = vmatmul.mubr.msk.f32.gmra.mxu1 %vm279_vm1, %v13034_v37 }
  0x90   : > { %11510 = vmatmul.mubr.msk.f32.gmra.mxu0 %vm279_vm1, %v13038_v23  ;;  %11459 = vmatprep.mubr.msk.f32.mxu1 %vm279_vm1, %v13040_v15  ;;  %v13064_v23 = vld [vmem:[#allocation2 + $0x170] sm:$0xff] }
  0x91   : > { %11512 = vmatprep.mubr.msk.f32.mxu0 %vm279_vm1, %v13042_v13  ;;  %v13071_v13 = vld [vmem:[%s16574_s1 + $0x20] sm:$0xf] }
  0x93   : > { %11460 = vmatmul.mubr.msk.f32.gmra.mxu1 %vm279_vm1, %v13050_v27 }
  0x94   : > { %11513 = vmatmul.mubr.msk.f32.gmra.mxu0 %vm279_vm1, %v13054_v19  ;;  %11462 = vmatprep.mubr.msk.f32.mxu1 %vm279_vm1, %v13056_v9 }
  0x95   : > { %11567 = vmatprep.mubr.msk.f32.mxu0 %vm279_vm1, %v12658_v32  ;;  %v13088_v32 = vld [vmem:[%s16574_s1 + $0x1c] sm:$0xf] }
  0x97   : > { %11463 = vmatmul.mubr.msk.f32.gmra.mxu1 %vm279_vm1, %v13064_v23 }
  0x98   : > { %11568 = vmatmul.mubr.msk.f32.vlgmr.msra.gmra.mxu0 %vm279_vm1, %v12669_v34  ;;  %11517 = vmatprep.mubr.msk.f32.mxu1 %vm279_vm1, %v12816_v14  ;;  %v13218_v34 = vld [vmem:[#allocation2 + $0x188] sm:$0xff] }
  0x99   : > { %11666 = vmatpush3.msk.msra.mxu0 %vm673_vm0, %v12806_v10  ;;  %11570 = vmatprep.mubr.msk.f32.mxu0 %vm279_vm1, %v12680_v36  ;;  %v16743_v36 = vld [vmem:[#allocation9_spill] sm:$0xff] }
  0x9a   : > { %11765 = vmatprep.subr.msk.mxu0 %vm673_vm0, %v13071_v13 }
  0x9b   : > { %11518 = vmatmul.mubr.msk.f32.vlgmr.msra.gmra.mxu1 %vm279_vm1, %v12838_v18 }
  0x9c   : > { %11571 = vmatmul.mubr.msk.f32.gmra.mxu0 %vm279_vm1, %v12689_v39  ;;  %11616 = vmatpush3.msk.msra.mxu1 %vm673_vm0, %v12827_v16  ;;  %v16745_v39 = vld [vmem:[#allocation11_spill] sm:$0xff] }
  0x9d   : > { %11520 = vmatprep.mubr.msk.f32.mxu1 %vm279_vm1, %v12844_v20  ;;  %11573 = vmatprep.mubr.msk.f32.mxu0 %vm279_vm1, %v12697_v42  ;;  %v16747_v42 = vld [vmem:[#allocation13_spill] sm:$0xff] }
  0x9e   : > { %11715 = vmatprep.subr.msk.mxu1 %vm673_vm0, %v13088_v32 }
  0x9f   : > { %11521 = vmatmul.mubr.msk.f32.gmra.mxu1 %vm279_vm1, %v12858_v22 }
  0xa0   : > { %11574 = vmatmul.mubr.msk.f32.gmra.mxu0 %vm279_vm1, %v12714_v45  ;;  %11523 = vmatprep.mubr.msk.f32.mxu1 %vm279_vm1, %v12864_v24  ;;  %v16750_v45 = vld [vmem:[#allocation16_spill] sm:$0xff] }
  0xa1   : > { %11576 = vmatprep.mubr.msk.f32.mxu0 %vm279_vm1, %v12716_v46  ;;  %v16751_v46 = vld [vmem:[#allocation17_spill] sm:$0xff] }
  0xa3   : > { %11524 = vmatmul.mubr.msk.f32.gmra.mxu1 %vm279_vm1, %v12874_v26 }
  0xa4   : > { %11577 = vmatmul.mubr.msk.f32.gmra.mxu0 %vm279_vm1, %v12740_v54  ;;  %11526 = vmatprep.mubr.msk.f32.mxu1 %vm279_vm1, %v12880_v28  ;;  %v16753_v54 = vld [vmem:[#allocation19_spill] sm:$0xff] }
  0xa5   : > { %11579 = vmatprep.mubr.msk.f32.mxu0 %vm279_vm1, %v12744_v56  ;;  %v16755_v56 = vld [vmem:[#allocation21_spill] sm:$0xff] }
  0xa7   : > { %11527 = vmatmul.mubr.msk.f32.gmra.mxu1 %vm279_vm1, %v12890_v35 }
  0xa8   : > { %11580 = vmatmul.mubr.msk.f32.gmra.mxu0 %vm279_vm1, %v12756_v58  ;;  %11529 = vmatprep.mubr.msk.f32.mxu1 %vm279_vm1, %v12896_v40  ;;  %v16757_v58 = vld [vmem:[#allocation23_spill] sm:$0xff] }
  0xa9   : > { %11582 = vmatprep.mubr.msk.f32.mxu0 %vm279_vm1, %v12760_v60  ;;  %v16758_v60 = vld [vmem:[#allocation24_spill] sm:$0xff] }
  0xab   : > { %11530 = vmatmul.mubr.msk.f32.gmra.mxu1 %vm279_vm1, %v12906_v48 }
  0xac   : > { %11583 = vmatmul.mubr.msk.f32.gmra.mxu0 %vm279_vm1, %v12772_v62  ;;  %11532 = vmatprep.mubr.msk.f32.mxu1 %vm279_vm1, %v12912_v50  ;;  %v16759_v62 = vld [vmem:[#allocation25_spill] sm:$0xff] }
  0xad   : > { %11585 = vmatprep.mubr.msk.f32.mxu0 %vm279_vm1, %v12776_v0  ;;  %v16760_v0 = vld [vmem:[#allocation26_spill] sm:$0xff] }
  0xaf   : > { %11533 = vmatmul.mubr.msk.f32.gmra.mxu1 %vm279_vm1, %v12922_v52 }
  0xb0   : > { %11586 = vmatmul.mubr.msk.f32.gmra.mxu0 %vm279_vm1, %v12788_v3  ;;  %11535 = vmatprep.mubr.msk.f32.mxu1 %vm279_vm1, %v12928_v7  ;;  %v16761_v3 = vld [vmem:[#allocation27_spill] sm:$0xff] }
  0xb1   : > { %11588 = vmatprep.mubr.msk.f32.mxu0 %vm279_vm1, %v12654_v30  ;;  %v13198_v30 = vld [vmem:[#allocation2 + $0x181] sm:$0xff] }
  0xb3   : > { %11536 = vmatmul.mubr.msk.f32.gmra.mxu1 %vm279_vm1, %v12938_v12 }
  0xb4   : > { %11589 = vmatmul.mubr.msk.f32.gmra.mxu0 %vm279_vm1, %v12656_v31  ;;  %11538 = vmatprep.mubr.msk.f32.mxu1 %vm279_vm1, %v12944_v17  ;;  %v13208_v31 = vld [vmem:[#allocation2 + $0x189] sm:$0xff] }
  0xb5   : > { %11591 = vmatprep.mubr.msk.f32.mxu0 %vm279_vm1, %v12667_v33  ;;  %v13210_v33 = vld [vmem:[#allocation2 + $0x180] sm:$0xff] }
  0xb7   : > { %11539 = vmatmul.mubr.msk.f32.gmra.mxu1 %vm279_vm1, %v12954_v5 }
  0xb8   : > { %11592 = vmatmul.mubr.msk.f32.gmra.mxu0 %vm279_vm1, %v12687_v38  ;;  %11541 = vmatprep.mubr.msk.f32.mxu1 %vm279_vm1, %v12960_v51  ;;  %v16744_v38 = vld [vmem:[#allocation10_spill] sm:$0xff] }
  0xb9   : > { %11594 = vmatprep.mubr.msk.f32.mxu0 %vm279_vm1, %v12695_v41  ;;  %v16746_v41 = vld [vmem:[#allocation12_spill] sm:$0xff] }
  0xbb   : > { %11542 = vmatmul.mubr.msk.f32.gmra.mxu1 %vm279_vm1, %v12970_v11 }
  0xbc   : > { %11595 = vmatmul.mubr.msk.f32.gmra.mxu0 %vm279_vm1, %v12706_v43  ;;  %11544 = vmatprep.mubr.msk.f32.mxu1 %vm279_vm1, %v12976_v47  ;;  %v16748_v43 = vld [vmem:[#allocation14_spill] sm:$0xff] }
  0xbd   : > { %11597 = vmatprep.mubr.msk.f32.mxu0 %vm279_vm1, %v12712_v44  ;;  %v16749_v44 = vld [vmem:[#allocation15_spill] sm:$0xff] }
  0xbf   : > { %11545 = vmatmul.mubr.msk.f32.gmra.mxu1 %vm279_vm1, %v12986_v8 }
  0xc0   : > { %11598 = vmatmul.mubr.msk.f32.gmra.mxu0 %vm279_vm1, %v12736_v53  ;;  %11547 = vmatprep.mubr.msk.f32.mxu1 %vm279_vm1, %v12992_v29  ;;  %v16752_v53 = vld [vmem:[#allocation18_spill] sm:$0xff] }
  0xc1   : > { %11600 = vmatprep.mubr.msk.f32.mxu0 %vm279_vm1, %v12742_v55  ;;  %v16754_v55 = vld [vmem:[#allocation20_spill] sm:$0xff] }
  0xc3   : > { %11548 = vmatmul.mubr.msk.f32.gmra.mxu1 %vm279_vm1, %v13002_v2 }
  0xc4   : > { %11601 = vmatmul.mubr.msk.f32.gmra.mxu0 %vm279_vm1, %v12752_v57  ;;  %11550 = vmatprep.mubr.msk.f32.mxu1 %vm279_vm1, %v13008_v25  ;;  %v16756_v57 = vld [vmem:[#allocation22_spill] sm:$0xff] }
  0xc5   : > { %11603 = vmatprep.mubr.msk.f32.mxu0 %vm279_vm1, %v12758_v59 }
  0xc7   : > { %11551 = vmatmul.mubr.msk.f32.gmra.mxu1 %vm279_vm1, %v13018_v49 }
  0xc8   : > { %11604 = vmatmul.mubr.msk.f32.gmra.mxu0 %vm279_vm1, %v12768_v61  ;;  %11553 = vmatprep.mubr.msk.f32.mxu1 %vm279_vm1, %v13024_v21 }
  0xc9   : > { %11606 = vmatprep.mubr.msk.f32.mxu0 %vm279_vm1, %v12774_v63 }
  0xcb   : > { %11554 = vmatmul.mubr.msk.f32.gmra.mxu1 %vm279_vm1, %v13034_v37 }
  0xcc   : > { %11607 = vmatmul.mubr.msk.f32.gmra.mxu0 %vm279_vm1, %v12784_v1  ;;  %11556 = vmatprep.mubr.msk.f32.mxu1 %vm279_vm1, %v13040_v15 }
  0xcd   : > { %11609 = vmatprep.mubr.msk.f32.mxu0 %vm279_vm1, %v12790_v4 }
  0xcf   : > { %11557 = vmatmul.mubr.msk.f32.gmra.mxu1 %vm279_vm1, %v13050_v27 }
  0xd0   : > { %11610 = vmatmul.mubr.msk.f32.gmra.mxu0 %vm279_vm1, %v12798_v6  ;;  %11559 = vmatprep.mubr.msk.f32.mxu1 %vm279_vm1, %v13056_v9 }
  0xd1   : > { %11612 = vmatprep.mubr.msk.f32.mxu0 %vm279_vm1, %v13198_v30 }
  0xd3   : > { %11560 = vmatmul.mubr.msk.f32.gmra.mxu1 %vm279_vm1, %v13064_v23 }
  0xd4   : > { %11613 = vmatmul.mubr.msk.f32.gmra.mxu0 %vm279_vm1, %v13208_v31  ;;  %11562 = vmatprep.mubr.msk.f32.mxu1 %vm279_vm1, %v13210_v33 }
  0xd5   : > { %11667 = vmatprep.mubr.msk.f32.mxu0 %vm279_vm1, %v12844_v20 }
  0xd7   : > { %11563 = vmatmul.mubr.msk.f32.gmra.mxu1 %vm279_vm1, %v13218_v34 }
  0xd8   : > { %11668 = vmatmul.mubr.msk.f32.vlgmr.msra.gmra.mxu0 %vm279_vm1, %v12858_v22  ;;  %11617 = vmatprep.mubr.msk.f32.mxu1 %vm279_vm1, %v16743_v36  ;;  %v16765_v22 = vld [vmem:[#allocation30_spill] sm:$0xff] }
  0xd9   : > { %11766 = vmatpush3.msk.msra.mxu0 %vm673_vm0, %v13071_v13  ;;  %11670 = vmatprep.mubr.msk.f32.mxu0 %vm279_vm1, %v12864_v24  ;;  %v16762_v13 = vld [vmem:[#allocation28_spill] sm:$0xff] }
  0xdb   : > { %11618 = vmatmul.mubr.msk.f32.vlgmr.msra.gmra.mxu1 %vm279_vm1, %v16744_v38 }
  0xdc   : > { %11671 = vmatmul.mubr.msk.f32.gmra.mxu0 %vm279_vm1, %v12874_v26  ;;  %11716 = vmatpush3.msk.msra.mxu1 %vm673_vm0, %v13088_v32 }
  0xdd   : > { %11620 = vmatprep.mubr.msk.f32.mxu1 %vm279_vm1, %v16745_v39  ;;  %11673 = vmatprep.mubr.msk.f32.mxu0 %vm279_vm1, %v12880_v28 }
  0xdf   : > { %11621 = vmatmul.mubr.msk.f32.gmra.mxu1 %vm279_vm1, %v16746_v41 }
  0xe0   : > { %11674 = vmatmul.mubr.msk.f32.gmra.mxu0 %vm279_vm1, %v12890_v35  ;;  %11623 = vmatprep.mubr.msk.f32.mxu1 %vm279_vm1, %v16747_v42 }
  0xe1   : > { %11676 = vmatprep.mubr.msk.f32.mxu0 %vm279_vm1, %v12896_v40 }
  0xe3   : > { %11624 = vmatmul.mubr.msk.f32.gmra.mxu1 %vm279_vm1, %v16748_v43 }
  0xe4   : > { %11677 = vmatmul.mubr.msk.f32.gmra.mxu0 %vm279_vm1, %v12906_v48  ;;  %11626 = vmatprep.mubr.msk.f32.mxu1 %vm279_vm1, %v16749_v44  ;;  %v16771_v48 = vld [vmem:[#allocation34_spill] sm:$0xff] }
  0xe5   : > { %11679 = vmatprep.mubr.msk.f32.mxu0 %vm279_vm1, %v12912_v50 }
  0xe7   : > { %11627 = vmatmul.mubr.msk.f32.gmra.mxu1 %vm279_vm1, %v16750_v45 }
  0xe8   : > { %11680 = vmatmul.mubr.msk.f32.gmra.mxu0 %vm279_vm1, %v12922_v52  ;;  %11629 = vmatprep.mubr.msk.f32.mxu1 %vm279_vm1, %v16751_v46 }
  0xe9   : > { %11682 = vmatprep.mubr.msk.f32.mxu0 %vm279_vm1, %v12928_v7 }
  0xeb   : > { %11630 = vmatmul.mubr.msk.f32.gmra.mxu1 %vm279_vm1, %v16752_v53 }
  0xec   : > { %11683 = vmatmul.mubr.msk.f32.gmra.mxu0 %vm279_vm1, %v12938_v12  ;;  %11632 = vmatprep.mubr.msk.f32.mxu1 %vm279_vm1, %v16753_v54 }
  0xed   : > { %11685 = vmatprep.mubr.msk.f32.mxu0 %vm279_vm1, %v12944_v17  ;;  %v13397_v17 = vld [vmem:[#allocation2 + $0x182] sm:$0xff] }
  0xef   : > { %11633 = vmatmul.mubr.msk.f32.gmra.mxu1 %vm279_vm1, %v16754_v55 }
  0xf0   : > { %11686 = vmatmul.mubr.msk.f32.gmra.mxu0 %vm279_vm1, %v12954_v5  ;;  %11635 = vmatprep.mubr.msk.f32.mxu1 %vm279_vm1, %v16755_v56  ;;  %v16774_v5 = vld [vmem:[#allocation36_spill] sm:$0xff] }
  0xf1   : > { %11688 = vmatprep.mubr.msk.f32.mxu0 %vm279_vm1, %v12960_v51  ;;  %v13290_v59 = vpop.f32.mrf.mxu0  ;;  %v2817_v51 = vld [vmem:[#allocation2 + $0x198] sm:$0xff] }
  0xf3   : > { %11636 = vmatmul.mubr.msk.f32.gmra.mxu1 %vm279_vm1, %v16756_v57  ;;  %v13296_v61 = vpop.f32.mrf.mxu0 }
  0xf4   : > { %11689 = vmatmul.mubr.msk.f32.gmra.mxu0 %vm279_vm1, %v12970_v11  ;;  %11638 = vmatprep.mubr.msk.f32.mxu1 %vm279_vm1, %v16757_v58 }
  0xf5   : > { %11691 = vmatprep.mubr.msk.f32.mxu0 %vm279_vm1, %v12976_v47 }
  0xf7   : > { %11639 = vmatmul.mubr.msk.f32.gmra.mxu1 %vm279_vm1, %v16758_v60 }
  0xf8   : > { %11692 = vmatmul.mubr.msk.f32.gmra.mxu0 %vm279_vm1, %v12986_v8  ;;  %11641 = vmatprep.mubr.msk.f32.mxu1 %vm279_vm1, %v16759_v62  ;;  %v2818_v8 = vld [vmem:[#allocation2 + $0x1a0] sm:$0xff] }
  0xf9   : > { %11694 = vmatprep.mubr.msk.f32.mxu0 %vm279_vm1, %v12992_v29  ;;  %v16768_v29 = vld [vmem:[#allocation32_spill] sm:$0xff] }
  0xfb   : > { %v13302_v63 = vpop.f32.mrf.mxu1  ;;  %11642 = vmatmul.mubr.msk.f32.gmra.mxu1 %vm279_vm1, %v16760_v0 }
  0xfc   : > { %v13306_v1 = vpop.f32.mrf.mxu0  ;;  %11695 = vmatmul.mubr.msk.f32.gmra.mxu0 %vm279_vm1, %v13002_v2  ;;  %11644 = vmatprep.mubr.msk.f32.mxu1 %vm279_vm1, %v16761_v3  ;;  %v16763_v2 = vld [vmem:[#allocation29_spill] sm:$0xff] }
  0xfd   : > { %11697 = vmatprep.mubr.msk.f32.mxu0 %vm279_vm1, %v13008_v25  ;;  %v13314_v4 = vpop.f32.mrf.mxu1  ;;  %v16766_v25 = vld [vmem:[#allocation31_spill] sm:$0xff] }
  0xfe   : > { %v13316_v6 = vpop.f32.mrf.mxu0 }
  0xff   : > { %v13318_v10 = vpop.f32.mrf.mxu1  ;;  %11645 = vmatmul.mubr.msk.f32.gmra.mxu1 %vm279_vm1, %v16762_v13 }
 0x100   : > { %v13322_v14 = vpop.f32.mrf.mxu0  ;;  %11698 = vmatmul.mubr.msk.f32.gmra.mxu0 %vm279_vm1, %v13018_v49  ;;  %11647 = vmatprep.mubr.msk.f32.mxu1 %vm279_vm1, %v16763_v2 }
 0x101   : > { %11700 = vmatprep.mubr.msk.f32.mxu0 %vm279_vm1, %v13024_v21  ;;  %v13330_v16 = vpop.f32.mrf.mxu1 }
 0x102   : > { %16764 = vst [vmem:[#allocation9_spill] sm:$0xff] %v13330_v16  ;;  %v13332_v18 = vpop.f32.mrf.mxu0 }
 0x103   : > { %v13334_v20 = vpop.f32.mrf.mxu1  ;;  %11648 = vmatmul.mubr.msk.f32.gmra.mxu1 %vm279_vm1, %v16765_v22 }
 0x104   : > { %v13338_v24 = vpop.f32.mrf.mxu0  ;;  %11701 = vmatmul.mubr.msk.f32.gmra.mxu0 %vm279_vm1, %v13034_v37  ;;  %11650 = vmatprep.mubr.msk.f32.mxu1 %vm279_vm1, %v16766_v25  ;;  %v16769_v37 = vld [vmem:[#allocation33_spill] sm:$0xff] }
 0x105   : > { %11703 = vmatprep.mubr.msk.f32.mxu0 %vm279_vm1, %v13040_v15  ;;  %v13346_v21 = vpop.f32.mrf.mxu1 }
 0x106   : > { %16767 = vst [vmem:[#allocation10_spill] sm:$0xff] %v13346_v21  ;;  %v13348_v26 = vpop.f32.mrf.mxu0 }
 0x107   : > { %v13350_v28 = vpop.f32.mrf.mxu1  ;;  %11651 = vmatmul.mubr.msk.f32.gmra.mxu1 %vm279_vm1, %v16768_v29 }
 0x108   : > { %v13354_v35 = vpop.f32.mrf.mxu0  ;;  %11704 = vmatmul.mubr.msk.f32.gmra.mxu0 %vm279_vm1, %v13050_v27  ;;  %11653 = vmatprep.mubr.msk.f32.mxu1 %vm279_vm1, %v16769_v37  ;;  %v16772_v27 = vld [vmem:[#allocation35_spill] sm:$0xff] }
 0x109   : > { %11706 = vmatprep.mubr.msk.f32.mxu0 %vm279_vm1, %v13056_v9  ;;  %v13362_v15 = vpop.f32.mrf.mxu1 }
 0x10a   : > { %16770 = vst [vmem:[#allocation11_spill] sm:$0xff] %v13362_v15  ;;  %v13364_v40 = vpop.f32.mrf.mxu0 }
 0x10b   : > { %v13366_v47 = vpop.f32.mrf.mxu1  ;;  %11654 = vmatmul.mubr.msk.f32.gmra.mxu1 %vm279_vm1, %v16771_v48 }
 0x10c   : > { %v13370_v49 = vpop.f32.mrf.mxu0  ;;  %11707 = vmatmul.mubr.msk.f32.gmra.mxu0 %vm279_vm1, %v13064_v23  ;;  %11656 = vmatprep.mubr.msk.f32.mxu1 %vm279_vm1, %v16772_v27  ;;  %v16775_v23 = vld [vmem:[#allocation37_spill] sm:$0xff] }
 0x10d   : > { %11709 = vmatprep.mubr.msk.f32.mxu0 %vm279_vm1, %v13210_v33  ;;  %v13378_v9 = vpop.f32.mrf.mxu1 }
 0x10e   : > { %16773 = vst [vmem:[#allocation12_spill] sm:$0xff] %v13378_v9  ;;  %v13380_v50 = vpop.f32.mrf.mxu0 }
 0x10f   : > { %v13382_v52 = vpop.f32.mrf.mxu1  ;;  %11657 = vmatmul.mubr.msk.f32.gmra.mxu1 %vm279_vm1, %v16774_v5 }
 0x110   : > { %v13386_v7 = vpop.f32.mrf.mxu0  ;;  %11710 = vmatmul.mubr.msk.f32.gmra.mxu0 %vm279_vm1, %v13218_v34  ;;  %11659 = vmatprep.mubr.msk.f32.mxu1 %vm279_vm1, %v16775_v23  ;;  %v13408_v34 = vld [vmem:[#allocation2 + $0x18a] sm:$0xff]  ;;  %v3178_v23 = vld [vmem:[#allocation2 + $0x39] sm:$0xff] }
 0x111   : > { %11712 = vmatprep.mubr.msk.f32.mxu0 %vm279_vm1, %v2817_v51  ;;  %v13393_v12 = vpop.f32.mrf.mxu1  ;;  %v3177_v51 = vld [vmem:[#allocation2 + $0x31] sm:$0xff] }
 0x112   : > { %16776 = vst [vmem:[#allocation13_spill] sm:$0xff] %v13393_v12  ;;  %v13395_v11 = vpop.f32.mrf.mxu0 }
 0x113   : > { %v13399_v32 = vpop.f32.mrf.mxu1  ;;  %11660 = vmatmul.mubr.msk.f32.gmra.mxu1 %vm279_vm1, %v13054_v19 }
 0x114   : > { %v13403_v33 = vpop.f32.mrf.mxu0  ;;  %11713 = vmatmul.mubr.msk.f32.gmra.mxu0 %vm279_vm1, %v2818_v8  ;;  %11662 = vmatprep.mubr.msk.f32.mxu1 %vm279_vm1, %v13397_v17 }
 0x115   : > { %11767 = vmatprep.mubr.msk.f32.mxu0 %vm279_vm1, %v16745_v39  ;;  %v13412_v36 = vpop.f32.mrf.mxu1 }
 0x116   : > { %16777 = vst [vmem:[#allocation14_spill] sm:$0xff] %v13412_v36  ;;  %v13414_v38 = vpop.f32.mrf.mxu0  ;;  %v3179_v36 = vld [vmem:[#allocation2 + $0x49] sm:$0xff] }
 0x117   : > { %v13416_v5 = vpop.f32.mrf.mxu1  ;;  %11663 = vmatmul.mubr.msk.f32.gmra.mxu1 %vm279_vm1, %v13408_v34 }
 0x118   : > { %16778 = vst [vmem:[#allocation15_spill] sm:$0xff] %v13416_v5  ;;  %v11469_v19 = vpop.f32.mrf.mxu0  ;;  %11768 = vmatmul.mubr.msk.f32.vlgmr.msra.gmra.mxu0 %vm279_vm1, %v16746_v41  ;;  %11717 = vmatprep.mubr.msk.f32.mxu1 %vm279_vm1, %v3177_v51  ;;  %v3180_v41 = vld [vmem:[#allocation2 + $0x51] sm:$0xff] }
 0x119   : > { %11770 = vmatprep.mubr.msk.f32.mxu0 %vm279_vm1, %v16747_v42  ;;  %v13425_v39 = vpop.f32.mrf.mxu1 }
 0x11a   : > { %16779 = vst [vmem:[#allocation16_spill] sm:$0xff] %v13425_v39  ;;  %v1425_v8 = vpop.f32.mrf.mxu0  ;;  %v3181_v39 = vld [vmem:[#allocation2 + $0x61] sm:$0xff] }
 0x11b   : > { %v11419_v12 = vpop.f32.mrf.mxu1  ;;  %11718 = vmatmul.mubr.msk.f32.vlgmr.msra.gmra.mxu1 %vm279_vm1, %v3178_v23 }
 0x11c   : > { %v11472_v9 = vpop.f32.mrf.mxu0  ;;  %11771 = vmatmul.mubr.msk.f32.gmra.mxu0 %vm279_vm1, %v16748_v43  ;;  %v1073_v15 = vadd.f32 %v11419_v12, %v13290_v59  ;;  %11720 = vmatprep.mubr.msk.f32.mxu1 %vm279_vm1, %v3179_v36 }
 0x11d   : > { %11773 = vmatprep.mubr.msk.f32.mxu0 %vm279_vm1, %v16749_v44  ;;  %v1067_v42 = vpop.f32.mrf.mxu1  ;;  %v3182_v44 = vld [vmem:[#allocation2 + $0x69] sm:$0xff] }
 0x11e   : > { %v1435_v51 = vpop.f32.mrf.mxu0  ;;  %v13434_v21 = vadd.f32 %v11469_v19, %v1073_v15  ;;  %v1068_v16 = vadd.f32 %v1067_v42, %v13296_v61  ;;  %v3183_v61 = vld [vmem:[#allocation2 + $0x79] sm:$0xff] }
 0x11f   : > { %v11422_v23 = vpop.f32.mrf.mxu1  ;;  %11721 = vmatmul.mubr.msk.f32.gmra.mxu1 %vm279_vm1, %v3180_v41 }
 0x120   : > { %v11475_v5 = vpop.f32.mrf.mxu0  ;;  %11774 = vmatmul.mubr.msk.f32.gmra.mxu0 %vm279_vm1, %v16750_v45  ;;  %v13440_v43 = vadd.f32 %v1425_v8, %v1068_v16  ;;  %v1083_v59 = vadd.f32 %v11422_v23, %v13306_v1  ;;  %11723 = vmatprep.mubr.msk.f32.mxu1 %vm279_vm1, %v3181_v39 }
 0x121   : > { %11776 = vmatprep.mubr.msk.f32.mxu0 %vm279_vm1, %v16751_v46  ;;  %v1077_v15 = vpop.f32.mrf.mxu1  ;;  %v3184_v46 = vld [vmem:[#allocation2 + $0x81] sm:$0xff] }
 0x122   : > { %v1445_v12 = vpop.f32.mrf.mxu0  ;;  %v13446_v36 = vadd.f32 %v11472_v9, %v1083_v59  ;;  %v1078_v19 = vadd.f32 %v1077_v15, %v13316_v6  ;;  %v3185_v6 = vld [vmem:[#allocation2 + $0x91] sm:$0xff] }
 0x123   : > { %v11425_v41 = vpop.f32.mrf.mxu1  ;;  %11724 = vmatmul.mubr.msk.f32.gmra.mxu1 %vm279_vm1, %v3182_v44 }
 0x124   : > { %v11478_v45 = vpop.f32.mrf.mxu0  ;;  %11777 = vmatmul.mubr.msk.f32.gmra.mxu0 %vm279_vm1, %v16752_v53  ;;  %v13452_v1 = vadd.f32 %v1435_v51, %v1078_v19  ;;  %v1093_v16 = vadd.f32 %v11425_v41, %v13322_v14  ;;  %11726 = vmatprep.mubr.msk.f32.mxu1 %vm279_vm1, %v3183_v61 }
 0x125   : > { %11779 = vmatprep.mubr.msk.f32.mxu0 %vm279_vm1, %v16753_v54  ;;  %v1087_v9 = vpop.f32.mrf.mxu1  ;;  %v3186_v54 = vld [vmem:[#allocation2 + $0x99] sm:$0xff] }
 0x126   : > { %v1455_v39 = vpop.f32.mrf.mxu0  ;;  %v13458_v8 = vadd.f32 %v11475_v5, %v1093_v16  ;;  %v1088_v42 = vadd.f32 %v1087_v9, %v13332_v18  ;;  %v3187_v18 = vld [vmem:[#allocation2 + $0xa9] sm:$0xff] }
 0x127   : > { %v11428_v23 = vpop.f32.mrf.mxu1  ;;  %11727 = vmatmul.mubr.msk.f32.gmra.mxu1 %vm279_vm1, %v3184_v46 }
 0x128   : > { %v11481_v53 = vpop.f32.mrf.mxu0  ;;  %11780 = vmatmul.mubr.msk.f32.gmra.mxu0 %vm279_vm1, %v16754_v55  ;;  %v13464_v14 = vadd.f32 %v1445_v12, %v1088_v42  ;;  %v1103_v51 = vadd.f32 %v11428_v23, %v13338_v24  ;;  %11729 = vmatprep.mubr.msk.f32.mxu1 %vm279_vm1, %v3185_v6  ;;  %v3191_v42 = vld [vmem:[#allocation2 + $0xd9] sm:$0xff] }
 0x129   : > { %11782 = vmatprep.mubr.msk.f32.mxu0 %vm279_vm1, %v16755_v56  ;;  %v1097_v5 = vpop.f32.mrf.mxu1  ;;  %v3188_v56 = vld [vmem:[#allocation2 + $0xb1] sm:$0xff] }
 0x12a   : > { %v1465_v59 = vpop.f32.mrf.mxu0  ;;  %v13470_v44 = vadd.f32 %v11478_v45, %v1103_v51  ;;  %v1098_v15 = vadd.f32 %v1097_v5, %v13348_v26  ;;  %v9856_v26 = vld [vmem:[%s16576_s3 + $0x8] sm:$0xff] }
 0x12b   : > { %v11431_v61 = vpop.f32.mrf.mxu1  ;;  %11730 = vmatmul.mubr.msk.f32.gmra.mxu1 %vm279_vm1, %v3186_v54  ;;  %v3189_v45 = vld [vmem:[#allocation2 + $0xc1] sm:$0xff]  ;;  %11815 = vmatprep.subr.mxu1 %v9856_v26 }
 0x12c   : > { %v11484_v55 = vpop.f32.mrf.mxu0  ;;  %11783 = vmatmul.mubr.msk.f32.gmra.mxu0 %vm279_vm1, %v16756_v57  ;;  %v13476_v24 = vadd.f32 %v1455_v39, %v1098_v15  ;;  %v1113_v12 = vadd.f32 %v11431_v61, %v13354_v35  ;;  %11732 = vmatprep.mubr.msk.f32.mxu1 %vm279_vm1, %v3187_v18  ;;  %v3190_v39 = vld [vmem:[#allocation2 + $0xc9] sm:$0xff] }
 0x12d   : > { %11785 = vmatprep.mubr.msk.f32.mxu0 %vm279_vm1, %v16757_v58  ;;  %v1107_v19 = vpop.f32.mrf.mxu1  ;;  %11816 = vmatpush3.msra.mxu1 %v9856_v26 }
 0x12e   : > { %v1475_v41 = vpop.f32.mrf.mxu0  ;;  %v13485_v16 = vadd.f32 %v11481_v53, %v1113_v12  ;;  %v1108_v57 = vadd.f32 %v1107_v19, %v13364_v40 }
 0x12f   : > { %v11434_v35 = vpop.f32.mrf.mxu1  ;;  %11733 = vmatmul.mubr.msk.f32.gmra.mxu1 %vm279_vm1, %v3188_v56 }
 0x130   : > { %v11487_v46 = vpop.f32.mrf.mxu0  ;;  %11786 = vmatmul.mubr.msk.f32.gmra.mxu0 %vm279_vm1, %v16758_v60  ;;  %v13491_v58 = vadd.f32 %v1465_v59, %v1108_v57  ;;  %v1123_v9 = vadd.f32 %v11434_v35, %v13370_v49  ;;  %11735 = vmatprep.mubr.msk.f32.mxu1 %vm279_vm1, %v3189_v45 }
 0x131   : > { %11788 = vmatprep.mubr.msk.f32.mxu0 %vm279_vm1, %v16759_v62  ;;  %v1117_v6 = vpop.f32.mrf.mxu1  ;;  %v3192_v62 = vld [vmem:[#allocation2 + $0xe1] sm:$0xff] }
 0x132   : > { %v1485_v40 = vpop.f32.mrf.mxu0  ;;  %v13497_v23 = vadd.f32 %v11484_v55, %v1123_v9  ;;  %v1118_v53 = vadd.f32 %v1117_v6, %v13380_v50  ;;  %v3193_v50 = vld [vmem:[#allocation2 + $0xf1] sm:$0xff] }
 0x133   : > { %v11437_v51 = vpop.f32.mrf.mxu1  ;;  %11736 = vmatmul.mubr.msk.f32.gmra.mxu1 %vm279_vm1, %v3190_v39 }
 0x134   : > { %v11490_v60 = vpop.f32.mrf.mxu0  ;;  %11789 = vmatmul.mubr.msk.f32.gmra.mxu0 %vm279_vm1, %v16760_v0  ;;  %v13503_v49 = vadd.f32 %v1475_v41, %v1118_v53  ;;  %v1133_v54 = vadd.f32 %v11437_v51, %v13386_v7  ;;  %11738 = vmatprep.mubr.msk.f32.mxu1 %vm279_vm1, %v3191_v42  ;;  %v3199_v42 = vld [vmem:[#allocation2 + $0x139] sm:$0xff] }
 0x135   : > { %11791 = vmatprep.mubr.msk.f32.mxu0 %vm279_vm1, %v16761_v3  ;;  %v1127_v5 = vpop.f32.mrf.mxu1  ;;  %v3194_v3 = vld [vmem:[#allocation2 + $0xf9] sm:$0xff] }
 0x136   : > { %v1495_v59 = vpop.f32.mrf.mxu0  ;;  %v13509_v18 = vadd.f32 %v11487_v46, %v1133_v54  ;;  %v1128_v15 = vadd.f32 %v1127_v5, %v13395_v11  ;;  %v3195_v11 = vld [vmem:[#allocation2 + $0x109] sm:$0xff]  ;;  %v3201_v5 = vld [vmem:[#allocation2 + $0x151] sm:$0xff] }
 0x137   : > { %v11440_v61 = vpop.f32.mrf.mxu1  ;;  %11739 = vmatmul.mubr.msk.f32.gmra.mxu1 %vm279_vm1, %v3192_v62 }
 0x138   : > { %v11493_v0 = vpop.f32.mrf.mxu0  ;;  %11792 = vmatmul.mubr.msk.f32.gmra.mxu0 %vm279_vm1, %v16762_v13  ;;  %v13515_v7 = vadd.f32 %v1485_v40, %v1128_v15  ;;  %v1143_v55 = vadd.f32 %v11440_v61, %v13403_v33  ;;  %11741 = vmatprep.mubr.msk.f32.mxu1 %vm279_vm1, %v3193_v50  ;;  %v3594_v61 = vld [vmem:[#allocation2 + $0x172] sm:$0xff] }
 0x139   : > { %11794 = vmatprep.mubr.msk.f32.mxu0 %vm279_vm1, %v16763_v2  ;;  %v1137_v12 = vpop.f32.mrf.mxu1  ;;  %v3196_v2 = vld [vmem:[#allocation2 + $0x111] sm:$0xff] }
 0x13a   : > { %v1505_v56 = vpop.f32.mrf.mxu0  ;;  %v13521_v26 = vadd.f32 %v11490_v60, %v1143_v55  ;;  %v1138_v19 = vadd.f32 %v1137_v12, %v13414_v38  ;;  %v3197_v38 = vld [vmem:[#allocation2 + $0x121] sm:$0xff] }
 0x13b   : > { %v11443_v41 = vpop.f32.mrf.mxu1  ;;  %11742 = vmatmul.mubr.msk.f32.gmra.mxu1 %vm279_vm1, %v3194_v3  ;;  %v3200_v60 = vld [vmem:[#allocation2 + $0x141] sm:$0xff]  ;;  %v3203_v3 = vld [vmem:[#allocation2 + $0x169] sm:$0xff] }
 0x13c   : > { %v11496_v13 = vpop.f32.mrf.mxu0  ;;  %11795 = vmatmul.mubr.msk.f32.gmra.mxu0 %vm279_vm1, %v16765_v22  ;;  %v13527_v33 = vadd.f32 %v1495_v59, %v1138_v19  ;;  %v1153_v45 = vadd.f32 %v11443_v41, %v13302_v63  ;;  %11744 = vmatprep.mubr.msk.f32.mxu1 %vm279_vm1, %v3195_v11  ;;  %v3593_v59 = vld [vmem:[#allocation2 + $0x16a] sm:$0xff] }
 0x13d   : > { %11797 = vmatprep.mubr.msk.f32.mxu0 %vm279_vm1, %v16766_v25  ;;  %v1147_v57 = vpop.f32.mrf.mxu1  ;;  %v3198_v25 = vld [vmem:[#allocation2 + $0x129] sm:$0xff]  ;;  %v3204_v19 = vld [vmem:[#allocation2 + $0x171] sm:$0xff] }
 0x13e   : > { %16780 = vst [vmem:[#allocation17_spill] sm:$0xff] %v13527_v33  ;;  %v13533_v35 = vpop.f32.mrf.mxu0  ;;  %v13535_v46 = vadd.f32 %v11493_v0, %v1153_v45  ;;  %v1148_v9 = vadd.f32 %v1147_v57, %v13314_v4  ;;  %v3597_v45 = vld [vmem:[#allocation2 + $0x19a] sm:$0xff] }
 0x13f   : > { %v11446_v39 = vpop.f32.mrf.mxu1  ;;  %11745 = vmatmul.mubr.msk.f32.gmra.mxu1 %vm279_vm1, %v3196_v2 }
 0x140   : > { %v11499_v22 = vpop.f32.mrf.mxu0  ;;  %11798 = vmatmul.mubr.msk.f32.gmra.mxu0 %vm279_vm1, %v16768_v29  ;;  %v13541_v63 = vadd.f32 %v1505_v56, %v1148_v9  ;;  %v1163_v6 = vadd.f32 %v11446_v39, %v13318_v10  ;;  %11747 = vmatprep.mubr.msk.f32.mxu1 %vm279_vm1, %v3197_v38 }
 0x141   : > { %11800 = vmatprep.mubr.msk.f32.mxu0 %vm279_vm1, %v16769_v37  ;;  %v13547_v40 = vpop.f32.mrf.mxu1  ;;  %v3592_v37 = vld [vmem:[#allocation2 + $0x15a] sm:$0xff] }
 0x142   : > { %16781 = vst [vmem:[#allocation18_spill] sm:$0xff] %v13541_v63  ;;  %v13549_v4 = vpop.f32.mrf.mxu0  ;;  %v13551_v53 = vadd.f32 %v11496_v13, %v1163_v6 }
 0x143   : > { %v11449_v51 = vpop.f32.mrf.mxu1  ;;  %11748 = vmatmul.mubr.msk.f32.gmra.mxu1 %vm279_vm1, %v3198_v25 }
 0x144   : > { %v11502_v29 = vpop.f32.mrf.mxu0  ;;  %11801 = vmatmul.mubr.msk.f32.gmra.mxu0 %vm279_vm1, %v16771_v48  ;;  %v1173_v10 = vadd.f32 %v11449_v51, %v13334_v20  ;;  %11750 = vmatprep.mubr.msk.f32.mxu1 %vm279_vm1, %v3199_v42 }
 0x145   : > { %11803 = vmatprep.mubr.msk.f32.mxu0 %vm279_vm1, %v16772_v27  ;;  %v13560_v54 = vpop.f32.mrf.mxu1  ;;  %v3202_v27 = vld [vmem:[#allocation2 + $0x159] sm:$0xff] }
 0x146   : > { %v13562_v62 = vpop.f32.mrf.mxu0  ;;  %v13564_v50 = vadd.f32 %v11499_v22, %v1173_v10  ;;  %v3207_v22 = vld [vmem:[#allocation2 + $0x199] sm:$0xff] }
 0x147   : > { %v11452_v15 = vpop.f32.mrf.mxu1  ;;  %11751 = vmatmul.mubr.msk.f32.gmra.mxu1 %vm279_vm1, %v3200_v60 }
 0x148   : > { %v11505_v48 = vpop.f32.mrf.mxu0  ;;  %11804 = vmatmul.mubr.msk.f32.gmra.mxu0 %vm279_vm1, %v3592_v37  ;;  %v1183_v20 = vadd.f32 %v11452_v15, %v13350_v28  ;;  %11753 = vmatprep.mubr.msk.f32.mxu1 %vm279_vm1, %v3201_v5 }
 0x149   : > { %11806 = vmatprep.mubr.msk.f32.mxu0 %vm279_vm1, %v3593_v59  ;;  %v13571_v0 = vpop.f32.mrf.mxu1 }
 0x14a   : > { %v13573_v55 = vpop.f32.mrf.mxu0  ;;  %v13575_v12 = vadd.f32 %v11502_v29, %v1183_v20 }
 0x14b   : > { %16782 = vst [vmem:[#allocation19_spill] sm:$0xff] %v13573_v55  ;;  %v11455_v56 = vpop.f32.mrf.mxu1  ;;  %11754 = vmatmul.mubr.msk.f32.gmra.mxu1 %vm279_vm1, %v3202_v27 }
 0x14c   : > { %v11508_v11 = vpop.f32.mrf.mxu0  ;;  %11807 = vmatmul.mubr.msk.f32.gmra.mxu0 %vm279_vm1, %v3594_v61  ;;  %v1193_v28 = vadd.f32 %v11455_v56, %v13366_v47  ;;  %11756 = vmatprep.mubr.msk.f32.mxu1 %vm279_vm1, %v3203_v3  ;;  %v16791_v3 = vmov 0.0  }
 0x14d   : > { %11809 = vmatprep.mubr.msk.f32.mxu0 %vm279_vm1, %v13397_v17  ;;  %v13583_v41 = vpop.f32.mrf.mxu1  ;;  %v3598_v17 = vld [vmem:[#allocation2 + $0x1a2] sm:$0xff]  ;;  %341 = vst.msk [vmem:[#allocation3 + $0x20] sm:$0xff] %vm335_vm3, %v16791_v3  ;;  %336 = vst.msk [vmem:[#allocation3] sm:$0xff] %vm335_vm3, %v16791_v3 }
 0x14e   : > { %16783 = vst [vmem:[#allocation20_spill] sm:$0xff] %v13583_v41  ;;  %v13585_v13 = vpop.f32.mrf.mxu0  ;;  %v13587_v2 = vadd.f32 %v11505_v48, %v1193_v28  ;;  %342 = vst.msk [vmem:[#allocation3 + $0x28] sm:$0x3] %vm338_vm4, %v16791_v3 }
 0x14f   : > { %16784 = vst [vmem:[#allocation21_spill] sm:$0xff] %v13585_v13  ;;  %v11458_v57 = vpop.f32.mrf.mxu1  ;;  %11757 = vmatmul.mubr.msk.f32.gmra.mxu1 %vm279_vm1, %v3204_v19  ;;  %337 = vst.msk [vmem:[#allocation3 + $0x8] sm:$0xff] %vm335_vm3, %v16791_v3 }
 0x150   : > { %v11511_v38 = vpop.f32.mrf.mxu0  ;;  %11810 = vmatmul.mubr.msk.f32.gmra.mxu0 %vm279_vm1, %v13408_v34  ;;  %v1203_v47 = vadd.f32 %v11458_v57, %v13382_v52  ;;  %11759 = vmatprep.mubr.msk.f32.mxu1 %vm279_vm1, %v13198_v30  ;;  %v3208_v30 = vld [vmem:[#allocation2 + $0x1a1] sm:$0xff]  ;;  %339 = vst.msk [vmem:[#allocation3 + $0x10] sm:$0x3] %vm338_vm4, %v16791_v3  ;;  %345 = vst.msk [vmem:[#allocation3 + $0x40] sm:$0x3] %vm338_vm4, %v16791_v3 }
 0x151   : > { %11812 = vmatprep.mubr.msk.f32.mxu0 %vm279_vm1, %v3597_v45  ;;  %v13596_v9 = vpop.f32.mrf.mxu1  ;;  %340 = vst.msk [vmem:[#allocation3 + $0x18] sm:$0xff] %vm335_vm3, %v16791_v3  ;;  %343 = vst.msk [vmem:[#allocation3 + $0x30] sm:$0xff] %vm335_vm3, %v16791_v3 }
 0x152   : > { %16785 = vst [vmem:[#allocation22_spill] sm:$0xff] %v13596_v9  ;;  %v13598_v39 = vpop.f32.mrf.mxu0  ;;  %v13600_v6 = vadd.f32 %v11508_v11, %v1203_v47  ;;  %344 = vst.msk [vmem:[#allocation3 + $0x38] sm:$0xff] %vm335_vm3, %v16791_v3 }
 0x153   : > { %16786 = vst [vmem:[#allocation23_spill] sm:$0xff] %v13598_v39  ;;  %v11461_v25 = vpop.f32.mrf.mxu1  ;;  %11760 = vmatmul.mubr.msk.f32.gmra.mxu1 %vm279_vm1, %v13208_v31  ;;  %v16789_v31 = vld [vmem:[#allocation15_spill] sm:$0xff]  ;;  %346 = vst.msk [vmem:[#allocation3 + $0x48] sm:$0xff] %vm335_vm3, %v16791_v3 }
 0x154   : > { %v11514_v34 = vpop.f32.mrf.mxu0  ;;  %11813 = vmatmul.mubr.msk.f32.gmra.mxu0 %vm279_vm1, %v3598_v17  ;;  %v1213_v52 = vadd.f32 %v11461_v25, %v13399_v32  ;;  %11762 = vmatprep.mubr.msk.f32.mxu1 %vm279_vm1, %v3207_v22  ;;  %347 = vst.msk [vmem:[#allocation3 + $0x50] sm:$0xff] %vm335_vm3, %v16791_v3  ;;  %349 = vst.msk [vmem:[#allocation3 + $0x60] sm:$0xff] %vm335_vm3, %v16791_v3 }
 0x155   : > { %v13607_v42 = vpop.f32.mrf.mxu1  ;;  %348 = vst.msk [vmem:[#allocation3 + $0x58] sm:$0x3] %vm338_vm4, %v16791_v3  ;;  %351 = vst.msk [vmem:[#allocation3 + $0x70] sm:$0x3] %vm338_vm4, %v16791_v3 }
 0x156   : > { %16787 = vst [vmem:[#allocation24_spill] sm:$0xff] %v13607_v42  ;;  %v13609_v51 = vpop.f32.mrf.mxu0  ;;  %v13611_v29 = vadd.f32 %v11511_v38, %v1213_v52  ;;  %350 = vst.msk [vmem:[#allocation3 + $0x68] sm:$0xff] %vm335_vm3, %v16791_v3 }
 0x157   : > { %16788 = vst [vmem:[#allocation25_spill] sm:$0xff] %v13609_v51  ;;  %v11464_v10 = vpop.f32.mrf.mxu1  ;;  %11763 = vmatmul.mubr.msk.f32.gmra.mxu1 %vm279_vm1, %v3208_v30  ;;  %352 = vst.msk [vmem:[#allocation3 + $0x78] sm:$0xff] %vm335_vm3, %v16791_v3 }
 0x158   : > { %v13614_v60 = vpop.f32.mrf.mxu0  ;;  %v1223_v37 = vadd.f32 %v11464_v10, %v16789_v31  ;;  %353 = vst.msk [vmem:[#allocation3 + $0x80] sm:$0xff] %vm335_vm3, %v16791_v3  ;;  %355 = vst.msk [vmem:[#allocation3 + $0x90] sm:$0xff] %vm335_vm3, %v16791_v3  ;;  %v4094_v10 = vld [vmem:[#allocation3 + $0x1] sm:$0xff] }
 0x159   : > { %v13617_v5 = vpop.f32.mrf.mxu1  ;;  %354 = vst.msk [vmem:[#allocation3 + $0x88] sm:$0x3] %vm338_vm4, %v16791_v3  ;;  %357 = vst.msk [vmem:[#allocation3 + $0xa0] sm:$0x3] %vm338_vm4, %v16791_v3  ;;  %11817 = vmatprep.mubr.msk.f32.mxu1 %vm335_vm3, %v4094_v10 }
 0x15a   : > { %16790 = vst [vmem:[#allocation26_spill] sm:$0xff] %v13617_v5  ;;  %v13619_v59 = vpop.f32.mrf.mxu0  ;;  %v13621_v32 = vadd.f32 %v11514_v34, %v1223_v37  ;;  %356 = vst.msk [vmem:[#allocation3 + $0x98] sm:$0xff] %vm335_vm3, %v16791_v3  ;;  %v4062_v37 = vld [vmem:[#allocation3 + $0x8] sm:$0xff] }
 0x15b   : > { %v11519_v15 = vpop.f32.mrf.mxu1  ;;  %358 = vst.msk [vmem:[#allocation3 + $0xa8] sm:$0xff] %vm335_vm3, %v16791_v3  ;;  %359 = vst.msk [vmem:[#allocation3 + $0xb0] sm:$0xff] %vm335_vm3, %v16791_v3 }
 0x15c   : > { %v13623_v48 = vpop.f32.mrf.mxu0  ;;  %v13626_v20 = vadd.f32 %v11519_v15, %v13434_v21  ;;  %360 = vst.msk [vmem:[#allocation3 + $0xb8] sm:$0x3] %vm338_vm4, %v16791_v3  ;;  %363 = vst.msk [vmem:[#allocation3 + $0xd0] sm:$0x3] %vm338_vm4, %v16791_v3 }
 0x15d   : > { %v13628_v27 = vpop.f32.mrf.mxu1  ;;  %361 = vst.msk [vmem:[#allocation3 + $0xc0] sm:$0xff] %vm335_vm3, %v16791_v3  ;;  %362 = vst.msk [vmem:[#allocation3 + $0xc8] sm:$0xff] %vm335_vm3, %v16791_v3 }
 0x15e   : > { %v13630_v61 = vpop.f32.mrf.mxu0  ;;  %364 = vst.msk [vmem:[#allocation3 + $0xd8] sm:$0xff] %vm335_vm3, %v16791_v3  ;;  %365 = vst.msk [vmem:[#allocation3 + $0xe0] sm:$0xff] %vm335_vm3, %v16791_v3  ;;  %v13850_v21 = vadd.f32 %v13614_v60, %v13626_v20  ;;  %v4061_v60 = vld [vmem:[#allocation3] sm:$0xff] }
 0x15f   : > { %366 = vst.msk [vmem:[#allocation3 + $0xe8] sm:$0x3] %vm338_vm4, %v16791_v3  ;;  %369 = vst.msk [vmem:[#allocation3 + $0x100] sm:$0x3] %vm338_vm4, %v16791_v3  ;;  %v11522_v56 = vpop.f32.mrf.mxu1  ;;  %11867 = vmatprep.mubr.msk.f32.mxu0 %vm335_vm3, %v4061_v60 }
 0x160   : > { %367 = vst.msk [vmem:[#allocation3 + $0xf0] sm:$0xff] %vm335_vm3, %v16791_v3  ;;  %368 = vst.msk [vmem:[#allocation3 + $0xf8] sm:$0xff] %vm335_vm3, %v16791_v3  ;;  %v11575_v11 = vpop.f32.mrf.mxu0  ;;  %v1977_v28 = vadd.f32 %v11522_v56, %v13446_v36  ;;  %v4093_v36 = vld [vmem:[%s16576_s3] sm:$0xff] }
 0x161   : > { %370 = vst.msk [vmem:[#allocation3 + $0x108] sm:$0xff] %vm335_vm3, %v16791_v3  ;;  %371 = vst.msk [vmem:[#allocation3 + $0x110] sm:$0xff] %vm335_vm3, %v16791_v3  ;;  %v13853_v19 = vpop.f32.mrf.mxu1  ;;  %11865 = vmatprep.subr.mxu0 %v4093_v36 }
 0x162   : > { %372 = vst.msk [vmem:[#allocation3 + $0x118] sm:$0x3] %vm338_vm4, %v16791_v3  ;;  %375 = vst.msk [vmem:[#allocation3 + $0x130] sm:$0x3] %vm338_vm4, %v16791_v3  ;;  %v13855_v45 = vpop.f32.mrf.mxu0  ;;  %v13858_v57 = vadd.f32 %v13623_v48, %v1977_v28  ;;  %11866 = vmatpush3.msra.mxu0 %v4093_v36 }
 0x163   : > { %373 = vst.msk [vmem:[#allocation3 + $0x120] sm:$0xff] %vm335_vm3, %v16791_v3  ;;  %374 = vst.msk [vmem:[#allocation3 + $0x128] sm:$0xff] %vm335_vm3, %v16791_v3  ;;  %v11525_v38 = vpop.f32.mrf.mxu1  ;;  %11868 = vmatmul.mubr.msk.f32.vlgmr.msra.gmra.mxu0 %vm335_vm3, %v4062_v37 }
 0x164   : > { %376 = vst.msk [vmem:[#allocation3 + $0x138] sm:$0xff] %vm335_vm3, %v16791_v3  ;;  %377 = vst.msk [vmem:[#allocation3 + $0x140] sm:$0xff] %vm335_vm3, %v16791_v3  ;;  %v11578_v47 = vpop.f32.mrf.mxu0  ;;  %v1979_v17 = vadd.f32 %v11525_v38, %v13458_v8  ;;  %v4095_v8 = vld [vmem:[#allocation3 + $0x9] sm:$0xff] }
 0x165   : > { %378 = vst.msk [vmem:[#allocation3 + $0x148] sm:$0x3] %vm338_vm4, %v16791_v3  ;;  %381 = vst.msk [vmem:[#allocation3 + $0x160] sm:$0x3] %vm338_vm4, %v16791_v3  ;;  %v13861_v22 = vpop.f32.mrf.mxu1  ;;  %11818 = vmatmul.mubr.msk.f32.vlgmr.msra.gmra.mxu1 %vm335_vm3, %v4095_v8 }
 0x166   : > { %379 = vst.msk [vmem:[#allocation3 + $0x150] sm:$0xff] %vm335_vm3, %v16791_v3  ;;  %380 = vst.msk [vmem:[#allocation3 + $0x158] sm:$0xff] %vm335_vm3, %v16791_v3  ;;  %v13863_v25 = vpop.f32.mrf.mxu0  ;;  %v13865_v34 = vadd.f32 %v11575_v11, %v1979_v17 }
 0x167   : > { %382 = vst.msk [vmem:[#allocation3 + $0x168] sm:$0xff] %vm335_vm3, %v16791_v3  ;;  %383 = vst.msk [vmem:[#allocation3 + $0x170] sm:$0xff] %vm335_vm3, %v16791_v3  ;;  %v11528_v52 = vpop.f32.mrf.mxu1 }
 0x168   : > { %384 = vst.msk [vmem:[#allocation3 + $0x178] sm:$0x3] %vm338_vm4, %v16791_v3  ;;  %387 = vst.msk [vmem:[#allocation3 + $0x190] sm:$0x3] %vm338_vm4, %v16791_v3  ;;  %v11581_v30 = vpop.f32.mrf.mxu0  ;;  %v1981_v31 = vadd.f32 %v11528_v52, %v13470_v44 }
 0x169   : > { %385 = vst.msk [vmem:[#allocation3 + $0x180] sm:$0xff] %vm335_vm3, %v16791_v3  ;;  %386 = vst.msk [vmem:[#allocation3 + $0x188] sm:$0xff] %vm335_vm3, %v16791_v3  ;;  %v13872_v15 = vpop.f32.mrf.mxu1 }
 0x16a   : > { %388 = vst.msk [vmem:[#allocation3 + $0x198] sm:$0xff] %vm335_vm3, %v16791_v3  ;;  %389 = vst.msk [vmem:[#allocation3 + $0x1a0] sm:$0xff] %vm335_vm3, %v16791_v3  ;;  %v13874_v48 = vpop.f32.mrf.mxu0  ;;  %v13878_v20 = vadd.f32 %v11578_v47, %v1981_v31 }
 0x16b   : > { %390 = vst.msk [vmem:[#allocation3 + $0x1a8] sm:$0x3] %vm338_vm4, %v16791_v3  ;;  %393 = vst.msk [vmem:[#allocation4 + $0x10] sm:$0x3] %vm338_vm4, %v16791_v3 }
 0x16c   : > { %391 = vst.msk [vmem:[#allocation4] sm:$0xff] %vm335_vm3, %v16791_v3  ;;  %392 = vst.msk [vmem:[#allocation4 + $0x8] sm:$0xff] %vm335_vm3, %v16791_v3  ;;  %v11584_v56 = vpop.f32.mrf.mxu0 }
 0x16d   : > { %394 = vst.msk [vmem:[#allocation4 + $0x18] sm:$0xff] %vm335_vm3, %v16791_v3  ;;  %395 = vst.msk [vmem:[#allocation4 + $0x20] sm:$0xff] %vm335_vm3, %v16791_v3 }
 0x16e   : > { %396 = vst.msk [vmem:[#allocation4 + $0x28] sm:$0x3] %vm338_vm4, %v16791_v3  ;;  %399 = vst.msk [vmem:[#allocation4 + $0x40] sm:$0x3] %vm338_vm4, %v16791_v3  ;;  %v13884_v28 = vpop.f32.mrf.mxu0 }
 0x16f   : > { %397 = vst.msk [vmem:[#allocation4 + $0x30] sm:$0xff] %vm335_vm3, %v16791_v3  ;;  %398 = vst.msk [vmem:[#allocation4 + $0x38] sm:$0xff] %vm335_vm3, %v16791_v3 }
 0x170   : > { %400 = vst.msk [vmem:[#allocation4 + $0x48] sm:$0xff] %vm335_vm3, %v16791_v3  ;;  %401 = vst.msk [vmem:[#allocation4 + $0x50] sm:$0xff] %vm335_vm3, %v16791_v3  ;;  %v11587_v36 = vpop.f32.mrf.mxu0 }
 0x171   : > { %402 = vst.msk [vmem:[#allocation4 + $0x58] sm:$0x3] %vm338_vm4, %v16791_v3  ;;  %405 = vst.msk [vmem:[#allocation4 + $0x70] sm:$0x3] %vm338_vm4, %v16791_v3 }
 0x172   : > { %403 = vst.msk [vmem:[#allocation4 + $0x60] sm:$0xff] %vm335_vm3, %v16791_v3  ;;  %404 = vst.msk [vmem:[#allocation4 + $0x68] sm:$0xff] %vm335_vm3, %v16791_v3  ;;  %v13891_v47 = vpop.f32.mrf.mxu0 }
 0x173   : > { %406 = vst.msk [vmem:[#allocation4 + $0x78] sm:$0xff] %vm335_vm3, %v16791_v3  ;;  %407 = vst.msk [vmem:[#allocation4 + $0x80] sm:$0xff] %vm335_vm3, %v16791_v3 }
 0x174   : > { %408 = vst.msk [vmem:[#allocation4 + $0x88] sm:$0x3] %vm338_vm4, %v16791_v3  ;;  %411 = vst.msk [vmem:[#allocation4 + $0xa0] sm:$0x3] %vm338_vm4, %v16791_v3  ;;  %v11590_v8 = vpop.f32.mrf.mxu0 }
 0x175   : > { %409 = vst.msk [vmem:[#allocation4 + $0x90] sm:$0xff] %vm335_vm3, %v16791_v3  ;;  %410 = vst.msk [vmem:[#allocation4 + $0x98] sm:$0xff] %vm335_vm3, %v16791_v3 }
 0x176   : > { %412 = vst.msk [vmem:[#allocation4 + $0xa8] sm:$0xff] %vm335_vm3, %v16791_v3  ;;  %413 = vst.msk [vmem:[#allocation4 + $0xb0] sm:$0xff] %vm335_vm3, %v16791_v3 }
 0x177   : > { %414 = vst.msk [vmem:[#allocation4 + $0xb8] sm:$0x3] %vm338_vm4, %v16791_v3  ;;  %417 = vst.msk [vmem:[#allocation4 + $0xd0] sm:$0x3] %vm338_vm4, %v16791_v3 }
 0x178   : > { %415 = vst.msk [vmem:[#allocation4 + $0xc0] sm:$0xff] %vm335_vm3, %v16791_v3  ;;  %416 = vst.msk [vmem:[#allocation4 + $0xc8] sm:$0xff] %vm335_vm3, %v16791_v3 }
 0x179   : > { %418 = vst.msk [vmem:[#allocation4 + $0xd8] sm:$0xff] %vm335_vm3, %v16791_v3  ;;  %419 = vst.msk [vmem:[#allocation4 + $0xe0] sm:$0xff] %vm335_vm3, %v16791_v3 }
 0x17a   : > { %420 = vst.msk [vmem:[#allocation4 + $0xe8] sm:$0x3] %vm338_vm4, %v16791_v3  ;;  %423 = vst.msk [vmem:[#allocation4 + $0x100] sm:$0x3] %vm338_vm4, %v16791_v3 }
 0x17b   : > { %421 = vst.msk [vmem:[#allocation4 + $0xf0] sm:$0xff] %vm335_vm3, %v16791_v3  ;;  %422 = vst.msk [vmem:[#allocation4 + $0xf8] sm:$0xff] %vm335_vm3, %v16791_v3 }
 0x17c   : > { %424 = vst.msk [vmem:[#allocation4 + $0x108] sm:$0xff] %vm335_vm3, %v16791_v3  ;;  %425 = vst.msk [vmem:[#allocation4 + $0x110] sm:$0xff] %vm335_vm3, %v16791_v3 }
 0x17d   : > { %426 = vst.msk [vmem:[#allocation4 + $0x118] sm:$0x3] %vm338_vm4, %v16791_v3  ;;  %429 = vst.msk [vmem:[#allocation4 + $0x130] sm:$0x3] %vm338_vm4, %v16791_v3 }
 0x17e   : > { %427 = vst.msk [vmem:[#allocation4 + $0x120] sm:$0xff] %vm335_vm3, %v16791_v3  ;;  %428 = vst.msk [vmem:[#allocation4 + $0x128] sm:$0xff] %vm335_vm3, %v16791_v3 }
 0x17f   : > { %430 = vst.msk [vmem:[#allocation4 + $0x138] sm:$0xff] %vm335_vm3, %v16791_v3  ;;  %431 = vst.msk [vmem:[#allocation4 + $0x140] sm:$0xff] %vm335_vm3, %v16791_v3 }
 0x180   : > { %432 = vst.msk [vmem:[#allocation4 + $0x148] sm:$0x3] %vm338_vm4, %v16791_v3  ;;  %435 = vst.msk [vmem:[#allocation4 + $0x160] sm:$0x3] %vm338_vm4, %v16791_v3 }
 0x181   : > { %433 = vst.msk [vmem:[#allocation4 + $0x150] sm:$0xff] %vm335_vm3, %v16791_v3  ;;  %434 = vst.msk [vmem:[#allocation4 + $0x158] sm:$0xff] %vm335_vm3, %v16791_v3 }
 0x182   : > { %436 = vst.msk [vmem:[#allocation4 + $0x168] sm:$0xff] %vm335_vm3, %v16791_v3  ;;  %437 = vst.msk [vmem:[#allocation4 + $0x170] sm:$0xff] %vm335_vm3, %v16791_v3 }
 0x183   : > { %438 = vst.msk [vmem:[#allocation4 + $0x178] sm:$0x3] %vm338_vm4, %v16791_v3  ;;  %441 = vst.msk [vmem:[#allocation4 + $0x190] sm:$0x3] %vm338_vm4, %v16791_v3 }
 0x184   : > { %439 = vst.msk [vmem:[#allocation4 + $0x180] sm:$0xff] %vm335_vm3, %v16791_v3  ;;  %440 = vst.msk [vmem:[#allocation4 + $0x188] sm:$0xff] %vm335_vm3, %v16791_v3 }
 0x185   : > { %442 = vst.msk [vmem:[#allocation4 + $0x198] sm:$0xff] %vm335_vm3, %v16791_v3  ;;  %443 = vst.msk [vmem:[#allocation4 + $0x1a0] sm:$0xff] %vm335_vm3, %v16791_v3 }
 0x186   : > { %444 = vst.msk [vmem:[#allocation4 + $0x1a8] sm:$0x3] %vm338_vm4, %v16791_v3  ;;  %v11531_v3 = vpop.f32.mrf.mxu1  ;;  %16792 = vst [vmem:[#allocation27_spill] sm:$0xff] %v13891_v47 }
 0x187   : > { %v1983_v44 = vadd.f32 %v11531_v3, %v13485_v16  ;;  %v9921_v16 = vld [vmem:[%s16576_s3 + $0x10] sm:$0xff]  ;;  %v13901_v3 = vpop.f32.mrf.mxu0 }
 0x188   : > { %v13882_v11 = vpop.f32.mrf.mxu1  ;;  %11915 = vmatprep.subr.mxu1 %v9921_v16  ;;  %16793 = vst [vmem:[#allocation28_spill] sm:$0xff] %v13901_v3 }
 0x189   : > { %v13886_v38 = vadd.f32 %v11581_v30, %v1983_v44  ;;  %11916 = vmatpush3.msra.mxu1 %v9921_v16 }
 0x18a   : > { %v11534_v17 = vpop.f32.mrf.mxu1 }
 0x18b   : > { %v1985_v52 = vadd.f32 %v11534_v17, %v13497_v23  ;;  %v11593_v17 = vpop.f32.mrf.mxu0 }
 0x18c   : > { %v13889_v10 = vpop.f32.mrf.mxu1 }
 0x18d   : > { %v13893_v60 = vadd.f32 %v11584_v56, %v1985_v52  ;;  %v13908_v51 = vpop.f32.mrf.mxu0 }
 0x18e   : > { %v11537_v31 = vpop.f32.mrf.mxu1  ;;  %16796 = vst [vmem:[#allocation31_spill] sm:$0xff] %v13908_v51 }
 0x18f   : > { %v1987_v30 = vadd.f32 %v11537_v31, %v13509_v18  ;;  %v11596_v42 = vpop.f32.mrf.mxu0 }
 0x190   : > { %v13899_v37 = vpop.f32.mrf.mxu1 }
 0x191   : > { %v13903_v23 = vadd.f32 %v11587_v36, %v1987_v30  ;;  %v13915_v31 = vpop.f32.mrf.mxu0 }
 0x192   : > { %v11540_v44 = vpop.f32.mrf.mxu1  ;;  %16799 = vst [vmem:[#allocation34_spill] sm:$0xff] %v13915_v31 }
 0x193   : > { %16794 = vst [vmem:[#allocation29_spill] sm:$0xff] %v13903_v23  ;;  %v1989_v56 = vadd.f32 %v11540_v44, %v13521_v26  ;;  %v11599_v13 = vpop.f32.mrf.mxu0 }
 0x194   : > { %v13906_v52 = vpop.f32.mrf.mxu1 }
 0x195   : > { %16795 = vst [vmem:[#allocation30_spill] sm:$0xff] %v13906_v52  ;;  %v13910_v5 = vadd.f32 %v11590_v8, %v1989_v56  ;;  %v13922_v9 = vpop.f32.mrf.mxu0 }
 0x196   : > { %v11543_v39 = vpop.f32.mrf.mxu1  ;;  %16802 = vst [vmem:[#allocation37_spill] sm:$0xff] %v13922_v9 }
 0x197   : > { %16797 = vst [vmem:[#allocation32_spill] sm:$0xff] %v13910_v5  ;;  %v1991_v18 = vadd.f32 %v11543_v39, %v13535_v46  ;;  %v11602_v51 = vpop.f32.mrf.mxu0 }
 0x198   : > { %v13913_v16 = vpop.f32.mrf.mxu1 }
 0x199   : > { %16798 = vst [vmem:[#allocation33_spill] sm:$0xff] %v13913_v16  ;;  %v13917_v36 = vadd.f32 %v11593_v17, %v1991_v18  ;;  %v13929_v55 = vpop.f32.mrf.mxu0 }
 0x19a   : > { %v11546_v30 = vpop.f32.mrf.mxu1  ;;  %16805 = vst [vmem:[#allocation39_spill] sm:$0xff] %v13929_v55 }
 0x19b   : > { %16800 = vst [vmem:[#allocation35_spill] sm:$0xff] %v13917_v36  ;;  %v1993_v26 = vadd.f32 %v11546_v30, %v13551_v53  ;;  %v11605_v31 = vpop.f32.mrf.mxu0 }
 0x19c   : > { %v13920_v44 = vpop.f32.mrf.mxu1 }
 0x19d   : > { %16801 = vst [vmem:[#allocation36_spill] sm:$0xff] %v13920_v44  ;;  %v13924_v8 = vadd.f32 %v11596_v42, %v1993_v26  ;;  %v13936_v36 = vpop.f32.mrf.mxu0 }
 0x19e   : > { %v11549_v56 = vpop.f32.mrf.mxu1  ;;  %16808 = vst [vmem:[#allocation42_spill] sm:$0xff] %v13936_v36 }
 0x19f   : > { %16803 = vst [vmem:[#allocation15_spill] sm:$0xff] %v13924_v8  ;;  %v1995_v46 = vadd.f32 %v11549_v56, %v13564_v50  ;;  %v11608_v9 = vpop.f32.mrf.mxu0 }
 0x1a0   : > { %v13927_v39 = vpop.f32.mrf.mxu1 }
 0x1a1   : > { %16804 = vst [vmem:[#allocation38_spill] sm:$0xff] %v13927_v39  ;;  %v13931_v17 = vadd.f32 %v11599_v13, %v1995_v46  ;;  %v13943_v8 = vpop.f32.mrf.mxu0 }
 0x1a2   : > { %v11552_v18 = vpop.f32.mrf.mxu1  ;;  %16811 = vst [vmem:[#allocation45_spill] sm:$0xff] %v13943_v8 }
 0x1a3   : > { %16806 = vst [vmem:[#allocation40_spill] sm:$0xff] %v13931_v17  ;;  %v1997_v53 = vadd.f32 %v11552_v18, %v13575_v12  ;;  %v11611_v55 = vpop.f32.mrf.mxu0 }
 0x1a4   : > { %v13934_v30 = vpop.f32.mrf.mxu1 }
 0x1a5   : > { %16807 = vst [vmem:[#allocation41_spill] sm:$0xff] %v13934_v30  ;;  %v13938_v42 = vadd.f32 %v11602_v51, %v1997_v53  ;;  %v13950_v17 = vpop.f32.mrf.mxu0 }
 0x1a6   : > { %v11555_v26 = vpop.f32.mrf.mxu1  ;;  %16814 = vst [vmem:[#allocation48_spill] sm:$0xff] %v13950_v17 }
 0x1a7   : > { %16809 = vst [vmem:[#allocation43_spill] sm:$0xff] %v13938_v42  ;;  %v1999_v50 = vadd.f32 %v11555_v26, %v13587_v2  ;;  %v11614_v36 = vpop.f32.mrf.mxu0 }
 0x1a8   : > { %v13941_v56 = vpop.f32.mrf.mxu1 }
 0x1a9   : > { %16810 = vst [vmem:[#allocation44_spill] sm:$0xff] %v13941_v56  ;;  %v13945_v13 = vadd.f32 %v11605_v31, %v1999_v50  ;;  %v13957_v42 = vpop.f32.mrf.mxu0 }
 0x1aa   : > { %v11558_v46 = vpop.f32.mrf.mxu1  ;;  %16817 = vst [vmem:[#allocation51_spill] sm:$0xff] %v13957_v42 }
 0x1ab   : > { %16812 = vst [vmem:[#allocation46_spill] sm:$0xff] %v13945_v13  ;;  %v2001_v12 = vadd.f32 %v11558_v46, %v13600_v6  ;;  %v13961_v8 = vpop.f32.mrf.mxu0  ;;  %v9987_v13 = vld [vmem:[%s16576_s3 + $0x20] sm:$0xff] }
 0x1ac   : > { %v13948_v18 = vpop.f32.mrf.mxu1  ;;  %12015 = vmatprep.subr.mxu1 %v9987_v13 }
 0x1ad   : > { %16813 = vst [vmem:[#allocation47_spill] sm:$0xff] %v13948_v18  ;;  %v13952_v51 = vadd.f32 %v11608_v9, %v2001_v12  ;;  %v13966_v17 = vpop.f32.mrf.mxu0 }
 0x1ae   : > { %v11561_v53 = vpop.f32.mrf.mxu1 }
 0x1af   : > { %16815 = vst [vmem:[#allocation49_spill] sm:$0xff] %v13952_v51  ;;  %v2003_v2 = vadd.f32 %v11561_v53, %v13611_v29  ;;  %v13972_v29 = vpop.f32.mrf.mxu0 }
 0x1b0   : > { %v13955_v26 = vpop.f32.mrf.mxu1 }
 0x1b1   : > { %16816 = vst [vmem:[#allocation50_spill] sm:$0xff] %v13955_v26  ;;  %v13959_v31 = vadd.f32 %v11611_v55, %v2003_v2  ;;  %v13976_v42 = vpop.f32.mrf.mxu0  ;;  %v9954_v26 = vld [vmem:[%s16576_s3 + $0x18] sm:$0xff] }
 0x1b2   : > { %v11564_v50 = vpop.f32.mrf.mxu1  ;;  %11965 = vmatprep.subr.mxu0 %v9954_v26 }
 0x1b3   : > { %16818 = vst [vmem:[#allocation52_spill] sm:$0xff] %v13959_v31  ;;  %v2005_v6 = vadd.f32 %v11564_v50, %v13621_v32  ;;  %v13980_v2 = vpop.f32.mrf.mxu0  ;;  %11966 = vmatpush3.msra.mxu0 %v9954_v26 }
 0x1b4   : > { %v13964_v46 = vpop.f32.mrf.mxu1 }
 0x1b5   : > { %16819 = vst [vmem:[#allocation53_spill] sm:$0xff] %v13964_v46  ;;  %v13968_v9 = vadd.f32 %v11614_v36, %v2005_v6  ;;  %v13984_v32 = vpop.f32.mrf.mxu0 }
 0x1b6   : > { %v13970_v12 = vpop.f32.mrf.mxu1 }
 0x1b7   : > { %16820 = vst [vmem:[#allocation54_spill] sm:$0xff] %v13968_v9  ;;  %v13988_v36 = vpop.f32.mrf.mxu0 }
 0x1b8   : > { %v13974_v53 = vpop.f32.mrf.mxu1 }
 0x1b9   : > { %v13992_v9 = vpop.f32.mrf.mxu0 }
 0x1ba   : > { %v13978_v55 = vpop.f32.mrf.mxu1 }
 0x1bb   : > { %v13996_v51 = vpop.f32.mrf.mxu0 }
 0x1bc   : > { %v13982_v31 = vpop.f32.mrf.mxu1 }
 0x1bd   : > { %v14006_v56 = vpop.f32.mrf.mxu0 }
 0x1be   : > { %v13986_v50 = vpop.f32.mrf.mxu1 }
 0x1bf   : > { %v14010_v39 = vpop.f32.mrf.mxu0 }
 0x1c0   : > { %v13990_v6 = vpop.f32.mrf.mxu1  ;;  %16821 = vst [vmem:[#allocation55_spill] sm:$0xff] %v14010_v39 }
 0x1c1   : > { %v14014_v5 = vpop.f32.mrf.mxu0 }
 0x1c2   : > { %v13994_v46 = vpop.f32.mrf.mxu1  ;;  %16822 = vst [vmem:[#allocation56_spill] sm:$0xff] %v14014_v5 }
 0x1c3   : > { %v14018_v63 = vpop.f32.mrf.mxu0 }
 0x1c4   : > { %v14004_v18 = vpop.f32.mrf.mxu1  ;;  %16823 = vst [vmem:[#allocation57_spill] sm:$0xff] %v14018_v63 }
 0x1c5   : > { %v14022_v41 = vpop.f32.mrf.mxu0 }
 0x1c6   : > { %v14008_v30 = vpop.f32.mrf.mxu1  ;;  %16825 = vst [vmem:[#allocation59_spill] sm:$0xff] %v14022_v41 }
 0x1c7   : > { %v14026_v26 = vpop.f32.mrf.mxu0 }
 0x1c8   : > { %v14012_v44 = vpop.f32.mrf.mxu1  ;;  %16827 = vst [vmem:[#allocation61_spill] sm:$0xff] %v14026_v26 }
 0x1c9   : > { %v14030_v52 = vpop.f32.mrf.mxu0 }
 0x1ca   : > { %v14016_v16 = vpop.f32.mrf.mxu1  ;;  %16829 = vst [vmem:[#allocation63_spill] sm:$0xff] %v14030_v52 }
 0x1cb   : > { %v14034_v33 = vpop.f32.mrf.mxu0 }
 0x1cc   : > { %v14020_v3 = vpop.f32.mrf.mxu1  ;;  %16831 = vst [vmem:[#allocation65_spill] sm:$0xff] %v14034_v33 }
 0x1cd   : > { %16824 = vst [vmem:[#allocation58_spill] sm:$0xff] %v14020_v3  ;;  %v14038_v47 = vpop.f32.mrf.mxu0 }
 0x1ce   : > { %v14024_v23 = vpop.f32.mrf.mxu1  ;;  %16833 = vst [vmem:[#allocation67_spill] sm:$0xff] %v14038_v47 }
 0x1cf   : > { %16826 = vst [vmem:[#allocation60_spill] sm:$0xff] %v14024_v23  ;;  %v14042_v3 = vpop.f32.mrf.mxu0 }
 0x1d0   : > { %v14028_v13 = vpop.f32.mrf.mxu1  ;;  %16835 = vst [vmem:[#allocation69_spill] sm:$0xff] %v14042_v3 }
 0x1d1   : > { %16828 = vst [vmem:[#allocation62_spill] sm:$0xff] %v14028_v13  ;;  %v14046_v23 = vpop.f32.mrf.mxu0 }
 0x1d2   : > { %v14032_v39 = vpop.f32.mrf.mxu1  ;;  %16837 = vst [vmem:[#allocation71_spill] sm:$0xff] %v14046_v23 }
 0x1d3   : > { %16830 = vst [vmem:[#allocation64_spill] sm:$0xff] %v14032_v39  ;;  %v14050_v13 = vpop.f32.mrf.mxu0 }
 0x1d4   : > { %v14036_v5 = vpop.f32.mrf.mxu1  ;;  %16839 = vst [vmem:[#allocation73_spill] sm:$0xff] %v14050_v13 }
 0x1d5   : > { %16832 = vst [vmem:[#allocation66_spill] sm:$0xff] %v14036_v5  ;;  %v14054_v39 = vpop.f32.mrf.mxu0 }
 0x1d6   : > { %v14040_v63 = vpop.f32.mrf.mxu1  ;;  %16841 = vst [vmem:[#allocation75_spill] sm:$0xff] %v14054_v39 }
 0x1d7   : > { %16834 = vst [vmem:[#allocation68_spill] sm:$0xff] %v14040_v63  ;;  %v14058_v5 = vpop.f32.mrf.mxu0 }
 0x1d8   : > { %v14044_v41 = vpop.f32.mrf.mxu1  ;;  %16843 = vst [vmem:[#allocation77_spill] sm:$0xff] %v14058_v5 }
 0x1d9   : > { %16836 = vst [vmem:[#allocation70_spill] sm:$0xff] %v14044_v41  ;;  %v14062_v63 = vpop.f32.mrf.mxu0 }
 0x1da   : > { %v14048_v26 = vpop.f32.mrf.mxu1  ;;  %16845 = vst [vmem:[#allocation79_spill] sm:$0xff] %v14062_v63 }
 0x1db   : > { %16838 = vst [vmem:[#allocation72_spill] sm:$0xff] %v14048_v26  ;;  %v14066_v41 = vpop.f32.mrf.mxu0 }
 0x1dc   : > { %v14052_v52 = vpop.f32.mrf.mxu1  ;;  %16847 = vst [vmem:[#allocation81_spill] sm:$0xff] %v14066_v41  ;;  %v1974_v41 = vadd.f32 %v13628_v27, %v13440_v43  ;;  %v1978_v27 = vadd.f32 %v13861_v22, %v13464_v14  ;;  %v1980_v14 = vadd.f32 %v13872_v15, %v13476_v24 }
 0x1dd   : > { %16840 = vst [vmem:[#allocation74_spill] sm:$0xff] %v14052_v52  ;;  %v14070_v26 = vpop.f32.mrf.mxu0 }
 0x1de   : > { %v14056_v33 = vpop.f32.mrf.mxu1  ;;  %16848 = vst [vmem:[#allocation82_spill] sm:$0xff] %v14070_v26 }
 0x1df   : > { %16842 = vst [vmem:[#allocation76_spill] sm:$0xff] %v14056_v33  ;;  %v14074_v52 = vpop.f32.mrf.mxu0 }
 0x1e0   : > { %v14060_v47 = vpop.f32.mrf.mxu1  ;;  %16850 = vst [vmem:[#allocation84_spill] sm:$0xff] %v14074_v52 }
 0x1e1   : > { %16844 = vst [vmem:[#allocation78_spill] sm:$0xff] %v14060_v47  ;;  %v14078_v33 = vpop.f32.mrf.mxu0 }
 0x1e2   : > { %v14064_v3 = vpop.f32.mrf.mxu1  ;;  %16852 = vst [vmem:[#allocation86_spill] sm:$0xff] %v14078_v33  ;;  %v2364_v33 = vadd.f32 %v13619_v59, %v1974_v41 }
 0x1e3   : > { %16846 = vst [vmem:[#allocation80_spill] sm:$0xff] %v14064_v3  ;;  %v14082_v47 = vpop.f32.mrf.mxu0 }
 0x1e4   : > { %v14068_v23 = vpop.f32.mrf.mxu1  ;;  %16854 = vst [vmem:[#allocation88_spill] sm:$0xff] %v14082_v47  ;;  %v1976_v47 = vadd.f32 %v13853_v19, %v13452_v1  ;;  %v2754_v43 = vadd.f32 %v13974_v53, %v2364_v33  ;;  %v2757_v1 = vadd.f32 %v13978_v55, %v13858_v57  ;;  %v2368_v53 = vadd.f32 %v13855_v45, %v1978_v27 }
 0x1e5   : > { %v14086_v3 = vpop.f32.mrf.mxu0  ;;  %v2370_v27 = vadd.f32 %v13863_v25, %v1980_v14 }
 0x1e6   : > { %v14072_v13 = vpop.f32.mrf.mxu1  ;;  %16856 = vst [vmem:[#allocation90_spill] sm:$0xff] %v14086_v3  ;;  %v3145_v19 = vadd.f32 %v13966_v17, %v2754_v43  ;;  %v16860_v17 = vld [vmem:[#allocation9_spill] sm:$0xff] }
 0x1e7   : > { %16849 = vst [vmem:[#allocation83_spill] sm:$0xff] %v14072_v13  ;;  %v14092_v13 = vpop.f32.mrf.mxu0  ;;  %v1158_v45 = vadd.f32 %v13547_v40, %v16860_v17  ;;  %v2761_v40 = vadd.f32 %v13994_v46, %v13878_v20 }
 0x1e8   : > { %v14076_v39 = vpop.f32.mrf.mxu1  ;;  %16857 = vst [vmem:[#allocation91_spill] sm:$0xff] %v14092_v13 }
 0x1e9   : > { %16851 = vst [vmem:[#allocation85_spill] sm:$0xff] %v14076_v39  ;;  %v14096_v39 = vpop.f32.mrf.mxu0 }
 0x1ea   : > { %v14080_v5 = vpop.f32.mrf.mxu1  ;;  %16859 = vst [vmem:[#allocation93_spill] sm:$0xff] %v14096_v39  ;;  %v2366_v39 = vadd.f32 %v13630_v61, %v1976_v47  ;;  %v2759_v61 = vadd.f32 %v13986_v50, %v13865_v34  ;;  %v3148_v47 = vadd.f32 %v13972_v29, %v2757_v1  ;;  %v1982_v29 = vadd.f32 %v13882_v11, %v13491_v58 }
 0x1eb   : > { %16853 = vst [vmem:[#allocation87_spill] sm:$0xff] %v14080_v5  ;;  %v11769_v5 = vpop.f32.mrf.mxu0 }
 0x1ec   : > { %v14084_v63 = vpop.f32.mrf.mxu1 }
 0x1ed   : > { %16855 = vst [vmem:[#allocation89_spill] sm:$0xff] %v14084_v63  ;;  %v2755_v63 = vadd.f32 %v13970_v12, %v13850_v21  ;;  %v2756_v12 = vadd.f32 %v13982_v31, %v2366_v39  ;;  %v2758_v31 = vadd.f32 %v13990_v6, %v2368_v53  ;;  %v2372_v53 = vadd.f32 %v13874_v48, %v1982_v29 }
 0x1ee   : > { %v14090_v26 = vpop.f32.mrf.mxu1 }
 0x1ef   : > { %v3146_v41 = vadd.f32 %v13961_v8, %v2755_v63  ;;  %v14124_v63 = vld [vmem:[%s16575_s2] ss:$0 sm:$0xff]  ;;  %v3147_v34 = vadd.f32 %v13976_v42, %v2756_v12  ;;  %v3149_v25 = vadd.f32 %v13984_v32, %v2758_v31  ;;  %v2760_v12 = vadd.f32 %v14004_v18, %v2370_v27 }
 0x1f0   : > { %v14094_v52 = vpop.f32.mrf.mxu1  ;;  %v2763_v32 = vadd.f32 %v14008_v30, %v13886_v38 }
 0x1f1   : > { %16858 = vst [vmem:[#allocation92_spill] sm:$0xff] %v14094_v52  ;;  %v3766_v52 = vpop.f32.mrf.mxu0 }
 0x1f2   : > { %v14103_v3 = vpop.f32.mrf.mxu1 }
 0x1f3   : > { %v11772_v21 = vpop.f32.mrf.mxu0 }
 0x1f4   : > { %v14108_v13 = vpop.f32.mrf.mxu1 }
 0x1f5   : > { %v3776_v22 = vpop.f32.mrf.mxu0 }
 0x1f6   : > { %v11719_v59 = vpop.f32.mrf.mxu1 }
 0x1f7   : > { %v3536_v33 = vadd.f32 %v11719_v59, %v3146_v41  ;;  %v11775_v15 = vpop.f32.mrf.mxu0 }
 0x1f8   : > { %v3376_v57 = vpop.f32.mrf.mxu1 }
 0x1f9   : > { %v3926_v8 = vadd.f32 %v11769_v5, %v3536_v33  ;;  %v3535_v39 = vadd.f32 %v3376_v57, %v3145_v19  ;;  %v3150_v5 = vadd.f32 %v13980_v2, %v2759_v61  ;;  %v3786_v6 = vpop.f32.mrf.mxu0 }
 0x1fa   : > { %v11722_v24 = vpop.f32.mrf.mxu1 }
 0x1fb   : > { %v3965_v55 = vadd.f32 %v14124_v63, %v3926_v8  ;;  %v3925_v50 = vadd.f32 %v3766_v52, %v3535_v39  ;;  %v3538_v43 = vadd.f32 %v11722_v24, %v3148_v47  ;;  %v14140_v52 = vadd.f32 %v13533_v35, %v1158_v45  ;;  %v11778_v11 = vpop.f32.mrf.mxu0  ;;  %v16861_v8 = vld [vmem:[#allocation10_spill] sm:$0xff]  ;;  %v16862_v39 = vld [vmem:[#allocation11_spill] sm:$0xff] }
 0x1fc   : > { %v3386_v41 = vpop.f32.mrf.mxu1  ;;  %v3152_v35 = vadd.f32 %v13988_v36, %v2761_v40  ;;  %v1168_v48 = vadd.f32 %v13560_v54, %v16861_v8  ;;  %v2762_v36 = vadd.f32 %v14012_v44, %v2372_v53  ;;  %v14165_v54 = vld [vmem:[%s16576_s3 + $0x28] sm:$0xff]  ;;  %v3154_v44 = vadd.f32 %v13996_v51, %v2763_v32 }
 0x1fd   : > { %v3997_v1 = vmax.f32 %v3965_v55, 0.0  ;;  %v3964_v59 = vadd.f32 %v14124_v63, %v3925_v50  ;;  %v3928_v42 = vadd.f32 %v11772_v21, %v3538_v43  ;;  %v3537_v19 = vadd.f32 %v3386_v41, %v3147_v34  ;;  %v3796_v14 = vpop.f32.mrf.mxu0  ;;  %12065 = vmatprep.subr.mxu0 %v14165_v54 }
 0x1fe   : > { %v11725_v58 = vpop.f32.mrf.mxu1  ;;  %v1984_v21 = vadd.f32 %v13889_v10, %v13503_v49  ;;  %v1178_v49 = vadd.f32 %v13571_v0, %v16862_v39  ;;  %v3151_v10 = vadd.f32 %v13992_v9, %v2760_v12  ;;  %v1986_v9 = vadd.f32 %v13899_v37, %v13515_v7 }
 0x1ff   : > { %4030 = vst.msk [vmem:[#allocation3 + $0x21] sm:$0xff] %vm335_vm3, %v3997_v1  ;;  %v3996_v2 = vmax.f32 %v3964_v59, 0.0  ;;  %v3967_v20 = vadd.f32 %v14124_v63, %v3928_v42  ;;  %v3927_v46 = vadd.f32 %v3776_v22, %v3537_v19  ;;  %v3540_v33 = vadd.f32 %v11725_v58, %v3150_v5  ;;  %v11781_v30 = vpop.f32.mrf.mxu0  ;;  %v16864_v59 = vld [vmem:[#allocation27_spill] sm:$0xff]  ;;  %v16866_v19 = vld [vmem:[#allocation30_spill] sm:$0xff]  ;;  %v16868_v58 = vld [vmem:[#allocation29_spill] sm:$0xff] }
 0x200   : > { %v3396_v18 = vpop.f32.mrf.mxu1  ;;  %v2374_v0 = vadd.f32 %v13884_v28, %v1984_v21  ;;  %v14177_v28 = vadd.f32 %v13549_v4, %v1168_v48  ;;  %v14180_v7 = vadd.f32 %v13562_v62, %v1178_v49  ;;  %v3153_v37 = vadd.f32 %v14006_v56, %v2762_v36  ;;  %v16865_v4 = vld [vmem:[#allocation17_spill] sm:$0xff]  ;;  %v16867_v62 = vld [vmem:[#allocation55_spill] sm:$0xff]  ;;  %v16869_v56 = vld [vmem:[#allocation60_spill] sm:$0xff] }
 0x201   : > { %4029 = vst.msk [vmem:[#allocation3 + $0x19] sm:$0xff] %vm335_vm3, %v3996_v2  ;;  %v3999_v61 = vmax.f32 %v3967_v20, 0.0  ;;  %v3966_v57 = vadd.f32 %v14124_v63, %v3927_v46  ;;  %v3930_v47 = vadd.f32 %v11775_v15, %v3540_v33  ;;  %v3539_v22 = vadd.f32 %v3396_v18, %v3149_v25  ;;  %v3806_v55 = vpop.f32.mrf.mxu0  ;;  %v16873_v48 = vld [vmem:[#allocation62_spill] sm:$0xff] }
 0x202   : > { %v11728_v38 = vpop.f32.mrf.mxu1  ;;  %v2765_v15 = vadd.f32 %v14016_v16, %v13893_v60  ;;  %v16863_v60 = vld [vmem:[#allocation58_spill] sm:$0xff]  ;;  %v2376_v42 = vadd.f32 %v16864_v59, %v1986_v9  ;;  %v1988_v25 = vadd.f32 %v16866_v19, %v16865_v4 }
 0x203   : > { %4032 = vst.msk [vmem:[#allocation3 + $0x39] sm:$0xff] %vm335_vm3, %v3999_v61  ;;  %v3998_v17 = vmax.f32 %v3966_v57, 0.0  ;;  %v3969_v45 = vadd.f32 %v14124_v63, %v3930_v47  ;;  %v3929_v31 = vadd.f32 %v3786_v6, %v3539_v22  ;;  %v3542_v24 = vadd.f32 %v11728_v38, %v3152_v35  ;;  %v11784_v5 = vpop.f32.mrf.mxu0  ;;  %v16870_v61 = vld [vmem:[#allocation12_spill] sm:$0xff]  ;;  %v16882_v19 = vld [vmem:[#allocation66_spill] sm:$0xff] }
 0x204   : > { %v3406_v34 = vpop.f32.mrf.mxu1  ;;  %v2764_v16 = vadd.f32 %v16863_v60, %v2374_v0  ;;  %v3156_v12 = vadd.f32 %v16867_v62, %v2765_v15  ;;  %v16871_v57 = vld [vmem:[#allocation20_spill] sm:$0xff]  ;;  %v2766_v39 = vadd.f32 %v16873_v48, %v2376_v42  ;;  %v16876_v0 = vld [vmem:[#allocation33_spill] sm:$0xff]  ;;  %v16881_v42 = vld [vmem:[#allocation59_spill] sm:$0xff] }
 0x205   : > { %4031 = vst.msk [vmem:[#allocation3 + $0x31] sm:$0xff] %vm335_vm3, %v3998_v17  ;;  %v4001_v50 = vmax.f32 %v3969_v45, 0.0  ;;  %v3968_v43 = vadd.f32 %v14124_v63, %v3929_v31  ;;  %v3932_v27 = vadd.f32 %v11778_v11, %v3542_v24  ;;  %v3541_v29 = vadd.f32 %v3406_v34, %v3151_v10  ;;  %v3816_v53 = vpop.f32.mrf.mxu0  ;;  %v16872_v22 = vld [vmem:[#allocation56_spill] sm:$0xff]  ;;  %v16875_v24 = vld [vmem:[#allocation18_spill] sm:$0xff] }
 0x206   : > { %v11731_v51 = vpop.f32.mrf.mxu1  ;;  %v2767_v11 = vadd.f32 %v16869_v56, %v16868_v58  ;;  %v1188_v47 = vadd.f32 %v16871_v57, %v16870_v61  ;;  %v3155_v8 = vadd.f32 %v16872_v22, %v2764_v16  ;;  %v16874_v45 = vld [vmem:[#allocation28_spill] sm:$0xff]  ;;  %v1990_v9 = vadd.f32 %v16876_v0, %v16875_v24  ;;  %v16886_v57 = vld [vmem:[#allocation35_spill] sm:$0xff] }
 0x207   : > { %4034 = vst.msk [vmem:[#allocation3 + $0x51] sm:$0xff] %vm335_vm3, %v4001_v50  ;;  %v4000_v40 = vmax.f32 %v3968_v43, 0.0  ;;  %v3971_v41 = vadd.f32 %v14124_v63, %v3932_v27  ;;  %v3931_v6 = vadd.f32 %v3796_v14, %v3541_v29  ;;  %v3544_v1 = vadd.f32 %v11731_v51, %v3154_v44  ;;  %v14204_v14 = vld [vmem:[#allocation3 + $0x21] sm:$0xff]  ;;  %v11787_v10 = vpop.f32.mrf.mxu0  ;;  %v16890_v0 = vld [vmem:[#allocation63_spill] sm:$0xff] }
 0x208   : > { %v3416_v2 = vpop.f32.mrf.mxu1  ;;  %v14192_v20 = vld [vmem:[#allocation3 + $0x19] sm:$0xff]  ;;  %v2378_v31 = vadd.f32 %v16874_v45, %v1988_v25  ;;  %v16877_v44 = vld [vmem:[#allocation57_spill] sm:$0xff]  ;;  %v3157_v4 = vadd.f32 %v16881_v42, %v2766_v39 }
 0x209   : > { %v14194_v46 = vld [vmem:[#allocation3 + $0x18] sm:$0xff]  ;;  %v14196_v33 = vld [vmem:[#allocation3 + $0x20] sm:$0xff]  ;;  %4033 = vst.msk [vmem:[#allocation3 + $0x49] sm:$0xff] %vm335_vm3, %v4000_v40  ;;  %v4003_v21 = vmax.f32 %v3971_v41, 0.0  ;;  %v3970_v35 = vadd.f32 %v14124_v63, %v3931_v6  ;;  %v3934_v32 = vadd.f32 %v11781_v30, %v3544_v1  ;;  %v3543_v18 = vadd.f32 %v3416_v2, %v3153_v37  ;;  %11820 = vmatprep.mubr.msk.f32.mxu1 %vm335_vm3, %v14192_v20  ;;  %v3826_v16 = vpop.f32.mrf.mxu0 }
 0x20a   : > { %11870 = vmatprep.mubr.msk.f32.mxu0 %vm335_vm3, %v14194_v46  ;;  %v11734_v49 = vpop.f32.mrf.mxu1  ;;  %11821 = vmatmul.mubr.msk.f32.gmra.mxu1 %vm335_vm3, %v14204_v14  ;;  %v3158_v15 = vadd.f32 %v16877_v44, %v2767_v11  ;;  %v16878_v34 = vld [vmem:[#allocation32_spill] sm:$0xff]  ;;  %v16880_v1 = vld [vmem:[#allocation19_spill] sm:$0xff]  ;;  %v2768_v25 = vadd.f32 %v16882_v19, %v2378_v31  ;;  %v16888_v45 = vld [vmem:[#allocation13_spill] sm:$0xff] }
 0x20b   : > { %11871 = vmatmul.mubr.msk.f32.gmra.mxu0 %vm335_vm3, %v14196_v33  ;;  %4036 = vst.msk [vmem:[#allocation3 + $0x69] sm:$0xff] %vm335_vm3, %v4003_v21  ;;  %v4002_v36 = vmax.f32 %v3970_v35, 0.0  ;;  %v3973_v38 = vadd.f32 %v14124_v63, %v3934_v32  ;;  %v3933_v30 = vadd.f32 %v3806_v55, %v3543_v18  ;;  %v3546_v17 = vadd.f32 %v11734_v49, %v3156_v12  ;;  %v16879_v50 = vld [vmem:[#allocation64_spill] sm:$0xff]  ;;  %v16883_v2 = vld [vmem:[#allocation31_spill] sm:$0xff]  ;;  %v16885_v18 = vld [vmem:[#allocation61_spill] sm:$0xff] }
 0x20c   : > { %v2769_v43 = vadd.f32 %v16879_v50, %v16878_v34  ;;  %v3426_v27 = vpop.f32.mrf.mxu1  ;;  %v14222_v29 = vld [vmem:[#allocation3 + $0x31] sm:$0xff]  ;;  %v14234_v6 = vld [vmem:[#allocation3 + $0x39] sm:$0xff]  ;;  %v14237_v59 = vadd.f32 %v16880_v1, %v1188_v47  ;;  %v2380_v21 = vadd.f32 %v16883_v2, %v1990_v9  ;;  %v3159_v9 = vadd.f32 %v16890_v0, %v2768_v25  ;;  %v16894_v42 = vld [vmem:[#allocation65_spill] sm:$0xff] }
 0x20d   : > { %v14224_v37 = vld [vmem:[#allocation3 + $0x30] sm:$0xff]  ;;  %v14226_v60 = vld [vmem:[#allocation3 + $0x38] sm:$0xff]  ;;  %4035 = vst.msk [vmem:[#allocation3 + $0x61] sm:$0xff] %vm335_vm3, %v4002_v36  ;;  %v4005_v55 = vmax.f32 %v3973_v38, 0.0  ;;  %v3972_v51 = vadd.f32 %v14124_v63, %v3933_v30  ;;  %v3936_v40 = vadd.f32 %v11784_v5, %v3546_v17  ;;  %v3545_v41 = vadd.f32 %v3426_v27, %v3155_v8  ;;  %11823 = vmatprep.mubr.msk.f32.mxu1 %vm335_vm3, %v14222_v29  ;;  %v11790_v5 = vpop.f32.mrf.mxu0  ;;  %v16901_v0 = vld [vmem:[#allocation41_spill] sm:$0xff] }
 0x20e   : > { %11873 = vmatprep.mubr.msk.f32.mxu0 %vm335_vm3, %v14224_v37  ;;  %v11737_v62 = vpop.f32.mrf.mxu1  ;;  %11824 = vmatmul.mubr.msk.f32.gmra.mxu1 %vm335_vm3, %v14234_v6  ;;  %v16884_v35 = vld [vmem:[#allocation36_spill] sm:$0xff]  ;;  %v3160_v61 = vadd.f32 %v16885_v18, %v2769_v43  ;;  %v14265_v17 = vld [vmem:[#allocation3 + $0x51] sm:$0xff]  ;;  %v16897_v18 = vld [vmem:[#allocation21_spill] sm:$0xff] }
 0x20f   : > { %11874 = vmatmul.mubr.msk.f32.gmra.mxu0 %vm335_vm3, %v14226_v60  ;;  %4038 = vst.msk [vmem:[#allocation3 + $0x81] sm:$0xff] %vm335_vm3, %v4005_v55  ;;  %v4004_v12 = vmax.f32 %v3972_v51, 0.0  ;;  %v3975_v58 = vadd.f32 %v14124_v63, %v3936_v40  ;;  %v3935_v56 = vadd.f32 %v3816_v53, %v3545_v41  ;;  %v3548_v11 = vadd.f32 %v11737_v62, %v3158_v15  ;;  %v16887_v47 = vld [vmem:[#allocation68_spill] sm:$0xff]  ;;  %v3836_v36 = vpop.f32.mrf.mxu0  ;;  %v16889_v31 = vld [vmem:[#allocation22_spill] sm:$0xff]  ;;  %v16895_v19 = vld [vmem:[#allocation15_spill] sm:$0xff] }
 0x210   : > { %v1992_v32 = vadd.f32 %v16884_v35, %v14140_v52  ;;  %v2771_v22 = vadd.f32 %v16887_v47, %v16886_v57  ;;  %v3436_v8 = vpop.f32.mrf.mxu1  ;;  %v14253_v48 = vld [vmem:[#allocation3 + $0x49] sm:$0xff]  ;;  %v1198_v24 = vadd.f32 %v16889_v31, %v16888_v45  ;;  %v16896_v25 = vld [vmem:[#allocation72_spill] sm:$0xff]  ;;  %v16898_v57 = vld [vmem:[#allocation67_spill] sm:$0xff] }
 0x211   : > { %v14255_v39 = vld [vmem:[#allocation3 + $0x48] sm:$0xff]  ;;  %v14257_v49 = vld [vmem:[#allocation3 + $0x50] sm:$0xff]  ;;  %4037 = vst.msk [vmem:[#allocation3 + $0x79] sm:$0xff] %vm335_vm3, %v4004_v12  ;;  %v4007_v53 = vmax.f32 %v3975_v58, 0.0  ;;  %v3974_v38 = vadd.f32 %v14124_v63, %v3935_v56  ;;  %v3938_v30 = vadd.f32 %v11787_v10, %v3548_v11  ;;  %v3547_v52 = vadd.f32 %v3436_v8, %v3157_v4  ;;  %11826 = vmatprep.mubr.msk.f32.mxu1 %vm335_vm3, %v14253_v48  ;;  %v11793_v10 = vpop.f32.mrf.mxu0 }
 0x212   : > { %11876 = vmatprep.mubr.msk.f32.mxu0 %vm335_vm3, %v14255_v39  ;;  %v16891_v44 = vld [vmem:[#allocation70_spill] sm:$0xff]  ;;  %v11740_v34 = vpop.f32.mrf.mxu1  ;;  %11827 = vmatmul.mubr.msk.f32.gmra.mxu1 %vm335_vm3, %v14265_v17  ;;  %v3162_v4 = vadd.f32 %v16894_v42, %v2771_v22  ;;  %v2773_v62 = vadd.f32 %v16896_v25, %v16895_v19  ;;  %v16900_v31 = vld [vmem:[#allocation37_spill] sm:$0xff]  ;;  %v16908_v25 = vld [vmem:[#allocation24_spill] sm:$0xff] }
 0x213   : > { %v2770_v15 = vadd.f32 %v16891_v44, %v2380_v21  ;;  %11877 = vmatmul.mubr.msk.f32.gmra.mxu0 %vm335_vm3, %v14257_v49  ;;  %4040 = vst.msk [vmem:[#allocation3 + $0x99] sm:$0xff] %vm335_vm3, %v4007_v53  ;;  %v4006_v50 = vmax.f32 %v3974_v38, 0.0  ;;  %v3977_v43 = vadd.f32 %v14124_v63, %v3938_v30  ;;  %v3937_v27 = vadd.f32 %v3826_v16, %v3547_v52  ;;  %v16892_v51 = vld [vmem:[#allocation34_spill] sm:$0xff]  ;;  %v3846_v2 = vpop.f32.mrf.mxu0  ;;  %v16902_v44 = vld [vmem:[#allocation69_spill] sm:$0xff] }
 0x214   : > { %v3550_v55 = vadd.f32 %v11740_v34, %v3160_v61  ;;  %v2382_v40 = vadd.f32 %v16892_v51, %v1992_v32  ;;  %v16893_v41 = vld [vmem:[#allocation38_spill] sm:$0xff]  ;;  %v3446_v12 = vpop.f32.mrf.mxu1  ;;  %v14283_v58 = vld [vmem:[#allocation3 + $0x61] sm:$0xff]  ;;  %v14298_v61 = vadd.f32 %v16897_v18, %v1198_v24 }
 0x215   : > { %v1994_v1 = vadd.f32 %v16893_v41, %v14177_v28  ;;  %v14285_v56 = vld [vmem:[#allocation3 + $0x60] sm:$0xff]  ;;  %v14287_v11 = vld [vmem:[#allocation3 + $0x68] sm:$0xff]  ;;  %4039 = vst.msk [vmem:[#allocation3 + $0x91] sm:$0xff] %vm335_vm3, %v4006_v50  ;;  %v4009_v16 = vmax.f32 %v3977_v43, 0.0  ;;  %v3976_v21 = vadd.f32 %v14124_v63, %v3937_v27  ;;  %v3549_v28 = vadd.f32 %v3446_v12, %v3159_v9  ;;  %11829 = vmatprep.mubr.msk.f32.mxu1 %vm335_vm3, %v14283_v58  ;;  %v16909_v12 = vld [vmem:[#allocation71_spill] sm:$0xff] }
 0x216   : > { %v3940_v35 = vadd.f32 %v11790_v5, %v3550_v55  ;;  %11879 = vmatprep.mubr.msk.f32.mxu0 %vm335_vm3, %v14285_v56  ;;  %v14295_v32 = vld [vmem:[#allocation3 + $0x69] sm:$0xff]  ;;  %v3161_v47 = vadd.f32 %v16898_v57, %v2770_v15  ;;  %v11743_v53 = vpop.f32.mrf.mxu1  ;;  %v11796_v5 = vpop.f32.mrf.mxu0  ;;  %v1996_v9 = vadd.f32 %v16901_v0, %v14180_v7  ;;  %v3164_v15 = vadd.f32 %v16902_v44, %v2773_v62  ;;  %v16903_v34 = vld [vmem:[#allocation40_spill] sm:$0xff] }
 0x217   : > { %v16899_v22 = vld [vmem:[#allocation74_spill] sm:$0xff]  ;;  %11830 = vmatmul.mubr.msk.f32.gmra.mxu1 %vm335_vm3, %v14295_v32  ;;  %11880 = vmatmul.mubr.msk.f32.gmra.mxu0 %vm335_vm3, %v14287_v11  ;;  %4042 = vst.msk [vmem:[#allocation3 + $0xb1] sm:$0xff] %vm335_vm3, %v4009_v16  ;;  %v4008_v38 = vmax.f32 %v3976_v21, 0.0  ;;  %v3939_v52 = vadd.f32 %v3836_v36, %v3549_v28  ;;  %v3552_v45 = vadd.f32 %v11743_v53, %v3162_v4  ;;  %v16904_v50 = vld [vmem:[#allocation76_spill] sm:$0xff]  ;;  %v16911_v53 = vld [vmem:[#allocation39_spill] sm:$0xff] }
 0x218   : > { %v2772_v8 = vadd.f32 %v16899_v22, %v2382_v40  ;;  %v3979_v30 = vadd.f32 %v14124_v63, %v3940_v35  ;;  %v2384_v24 = vadd.f32 %v16900_v31, %v1994_v1  ;;  %v2775_v43 = vadd.f32 %v16904_v50, %v16903_v34  ;;  %v3456_v27 = vpop.f32.mrf.mxu1  ;;  %v14314_v55 = vld [vmem:[#allocation3 + $0x79] sm:$0xff]  ;;  %v3856_v41 = vpop.f32.mrf.mxu0  ;;  %v14326_v4 = vld [vmem:[#allocation3 + $0x81] sm:$0xff]  ;;  %v16907_v19 = vld [vmem:[#allocation14_spill] sm:$0xff] }
 0x219   : > { %v14316_v51 = vld [vmem:[#allocation3 + $0x78] sm:$0xff]  ;;  %v14318_v40 = vld [vmem:[#allocation3 + $0x80] sm:$0xff]  ;;  %4041 = vst.msk [vmem:[#allocation3 + $0xa9] sm:$0xff] %vm335_vm3, %v4008_v38  ;;  %v3978_v1 = vadd.f32 %v14124_v63, %v3939_v52  ;;  %v3942_v42 = vadd.f32 %v11793_v10, %v3552_v45  ;;  %v3551_v7 = vadd.f32 %v3456_v27, %v3161_v47  ;;  %11832 = vmatprep.mubr.msk.f32.mxu1 %vm335_vm3, %v14314_v55  ;;  %v16910_v21 = vld [vmem:[#allocation78_spill] sm:$0xff] }
 0x21a   : > { %16905 = vst [vmem:[#allocation9_spill] sm:$0xff] %v14316_v51  ;;  %16906 = vst [vmem:[#allocation10_spill] sm:$0xff] %v14318_v40  ;;  %v4011_v36 = vmax.f32 %v3979_v30, 0.0  ;;  %11882 = vmatprep.mubr.msk.f32.mxu0 %vm335_vm3, %v14316_v51  ;;  %v1208_v62 = vadd.f32 %v16908_v25, %v16907_v19  ;;  %v3163_v16 = vadd.f32 %v16909_v12, %v2772_v8  ;;  %v11746_v28 = vpop.f32.mrf.mxu1  ;;  %v11799_v10 = vpop.f32.mrf.mxu0  ;;  %v16912_v8 = vld [vmem:[#allocation44_spill] sm:$0xff]  ;;  %v16913_v52 = vld [vmem:[#allocation73_spill] sm:$0xff] }
 0x21b   : > { %v2774_v35 = vadd.f32 %v16910_v21, %v2384_v24  ;;  %11833 = vmatmul.mubr.msk.f32.gmra.mxu1 %vm335_vm3, %v14326_v4  ;;  %11883 = vmatmul.mubr.msk.f32.gmra.mxu0 %vm335_vm3, %v14318_v40  ;;  %v4010_v18 = vmax.f32 %v3978_v1, 0.0  ;;  %v3981_v57 = vadd.f32 %v14124_v63, %v3942_v42  ;;  %v3941_v47 = vadd.f32 %v3846_v2, %v3551_v7  ;;  %v16914_v31 = vld [vmem:[#allocation43_spill] sm:$0xff]  ;;  %v16915_v24 = vld [vmem:[#allocation80_spill] sm:$0xff] }
 0x21c   : > { %4044 = vst.msk [vmem:[#allocation3 + $0xc9] sm:$0xff] %vm335_vm3, %v4011_v36  ;;  %v3554_v22 = vadd.f32 %v11746_v28, %v3164_v15  ;;  %v2386_v38 = vadd.f32 %v16911_v53, %v1996_v9  ;;  %v1998_v30 = vadd.f32 %v16912_v8, %v14237_v59  ;;  %v3166_v45 = vadd.f32 %v16913_v52, %v2775_v43  ;;  %v3466_v44 = vpop.f32.mrf.mxu1  ;;  %v14344_v34 = vld [vmem:[#allocation3 + $0x91] sm:$0xff]  ;;  %v3866_v36 = vpop.f32.mrf.mxu0  ;;  %v14356_v43 = vld [vmem:[#allocation3 + $0x99] sm:$0xff] }
 0x21d   : > { %v2777_v0 = vadd.f32 %v16915_v24, %v16914_v31  ;;  %v14346_v50 = vld [vmem:[#allocation3 + $0x90] sm:$0xff]  ;;  %v14348_v27 = vld [vmem:[#allocation3 + $0x98] sm:$0xff]  ;;  %4043 = vst.msk [vmem:[#allocation3 + $0xc1] sm:$0xff] %vm335_vm3, %v4010_v18  ;;  %v4013_v2 = vmax.f32 %v3981_v57, 0.0  ;;  %v3980_v9 = vadd.f32 %v14124_v63, %v3941_v47  ;;  %v3553_v59 = vadd.f32 %v3466_v44, %v3163_v16  ;;  %11835 = vmatprep.mubr.msk.f32.mxu1 %vm335_vm3, %v14344_v34  ;;  %v16922_v47 = vld [vmem:[#allocation77_spill] sm:$0xff] }
 0x21e   : > { %16916 = vst [vmem:[#allocation11_spill] sm:$0xff] %v14346_v50  ;;  %16917 = vst [vmem:[#allocation58_spill] sm:$0xff] %v14348_v27  ;;  %v3944_v15 = vadd.f32 %v11796_v5, %v3554_v22  ;;  %11885 = vmatprep.mubr.msk.f32.mxu0 %vm335_vm3, %v14346_v50  ;;  %v16918_v1 = vld [vmem:[#allocation23_spill] sm:$0xff]  ;;  %v2776_v25 = vadd.f32 %v14068_v23, %v2386_v38  ;;  %v11749_v12 = vpop.f32.mrf.mxu1  ;;  %v11802_v5 = vpop.f32.mrf.mxu0  ;;  %v16923_v53 = vld [vmem:[#allocation46_spill] sm:$0xff] }
 0x21f   : > { %v1612_v42 = vadd.f32 %v16918_v1, %v1208_v62  ;;  %v16919_v7 = vld [vmem:[#allocation75_spill] sm:$0xff]  ;;  %11836 = vmatmul.mubr.msk.f32.gmra.mxu1 %vm335_vm3, %v14356_v43  ;;  %11886 = vmatmul.mubr.msk.f32.gmra.mxu0 %vm335_vm3, %v14348_v27  ;;  %4046 = vst.msk [vmem:[#allocation3 + $0xe1] sm:$0xff] %vm335_vm3, %v4013_v2  ;;  %v4012_v16 = vmax.f32 %v3980_v9, 0.0  ;;  %v3943_v28 = vadd.f32 %v3856_v41, %v3553_v59  ;;  %v16920_v62 = vld [vmem:[#allocation42_spill] sm:$0xff]  ;;  %v16928_v9 = vld [vmem:[#allocation16_spill] sm:$0xff] }
 0x220   : > { %v3165_v19 = vadd.f32 %v16919_v7, %v2774_v35  ;;  %v3983_v21 = vadd.f32 %v14124_v63, %v3944_v15  ;;  %v3556_v18 = vadd.f32 %v11749_v12, %v3166_v45  ;;  %v2388_v57 = vadd.f32 %v16920_v62, %v1998_v30  ;;  %v16921_v35 = vld [vmem:[#allocation47_spill] sm:$0xff]  ;;  %v3476_v52 = vpop.f32.mrf.mxu1  ;;  %v14373_v31 = vld [vmem:[#allocation3 + $0xa9] sm:$0xff]  ;;  %v3876_v2 = vpop.f32.mrf.mxu0 }
 0x221   : > { %v2000_v23 = vadd.f32 %v16921_v35, %v14298_v61  ;;  %v3168_v22 = vadd.f32 %v16922_v47, %v2777_v0  ;;  %v16924_v38 = vld [vmem:[#allocation83_spill] sm:$0xff]  ;;  %v14375_v24 = vld [vmem:[#allocation3 + $0xa8] sm:$0xff]  ;;  %4045 = vst.msk [vmem:[#allocation3 + $0xd9] sm:$0xff] %vm335_vm3, %v4012_v16  ;;  %v3982_v30 = vadd.f32 %v14124_v63, %v3943_v28  ;;  %11838 = vmatprep.mubr.msk.f32.mxu1 %vm335_vm3, %v14373_v31 }
 0x222   : > { %v2779_v8 = vadd.f32 %v16924_v38, %v16923_v53  ;;  %16925 = vst [vmem:[#allocation27_spill] sm:$0xff] %v14375_v24  ;;  %v14377_v44 = vld [vmem:[#allocation3 + $0xb0] sm:$0xff]  ;;  %v4015_v41 = vmax.f32 %v3983_v21, 0.0  ;;  %v3946_v45 = vadd.f32 %v11799_v10, %v3556_v18  ;;  %v3555_v61 = vadd.f32 %v3476_v52, %v3165_v19  ;;  %11888 = vmatprep.mubr.msk.f32.mxu0 %vm335_vm3, %v14375_v24  ;;  %v16931_v12 = vld [vmem:[#allocation85_spill] sm:$0xff]  ;;  %v11752_v21 = vpop.f32.mrf.mxu1  ;;  %v11805_v10 = vpop.f32.mrf.mxu0 }
 0x223   : > { %16926 = vst [vmem:[#allocation17_spill] sm:$0xff] %v14377_v44  ;;  %v14385_v0 = vld [vmem:[#allocation3 + $0xb1] sm:$0xff]  ;;  %v2778_v16 = vadd.f32 %v16931_v12, %v2388_v57  ;;  %11889 = vmatmul.mubr.msk.f32.gmra.mxu0 %vm335_vm3, %v14377_v44  ;;  %v4014_v19 = vmax.f32 %v3982_v30, 0.0  ;;  %v3558_v62 = vadd.f32 %v11752_v21, %v3168_v22  ;;  %v16932_v35 = vld [vmem:[#allocation45_spill] sm:$0xff] }
 0x224   : > { %16927 = vst [vmem:[#allocation30_spill] sm:$0xff] %v14385_v0  ;;  %v16929_v15 = vld [vmem:[#allocation26_spill] sm:$0xff]  ;;  %v16930_v1 = vld [vmem:[#allocation79_spill] sm:$0xff]  ;;  %11839 = vmatmul.mubr.msk.f32.gmra.mxu1 %vm335_vm3, %v14385_v0  ;;  %4048 = vst.msk [vmem:[#allocation3 + $0xf9] sm:$0xff] %vm335_vm3, %v4015_v41  ;;  %v3985_v28 = vadd.f32 %v14124_v63, %v3946_v45  ;;  %v3945_v18 = vadd.f32 %v3866_v36, %v3555_v61  ;;  %v2390_v47 = vadd.f32 %v16932_v35, %v2000_v23  ;;  %v3886_v30 = vpop.f32.mrf.mxu0 }
 0x225   : > { %v1218_v59 = vadd.f32 %v16929_v15, %v16928_v9  ;;  %v3167_v7 = vadd.f32 %v16930_v1, %v2776_v25  ;;  %v16933_v25 = vld [vmem:[#allocation50_spill] sm:$0xff]  ;;  %v16934_v57 = vld [vmem:[#allocation81_spill] sm:$0xff]  ;;  %v16936_v9 = vld [vmem:[#allocation87_spill] sm:$0xff]  ;;  %v3486_v1 = vpop.f32.mrf.mxu1  ;;  %4047 = vst.msk [vmem:[#allocation3 + $0xf1] sm:$0xff] %vm335_vm3, %v4014_v19  ;;  %v3948_v22 = vadd.f32 %v11802_v5, %v3558_v62 }
 0x226   : > { %v2002_v53 = vadd.f32 %v16933_v25, %v1612_v42  ;;  %v3170_v38 = vadd.f32 %v16934_v57, %v2779_v8  ;;  %v16935_v52 = vld [vmem:[#allocation49_spill] sm:$0xff]  ;;  %v4017_v36 = vmax.f32 %v3985_v28, 0.0  ;;  %v3984_v23 = vadd.f32 %v14124_v63, %v3945_v18  ;;  %v16942_v21 = vld [vmem:[#allocation82_spill] sm:$0xff]  ;;  %v11808_v5 = vpop.f32.mrf.mxu0 }
 0x227   : > { %v2781_v15 = vadd.f32 %v16936_v9, %v16935_v52  ;;  %v14402_v12 = vld [vmem:[#allocation3 + $0xc1] sm:$0xff]  ;;  %v3557_v42 = vadd.f32 %v3486_v1, %v3167_v7  ;;  %v14414_v8 = vld [vmem:[#allocation3 + $0xc9] sm:$0xff]  ;;  %v3169_v35 = vadd.f32 %v16942_v21, %v2778_v16  ;;  %v11755_v19 = vpop.f32.mrf.mxu1  ;;  %v3987_v28 = vadd.f32 %v14124_v63, %v3948_v22 }
 0x228   : > { %16937 = vst [vmem:[#allocation55_spill] sm:$0xff] %v14402_v12  ;;  %v14404_v0 = vld [vmem:[#allocation3 + $0xc0] sm:$0xff]  ;;  %v14406_v41 = vld [vmem:[#allocation3 + $0xc8] sm:$0xff]  ;;  %11841 = vmatprep.mubr.msk.f32.mxu1 %vm335_vm3, %v14402_v12  ;;  %16940 = vst [vmem:[#allocation12_spill] sm:$0xff] %v14414_v8  ;;  %v4016_v7 = vmax.f32 %v3984_v23, 0.0  ;;  %v3560_v62 = vadd.f32 %v11755_v19, %v3170_v38  ;;  %v3896_v23 = vpop.f32.mrf.mxu0 }
 0x229   : > { %16938 = vst [vmem:[#allocation29_spill] sm:$0xff] %v14404_v0  ;;  %16939 = vst [vmem:[#allocation60_spill] sm:$0xff] %v14406_v41  ;;  %11891 = vmatprep.mubr.msk.f32.mxu0 %vm335_vm3, %v14404_v0  ;;  %v16941_v45 = vld [vmem:[#allocation25_spill] sm:$0xff]  ;;  %11842 = vmatmul.mubr.msk.f32.gmra.mxu1 %vm335_vm3, %v14414_v8  ;;  %v3947_v18 = vadd.f32 %v3876_v2, %v3557_v42  ;;  %v14430_v8 = vld [vmem:[#allocation3 + $0xd9] sm:$0xff]  ;;  %v4019_v2 = vmax.f32 %v3987_v28, 0.0 }
 0x22a   : > { %v1614_v61 = vadd.f32 %v16941_v45, %v1218_v59  ;;  %v16943_v25 = vld [vmem:[#allocation89_spill] sm:$0xff]  ;;  %11892 = vmatmul.mubr.msk.f32.gmra.mxu0 %vm335_vm3, %v14406_v41  ;;  %4050 = vst.msk [vmem:[#allocation3 + $0x111] sm:$0xff] %vm335_vm3, %v4017_v36  ;;  %v16944_v59 = vld [vmem:[#allocation48_spill] sm:$0xff]  ;;  %4049 = vst.msk [vmem:[#allocation3 + $0x109] sm:$0xff] %vm335_vm3, %v4016_v7  ;;  %v3950_v38 = vadd.f32 %v11805_v10, %v3560_v62  ;;  %11844 = vmatprep.mubr.msk.f32.mxu1 %vm335_vm3, %v14430_v8  ;;  %v11811_v10 = vpop.f32.mrf.mxu0 }
 0x22b   : > { %v2780_v57 = vadd.f32 %v16943_v25, %v2390_v47  ;;  %v2392_v52 = vadd.f32 %v16944_v59, %v2002_v53  ;;  %v16945_v16 = vld [vmem:[#allocation53_spill] sm:$0xff]  ;;  %v16946_v47 = vld [vmem:[#allocation84_spill] sm:$0xff]  ;;  %v3496_v25 = vpop.f32.mrf.mxu1  ;;  %v3986_v53 = vadd.f32 %v14124_v63, %v3947_v18  ;;  %4052 = vst.msk [vmem:[#allocation3 + $0x129] sm:$0xff] %vm335_vm3, %v4019_v2  ;;  %v16953_v62 = vld [vmem:[#allocation51_spill] sm:$0xff] }
 0x22c   : > { %v2004_v9 = vadd.f32 %v16945_v16, %v1614_v61  ;;  %v3172_v1 = vadd.f32 %v16946_v47, %v2781_v15  ;;  %v16947_v45 = vld [vmem:[#allocation52_spill] sm:$0xff]  ;;  %v3559_v22 = vadd.f32 %v3496_v25, %v3169_v35  ;;  %v16951_v15 = vld [vmem:[#allocation86_spill] sm:$0xff]  ;;  %v3989_v7 = vadd.f32 %v14124_v63, %v3950_v38 }
 0x22d   : > { %v2783_v21 = vadd.f32 %v14090_v26, %v16947_v45  ;;  %v14432_v12 = vld [vmem:[#allocation3 + $0xd8] sm:$0xff]  ;;  %v14434_v36 = vld [vmem:[#allocation3 + $0xe0] sm:$0xff]  ;;  %v3171_v42 = vadd.f32 %v16951_v15, %v2780_v57  ;;  %v11758_v59 = vpop.f32.mrf.mxu1  ;;  %v4018_v35 = vmax.f32 %v3986_v53, 0.0 }
 0x22e   : > { %16948 = vst [vmem:[#allocation20_spill] sm:$0xff] %v14432_v12  ;;  %16949 = vst [vmem:[#allocation56_spill] sm:$0xff] %v14434_v36  ;;  %11894 = vmatprep.mubr.msk.f32.mxu0 %vm335_vm3, %v14432_v12  ;;  %v14442_v26 = vld [vmem:[#allocation3 + $0xe1] sm:$0xff]  ;;  %v3949_v28 = vadd.f32 %v3886_v30, %v3559_v22  ;;  %v3562_v18 = vadd.f32 %v11758_v59, %v3172_v1  ;;  %v2394_v16 = vadd.f32 %v16953_v62, %v2004_v9  ;;  %v14456_v15 = vld [vmem:[#allocation3 + $0xf1] sm:$0xff] }
 0x22f   : > { %16950 = vst [vmem:[#allocation62_spill] sm:$0xff] %v14442_v26  ;;  %v16952_v61 = vld [vmem:[#allocation92_spill] sm:$0xff]  ;;  %11845 = vmatmul.mubr.msk.f32.gmra.mxu1 %vm335_vm3, %v14442_v26  ;;  %11895 = vmatmul.mubr.msk.f32.gmra.mxu0 %vm335_vm3, %v14434_v36  ;;  %v3506_v25 = vpop.f32.mrf.mxu1  ;;  %4051 = vst.msk [vmem:[#allocation3 + $0x121] sm:$0xff] %vm335_vm3, %v4018_v35  ;;  %v4021_v2 = vmax.f32 %v3989_v7, 0.0  ;;  %v16958_v9 = vld [vmem:[#allocation90_spill] sm:$0xff] }
 0x230   : > { %v2782_v19 = vadd.f32 %v16952_v61, %v2392_v52  ;;  %v16954_v57 = vld [vmem:[#allocation88_spill] sm:$0xff]  ;;  %v16955_v52 = vld [vmem:[#allocation54_spill] sm:$0xff]  ;;  %v3988_v30 = vadd.f32 %v14124_v63, %v3949_v28  ;;  %v3952_v1 = vadd.f32 %v11808_v5, %v3562_v18  ;;  %v3561_v53 = vadd.f32 %v3506_v25, %v3171_v42  ;;  %11847 = vmatprep.mubr.msk.f32.mxu1 %vm335_vm3, %v14456_v15  ;;  %v3906_v5 = vpop.f32.mrf.mxu0  ;;  %v16959_v28 = vld [vmem:[#allocation91_spill] sm:$0xff] }
 0x231   : > { %v3174_v47 = vadd.f32 %v16954_v57, %v2783_v21  ;;  %v2785_v45 = vadd.f32 %v14103_v3, %v16955_v52  ;;  %v14458_v61 = vld [vmem:[#allocation3 + $0xf0] sm:$0xff]  ;;  %v14460_v26 = vld [vmem:[#allocation3 + $0xf8] sm:$0xff]  ;;  %v2784_v38 = vadd.f32 %v14108_v13, %v2394_v16  ;;  %v11761_v22 = vpop.f32.mrf.mxu1  ;;  %4054 = vst.msk [vmem:[#allocation3 + $0x141] sm:$0xff] %vm335_vm3, %v4021_v2  ;;  %v14481_v13 = vld [vmem:[#allocation3 + $0x108] sm:$0xff] }
 0x232   : > { %16956 = vst [vmem:[#allocation28_spill] sm:$0xff] %v14458_v61  ;;  %16957 = vst [vmem:[#allocation18_spill] sm:$0xff] %v14460_v26  ;;  %11897 = vmatprep.mubr.msk.f32.mxu0 %vm335_vm3, %v14458_v61  ;;  %v14468_v3 = vld [vmem:[#allocation3 + $0xf9] sm:$0xff]  ;;  %v3173_v21 = vadd.f32 %v16958_v9, %v2782_v19  ;;  %v4020_v42 = vmax.f32 %v3988_v30, 0.0  ;;  %v3991_v59 = vadd.f32 %v14124_v63, %v3952_v1  ;;  %v14479_v62 = vld [vmem:[#allocation3 + $0x109] sm:$0xff]  ;;  %v11814_v57 = vpop.f32.mrf.mxu0 }
 0x233   : > { %11848 = vmatmul.mubr.msk.f32.gmra.mxu1 %vm335_vm3, %v14468_v3  ;;  %11898 = vmatmul.mubr.msk.f32.gmra.mxu0 %vm335_vm3, %v14460_v26  ;;  %v3951_v35 = vadd.f32 %v3896_v23, %v3561_v53  ;;  %v3564_v7 = vadd.f32 %v11761_v22, %v3174_v47  ;;  %v3176_v18 = vadd.f32 %v16959_v28, %v2785_v45  ;;  %v3516_v19 = vpop.f32.mrf.mxu1  ;;  %v14483_v16 = vld [vmem:[#allocation3 + $0x110] sm:$0xff]  ;;  %v16962_v47 = vld [vmem:[#allocation93_spill] sm:$0xff] }
 0x234   : > { %16960 = vst [vmem:[#allocation33_spill] sm:$0xff] %v14481_v13  ;;  %16961 = vst [vmem:[#allocation57_spill] sm:$0xff] %v14483_v16  ;;  %v4023_v52 = vmax.f32 %v3991_v59, 0.0  ;;  %v3563_v30 = vadd.f32 %v3516_v19, %v3173_v21  ;;  %11850 = vmatprep.mubr.msk.f32.mxu1 %vm335_vm3, %v14479_v62  ;;  %11900 = vmatprep.mubr.msk.f32.mxu0 %vm335_vm3, %v14481_v13  ;;  %v14491_v23 = vld [vmem:[#allocation3 + $0x111] sm:$0xff]  ;;  %v3175_v45 = vadd.f32 %v16962_v47, %v2784_v38  ;;  %v3916_v38 = vpop.f32.mrf.mxu0 }
 0x235   : > { %4053 = vst.msk [vmem:[#allocation3 + $0x139] sm:$0xff] %vm335_vm3, %v4020_v42  ;;  %v3990_v25 = vadd.f32 %v14124_v63, %v3951_v35  ;;  %v3954_v2 = vadd.f32 %v11811_v10, %v3564_v7  ;;  %v11764_v1 = vpop.f32.mrf.mxu1 }
 0x236   : > { %4056 = vst.msk [vmem:[#allocation3 + $0x159] sm:$0xff] %vm335_vm3, %v4023_v52  ;;  %v3953_v9 = vadd.f32 %v3906_v5, %v3563_v30  ;;  %v3566_v21 = vadd.f32 %v11764_v1, %v3176_v18  ;;  %v14500_v42 = vld [vmem:[#allocation3 + $0x121] sm:$0xff]  ;;  %v14512_v5 = vld [vmem:[#allocation3 + $0x129] sm:$0xff] }
 0x237   : > { %11851 = vmatmul.mubr.msk.f32.gmra.mxu1 %vm335_vm3, %v14491_v23  ;;  %11901 = vmatmul.mubr.msk.f32.gmra.mxu0 %vm335_vm3, %v14483_v16  ;;  %v4022_v10 = vmax.f32 %v3990_v25, 0.0  ;;  %v3993_v53 = vadd.f32 %v14124_v63, %v3954_v2  ;;  %v3526_v22 = vpop.f32.mrf.mxu1  ;;  %v14502_v59 = vld [vmem:[#allocation3 + $0x120] sm:$0xff]  ;;  %v14504_v35 = vld [vmem:[#allocation3 + $0x128] sm:$0xff] }
 0x238   : > { %16963 = vst [vmem:[#allocation32_spill] sm:$0xff] %v14502_v59  ;;  %16964 = vst [vmem:[#allocation64_spill] sm:$0xff] %v14504_v35  ;;  %v3992_v28 = vadd.f32 %v14124_v63, %v3953_v9  ;;  %v3565_v19 = vadd.f32 %v3526_v22, %v3175_v45  ;;  %v3956_v52 = vadd.f32 %v11814_v57, %v3566_v21  ;;  %11853 = vmatprep.mubr.msk.f32.mxu1 %vm335_vm3, %v14500_v42 }
 0x239   : > { %4055 = vst.msk [vmem:[#allocation3 + $0x151] sm:$0xff] %vm335_vm3, %v4022_v10  ;;  %v4025_v7 = vmax.f32 %v3993_v53, 0.0  ;;  %11903 = vmatprep.mubr.msk.f32.mxu0 %vm335_vm3, %v14502_v59  ;;  %v14532_v10 = vld [vmem:[#allocation3 + $0x141] sm:$0xff] }
 0x23a   : > { %v4024_v18 = vmax.f32 %v3992_v28, 0.0  ;;  %v3995_v25 = vadd.f32 %v14124_v63, %v3956_v52  ;;  %v3955_v57 = vadd.f32 %v3916_v38, %v3565_v19  ;;  %v4770_v38 = vld [vmem:[#allocation3 + $0x2] sm:$0xff] }
 0x23b   : > { %11854 = vmatmul.mubr.msk.f32.gmra.mxu1 %vm335_vm3, %v14512_v5  ;;  %11904 = vmatmul.mubr.msk.f32.gmra.mxu0 %vm335_vm3, %v14504_v35  ;;  %4058 = vst.msk [vmem:[#allocation3 + $0x171] sm:$0xff] %vm335_vm3, %v4025_v7 }
 0x23c   : > { %v14520_v2 = vld [vmem:[#allocation3 + $0x139] sm:$0xff]  ;;  %4057 = vst.msk [vmem:[#allocation3 + $0x169] sm:$0xff] %vm335_vm3, %v4024_v18  ;;  %v4027_v45 = vmax.f32 %v3995_v25, 0.0  ;;  %v3994_v1 = vadd.f32 %v14124_v63, %v3955_v57  ;;  %v4771_v18 = vld [vmem:[#allocation3 + $0xa] sm:$0xff]  ;;  %v11819_v25 = vpop.f32.mrf.mxu1  ;;  %v11869_v57 = vpop.f32.mrf.mxu0 }
 0x23d   : > { %v14522_v30 = vld [vmem:[#allocation3 + $0x138] sm:$0xff]  ;;  %v14524_v47 = vld [vmem:[#allocation3 + $0x140] sm:$0xff]  ;;  %11856 = vmatprep.mubr.msk.f32.mxu1 %vm335_vm3, %v14520_v2 }
 0x23e   : > { %16965 = vst [vmem:[#allocation19_spill] sm:$0xff] %v14522_v30  ;;  %16966 = vst [vmem:[#allocation59_spill] sm:$0xff] %v14524_v47  ;;  %11906 = vmatprep.mubr.msk.f32.mxu0 %vm335_vm3, %v14522_v30  ;;  %v4026_v53 = vmax.f32 %v3994_v1, 0.0  ;;  %v14550_v22 = vld [vmem:[#allocation3 + $0x159] sm:$0xff] }
 0x23f   : > { %11857 = vmatmul.mubr.msk.f32.gmra.mxu1 %vm335_vm3, %v14532_v10  ;;  %11907 = vmatmul.mubr.msk.f32.gmra.mxu0 %vm335_vm3, %v14524_v47  ;;  %4060 = vst.msk [vmem:[#allocation3 + $0x189] sm:$0xff] %vm335_vm3, %v4027_v45  ;;  %v14578_v45 = vld [vmem:[#allocation3 + $0x1a] sm:$0xff] }
 0x240   : > { %v14539_v9 = vld [vmem:[#allocation3 + $0x151] sm:$0xff]  ;;  %4059 = vst.msk [vmem:[#allocation3 + $0x181] sm:$0xff] %vm335_vm3, %v4026_v53  ;;  %v14583_v1 = vld [vmem:[%s16576_s3 + $0x30] sm:$0xff]  ;;  %v14590_v53 = vadd.f32 %v11869_v57, %v11819_v25 }
 0x241   : > { %v14541_v63 = vld [vmem:[#allocation3 + $0x150] sm:$0xff]  ;;  %v14543_v21 = vld [vmem:[#allocation3 + $0x158] sm:$0xff]  ;;  %11859 = vmatprep.mubr.msk.f32.mxu1 %vm335_vm3, %v14539_v9 }
 0x242   : > { %16967 = vst [vmem:[#allocation66_spill] sm:$0xff] %v14541_v63  ;;  %16968 = vst [vmem:[#allocation31_spill] sm:$0xff] %v14543_v21  ;;  %11909 = vmatprep.mubr.msk.f32.mxu0 %vm335_vm3, %v14541_v63  ;;  %v14566_v52 = vld [vmem:[#allocation3 + $0x171] sm:$0xff]  ;;  %v14644_v57 = vld [vmem:[#allocation3 + $0x7a] sm:$0xff] }
 0x243   : > { %11860 = vmatmul.mubr.msk.f32.gmra.mxu1 %vm335_vm3, %v14550_v22  ;;  %11910 = vmatmul.mubr.msk.f32.gmra.mxu0 %vm335_vm3, %v14543_v21  ;;  %v14556_v7 = vld [vmem:[#allocation3 + $0x169] sm:$0xff]  ;;  %16970 = vst [vmem:[#allocation61_spill] sm:$0xff] %v14590_v53  ;;  %v14656_v53 = vld [vmem:[#allocation3 + $0x92] sm:$0xff] }
 0x244   : > { %v14558_v28 = vld [vmem:[#allocation3 + $0x168] sm:$0xff]  ;;  %v14560_v19 = vld [vmem:[#allocation3 + $0x170] sm:$0xff]  ;;  %11862 = vmatprep.mubr.msk.f32.mxu1 %vm335_vm3, %v14556_v7 }
 0x245   : > { %16969 = vst [vmem:[#allocation36_spill] sm:$0xff] %v14558_v28  ;;  %11912 = vmatprep.mubr.msk.f32.mxu0 %vm335_vm3, %v14558_v28  ;;  %v14638_v25 = vld [vmem:[#allocation3 + $0x6a] sm:$0xff] }
 0x247   : > { %11863 = vmatmul.mubr.msk.f32.gmra.mxu1 %vm335_vm3, %v14566_v52  ;;  %11913 = vmatmul.mubr.msk.f32.gmra.mxu0 %vm335_vm3, %v14560_v19 }
 0x248   : > { %11967 = vmatprep.mubr.msk.f32.mxu0 %vm335_vm3, %v14194_v46  ;;  %11917 = vmatprep.mubr.msk.f32.mxu1 %vm335_vm3, %v4770_v38  ;;  %v14588_v46 = vld [vmem:[%s16576_s3 + $0x38] sm:$0xff]  ;;  %v12310_v38 = vld [vmem:[%s16576_s3 + $0x20] sm:$0xff] }
 0x24b   : > { %11918 = vmatmul.mubr.msk.f32.vlgmr.msra.gmra.mxu1 %vm335_vm3, %v4771_v18  ;;  %11968 = vmatmul.mubr.msk.f32.vlgmr.msra.gmra.mxu0 %vm335_vm3, %v14196_v33  ;;  %v14600_v33 = vld [vmem:[#allocation3 + $0x22] sm:$0xff]  ;;  %v14608_v18 = vld [vmem:[#allocation3 + $0x32] sm:$0xff] }
 0x24c   : > { %12016 = vmatpush3.msra.mxu1 %v12310_v38  ;;  %11920 = vmatprep.mubr.msk.f32.mxu1 %vm335_vm3, %v14578_v45  ;;  %v14650_v38 = vld [vmem:[#allocation3 + $0x82] sm:$0xff] }
 0x24d   : > { %11970 = vmatprep.mubr.msk.f32.mxu0 %vm335_vm3, %v14224_v37  ;;  %12066 = vmatpush3.msra.mxu0 %v14165_v54  ;;  %v14614_v54 = vld [vmem:[#allocation3 + $0x3a] sm:$0xff]  ;;  %v14620_v37 = vld [vmem:[#allocation3 + $0x4a] sm:$0xff] }
 0x24e   : > { %12115 = vmatprep.subr.mxu1 %v14583_v1  ;;  %12165 = vmatprep.subr.mxu0 %v14588_v46 }
 0x24f   : > { %11921 = vmatmul.mubr.msk.f32.gmra.mxu1 %vm335_vm3, %v14600_v33  ;;  %11971 = vmatmul.mubr.msk.f32.gmra.mxu0 %vm335_vm3, %v14226_v60  ;;  %v14626_v60 = vld [vmem:[#allocation3 + $0x52] sm:$0xff] }
 0x250   : > { %11923 = vmatprep.mubr.msk.f32.mxu1 %vm335_vm3, %v14608_v18  ;;  %11973 = vmatprep.mubr.msk.f32.mxu0 %vm335_vm3, %v14255_v39  ;;  %v14632_v39 = vld [vmem:[#allocation3 + $0x62] sm:$0xff] }
 0x253   : > { %11924 = vmatmul.mubr.msk.f32.gmra.mxu1 %vm335_vm3, %v14614_v54  ;;  %11974 = vmatmul.mubr.msk.f32.gmra.mxu0 %vm335_vm3, %v14257_v49 }
 0x254   : > { %11926 = vmatprep.mubr.msk.f32.mxu1 %vm335_vm3, %v14620_v37  ;;  %11976 = vmatprep.mubr.msk.f32.mxu0 %vm335_vm3, %v14285_v56 }
 0x257   : > { %11927 = vmatmul.mubr.msk.f32.gmra.mxu1 %vm335_vm3, %v14626_v60  ;;  %11977 = vmatmul.mubr.msk.f32.gmra.mxu0 %vm335_vm3, %v14287_v11 }
 0x258   : > { %11929 = vmatprep.mubr.msk.f32.mxu1 %vm335_vm3, %v14632_v39  ;;  %11979 = vmatprep.mubr.msk.f32.mxu0 %vm335_vm3, %v14316_v51  ;;  %v14766_v51 = vld [vmem:[#allocation3 + $0x180] sm:$0xff] }
 0x259   : > { %16971 = vst [vmem:[#allocation35_spill] sm:$0xff] %v14766_v51 }
 0x25b   : > { %11930 = vmatmul.mubr.msk.f32.gmra.mxu1 %vm335_vm3, %v14638_v25  ;;  %11980 = vmatmul.mubr.msk.f32.gmra.mxu0 %vm335_vm3, %v14318_v40  ;;  %v14662_v40 = vld [vmem:[#allocation3 + $0x9a] sm:$0xff] }
 0x25c   : > { %11932 = vmatprep.mubr.msk.f32.mxu1 %vm335_vm3, %v14644_v57  ;;  %11982 = vmatprep.mubr.msk.f32.mxu0 %vm335_vm3, %v14346_v50  ;;  %v14668_v50 = vld [vmem:[#allocation3 + $0xaa] sm:$0xff] }
 0x25f   : > { %11933 = vmatmul.mubr.msk.f32.gmra.mxu1 %vm335_vm3, %v14650_v38  ;;  %11983 = vmatmul.mubr.msk.f32.gmra.mxu0 %vm335_vm3, %v14348_v27  ;;  %v14674_v27 = vld [vmem:[#allocation3 + $0xb2] sm:$0xff] }
 0x260   : > { %11935 = vmatprep.mubr.msk.f32.mxu1 %vm335_vm3, %v14656_v53  ;;  %11985 = vmatprep.mubr.msk.f32.mxu0 %vm335_vm3, %v14375_v24  ;;  %v14680_v24 = vld [vmem:[#allocation3 + $0xc2] sm:$0xff] }
 0x263   : > { %11936 = vmatmul.mubr.msk.f32.gmra.mxu1 %vm335_vm3, %v14662_v40  ;;  %11986 = vmatmul.mubr.msk.f32.gmra.mxu0 %vm335_vm3, %v14377_v44  ;;  %v14686_v44 = vld [vmem:[#allocation3 + $0xca] sm:$0xff] }
 0x264   : > { %11938 = vmatprep.mubr.msk.f32.mxu1 %vm335_vm3, %v14668_v50  ;;  %11988 = vmatprep.mubr.msk.f32.mxu0 %vm335_vm3, %v14404_v0  ;;  %v14692_v0 = vld [vmem:[#allocation3 + $0xda] sm:$0xff] }
 0x267   : > { %11939 = vmatmul.mubr.msk.f32.gmra.mxu1 %vm335_vm3, %v14674_v27  ;;  %11989 = vmatmul.mubr.msk.f32.gmra.mxu0 %vm335_vm3, %v14406_v41  ;;  %v14698_v41 = vld [vmem:[#allocation3 + $0xe2] sm:$0xff] }
 0x268   : > { %11941 = vmatprep.mubr.msk.f32.mxu1 %vm335_vm3, %v14680_v24  ;;  %11991 = vmatprep.mubr.msk.f32.mxu0 %vm335_vm3, %v14432_v12  ;;  %v14704_v12 = vld [vmem:[#allocation3 + $0xf2] sm:$0xff] }
 0x26b   : > { %11942 = vmatmul.mubr.msk.f32.gmra.mxu1 %vm335_vm3, %v14686_v44  ;;  %11992 = vmatmul.mubr.msk.f32.gmra.mxu0 %vm335_vm3, %v14434_v36  ;;  %v14710_v36 = vld [vmem:[#allocation3 + $0xfa] sm:$0xff] }
 0x26c   : > { %11944 = vmatprep.mubr.msk.f32.mxu1 %vm335_vm3, %v14692_v0  ;;  %11994 = vmatprep.mubr.msk.f32.mxu0 %vm335_vm3, %v14458_v61  ;;  %v14716_v61 = vld [vmem:[#allocation3 + $0x10a] sm:$0xff] }
 0x26f   : > { %11945 = vmatmul.mubr.msk.f32.gmra.mxu1 %vm335_vm3, %v14698_v41  ;;  %11995 = vmatmul.mubr.msk.f32.gmra.mxu0 %vm335_vm3, %v14460_v26  ;;  %v14722_v26 = vld [vmem:[#allocation3 + $0x112] sm:$0xff] }
 0x270   : > { %11947 = vmatprep.mubr.msk.f32.mxu1 %vm335_vm3, %v14704_v12  ;;  %11997 = vmatprep.mubr.msk.f32.mxu0 %vm335_vm3, %v14481_v13  ;;  %v14728_v13 = vld [vmem:[#allocation3 + $0x122] sm:$0xff] }
 0x273   : > { %11948 = vmatmul.mubr.msk.f32.gmra.mxu1 %vm335_vm3, %v14710_v36  ;;  %11998 = vmatmul.mubr.msk.f32.gmra.mxu0 %vm335_vm3, %v14483_v16  ;;  %v14734_v16 = vld [vmem:[#allocation3 + $0x12a] sm:$0xff] }
 0x274   : > { %11950 = vmatprep.mubr.msk.f32.mxu1 %vm335_vm3, %v14716_v61  ;;  %12000 = vmatprep.mubr.msk.f32.mxu0 %vm335_vm3, %v14502_v59  ;;  %v14740_v59 = vld [vmem:[#allocation3 + $0x13a] sm:$0xff] }
 0x277   : > { %11951 = vmatmul.mubr.msk.f32.gmra.mxu1 %vm335_vm3, %v14722_v26  ;;  %12001 = vmatmul.mubr.msk.f32.gmra.mxu0 %vm335_vm3, %v14504_v35  ;;  %v14746_v35 = vld [vmem:[#allocation3 + $0x142] sm:$0xff] }
 0x278   : > { %11953 = vmatprep.mubr.msk.f32.mxu1 %vm335_vm3, %v14728_v13  ;;  %12003 = vmatprep.mubr.msk.f32.mxu0 %vm335_vm3, %v14522_v30  ;;  %v14752_v30 = vld [vmem:[#allocation3 + $0x152] sm:$0xff] }
 0x27b   : > { %11954 = vmatmul.mubr.msk.f32.gmra.mxu1 %vm335_vm3, %v14734_v16  ;;  %12004 = vmatmul.mubr.msk.f32.gmra.mxu0 %vm335_vm3, %v14524_v47  ;;  %v14758_v47 = vld [vmem:[#allocation3 + $0x15a] sm:$0xff] }
 0x27c   : > { %11956 = vmatprep.mubr.msk.f32.mxu1 %vm335_vm3, %v14740_v59  ;;  %12006 = vmatprep.mubr.msk.f32.mxu0 %vm335_vm3, %v14541_v63  ;;  %v14764_v63 = vld [vmem:[#allocation3 + $0x16a] sm:$0xff] }
 0x27f   : > { %11957 = vmatmul.mubr.msk.f32.gmra.mxu1 %vm335_vm3, %v14746_v35  ;;  %12007 = vmatmul.mubr.msk.f32.gmra.mxu0 %vm335_vm3, %v14543_v21  ;;  %v14772_v21 = vld [vmem:[#allocation3 + $0x172] sm:$0xff] }
 0x280   : > { %11959 = vmatprep.mubr.msk.f32.mxu1 %vm335_vm3, %v14752_v30  ;;  %12009 = vmatprep.mubr.msk.f32.mxu0 %vm335_vm3, %v14558_v28  ;;  %v14774_v28 = vld [vmem:[#allocation3 + $0x188] sm:$0xff] }
 0x283   : > { %11960 = vmatmul.mubr.msk.f32.gmra.mxu1 %vm335_vm3, %v14758_v47  ;;  %12010 = vmatmul.mubr.msk.f32.gmra.mxu0 %vm335_vm3, %v14560_v19 }
 0x284   : > { %11962 = vmatprep.mubr.msk.f32.mxu1 %vm335_vm3, %v14764_v63  ;;  %12012 = vmatprep.mubr.msk.f32.mxu0 %vm335_vm3, %v14766_v51  ;;  %v14791_v51 = vld [vmem:[%s16576_s3 + $0x40] sm:$0xff] }
 0x287   : > { %11963 = vmatmul.mubr.msk.f32.gmra.mxu1 %vm335_vm3, %v14772_v21  ;;  %12013 = vmatmul.mubr.msk.f32.gmra.mxu0 %vm335_vm3, %v14774_v28 }
 0x288   : > { %12017 = vmatprep.mubr.msk.f32.mxu1 %vm335_vm3, %v14192_v20  ;;  %12067 = vmatprep.mubr.msk.f32.mxu0 %vm335_vm3, %v14578_v45  ;;  %v16972_v20 = vld [vmem:[#allocation30_spill] sm:$0xff]  ;;  %v14930_v45 = vpop.f32.mrf.mxu1 }
 0x28b   : > { %12018 = vmatmul.mubr.msk.f32.vlgmr.msra.gmra.mxu1 %vm335_vm3, %v14204_v14  ;;  %12068 = vmatmul.mubr.msk.f32.vlgmr.msra.gmra.mxu0 %vm335_vm3, %v14600_v33  ;;  %v16973_v14 = vld [vmem:[#allocation55_spill] sm:$0xff] }
 0x28c   : > { %12116 = vmatpush3.msra.mxu1 %v14583_v1  ;;  %12020 = vmatprep.mubr.msk.f32.mxu1 %vm335_vm3, %v14222_v29  ;;  %v16974_v29 = vld [vmem:[#allocation12_spill] sm:$0xff]  ;;  %v14932_v1 = vpop.f32.mrf.mxu0 }
 0x28d   : > { %12070 = vmatprep.mubr.msk.f32.mxu0 %vm335_vm3, %v14608_v18  ;;  %12166 = vmatpush3.msra.mxu0 %v14588_v46  ;;  %v6709_v46 = vld [vmem:[#allocation3 + $0x51] sm:$0xff] }
 0x28e   : > { %12215 = vmatprep.subr.mxu1 %v14791_v51 }
 0x28f   : > { %12021 = vmatmul.mubr.msk.f32.gmra.mxu1 %vm335_vm3, %v14234_v6  ;;  %12071 = vmatmul.mubr.msk.f32.gmra.mxu0 %vm335_vm3, %v14614_v54  ;;  %v16975_v6 = vld [vmem:[#allocation62_spill] sm:$0xff] }
 0x290   : > { %12023 = vmatprep.mubr.msk.f32.mxu1 %vm335_vm3, %v14253_v48  ;;  %12073 = vmatprep.mubr.msk.f32.mxu0 %vm335_vm3, %v14620_v37  ;;  %v14908_v48 = vld [vmem:[#allocation3 + $0x181] sm:$0xff] }
 0x293   : > { %12024 = vmatmul.mubr.msk.f32.gmra.mxu1 %vm335_vm3, %v14265_v17  ;;  %12074 = vmatmul.mubr.msk.f32.gmra.mxu0 %vm335_vm3, %v14626_v60  ;;  %v14910_v17 = vld [vmem:[#allocation3 + $0x182] sm:$0xff] }
 0x294   : > { %12026 = vmatprep.mubr.msk.f32.mxu1 %vm335_vm3, %v14283_v58  ;;  %12076 = vmatprep.mubr.msk.f32.mxu0 %vm335_vm3, %v14632_v39  ;;  %16976 = vst [vmem:[#allocation68_spill] sm:$0xff] %v14910_v17 }
 0x297   : > { %12027 = vmatmul.mubr.msk.f32.gmra.mxu1 %vm335_vm3, %v14295_v32  ;;  %12077 = vmatmul.mubr.msk.f32.gmra.mxu0 %vm335_vm3, %v14638_v25 }
 0x298   : > { %12029 = vmatprep.mubr.msk.f32.mxu1 %vm335_vm3, %v14314_v55  ;;  %12079 = vmatprep.mubr.msk.f32.mxu0 %vm335_vm3, %v14644_v57 }
 0x29b   : > { %12030 = vmatmul.mubr.msk.f32.gmra.mxu1 %vm335_vm3, %v14326_v4  ;;  %12080 = vmatmul.mubr.msk.f32.gmra.mxu0 %vm335_vm3, %v14650_v38 }
 0x29c   : > { %12032 = vmatprep.mubr.msk.f32.mxu1 %vm335_vm3, %v14344_v34  ;;  %12082 = vmatprep.mubr.msk.f32.mxu0 %vm335_vm3, %v14656_v53 }
 0x29f   : > { %12033 = vmatmul.mubr.msk.f32.gmra.mxu1 %vm335_vm3, %v14356_v43  ;;  %12083 = vmatmul.mubr.msk.f32.gmra.mxu0 %vm335_vm3, %v14662_v40 }
 0x2a0   : > { %12035 = vmatprep.mubr.msk.f32.mxu1 %vm335_vm3, %v14373_v31  ;;  %12085 = vmatprep.mubr.msk.f32.mxu0 %vm335_vm3, %v14668_v50 }
 0x2a3   : > { %12036 = vmatmul.mubr.msk.f32.gmra.mxu1 %vm335_vm3, %v16972_v20  ;;  %12086 = vmatmul.mubr.msk.f32.gmra.mxu0 %vm335_vm3, %v14674_v27 }
 0x2a4   : > { %12038 = vmatprep.mubr.msk.f32.mxu1 %vm335_vm3, %v16973_v14  ;;  %12088 = vmatprep.mubr.msk.f32.mxu0 %vm335_vm3, %v14680_v24 }
 0x2a7   : > { %12039 = vmatmul.mubr.msk.f32.gmra.mxu1 %vm335_vm3, %v16974_v29  ;;  %12089 = vmatmul.mubr.msk.f32.gmra.mxu0 %vm335_vm3, %v14686_v44 }
 0x2a8   : > { %12041 = vmatprep.mubr.msk.f32.mxu1 %vm335_vm3, %v14430_v8  ;;  %12091 = vmatprep.mubr.msk.f32.mxu0 %vm335_vm3, %v14692_v0 }
 0x2ab   : > { %12042 = vmatmul.mubr.msk.f32.gmra.mxu1 %vm335_vm3, %v16975_v6  ;;  %12092 = vmatmul.mubr.msk.f32.gmra.mxu0 %vm335_vm3, %v14698_v41 }
 0x2ac   : > { %12044 = vmatprep.mubr.msk.f32.mxu1 %vm335_vm3, %v14456_v15  ;;  %12094 = vmatprep.mubr.msk.f32.mxu0 %vm335_vm3, %v14704_v12 }
 0x2af   : > { %12045 = vmatmul.mubr.msk.f32.gmra.mxu1 %vm335_vm3, %v14468_v3  ;;  %12095 = vmatmul.mubr.msk.f32.gmra.mxu0 %vm335_vm3, %v14710_v36 }
 0x2b0   : > { %12047 = vmatprep.mubr.msk.f32.mxu1 %vm335_vm3, %v14479_v62  ;;  %12097 = vmatprep.mubr.msk.f32.mxu0 %vm335_vm3, %v14716_v61 }
 0x2b3   : > { %12048 = vmatmul.mubr.msk.f32.gmra.mxu1 %vm335_vm3, %v14491_v23  ;;  %12098 = vmatmul.mubr.msk.f32.gmra.mxu0 %vm335_vm3, %v14722_v26  ;;  %v14916_v26 = vld [vmem:[#allocation3 + $0x189] sm:$0xff] }
 0x2b4   : > { %12050 = vmatprep.mubr.msk.f32.mxu1 %vm335_vm3, %v14500_v42  ;;  %12100 = vmatprep.mubr.msk.f32.mxu0 %vm335_vm3, %v14728_v13 }
 0x2b7   : > { %12051 = vmatmul.mubr.msk.f32.gmra.mxu1 %vm335_vm3, %v14512_v5  ;;  %12101 = vmatmul.mubr.msk.f32.gmra.mxu0 %vm335_vm3, %v14734_v16  ;;  %v14918_v16 = vld [vmem:[#allocation3 + $0x18a] sm:$0xff] }
 0x2b8   : > { %12053 = vmatprep.mubr.msk.f32.mxu1 %vm335_vm3, %v14520_v2  ;;  %12103 = vmatprep.mubr.msk.f32.mxu0 %vm335_vm3, %v14740_v59  ;;  %16977 = vst [vmem:[#allocation13_spill] sm:$0xff] %v14918_v16  ;;  %v6319_v59 = vld [vmem:[#allocation3 + $0x30] sm:$0xff] }
 0x2bb   : > { %12054 = vmatmul.mubr.msk.f32.gmra.mxu1 %vm335_vm3, %v14532_v10  ;;  %12104 = vmatmul.mubr.msk.f32.gmra.mxu0 %vm335_vm3, %v14746_v35  ;;  %v6706_v35 = vld [vmem:[#allocation3 + $0x31] sm:$0xff] }
 0x2bc   : > { %12056 = vmatprep.mubr.msk.f32.mxu1 %vm335_vm3, %v14539_v9  ;;  %12106 = vmatprep.mubr.msk.f32.mxu0 %vm335_vm3, %v14752_v30  ;;  %v6320_v30 = vld [vmem:[#allocation3 + $0x38] sm:$0xff] }
 0x2bf   : > { %12057 = vmatmul.mubr.msk.f32.gmra.mxu1 %vm335_vm3, %v14550_v22  ;;  %12107 = vmatmul.mubr.msk.f32.gmra.mxu0 %vm335_vm3, %v14758_v47  ;;  %v6707_v47 = vld [vmem:[#allocation3 + $0x39] sm:$0xff] }
 0x2c0   : > { %12059 = vmatprep.mubr.msk.f32.mxu1 %vm335_vm3, %v14556_v7  ;;  %12109 = vmatprep.mubr.msk.f32.mxu0 %vm335_vm3, %v14764_v63  ;;  %v6321_v63 = vld [vmem:[#allocation3 + $0x48] sm:$0xff] }
 0x2c3   : > { %12060 = vmatmul.mubr.msk.f32.gmra.mxu1 %vm335_vm3, %v14566_v52  ;;  %12110 = vmatmul.mubr.msk.f32.gmra.mxu0 %vm335_vm3, %v14772_v21  ;;  %v6708_v21 = vld [vmem:[#allocation3 + $0x49] sm:$0xff] }
 0x2c4   : > { %12062 = vmatprep.mubr.msk.f32.mxu1 %vm335_vm3, %v14908_v48  ;;  %12112 = vmatprep.mubr.msk.f32.mxu0 %vm335_vm3, %v14910_v17  ;;  %v16997_v17 = vld [vmem:[#allocation31_spill] sm:$0xff] }
 0x2c7   : > { %12063 = vmatmul.mubr.msk.f32.gmra.mxu1 %vm335_vm3, %v14916_v26  ;;  %12113 = vmatmul.mubr.msk.f32.gmra.mxu0 %vm335_vm3, %v14918_v16  ;;  %v16995_v16 = vld [vmem:[#allocation59_spill] sm:$0xff] }
 0x2c8   : > { %12117 = vmatprep.mubr.msk.f32.mxu1 %vm335_vm3, %v6319_v59  ;;  %12167 = vmatprep.mubr.msk.f32.mxu0 %vm335_vm3, %v6706_v35 }
 0x2ca   : > { %v11822_v33 = vpop.f32.mrf.mxu1 }
 0x2cb   : > { %12118 = vmatmul.mubr.msk.f32.vlgmr.msra.gmra.mxu1 %vm335_vm3, %v6320_v30  ;;  %12168 = vmatmul.mubr.msk.f32.vlgmr.msra.gmra.mxu0 %vm335_vm3, %v6707_v47  ;;  %v11872_v59 = vpop.f32.mrf.mxu0 }
 0x2cc   : > { %12216 = vmatpush3.msra.mxu1 %v14791_v51  ;;  %12120 = vmatprep.mubr.msk.f32.mxu1 %vm335_vm3, %v6321_v63  ;;  %v14938_v35 = vadd.f32 %v11872_v59, %v11822_v33  ;;  %v4300_v51 = vpop.f32.mrf.mxu1 }
 0x2cd   : > { %12170 = vmatprep.mubr.msk.f32.mxu0 %vm335_vm3, %v6708_v21  ;;  %v4621_v30 = vpop.f32.mrf.mxu0 }
 0x2ce   : > { %v14944_v47 = vadd.f32 %v4621_v30, %v4300_v51  ;;  %v11825_v63 = vpop.f32.mrf.mxu1  ;;  %v16979_v30 = vld [vmem:[#allocation10_spill] sm:$0xff] }
 0x2cf   : > { %12121 = vmatmul.mubr.msk.f32.gmra.mxu1 %vm335_vm3, %v14257_v49  ;;  %12171 = vmatmul.mubr.msk.f32.gmra.mxu0 %vm335_vm3, %v6709_v46  ;;  %v11875_v21 = vpop.f32.mrf.mxu0  ;;  %v16978_v46 = vld [vmem:[#allocation9_spill] sm:$0xff] }
 0x2d0   : > { %12123 = vmatprep.mubr.msk.f32.mxu1 %vm335_vm3, %v14285_v56  ;;  %12173 = vmatprep.mubr.msk.f32.mxu0 %vm335_vm3, %v14283_v58  ;;  %v14950_v49 = vadd.f32 %v11875_v21, %v11825_v63  ;;  %v4310_v58 = vpop.f32.mrf.mxu1 }
 0x2d1   : > { %v4631_v56 = vpop.f32.mrf.mxu0 }
 0x2d2   : > { %v14956_v33 = vadd.f32 %v4631_v56, %v4310_v58  ;;  %v11828_v59 = vpop.f32.mrf.mxu1  ;;  %v16981_v56 = vld [vmem:[#allocation58_spill] sm:$0xff] }
 0x2d3   : > { %12124 = vmatmul.mubr.msk.f32.gmra.mxu1 %vm335_vm3, %v14287_v11  ;;  %12174 = vmatmul.mubr.msk.f32.gmra.mxu0 %vm335_vm3, %v14295_v32  ;;  %v11878_v51 = vpop.f32.mrf.mxu0  ;;  %v16980_v32 = vld [vmem:[#allocation11_spill] sm:$0xff] }
 0x2d4   : > { %12126 = vmatprep.mubr.msk.f32.mxu1 %vm335_vm3, %v16978_v46  ;;  %12176 = vmatprep.mubr.msk.f32.mxu0 %vm335_vm3, %v14314_v55  ;;  %v14962_v11 = vadd.f32 %v11878_v51, %v11828_v59  ;;  %v4320_v55 = vpop.f32.mrf.mxu1  ;;  %v16982_v59 = vld [vmem:[#allocation27_spill] sm:$0xff] }
 0x2d5   : > { %v4641_v63 = vpop.f32.mrf.mxu0 }
 0x2d6   : > { %v14968_v21 = vadd.f32 %v4641_v63, %v4320_v55  ;;  %v16983_v63 = vld [vmem:[#allocation17_spill] sm:$0xff] }
 0x2d7   : > { %12127 = vmatmul.mubr.msk.f32.gmra.mxu1 %vm335_vm3, %v16979_v30  ;;  %12177 = vmatmul.mubr.msk.f32.gmra.mxu0 %vm335_vm3, %v14326_v4  ;;  %v11831_v46 = vpop.f32.mrf.mxu1  ;;  %v11881_v58 = vpop.f32.mrf.mxu0 }
 0x2d8   : > { %12129 = vmatprep.mubr.msk.f32.mxu1 %vm335_vm3, %v16980_v32  ;;  %12179 = vmatprep.mubr.msk.f32.mxu0 %vm335_vm3, %v14344_v34  ;;  %v14974_v4 = vadd.f32 %v11881_v58, %v11831_v46  ;;  %v16984_v46 = vld [vmem:[#allocation29_spill] sm:$0xff] }
 0x2d9   : > { %v4330_v34 = vpop.f32.mrf.mxu1  ;;  %v4651_v51 = vpop.f32.mrf.mxu0 }
 0x2da   : > { %v14980_v30 = vadd.f32 %v4651_v51, %v4330_v34  ;;  %v16985_v51 = vld [vmem:[#allocation60_spill] sm:$0xff] }
 0x2db   : > { %12130 = vmatmul.mubr.msk.f32.gmra.mxu1 %vm335_vm3, %v16981_v56  ;;  %12180 = vmatmul.mubr.msk.f32.gmra.mxu0 %vm335_vm3, %v14356_v43  ;;  %v11834_v32 = vpop.f32.mrf.mxu1  ;;  %v11884_v55 = vpop.f32.mrf.mxu0 }
 0x2dc   : > { %12132 = vmatprep.mubr.msk.f32.mxu1 %vm335_vm3, %v16982_v59  ;;  %12182 = vmatprep.mubr.msk.f32.mxu0 %vm335_vm3, %v14373_v31  ;;  %v14986_v43 = vadd.f32 %v11884_v55, %v11834_v32  ;;  %v16986_v32 = vld [vmem:[#allocation20_spill] sm:$0xff] }
 0x2dd   : > { %v4340_v31 = vpop.f32.mrf.mxu1  ;;  %v4661_v58 = vpop.f32.mrf.mxu0 }
 0x2de   : > { %v14992_v56 = vadd.f32 %v4661_v58, %v4340_v31  ;;  %v16987_v58 = vld [vmem:[#allocation56_spill] sm:$0xff] }
 0x2df   : > { %12133 = vmatmul.mubr.msk.f32.gmra.mxu1 %vm335_vm3, %v16983_v63  ;;  %12183 = vmatmul.mubr.msk.f32.gmra.mxu0 %vm335_vm3, %v16972_v20  ;;  %v11837_v59 = vpop.f32.mrf.mxu1  ;;  %v11887_v34 = vpop.f32.mrf.mxu0 }
 0x2e0   : > { %12135 = vmatprep.mubr.msk.f32.mxu1 %vm335_vm3, %v16984_v46  ;;  %12185 = vmatprep.mubr.msk.f32.mxu0 %vm335_vm3, %v16973_v14  ;;  %v14998_v20 = vadd.f32 %v11887_v34, %v11837_v59  ;;  %v16988_v59 = vld [vmem:[#allocation28_spill] sm:$0xff] }
 0x2e1   : > { %v4350_v14 = vpop.f32.mrf.mxu1  ;;  %v4671_v55 = vpop.f32.mrf.mxu0 }
 0x2e2   : > { %v15004_v63 = vadd.f32 %v4671_v55, %v4350_v14  ;;  %v16989_v55 = vld [vmem:[#allocation18_spill] sm:$0xff] }
 0x2e3   : > { %12136 = vmatmul.mubr.msk.f32.gmra.mxu1 %vm335_vm3, %v16985_v51  ;;  %12186 = vmatmul.mubr.msk.f32.gmra.mxu0 %vm335_vm3, %v16974_v29  ;;  %v11890_v31 = vpop.f32.mrf.mxu0 }
 0x2e4   : > { %12138 = vmatprep.mubr.msk.f32.mxu1 %vm335_vm3, %v16986_v32  ;;  %12188 = vmatprep.mubr.msk.f32.mxu0 %vm335_vm3, %v14430_v8  ;;  %v11840_v46 = vpop.f32.mrf.mxu1 }
 0x2e5   : > { %v15010_v29 = vadd.f32 %v11890_v31, %v11840_v46  ;;  %v4681_v34 = vpop.f32.mrf.mxu0  ;;  %v16990_v46 = vld [vmem:[#allocation33_spill] sm:$0xff] }
 0x2e6   : > { %v4360_v8 = vpop.f32.mrf.mxu1 }
 0x2e7   : > { %12139 = vmatmul.mubr.msk.f32.gmra.mxu1 %vm335_vm3, %v16987_v58  ;;  %12189 = vmatmul.mubr.msk.f32.gmra.mxu0 %vm335_vm3, %v16975_v6  ;;  %v15016_v51 = vadd.f32 %v4681_v34, %v4360_v8  ;;  %v16991_v8 = vld [vmem:[#allocation57_spill] sm:$0xff]  ;;  %v16992_v34 = vld [vmem:[#allocation32_spill] sm:$0xff] }
 0x2e8   : > { %12141 = vmatprep.mubr.msk.f32.mxu1 %vm335_vm3, %v16988_v59  ;;  %12191 = vmatprep.mubr.msk.f32.mxu0 %vm335_vm3, %v14456_v15 }
 0x2e9   : > { %v11843_v32 = vpop.f32.mrf.mxu1 }
 0x2ea   : > { %v11893_v14 = vpop.f32.mrf.mxu0 }
 0x2eb   : > { %12142 = vmatmul.mubr.msk.f32.gmra.mxu1 %vm335_vm3, %v16989_v55  ;;  %12192 = vmatmul.mubr.msk.f32.gmra.mxu0 %vm335_vm3, %v14468_v3  ;;  %v15022_v6 = vadd.f32 %v11893_v14, %v11843_v32  ;;  %v15028_v15 = vpop.f32.mrf.mxu1 }
 0x2ec   : > { %12144 = vmatprep.mubr.msk.f32.mxu1 %vm335_vm3, %v16990_v46  ;;  %12194 = vmatprep.mubr.msk.f32.mxu0 %vm335_vm3, %v14479_v62  ;;  %v15030_v31 = vpop.f32.mrf.mxu0  ;;  %v16993_v46 = vld [vmem:[#allocation64_spill] sm:$0xff] }
 0x2ef   : > { %v11846_v58 = vpop.f32.mrf.mxu1  ;;  %v11896_v59 = vpop.f32.mrf.mxu0  ;;  %12145 = vmatmul.mubr.msk.f32.gmra.mxu1 %vm335_vm3, %v16991_v8  ;;  %12195 = vmatmul.mubr.msk.f32.gmra.mxu0 %vm335_vm3, %v14491_v23 }
 0x2f0   : > { %v15036_v3 = vadd.f32 %v11896_v59, %v11846_v58  ;;  %12147 = vmatprep.mubr.msk.f32.mxu1 %vm335_vm3, %v16992_v34  ;;  %12197 = vmatprep.mubr.msk.f32.mxu0 %vm335_vm3, %v14500_v42  ;;  %v16994_v58 = vld [vmem:[#allocation19_spill] sm:$0xff] }
 0x2f1   : > { %v15042_v62 = vpop.f32.mrf.mxu1  ;;  %v15044_v32 = vpop.f32.mrf.mxu0 }
 0x2f3   : > { %v11849_v14 = vpop.f32.mrf.mxu1  ;;  %v11899_v55 = vpop.f32.mrf.mxu0  ;;  %12148 = vmatmul.mubr.msk.f32.gmra.mxu1 %vm335_vm3, %v16993_v46  ;;  %12198 = vmatmul.mubr.msk.f32.gmra.mxu0 %vm335_vm3, %v14512_v5 }
 0x2f4   : > { %v15050_v23 = vadd.f32 %v11899_v55, %v11849_v14  ;;  %12150 = vmatprep.mubr.msk.f32.mxu1 %vm335_vm3, %v16994_v58  ;;  %12200 = vmatprep.mubr.msk.f32.mxu0 %vm335_vm3, %v14520_v2  ;;  %v16996_v14 = vld [vmem:[#allocation66_spill] sm:$0xff] }
 0x2f5   : > { %v15056_v42 = vpop.f32.mrf.mxu1  ;;  %v15058_v59 = vpop.f32.mrf.mxu0 }
 0x2f7   : > { %v11852_v8 = vpop.f32.mrf.mxu1  ;;  %v11902_v34 = vpop.f32.mrf.mxu0  ;;  %12151 = vmatmul.mubr.msk.f32.gmra.mxu1 %vm335_vm3, %v16995_v16  ;;  %12201 = vmatmul.mubr.msk.f32.gmra.mxu0 %vm335_vm3, %v14532_v10  ;;  %v16999_v16 = vld [vmem:[#allocation36_spill] sm:$0xff] }
 0x2f8   : > { %v15064_v5 = vadd.f32 %v11902_v34, %v11852_v8  ;;  %12153 = vmatprep.mubr.msk.f32.mxu1 %vm335_vm3, %v16996_v14  ;;  %12203 = vmatprep.mubr.msk.f32.mxu0 %vm335_vm3, %v14539_v9 }
 0x2f9   : > { %v15070_v2 = vpop.f32.mrf.mxu1  ;;  %v15072_v55 = vpop.f32.mrf.mxu0 }
 0x2fb   : > { %v11855_v46 = vpop.f32.mrf.mxu1  ;;  %v11905_v58 = vpop.f32.mrf.mxu0  ;;  %12154 = vmatmul.mubr.msk.f32.gmra.mxu1 %vm335_vm3, %v16997_v17  ;;  %12204 = vmatmul.mubr.msk.f32.gmra.mxu0 %vm335_vm3, %v14550_v22  ;;  %v17002_v17 = vld [vmem:[#allocation35_spill] sm:$0xff] }
 0x2fc   : > { %v15078_v10 = vadd.f32 %v11905_v58, %v11855_v46  ;;  %12156 = vmatprep.mubr.msk.f32.mxu1 %vm335_vm3, %v16999_v16  ;;  %12206 = vmatprep.mubr.msk.f32.mxu0 %vm335_vm3, %v14556_v7  ;;  %v6349_v58 = vld [vmem:[#allocation3 + $0x198] sm:$0xff] }
 0x2fd   : > { %v15084_v9 = vpop.f32.mrf.mxu1  ;;  %v15086_v8 = vpop.f32.mrf.mxu0  ;;  %v6736_v16 = vld [vmem:[#allocation3 + $0x199] sm:$0xff] }
 0x2fe   : > { %16998 = vst [vmem:[#allocation22_spill] sm:$0xff] %v15078_v10  ;;  %17000 = vst [vmem:[#allocation63_spill] sm:$0xff] %v15084_v9 }
 0x2ff   : > { %17001 = vst [vmem:[#allocation70_spill] sm:$0xff] %v15086_v8  ;;  %v11858_v34 = vpop.f32.mrf.mxu1  ;;  %v11908_v14 = vpop.f32.mrf.mxu0  ;;  %12157 = vmatmul.mubr.msk.f32.gmra.mxu1 %vm335_vm3, %v14560_v19  ;;  %12207 = vmatmul.mubr.msk.f32.gmra.mxu0 %vm335_vm3, %v14566_v52  ;;  %v6350_v52 = vld [vmem:[#allocation3 + $0x1a0] sm:$0xff] }
 0x300   : > { %v15092_v22 = vadd.f32 %v11908_v14, %v11858_v34  ;;  %12159 = vmatprep.mubr.msk.f32.mxu1 %vm335_vm3, %v17002_v17  ;;  %12209 = vmatprep.mubr.msk.f32.mxu0 %vm335_vm3, %v14908_v48  ;;  %v6737_v48 = vld [vmem:[#allocation3 + $0x1a1] sm:$0xff] }
 0x301   : > { %v4420_v7 = vpop.f32.mrf.mxu1  ;;  %v4741_v46 = vpop.f32.mrf.mxu0 }
 0x302   : > { %v15098_v10 = vadd.f32 %v4741_v46, %v4420_v7 }
 0x303   : > { %v11861_v8 = vpop.f32.mrf.mxu1  ;;  %v11911_v9 = vpop.f32.mrf.mxu0  ;;  %12160 = vmatmul.mubr.msk.f32.gmra.mxu1 %vm335_vm3, %v14774_v28  ;;  %12210 = vmatmul.mubr.msk.f32.gmra.mxu0 %vm335_vm3, %v14916_v26 }
 0x304   : > { %v15104_v19 = vadd.f32 %v11911_v9, %v11861_v8  ;;  %12162 = vmatprep.mubr.msk.f32.mxu1 %vm335_vm3, %v6349_v58  ;;  %12212 = vmatprep.mubr.msk.f32.mxu0 %vm335_vm3, %v6736_v16 }
 0x305   : > { %v4430_v34 = vpop.f32.mrf.mxu1  ;;  %v4751_v14 = vpop.f32.mrf.mxu0 }
 0x306   : > { %v15108_v17 = vadd.f32 %v4751_v14, %v4430_v34  ;;  %v4612_v34 = vadd.f32 %v14932_v1, %v14930_v45 }
 0x307   : > { %v11864_v7 = vpop.f32.mrf.mxu1  ;;  %v11914_v46 = vpop.f32.mrf.mxu0  ;;  %12163 = vmatmul.mubr.msk.f32.gmra.mxu1 %vm335_vm3, %v6350_v52  ;;  %12213 = vmatmul.mubr.msk.f32.gmra.mxu0 %vm335_vm3, %v6737_v48  ;;  %v17004_v52 = vld [vmem:[#allocation61_spill] sm:$0xff] }
 0x308   : > { %v15112_v28 = vadd.f32 %v11914_v46, %v11864_v7  ;;  %12217 = vmatprep.mubr.msk.f32.mxu1 %vm335_vm3, %v14608_v18 }
 0x309   : > { %v4440_v26 = vpop.f32.mrf.mxu1  ;;  %v4761_v9 = vpop.f32.mrf.mxu0 }
 0x30a   : > { %v15116_v8 = vadd.f32 %v4761_v9, %v4440_v26 }
 0x30b   : > { %v11919_v58 = vpop.f32.mrf.mxu1  ;;  %v11969_v16 = vpop.f32.mrf.mxu0  ;;  %12218 = vmatmul.mubr.msk.f32.vlgmr.msra.gmra.mxu1 %vm335_vm3, %v14614_v54 }
 0x30c   : > { %17003 = vst [vmem:[#allocation34_spill] sm:$0xff] %v15116_v8  ;;  %v5126_v14 = vadd.f32 %v11919_v58, %v17004_v52  ;;  %12220 = vmatprep.mubr.msk.f32.mxu1 %vm335_vm3, %v14620_v37 }
 0x30d   : > { %v4966_v48 = vpop.f32.mrf.mxu1  ;;  %v5353_v7 = vpop.f32.mrf.mxu0 }
 0x30e   : > { %v15125_v18 = vadd.f32 %v11969_v16, %v5126_v14  ;;  %v5125_v46 = vadd.f32 %v4966_v48, %v4612_v34 }
 0x30f   : > { %v11922_v26 = vpop.f32.mrf.mxu1  ;;  %v11972_v9 = vpop.f32.mrf.mxu0  ;;  %12221 = vmatmul.mubr.msk.f32.gmra.mxu1 %vm335_vm3, %v14626_v60 }
 0x310   : > { %v15129_v8 = vadd.f32 %v5353_v7, %v5125_v46  ;;  %v5128_v54 = vadd.f32 %v11922_v26, %v14938_v35  ;;  %12223 = vmatprep.mubr.msk.f32.mxu1 %vm335_vm3, %v14632_v39 }
 0x311   : > { %v4976_v45 = vpop.f32.mrf.mxu1  ;;  %v5363_v1 = vpop.f32.mrf.mxu0 }
 0x312   : > { %v15134_v37 = vadd.f32 %v11972_v9, %v5128_v54  ;;  %v5127_v58 = vadd.f32 %v4976_v45, %v14944_v47 }
 0x313   : > { %v11925_v16 = vpop.f32.mrf.mxu1  ;;  %v11975_v34 = vpop.f32.mrf.mxu0  ;;  %12224 = vmatmul.mubr.msk.f32.gmra.mxu1 %vm335_vm3, %v14638_v25 }
 0x314   : > { %v15139_v52 = vadd.f32 %v5363_v1, %v5127_v58  ;;  %v5130_v60 = vadd.f32 %v11925_v16, %v14950_v49  ;;  %12226 = vmatprep.mubr.msk.f32.mxu1 %vm335_vm3, %v14644_v57 }
 0x315   : > { %v4986_v35 = vpop.f32.mrf.mxu1  ;;  %v5373_v39 = vpop.f32.mrf.mxu0 }
 0x316   : > { %v15144_v14 = vadd.f32 %v11975_v34, %v5130_v60  ;;  %v5129_v48 = vadd.f32 %v4986_v35, %v14956_v33 }
 0x317   : > { %v11928_v7 = vpop.f32.mrf.mxu1  ;;  %v11978_v47 = vpop.f32.mrf.mxu0  ;;  %12227 = vmatmul.mubr.msk.f32.gmra.mxu1 %vm335_vm3, %v14650_v38 }
 0x318   : > { %v15149_v46 = vadd.f32 %v5373_v39, %v5129_v48  ;;  %v5132_v25 = vadd.f32 %v11928_v7, %v14962_v11  ;;  %12229 = vmatprep.mubr.msk.f32.mxu1 %vm335_vm3, %v14656_v53 }
 0x319   : > { %v4996_v49 = vpop.f32.mrf.mxu1  ;;  %v5383_v57 = vpop.f32.mrf.mxu0 }
 0x31a   : > { %v15154_v26 = vadd.f32 %v11978_v47, %v5132_v25  ;;  %v5131_v9 = vadd.f32 %v4996_v49, %v14968_v21 }
 0x31b   : > { %v11931_v54 = vpop.f32.mrf.mxu1  ;;  %v11981_v33 = vpop.f32.mrf.mxu0  ;;  %12230 = vmatmul.mubr.msk.f32.gmra.mxu1 %vm335_vm3, %v14662_v40 }
 0x31c   : > { %v15159_v45 = vadd.f32 %v5383_v57, %v5131_v9  ;;  %v5134_v38 = vadd.f32 %v11931_v54, %v14974_v4  ;;  %12232 = vmatprep.mubr.msk.f32.mxu1 %vm335_vm3, %v14668_v50 }
 0x31d   : > { %v5006_v11 = vpop.f32.mrf.mxu1  ;;  %v5393_v53 = vpop.f32.mrf.mxu0 }
 0x31e   : > { %v15164_v1 = vadd.f32 %v11981_v33, %v5134_v38  ;;  %v5133_v58 = vadd.f32 %v5006_v11, %v14980_v30 }
 0x31f   : > { %v11934_v16 = vpop.f32.mrf.mxu1  ;;  %v11984_v21 = vpop.f32.mrf.mxu0  ;;  %12233 = vmatmul.mubr.msk.f32.gmra.mxu1 %vm335_vm3, %v14674_v27 }
 0x320   : > { %v15169_v34 = vadd.f32 %v5393_v53, %v5133_v58  ;;  %v5136_v40 = vadd.f32 %v11934_v16, %v14986_v43  ;;  %12235 = vmatprep.mubr.msk.f32.mxu1 %vm335_vm3, %v14680_v24  ;;  %v7112_v53 = vld [vmem:[#allocation3 + $0x112] sm:$0xff] }
 0x321   : > { %v5016_v4 = vpop.f32.mrf.mxu1  ;;  %v5403_v50 = vpop.f32.mrf.mxu0 }
 0x322   : > { %v15174_v60 = vadd.f32 %v11984_v21, %v5136_v40  ;;  %v5135_v35 = vadd.f32 %v5016_v4, %v14992_v56  ;;  %v7114_v4 = vld [vmem:[#allocation3 + $0x12a] sm:$0xff] }
 0x323   : > { %v11937_v39 = vpop.f32.mrf.mxu1  ;;  %v11987_v30 = vpop.f32.mrf.mxu0  ;;  %12236 = vmatmul.mubr.msk.f32.gmra.mxu1 %vm335_vm3, %v14686_v44 }
 0x324   : > { %v15179_v48 = vadd.f32 %v5403_v50, %v5135_v35  ;;  %v5138_v27 = vadd.f32 %v11937_v39, %v14998_v20  ;;  %12238 = vmatprep.mubr.msk.f32.mxu1 %vm335_vm3, %v14692_v0  ;;  %v7115_v39 = vld [vmem:[#allocation3 + $0x13a] sm:$0xff] }
 0x325   : > { %v5026_v43 = vpop.f32.mrf.mxu1  ;;  %v5413_v24 = vpop.f32.mrf.mxu0 }
 0x326   : > { %v15184_v7 = vadd.f32 %v11987_v30, %v5138_v27  ;;  %v5137_v47 = vadd.f32 %v5026_v43, %v15004_v63 }
 0x327   : > { %v11940_v25 = vpop.f32.mrf.mxu1  ;;  %v11990_v56 = vpop.f32.mrf.mxu0  ;;  %12239 = vmatmul.mubr.msk.f32.gmra.mxu1 %vm335_vm3, %v14698_v41  ;;  %v4692_v41 = vadd.f32 %v15030_v31, %v15028_v15 }
 0x328   : > { %v15189_v49 = vadd.f32 %v5413_v24, %v5137_v47  ;;  %v5140_v44 = vadd.f32 %v11940_v25, %v15010_v29  ;;  %12241 = vmatprep.mubr.msk.f32.mxu1 %vm335_vm3, %v14704_v12  ;;  %v7116_v24 = vld [vmem:[#allocation3 + $0x142] sm:$0xff] }
 0x329   : > { %v5036_v20 = vpop.f32.mrf.mxu1  ;;  %v5423_v0 = vpop.f32.mrf.mxu0 }
 0x32a   : > { %v15194_v57 = vadd.f32 %v11990_v56, %v5140_v44  ;;  %v5139_v9 = vadd.f32 %v5036_v20, %v15016_v51  ;;  %v7117_v56 = vld [vmem:[#allocation3 + $0x152] sm:$0xff] }
 0x32b   : > { %v11943_v54 = vpop.f32.mrf.mxu1  ;;  %v11993_v63 = vpop.f32.mrf.mxu0  ;;  %12242 = vmatmul.mubr.msk.f32.gmra.mxu1 %vm335_vm3, %v14710_v36  ;;  %v4702_v36 = vadd.f32 %v15044_v32, %v15042_v62  ;;  %v4712_v62 = vadd.f32 %v15058_v59, %v15056_v42  ;;  %v4722_v42 = vadd.f32 %v15072_v55, %v15070_v2 }
 0x32c   : > { %v15201_v33 = vadd.f32 %v5423_v0, %v5139_v9  ;;  %v5142_v29 = vadd.f32 %v11943_v54, %v15022_v6  ;;  %12244 = vmatprep.mubr.msk.f32.mxu1 %vm335_vm3, %v14716_v61  ;;  %v7118_v54 = vld [vmem:[#allocation3 + $0x15a] sm:$0xff] }
 0x32d   : > { %v5046_v12 = vpop.f32.mrf.mxu1  ;;  %v5433_v38 = vpop.f32.mrf.mxu0 }
 0x32e   : > { %v15206_v11 = vadd.f32 %v11993_v63, %v5142_v29  ;;  %v5141_v51 = vadd.f32 %v5046_v12, %v4692_v41  ;;  %v7119_v29 = vld [vmem:[#allocation3 + $0x16a] sm:$0xff]  ;;  %v17005_v12 = vld [vmem:[#allocation63_spill] sm:$0xff] }
 0x32f   : > { %v11946_v58 = vpop.f32.mrf.mxu1  ;;  %v11996_v16 = vpop.f32.mrf.mxu0  ;;  %12245 = vmatmul.mubr.msk.f32.gmra.mxu1 %vm335_vm3, %v7112_v53 }
 0x330   : > { %v15211_v15 = vadd.f32 %v5433_v38, %v5141_v51  ;;  %v5144_v6 = vadd.f32 %v11946_v58, %v15036_v3  ;;  %12247 = vmatprep.mubr.msk.f32.mxu1 %vm335_vm3, %v14728_v13  ;;  %v17006_v38 = vld [vmem:[#allocation70_spill] sm:$0xff] }
 0x331   : > { %v5056_v61 = vpop.f32.mrf.mxu1  ;;  %v5443_v31 = vpop.f32.mrf.mxu0  ;;  %v4732_v2 = vadd.f32 %v17006_v38, %v17005_v12  ;;  %v17007_v51 = vld [vmem:[#allocation22_spill] sm:$0xff] }
 0x332   : > { %v15216_v21 = vadd.f32 %v11996_v16, %v5144_v6  ;;  %v5143_v40 = vadd.f32 %v5056_v61, %v4702_v36  ;;  %v7120_v6 = vld [vmem:[#allocation3 + $0x172] sm:$0xff] }
 0x333   : > { %v11949_v50 = vpop.f32.mrf.mxu1  ;;  %v11999_v35 = vpop.f32.mrf.mxu0  ;;  %12248 = vmatmul.mubr.msk.f32.gmra.mxu1 %vm335_vm3, %v7114_v4 }
 0x334   : > { %v15221_v32 = vadd.f32 %v5443_v31, %v5143_v40  ;;  %v5146_v3 = vadd.f32 %v11949_v50, %v15050_v23  ;;  %12250 = vmatprep.mubr.msk.f32.mxu1 %vm335_vm3, %v7115_v39  ;;  %v17008_v50 = vld [vmem:[#allocation68_spill] sm:$0xff] }
 0x335   : > { %v5066_v13 = vpop.f32.mrf.mxu1  ;;  %v5453_v30 = vpop.f32.mrf.mxu0 }
 0x336   : > { %v15225_v27 = vadd.f32 %v11999_v35, %v5146_v3  ;;  %v5145_v43 = vadd.f32 %v5066_v13, %v4712_v62  ;;  %v7123_v62 = vld [vmem:[#allocation3 + $0x19a] sm:$0xff] }
 0x337   : > { %v11952_v47 = vpop.f32.mrf.mxu1  ;;  %v12002_v25 = vpop.f32.mrf.mxu0  ;;  %12251 = vmatmul.mubr.msk.f32.gmra.mxu1 %vm335_vm3, %v7116_v24  ;;  %v17009_v24 = vld [vmem:[#allocation13_spill] sm:$0xff] }
 0x338   : > { %v15230_v59 = vadd.f32 %v5453_v30, %v5145_v43  ;;  %v5148_v23 = vadd.f32 %v11952_v47, %v15064_v5  ;;  %12253 = vmatprep.mubr.msk.f32.mxu1 %vm335_vm3, %v7117_v56 }
 0x339   : > { %v5076_v44 = vpop.f32.mrf.mxu1  ;;  %v5463_v20 = vpop.f32.mrf.mxu0 }
 0x33a   : > { %v15234_v0 = vadd.f32 %v12002_v25, %v5148_v23  ;;  %v5147_v9 = vadd.f32 %v5076_v44, %v4722_v42 }
 0x33b   : > { %v11955_v63 = vpop.f32.mrf.mxu1  ;;  %v12005_v41 = vpop.f32.mrf.mxu0  ;;  %12254 = vmatmul.mubr.msk.f32.gmra.mxu1 %vm335_vm3, %v7118_v54 }
 0x33c   : > { %v15239_v55 = vadd.f32 %v5463_v20, %v5147_v9  ;;  %v5150_v5 = vadd.f32 %v11955_v63, %v17007_v51  ;;  %12256 = vmatprep.mubr.msk.f32.mxu1 %vm335_vm3, %v7119_v29  ;;  %v17010_v29 = vld [vmem:[#allocation34_spill] sm:$0xff] }
 0x33d   : > { %v5086_v53 = vpop.f32.mrf.mxu1  ;;  %v5473_v58 = vpop.f32.mrf.mxu0 }
 0x33e   : > { %v15243_v16 = vadd.f32 %v12005_v41, %v5150_v5  ;;  %v5149_v36 = vadd.f32 %v5086_v53, %v4732_v2 }
 0x33f   : > { %v11958_v61 = vpop.f32.mrf.mxu1  ;;  %v12008_v31 = vpop.f32.mrf.mxu0  ;;  %12257 = vmatmul.mubr.msk.f32.gmra.mxu1 %vm335_vm3, %v7120_v6 }
 0x340   : > { %v15246_v40 = vadd.f32 %v5473_v58, %v5149_v36  ;;  %v5152_v4 = vadd.f32 %v11958_v61, %v15092_v22  ;;  %12259 = vmatprep.mubr.msk.f32.mxu1 %vm335_vm3, %v17008_v50  ;;  %v7124_v22 = vld [vmem:[#allocation3 + $0x1a2] sm:$0xff] }
 0x341   : > { %v5096_v35 = vpop.f32.mrf.mxu1  ;;  %v5483_v39 = vpop.f32.mrf.mxu0 }
 0x342   : > { %v15251_v3 = vadd.f32 %v12008_v31, %v5152_v4  ;;  %v5151_v13 = vadd.f32 %v5096_v35, %v15098_v10 }
 0x343   : > { %v11961_v30 = vpop.f32.mrf.mxu1  ;;  %v12011_v43 = vpop.f32.mrf.mxu0  ;;  %12260 = vmatmul.mubr.msk.f32.gmra.mxu1 %vm335_vm3, %v17009_v24 }
 0x344   : > { %v15256_v47 = vadd.f32 %v5483_v39, %v5151_v13  ;;  %v5154_v25 = vadd.f32 %v11961_v30, %v15104_v19  ;;  %12262 = vmatprep.mubr.msk.f32.mxu1 %vm335_vm3, %v7123_v62 }
 0x345   : > { %v5106_v56 = vpop.f32.mrf.mxu1  ;;  %v5493_v42 = vpop.f32.mrf.mxu0 }
 0x346   : > { %v15260_v23 = vadd.f32 %v12011_v43, %v5154_v25  ;;  %v5153_v44 = vadd.f32 %v5106_v56, %v15108_v17 }
 0x347   : > { %v11964_v20 = vpop.f32.mrf.mxu1  ;;  %v12014_v10 = vpop.f32.mrf.mxu0  ;;  %12263 = vmatmul.mubr.msk.f32.gmra.mxu1 %vm335_vm3, %v7124_v22 }
 0x348   : > { %v15264_v9 = vadd.f32 %v5493_v42, %v5153_v44  ;;  %v5156_v54 = vadd.f32 %v11964_v20, %v15112_v28 }
 0x349   : > { %v5116_v63 = vpop.f32.mrf.mxu1  ;;  %v5503_v41 = vpop.f32.mrf.mxu0 }
 0x34a   : > { %v15267_v19 = vadd.f32 %v12014_v10, %v5156_v54  ;;  %v5155_v12 = vadd.f32 %v5116_v63, %v17010_v29 }
 0x34b   : > { %v12019_v38 = vpop.f32.mrf.mxu1  ;;  %v15270_v2 = vpop.f32.mrf.mxu0 }
 0x34c   : > { %v15272_v51 = vadd.f32 %v5503_v41, %v5155_v12  ;;  %v15275_v17 = vadd.f32 %v12019_v38, %v15125_v18 }
 0x34d   : > { %v5740_v5 = vpop.f32.mrf.mxu1  ;;  %v15277_v53 = vpop.f32.mrf.mxu0 }
 0x34e   : > { %v15280_v58 = vadd.f32 %v5740_v5, %v15129_v8 }
 0x34f   : > { %v12022_v28 = vpop.f32.mrf.mxu1  ;;  %v15282_v36 = vpop.f32.mrf.mxu0 }
 0x350   : > { %v15285_v6 = vadd.f32 %v12022_v28, %v15134_v37 }
 0x351   : > { %v5750_v61 = vpop.f32.mrf.mxu1  ;;  %v15287_v31 = vpop.f32.mrf.mxu0 }
 0x352   : > { %v15290_v4 = vadd.f32 %v5750_v61, %v15139_v52 }
 0x353   : > { %v12025_v18 = vpop.f32.mrf.mxu1  ;;  %v15292_v50 = vpop.f32.mrf.mxu0 }
 0x354   : > { %v15295_v35 = vadd.f32 %v12025_v18, %v15144_v14 }
 0x355   : > { %v5760_v8 = vpop.f32.mrf.mxu1  ;;  %v15297_v39 = vpop.f32.mrf.mxu0 }
 0x356   : > { %v15300_v62 = vadd.f32 %v5760_v8, %v15149_v46 }
 0x357   : > { %v12028_v37 = vpop.f32.mrf.mxu1  ;;  %v15302_v13 = vpop.f32.mrf.mxu0 }
 0x358   : > { %v15305_v30 = vadd.f32 %v12028_v37, %v15154_v26 }
 0x359   : > { %v5770_v52 = vpop.f32.mrf.mxu1  ;;  %v15307_v43 = vpop.f32.mrf.mxu0 }
 0x35a   : > { %v15310_v24 = vadd.f32 %v5770_v52, %v15159_v45 }
 0x35b   : > { %v12031_v14 = vpop.f32.mrf.mxu1  ;;  %v15312_v25 = vpop.f32.mrf.mxu0 }
 0x35c   : > { %v15315_v22 = vadd.f32 %v12031_v14, %v15164_v1 }
 0x35d   : > { %v5780_v46 = vpop.f32.mrf.mxu1  ;;  %v15317_v56 = vpop.f32.mrf.mxu0 }
 0x35e   : > { %v15320_v42 = vadd.f32 %v5780_v46, %v15169_v34 }
 0x35f   : > { %v12034_v26 = vpop.f32.mrf.mxu1  ;;  %v15322_v44 = vpop.f32.mrf.mxu0 }
 0x360   : > { %v15325_v20 = vadd.f32 %v12034_v26, %v15174_v60 }
 0x361   : > { %v5790_v45 = vpop.f32.mrf.mxu1  ;;  %v15327_v10 = vpop.f32.mrf.mxu0 }
 0x362   : > { %v15330_v54 = vadd.f32 %v5790_v45, %v15179_v48 }
 0x363   : > { %v12037_v1 = vpop.f32.mrf.mxu1  ;;  %v15332_v63 = vpop.f32.mrf.mxu0 }
 0x364   : > { %v15335_v41 = vadd.f32 %v12037_v1, %v15184_v7 }
 0x365   : > { %v5800_v34 = vpop.f32.mrf.mxu1  ;;  %v15337_v29 = vpop.f32.mrf.mxu0 }
 0x366   : > { %v15340_v12 = vadd.f32 %v5800_v34, %v15189_v49 }
 0x367   : > { %v12040_v60 = vpop.f32.mrf.mxu1  ;;  %v15342_v38 = vpop.f32.mrf.mxu0 }
 0x368   : > { %17011 = vst [vmem:[#allocation38_spill] sm:$0xff] %v15342_v38  ;;  %v15345_v5 = vadd.f32 %v12040_v60, %v15194_v57 }
 0x369   : > { %v5810_v48 = vpop.f32.mrf.mxu1  ;;  %v15347_v28 = vpop.f32.mrf.mxu0 }
 0x36a   : > { %17012 = vst [vmem:[#allocation65_spill] sm:$0xff] %v15347_v28  ;;  %v15350_v61 = vadd.f32 %v5810_v48, %v15201_v33 }
 0x36b   : > { %v12043_v7 = vpop.f32.mrf.mxu1  ;;  %v15352_v18 = vpop.f32.mrf.mxu0 }
 0x36c   : > { %17013 = vst [vmem:[#allocation15_spill] sm:$0xff] %v15350_v61  ;;  %17014 = vst [vmem:[#allocation72_spill] sm:$0xff] %v15352_v18  ;;  %v15355_v8 = vadd.f32 %v12043_v7, %v15206_v11 }
 0x36d   : > { %v5820_v49 = vpop.f32.mrf.mxu1  ;;  %v15357_v37 = vpop.f32.mrf.mxu0 }
 0x36e   : > { %17015 = vst [vmem:[#allocation21_spill] sm:$0xff] %v15355_v8  ;;  %17016 = vst [vmem:[#allocation67_spill] sm:$0xff] %v15357_v37  ;;  %v15360_v52 = vadd.f32 %v5820_v49, %v15211_v15 }
 0x36f   : > { %v12046_v57 = vpop.f32.mrf.mxu1  ;;  %v15362_v14 = vpop.f32.mrf.mxu0 }
 0x370   : > { %17017 = vst [vmem:[#allocation74_spill] sm:$0xff] %v15360_v52  ;;  %17018 = vst [vmem:[#allocation37_spill] sm:$0xff] %v15362_v14  ;;  %v15365_v46 = vadd.f32 %v12046_v57, %v15216_v21 }
 0x371   : > { %v5830_v33 = vpop.f32.mrf.mxu1  ;;  %v15367_v26 = vpop.f32.mrf.mxu0 }
 0x372   : > { %17019 = vst [vmem:[#allocation41_spill] sm:$0xff] %v15365_v46  ;;  %17020 = vst [vmem:[#allocation69_spill] sm:$0xff] %v15367_v26  ;;  %v15370_v45 = vadd.f32 %v5830_v33, %v15221_v32 }
 0x373   : > { %v12049_v11 = vpop.f32.mrf.mxu1  ;;  %v15372_v1 = vpop.f32.mrf.mxu0 }
 0x374   : > { %17021 = vst [vmem:[#allocation40_spill] sm:$0xff] %v15370_v45  ;;  %17022 = vst [vmem:[#allocation76_spill] sm:$0xff] %v15372_v1  ;;  %v15375_v34 = vadd.f32 %v12049_v11, %v15225_v27 }
 0x375   : > { %v5840_v15 = vpop.f32.mrf.mxu1  ;;  %v15377_v60 = vpop.f32.mrf.mxu0 }
 0x376   : > { %17023 = vst [vmem:[#allocation14_spill] sm:$0xff] %v15375_v34  ;;  %17024 = vst [vmem:[#allocation24_spill] sm:$0xff] %v15377_v60  ;;  %v15380_v48 = vadd.f32 %v5840_v15, %v15230_v59 }
 0x377   : > { %v12052_v21 = vpop.f32.mrf.mxu1  ;;  %v15382_v7 = vpop.f32.mrf.mxu0 }
 0x378   : > { %17025 = vst [vmem:[#allocation71_spill] sm:$0xff] %v15380_v48  ;;  %17026 = vst [vmem:[#allocation78_spill] sm:$0xff] %v15382_v7  ;;  %v15385_v49 = vadd.f32 %v12052_v21, %v15234_v0 }
 0x379   : > { %v5850_v32 = vpop.f32.mrf.mxu1  ;;  %v15387_v57 = vpop.f32.mrf.mxu0 }
 0x37a   : > { %17027 = vst [vmem:[#allocation39_spill] sm:$0xff] %v15385_v49  ;;  %17028 = vst [vmem:[#allocation44_spill] sm:$0xff] %v15387_v57  ;;  %v15390_v33 = vadd.f32 %v5850_v32, %v15239_v55 }
 0x37b   : > { %v12055_v27 = vpop.f32.mrf.mxu1  ;;  %v15392_v11 = vpop.f32.mrf.mxu0 }
 0x37c   : > { %17029 = vst [vmem:[#allocation73_spill] sm:$0xff] %v15390_v33  ;;  %17030 = vst [vmem:[#allocation43_spill] sm:$0xff] %v15392_v11  ;;  %v15395_v60 = vadd.f32 %v12055_v27, %v15243_v16 }
 0x37d   : > { %v5860_v59 = vpop.f32.mrf.mxu1  ;;  %v15397_v15 = vpop.f32.mrf.mxu0 }
 0x37e   : > { %17031 = vst [vmem:[#allocation80_spill] sm:$0xff] %v15395_v60  ;;  %17032 = vst [vmem:[#allocation23_spill] sm:$0xff] %v15397_v15  ;;  %v15400_v7 = vadd.f32 %v5860_v59, %v15246_v40 }
 0x37f   : > { %v12058_v0 = vpop.f32.mrf.mxu1  ;;  %v15402_v21 = vpop.f32.mrf.mxu0 }
 0x380   : > { %17033 = vst [vmem:[#allocation75_spill] sm:$0xff] %v15400_v7  ;;  %17034 = vst [vmem:[#allocation42_spill] sm:$0xff] %v15402_v21  ;;  %v15405_v57 = vadd.f32 %v12058_v0, %v15251_v3 }
 0x381   : > { %v5870_v55 = vpop.f32.mrf.mxu1  ;;  %v15407_v32 = vpop.f32.mrf.mxu0 }
 0x382   : > { %17035 = vst [vmem:[#allocation47_spill] sm:$0xff] %v15405_v57  ;;  %17036 = vst [vmem:[#allocation77_spill] sm:$0xff] %v15407_v32  ;;  %v15410_v11 = vadd.f32 %v5870_v55, %v15256_v47 }
 0x383   : > { %v12061_v16 = vpop.f32.mrf.mxu1  ;;  %v15412_v27 = vpop.f32.mrf.mxu0 }
 0x384   : > { %17037 = vst [vmem:[#allocation46_spill] sm:$0xff] %v15410_v11  ;;  %17038 = vst [vmem:[#allocation83_spill] sm:$0xff] %v15412_v27  ;;  %v15415_v15 = vadd.f32 %v12061_v16, %v15260_v23 }
 0x385   : > { %v5880_v40 = vpop.f32.mrf.mxu1  ;;  %v15417_v59 = vpop.f32.mrf.mxu0 }
 0x386   : > { %17039 = vst [vmem:[#allocation16_spill] sm:$0xff] %v15415_v15  ;;  %17040 = vst [vmem:[#allocation26_spill] sm:$0xff] %v15417_v59  ;;  %v15420_v21 = vadd.f32 %v5880_v40, %v15264_v9 }
 0x387   : > { %v12064_v3 = vpop.f32.mrf.mxu1  ;;  %v15422_v0 = vpop.f32.mrf.mxu0 }
 0x388   : > { %17041 = vst [vmem:[#allocation79_spill] sm:$0xff] %v15420_v21  ;;  %17042 = vst [vmem:[#allocation85_spill] sm:$0xff] %v15422_v0  ;;  %v15425_v32 = vadd.f32 %v12064_v3, %v15267_v19 }
 0x389   : > { %v5890_v47 = vpop.f32.mrf.mxu1  ;;  %v15427_v55 = vpop.f32.mrf.mxu0 }
 0x38a   : > { %17043 = vst [vmem:[#allocation45_spill] sm:$0xff] %v15425_v32  ;;  %17044 = vst [vmem:[#allocation50_spill] sm:$0xff] %v15427_v55  ;;  %v15430_v27 = vadd.f32 %v5890_v47, %v15272_v51 }
 0x38b   : > { %v12119_v23 = vpop.f32.mrf.mxu1  ;;  %v12169_v16 = vpop.f32.mrf.mxu0 }
 0x38c   : > { %17045 = vst [vmem:[#allocation81_spill] sm:$0xff] %v15430_v27 }
 0x38d   : > { %v6515_v15 = vpop.f32.mrf.mxu1  ;;  %v6902_v11 = vpop.f32.mrf.mxu0 }
 0x38f   : > { %v12122_v59 = vpop.f32.mrf.mxu1  ;;  %v12172_v9 = vpop.f32.mrf.mxu0 }
 0x391   : > { %v6525_v57 = vpop.f32.mrf.mxu1  ;;  %v15432_v7 = vpop.f32.mrf.mxu0 }
 0x393   : > { %v12125_v40 = vpop.f32.mrf.mxu1  ;;  %v15438_v3 = vpop.f32.mrf.mxu0 }
 0x395   : > { %v6535_v21 = vpop.f32.mrf.mxu1  ;;  %v15444_v47 = vpop.f32.mrf.mxu0 }
 0x397   : > { %v15434_v0 = vpop.f32.mrf.mxu1  ;;  %v15450_v60 = vpop.f32.mrf.mxu0 }
 0x399   : > { %v15436_v19 = vpop.f32.mrf.mxu1  ;;  %v15456_v48 = vpop.f32.mrf.mxu0 }
 0x39b   : > { %v15440_v55 = vpop.f32.mrf.mxu1  ;;  %v15462_v26 = vpop.f32.mrf.mxu0 }
 0x39d   : > { %v15442_v51 = vpop.f32.mrf.mxu1  ;;  %v15468_v46 = vpop.f32.mrf.mxu0 }
 0x39f   : > { %v15446_v27 = vpop.f32.mrf.mxu1  ;;  %v15474_v18 = vpop.f32.mrf.mxu0 }
 0x3a1   : > { %v15448_v32 = vpop.f32.mrf.mxu1 }
 0x3a3   : > { %v15452_v33 = vpop.f32.mrf.mxu1 }
 0x3a5   : > { %v15454_v49 = vpop.f32.mrf.mxu1 }
 0x3a6   : > { %17046 = vst [vmem:[#allocation49_spill] sm:$0xff] %v15454_v49 }
 0x3a7   : > { %v15458_v1 = vpop.f32.mrf.mxu1 }
 0x3a8   : > { %17047 = vst [vmem:[#allocation87_spill] sm:$0xff] %v15458_v1  ;;  %v15480_v1 = vpop.f32.mrf.mxu0 }
 0x3a9   : > { %v15460_v34 = vpop.f32.mrf.mxu1 }
 0x3aa   : > { %17048 = vst [vmem:[#allocation25_spill] sm:$0xff] %v15460_v34 }
 0x3ab   : > { %v15464_v45 = vpop.f32.mrf.mxu1 }
 0x3ac   : > { %17049 = vst [vmem:[#allocation82_spill] sm:$0xff] %v15464_v45  ;;  %v15486_v45 = vpop.f32.mrf.mxu0 }
 0x3ad   : > { %v15466_v14 = vpop.f32.mrf.mxu1  ;;  %17057 = vst [vmem:[#allocation51_spill] sm:$0xff] %v15486_v45 }
 0x3ae   : > { %17050 = vst [vmem:[#allocation89_spill] sm:$0xff] %v15466_v14 }
 0x3af   : > { %v15470_v37 = vpop.f32.mrf.mxu1 }
 0x3b0   : > { %17051 = vst [vmem:[#allocation48_spill] sm:$0xff] %v15470_v37  ;;  %v15492_v37 = vpop.f32.mrf.mxu0 }
 0x3b1   : > { %v15472_v52 = vpop.f32.mrf.mxu1  ;;  %17060 = vst [vmem:[#allocation90_spill] sm:$0xff] %v15492_v37 }
 0x3b2   : > { %17052 = vst [vmem:[#allocation53_spill] sm:$0xff] %v15472_v52 }
 0x3b3   : > { %v15476_v8 = vpop.f32.mrf.mxu1 }
 0x3b4   : > { %17053 = vst [vmem:[#allocation84_spill] sm:$0xff] %v15476_v8  ;;  %v15498_v8 = vpop.f32.mrf.mxu0 }
 0x3b5   : > { %v15478_v28 = vpop.f32.mrf.mxu1  ;;  %17063 = vst [vmem:[#allocation30_spill] sm:$0xff] %v15498_v8 }
 0x3b6   : > { %17054 = vst [vmem:[#allocation52_spill] sm:$0xff] %v15478_v28 }
 0x3b7   : > { %v15482_v34 = vpop.f32.mrf.mxu1 }
 0x3b8   : > { %17055 = vst [vmem:[#allocation86_spill] sm:$0xff] %v15482_v34  ;;  %v6287_v34 = vadd.f32 %v15270_v2, %v15275_v17 }
 0x3b9   : > { %v15484_v61 = vpop.f32.mrf.mxu1 }
 0x3ba   : > { %17056 = vst [vmem:[#allocation92_spill] sm:$0xff] %v15484_v61  ;;  %v6675_v45 = vadd.f32 %v12119_v23, %v6287_v34  ;;  %v15525_v34 = vld [vmem:[%s16577_s4] ss:$0 sm:$0xff] }
 0x3bb   : > { %v15488_v14 = vpop.f32.mrf.mxu1 }
 0x3bc   : > { %17058 = vst [vmem:[#allocation88_spill] sm:$0xff] %v15488_v14  ;;  %v6286_v14 = vadd.f32 %v15277_v53, %v15280_v58  ;;  %v7062_v2 = vadd.f32 %v12169_v16, %v6675_v45 }
 0x3bd   : > { %v15490_v49 = vpop.f32.mrf.mxu1 }
 0x3be   : > { %17059 = vst [vmem:[#allocation54_spill] sm:$0xff] %v15490_v49  ;;  %v15508_v49 = vpop.f32.mrf.mxu0 }
 0x3bf   : > { %v15494_v52 = vpop.f32.mrf.mxu1 }
 0x3c0   : > { %17061 = vst [vmem:[#allocation91_spill] sm:$0xff] %v15494_v52  ;;  %v6674_v52 = vadd.f32 %v6515_v15, %v6286_v14  ;;  %v15520_v53 = vpop.f32.mrf.mxu0  ;;  %v6290_v15 = vadd.f32 %v15297_v39, %v15300_v62  ;;  %v15539_v39 = vld [vmem:[%s16578_s5 + $0x1] sm:$0x1]  ;;  %v6292_v62 = vadd.f32 %v15307_v43, %v15310_v24  ;;  %v6295_v43 = vadd.f32 %v15312_v25, %v15315_v22 }
 0x3c1   : > { %v15496_v38 = vpop.f32.mrf.mxu1  ;;  %11091 = vmatprep.mubr.msk.f32.mxu0 %vm335_vm3, %v15539_v39 }
 0x3c2   : > { %17062 = vst [vmem:[#allocation93_spill] sm:$0xff] %v15496_v38  ;;  %v6289_v38 = vadd.f32 %v15282_v36, %v15285_v6  ;;  %v7061_v36 = vadd.f32 %v6902_v11, %v6674_v52  ;;  %v15532_v23 = vpop.f32.mrf.mxu0  ;;  %v6683_v25 = vadd.f32 %v15440_v55, %v6295_v43 }
 0x3c3   : > { %v15500_v28 = vpop.f32.mrf.mxu1 }
 0x3c4   : > { %17064 = vst [vmem:[#allocation55_spill] sm:$0xff] %v15500_v28  ;;  %v6288_v28 = vadd.f32 %v15287_v31, %v15290_v4  ;;  %v6677_v17 = vadd.f32 %v12122_v59, %v6289_v38  ;;  %v6678_v59 = vadd.f32 %v6535_v21, %v6290_v15 }
 0x3c5   : > { %v15504_v61 = vpop.f32.mrf.mxu1 }
 0x3c6   : > { %17065 = vst [vmem:[#allocation12_spill] sm:$0xff] %v15504_v61  ;;  %v6291_v61 = vadd.f32 %v15292_v50, %v15295_v35  ;;  %v6676_v6 = vadd.f32 %v6525_v57, %v6288_v28  ;;  %v7064_v38 = vadd.f32 %v12172_v9, %v6677_v17  ;;  %v6293_v35 = vadd.f32 %v15302_v13, %v15305_v30 }
 0x3c7   : > { %v15510_v37 = vpop.f32.mrf.mxu1  ;;  %v7065_v24 = vadd.f32 %v15444_v47, %v6678_v59 }
 0x3c8   : > { %v6679_v31 = vadd.f32 %v12125_v40, %v6291_v61  ;;  %v7063_v52 = vadd.f32 %v15432_v7, %v6676_v6  ;;  %v6681_v61 = vadd.f32 %v15434_v0, %v6293_v35  ;;  %v15552_v40 = vld [vmem:[%s16578_s5] sm:$0x1]  ;;  %v6680_v0 = vadd.f32 %v15436_v19, %v6292_v62 }
 0x3c9   : > { %v15514_v8 = vpop.f32.mrf.mxu1  ;;  %11125 = vmatprep.mubr.msk.f32.mxu1 %vm335_vm3, %v15552_v40  ;;  %v6294_v6 = vadd.f32 %v15317_v56, %v15320_v42  ;;  %v7070_v35 = vadd.f32 %v15462_v26, %v6683_v25 }
 0x3ca   : > { %v7066_v13 = vadd.f32 %v15438_v3, %v6679_v31  ;;  %v15557_v3 = vpop.f32.mrf.mxu0  ;;  %v7068_v47 = vadd.f32 %v15450_v60, %v6681_v61  ;;  %v6297_v31 = vadd.f32 %v15322_v44, %v15325_v20  ;;  %v7067_v56 = vadd.f32 %v15456_v48, %v6680_v0 }
 0x3cb   : > { %v12219_v58 = vpop.f32.mrf.mxu1 }
 0x3cc   : > { %v7449_v14 = vadd.f32 %v12219_v58, %v7062_v2  ;;  %v6685_v44 = vadd.f32 %v15446_v27, %v6297_v31 }
 0x3cd   : > { %v7289_v4 = vpop.f32.mrf.mxu1 }
 0x3ce   : > { %v7488_v45 = vadd.f32 %v15525_v34, %v7449_v14  ;;  %v7448_v50 = vadd.f32 %v7289_v4, %v7061_v36  ;;  %v6682_v4 = vadd.f32 %v15442_v51, %v6294_v6 }
 0x3cf   : > { %v12222_v16 = vpop.f32.mrf.mxu1 }
 0x3d0   : > { %v7520_v28 = vmax.f32 %v7488_v45, 0.0  ;;  %v7487_v57 = vadd.f32 %v15525_v34, %v7448_v50  ;;  %v7451_v11 = vadd.f32 %v12222_v16, %v7064_v38  ;;  %v15573_v38 = vpop.f32.mrf.mxu0  ;;  %v6296_v50 = vadd.f32 %v15327_v10, %v15330_v54 }
 0x3d1   : > { %v7299_v30 = vpop.f32.mrf.mxu1  ;;  %v6299_v16 = vadd.f32 %v15332_v63, %v15335_v41  ;;  %v7072_v63 = vadd.f32 %v15474_v18, %v6685_v44 }
 0x3d2   : > { %7553 = vst.msk [vmem:[#allocation4 + $0x21] sm:$0xff] %vm335_vm3, %v7520_v28  ;;  %v7519_v7 = vmax.f32 %v7487_v57, 0.0  ;;  %v7490_v21 = vadd.f32 %v15525_v34, %v7451_v11  ;;  %v7450_v9 = vadd.f32 %v7299_v30, %v7063_v52  ;;  %v7069_v52 = vadd.f32 %v15468_v46, %v6682_v4  ;;  %v15587_v28 = vpop.f32.mrf.mxu0  ;;  %v17066_v30 = vld [vmem:[#allocation38_spill] sm:$0xff] }
 0x3d3   : > { %v12225_v2 = vpop.f32.mrf.mxu1  ;;  %v6684_v10 = vadd.f32 %v15448_v32, %v6296_v50  ;;  %v6298_v11 = vadd.f32 %v15337_v29, %v15340_v12  ;;  %v6687_v62 = vadd.f32 %v15452_v33, %v6299_v16  ;;  %v6301_v61 = vadd.f32 %v17066_v30, %v15345_v5  ;;  %v17071_v5 = vld [vmem:[#allocation87_spill] sm:$0xff]  ;;  %v17079_v16 = vld [vmem:[#allocation30_spill] sm:$0xff] }
 0x3d4   : > { %7552 = vst.msk [vmem:[#allocation4 + $0x19] sm:$0xff] %vm335_vm3, %v7519_v7  ;;  %v7522_v17 = vmax.f32 %v7490_v21, 0.0  ;;  %v7489_v58 = vadd.f32 %v15525_v34, %v7450_v9  ;;  %v7453_v36 = vadd.f32 %v12225_v2, %v7066_v13  ;;  %v17067_v7 = vld [vmem:[#allocation49_spill] sm:$0xff]  ;;  %v15601_v9 = vpop.f32.mrf.mxu0 }
 0x3d5   : > { %v7309_v22 = vpop.f32.mrf.mxu1  ;;  %v6686_v21 = vadd.f32 %v17067_v7, %v6298_v11  ;;  %v7071_v29 = vadd.f32 %v15480_v1, %v6684_v10  ;;  %v17069_v2 = vld [vmem:[#allocation65_spill] sm:$0xff]  ;;  %v6689_v6 = vadd.f32 %v17071_v5, %v6301_v61  ;;  %v17083_v7 = vld [vmem:[#allocation40_spill] sm:$0xff] }
 0x3d6   : > { %7555 = vst.msk [vmem:[#allocation4 + $0x39] sm:$0xff] %vm335_vm3, %v7522_v17  ;;  %v7521_v14 = vmax.f32 %v7489_v58, 0.0  ;;  %v7492_v15 = vadd.f32 %v15525_v34, %v7453_v36  ;;  %v7452_v19 = vadd.f32 %v7309_v22, %v7065_v24  ;;  %v17068_v24 = vld [vmem:[#allocation15_spill] sm:$0xff]  ;;  %v15615_v4 = vpop.f32.mrf.mxu0 }
 0x3d7   : > { %v12228_v45 = vpop.f32.mrf.mxu1  ;;  %v6300_v0 = vadd.f32 %v17069_v2, %v17068_v24  ;;  %v17070_v17 = vld [vmem:[#allocation51_spill] sm:$0xff] }
 0x3d8   : > { %7554 = vst.msk [vmem:[#allocation4 + $0x31] sm:$0xff] %vm335_vm3, %v7521_v14  ;;  %v7524_v42 = vmax.f32 %v7492_v15, 0.0  ;;  %v7491_v60 = vadd.f32 %v15525_v34, %v7452_v19  ;;  %v7455_v55 = vadd.f32 %v12228_v45, %v7068_v47  ;;  %v7074_v58 = vadd.f32 %v17070_v17, %v6687_v62  ;;  %v17072_v47 = vld [vmem:[#allocation21_spill] sm:$0xff]  ;;  %v17073_v14 = vld [vmem:[#allocation72_spill] sm:$0xff]  ;;  %v17074_v19 = vld [vmem:[#allocation90_spill] sm:$0xff] }
 0x3d9   : > { %v7319_v59 = vpop.f32.mrf.mxu1  ;;  %v6303_v15 = vadd.f32 %v17073_v14, %v17072_v47  ;;  %v7073_v31 = vadd.f32 %v17074_v19, %v6686_v21  ;;  %v17082_v62 = vld [vmem:[#allocation89_spill] sm:$0xff]  ;;  %v17087_v17 = vld [vmem:[#allocation76_spill] sm:$0xff]  ;;  %v17089_v14 = vld [vmem:[#allocation71_spill] sm:$0xff] }
 0x3da   : > { %7557 = vst.msk [vmem:[#allocation4 + $0x51] sm:$0xff] %vm335_vm3, %v7524_v42  ;;  %v7523_v20 = vmax.f32 %v7491_v60, 0.0  ;;  %v7494_v51 = vadd.f32 %v15525_v34, %v7455_v55  ;;  %v7454_v48 = vadd.f32 %v7319_v59, %v7067_v56  ;;  %v17075_v56 = vld [vmem:[#allocation25_spill] sm:$0xff]  ;;  %v17077_v59 = vld [vmem:[#allocation67_spill] sm:$0xff] }
 0x3db   : > { %v12231_v57 = vpop.f32.mrf.mxu1  ;;  %v6688_v42 = vadd.f32 %v17075_v56, %v6300_v0  ;;  %v17084_v21 = vld [vmem:[#allocation69_spill] sm:$0xff]  ;;  %v17086_v0 = vld [vmem:[#allocation14_spill] sm:$0xff] }
 0x3dc   : > { %7556 = vst.msk [vmem:[#allocation4 + $0x49] sm:$0xff] %vm335_vm3, %v7523_v20  ;;  %v7526_v54 = vmax.f32 %v7494_v51, 0.0  ;;  %v7493_v26 = vadd.f32 %v15525_v34, %v7454_v48  ;;  %v7457_v27 = vadd.f32 %v12231_v57, %v7070_v35  ;;  %v17076_v35 = vld [vmem:[#allocation74_spill] sm:$0xff] }
 0x3dd   : > { %v7329_v13 = vpop.f32.mrf.mxu1  ;;  %v6302_v44 = vadd.f32 %v17077_v59, %v17076_v35  ;;  %v17078_v20 = vld [vmem:[#allocation82_spill] sm:$0xff] }
 0x3de   : > { %7559 = vst.msk [vmem:[#allocation4 + $0x69] sm:$0xff] %vm335_vm3, %v7526_v54  ;;  %v7525_v41 = vmax.f32 %v7493_v26, 0.0  ;;  %v7496_v46 = vadd.f32 %v15525_v34, %v7457_v27  ;;  %v7456_v32 = vadd.f32 %v7329_v13, %v7069_v52  ;;  %v6691_v51 = vadd.f32 %v17078_v20, %v6303_v15  ;;  %v17080_v26 = vld [vmem:[#allocation41_spill] sm:$0xff]  ;;  %v17090_v15 = vld [vmem:[#allocation24_spill] sm:$0xff]  ;;  %v17093_v35 = vld [vmem:[#allocation78_spill] sm:$0xff] }
 0x3df   : > { %v12234_v43 = vpop.f32.mrf.mxu1  ;;  %v7076_v52 = vadd.f32 %v17079_v16, %v6689_v6  ;;  %v17081_v27 = vld [vmem:[#allocation37_spill] sm:$0xff]  ;;  %v6690_v13 = vadd.f32 %v17082_v62, %v6302_v44  ;;  %v6306_v19 = vadd.f32 %v17090_v15, %v17089_v14  ;;  %v17094_v44 = vld [vmem:[#allocation52_spill] sm:$0xff]  ;;  %v17097_v62 = vld [vmem:[#allocation86_spill] sm:$0xff] }
 0x3e0   : > { %7558 = vst.msk [vmem:[#allocation4 + $0x61] sm:$0xff] %vm335_vm3, %v7525_v41  ;;  %v7528_v12 = vmax.f32 %v7496_v46, 0.0  ;;  %v7495_v18 = vadd.f32 %v15525_v34, %v7456_v32  ;;  %v7459_v33 = vadd.f32 %v12234_v43, %v7072_v63  ;;  %v6305_v11 = vadd.f32 %v17081_v27, %v17080_v26  ;;  %v15629_v63 = vpop.f32.mrf.mxu0 }
 0x3e1   : > { %v7339_v36 = vpop.f32.mrf.mxu1  ;;  %v7075_v46 = vadd.f32 %v15508_v49, %v6688_v42  ;;  %v6304_v43 = vadd.f32 %v17084_v21, %v17083_v7  ;;  %v6694_v20 = vadd.f32 %v17094_v44, %v6306_v19 }
 0x3e2   : > { %7561 = vst.msk [vmem:[#allocation4 + $0x81] sm:$0xff] %vm335_vm3, %v7528_v12  ;;  %v7527_v25 = vmax.f32 %v7495_v18, 0.0  ;;  %v7498_v22 = vadd.f32 %v15525_v34, %v7459_v33  ;;  %v7458_v1 = vadd.f32 %v7339_v36, %v7071_v29  ;;  %v7078_v29 = vadd.f32 %v15520_v53, %v6691_v51  ;;  %v17085_v18 = vld [vmem:[#allocation48_spill] sm:$0xff]  ;;  %v12205_v5 = vpop.f32.mrf.mxu0 }
 0x3e3   : > { %v12237_v45 = vpop.f32.mrf.mxu1  ;;  %v6693_v33 = vadd.f32 %v17085_v18, %v6305_v11  ;;  %v7077_v36 = vadd.f32 %v15532_v23, %v6690_v13  ;;  %v7081_v7 = vadd.f32 %v15601_v9, %v6694_v20 }
 0x3e4   : > { %7560 = vst.msk [vmem:[#allocation4 + $0x79] sm:$0xff] %vm335_vm3, %v7527_v25  ;;  %v7530_v60 = vmax.f32 %v7498_v22, 0.0  ;;  %v7497_v55 = vadd.f32 %v15525_v34, %v7458_v1  ;;  %v7461_v50 = vadd.f32 %v12237_v45, %v7074_v58  ;;  %v6307_v58 = vadd.f32 %v17087_v17, %v17086_v0  ;;  %v17088_v25 = vld [vmem:[#allocation53_spill] sm:$0xff]  ;;  %v7022_v51 = vpop.f32.mrf.mxu0  ;;  %v17103_v0 = vld [vmem:[#allocation88_spill] sm:$0xff] }
 0x3e5   : > { %v7349_v48 = vpop.f32.mrf.mxu1  ;;  %v6692_v22 = vadd.f32 %v17088_v25, %v6304_v43  ;;  %v7080_v42 = vadd.f32 %v15557_v3, %v6693_v33 }
 0x3e6   : > { %7563 = vst.msk [vmem:[#allocation4 + $0x99] sm:$0xff] %vm335_vm3, %v7530_v60  ;;  %v7529_v57 = vmax.f32 %v7497_v55, 0.0  ;;  %v7500_v10 = vadd.f32 %v15525_v34, %v7461_v50  ;;  %v7460_v54 = vadd.f32 %v7349_v48, %v7073_v31  ;;  %v17091_v31 = vld [vmem:[#allocation84_spill] sm:$0xff]  ;;  %v17092_v50 = vld [vmem:[#allocation39_spill] sm:$0xff]  ;;  %v12208_v21 = vpop.f32.mrf.mxu0 }
 0x3e7   : > { %v12240_v41 = vpop.f32.mrf.mxu1  ;;  %v6695_v45 = vadd.f32 %v17091_v31, %v6307_v58  ;;  %v6309_v59 = vadd.f32 %v17093_v35, %v17092_v50  ;;  %v7079_v16 = vadd.f32 %v15573_v38, %v6692_v22  ;;  %v17104_v22 = vld [vmem:[#allocation47_spill] sm:$0xff] }
 0x3e8   : > { %7562 = vst.msk [vmem:[#allocation4 + $0x91] sm:$0xff] %vm335_vm3, %v7529_v57  ;;  %v7532_v32 = vmax.f32 %v7500_v10, 0.0  ;;  %v7499_v30 = vadd.f32 %v15525_v34, %v7460_v54  ;;  %v7463_v61 = vadd.f32 %v12240_v41, %v7076_v52  ;;  %v17095_v10 = vld [vmem:[#allocation73_spill] sm:$0xff]  ;;  %v17096_v54 = vld [vmem:[#allocation44_spill] sm:$0xff]  ;;  %v7032_v15 = vpop.f32.mrf.mxu0  ;;  %v17109_v35 = vld [vmem:[#allocation91_spill] sm:$0xff] }
 0x3e9   : > { %v7359_v12 = vpop.f32.mrf.mxu1  ;;  %v6308_v26 = vadd.f32 %v17096_v54, %v17095_v10  ;;  %v7082_v27 = vadd.f32 %v15587_v28, %v6695_v45  ;;  %v6697_v13 = vadd.f32 %v17097_v62, %v6309_v59  ;;  %v17112_v54 = vld [vmem:[#allocation93_spill] sm:$0xff]  ;;  %v17113_v62 = vld [vmem:[#allocation79_spill] sm:$0xff] }
 0x3ea   : > { %7565 = vst.msk [vmem:[#allocation4 + $0xb1] sm:$0xff] %vm335_vm3, %v7532_v32  ;;  %v7531_v24 = vmax.f32 %v7499_v30, 0.0  ;;  %v7502_v2 = vadd.f32 %v15525_v34, %v7463_v61  ;;  %v7462_v49 = vadd.f32 %v7359_v12, %v7075_v46  ;;  %v17098_v32 = vld [vmem:[#allocation80_spill] sm:$0xff]  ;;  %v17099_v30 = vld [vmem:[#allocation43_spill] sm:$0xff] }
 0x3eb   : > { %v12243_v6 = vpop.f32.mrf.mxu1  ;;  %v6311_v61 = vadd.f32 %v17099_v30, %v17098_v32 }
 0x3ec   : > { %7564 = vst.msk [vmem:[#allocation4 + $0xa9] sm:$0xff] %vm335_vm3, %v7531_v24  ;;  %v7534_v53 = vmax.f32 %v7502_v2, 0.0  ;;  %v7501_v1 = vadd.f32 %v15525_v34, %v7462_v49  ;;  %v7465_v47 = vadd.f32 %v12243_v6, %v7078_v29  ;;  %v17100_v29 = vld [vmem:[#allocation92_spill] sm:$0xff]  ;;  %v17101_v24 = vld [vmem:[#allocation75_spill] sm:$0xff] }
 0x3ed   : > { %v7369_v56 = vpop.f32.mrf.mxu1  ;;  %v6696_v12 = vadd.f32 %v17100_v29, %v6308_v26  ;;  %v17102_v2 = vld [vmem:[#allocation23_spill] sm:$0xff]  ;;  %v6699_v17 = vadd.f32 %v17103_v0, %v6311_v61  ;;  %v17117_v29 = vld [vmem:[#allocation85_spill] sm:$0xff] }
 0x3ee   : > { %7567 = vst.msk [vmem:[#allocation4 + $0xc9] sm:$0xff] %vm335_vm3, %v7534_v53  ;;  %v7533_v23 = vmax.f32 %v7501_v1, 0.0  ;;  %v7504_v60 = vadd.f32 %v15525_v34, %v7465_v47  ;;  %v7464_v55 = vadd.f32 %v7369_v56, %v7077_v36  ;;  %v6310_v49 = vadd.f32 %v17102_v2, %v17101_v24  ;;  %v17105_v53 = vld [vmem:[#allocation42_spill] sm:$0xff] }
 0x3ef   : > { %v12246_v48 = vpop.f32.mrf.mxu1  ;;  %v7084_v36 = vadd.f32 %v15615_v4, %v6697_v13  ;;  %v6313_v1 = vadd.f32 %v17105_v53, %v17104_v22  ;;  %v17106_v47 = vld [vmem:[#allocation54_spill] sm:$0xff]  ;;  %v7083_v31 = vadd.f32 %v15629_v63, %v6696_v12  ;;  %v17110_v63 = vld [vmem:[#allocation16_spill] sm:$0xff] }
 0x3f0   : > { %7566 = vst.msk [vmem:[#allocation4 + $0xc1] sm:$0xff] %vm335_vm3, %v7533_v23  ;;  %v7536_v52 = vmax.f32 %v7504_v60, 0.0  ;;  %v7503_v3 = vadd.f32 %v15525_v34, %v7464_v55  ;;  %v7467_v57 = vadd.f32 %v12246_v48, %v7080_v42  ;;  %v6698_v14 = vadd.f32 %v17106_v47, %v6310_v49  ;;  %v17107_v42 = vld [vmem:[#allocation46_spill] sm:$0xff]  ;;  %v17108_v23 = vld [vmem:[#allocation77_spill] sm:$0xff] }
 0x3f1   : > { %v7379_v11 = vpop.f32.mrf.mxu1  ;;  %v6312_v60 = vadd.f32 %v17108_v23, %v17107_v42  ;;  %v7086_v55 = vadd.f32 %v12205_v5, %v6699_v17  ;;  %v6701_v59 = vadd.f32 %v17109_v35, %v6313_v1  ;;  %v17114_v13 = vld [vmem:[#allocation26_spill] sm:$0xff]  ;;  %v17119_v17 = vld [vmem:[#allocation81_spill] sm:$0xff] }
 0x3f2   : > { %7569 = vst.msk [vmem:[#allocation4 + $0xe1] sm:$0xff] %vm335_vm3, %v7536_v52  ;;  %v7535_v41 = vmax.f32 %v7503_v3, 0.0  ;;  %v7506_v46 = vadd.f32 %v15525_v34, %v7467_v57  ;;  %v7466_v38 = vadd.f32 %v7379_v11, %v7079_v16  ;;  %v17111_v16 = vld [vmem:[#allocation83_spill] sm:$0xff]  ;;  %v7085_v3 = vadd.f32 %v7022_v51, %v6698_v14  ;;  %v12211_v57 = vpop.f32.mrf.mxu0 }
 0x3f3   : > { %v12249_v43 = vpop.f32.mrf.mxu1  ;;  %v6315_v52 = vadd.f32 %v17111_v16, %v17110_v63  ;;  %v6700_v26 = vadd.f32 %v17112_v54, %v6312_v60  ;;  %v7088_v30 = vadd.f32 %v12208_v21, %v6701_v59  ;;  %v15724_v54 = vld [vmem:[#allocation4 + $0xb1] sm:$0xff] }
 0x3f4   : > { %7568 = vst.msk [vmem:[#allocation4 + $0xd9] sm:$0xff] %vm335_vm3, %v7535_v41  ;;  %v7538_v28 = vmax.f32 %v7506_v46, 0.0  ;;  %v7505_v18 = vadd.f32 %v15525_v34, %v7466_v38  ;;  %v7469_v33 = vadd.f32 %v12249_v43, %v7082_v27  ;;  %v6314_v41 = vadd.f32 %v17114_v13, %v17113_v62  ;;  %v17115_v46 = vld [vmem:[#allocation55_spill] sm:$0xff]  ;;  %v17116_v43 = vld [vmem:[#allocation45_spill] sm:$0xff] }
 0x3f5   : > { %v7389_v58 = vpop.f32.mrf.mxu1  ;;  %v6703_v38 = vadd.f32 %v17115_v46, %v6315_v52  ;;  %v6317_v12 = vadd.f32 %v17117_v29, %v17116_v43  ;;  %v7087_v2 = vadd.f32 %v7032_v15, %v6700_v26  ;;  %v15752_v13 = vld [vmem:[#allocation4 + $0xa8] sm:$0xff]  ;;  %v15760_v46 = vld [vmem:[#allocation4 + $0x99] sm:$0xff] }
 0x3f6   : > { %7571 = vst.msk [vmem:[#allocation4 + $0xf9] sm:$0xff] %vm335_vm3, %v7538_v28  ;;  %v7537_v9 = vmax.f32 %v7505_v18, 0.0  ;;  %v7508_v6 = vadd.f32 %v15525_v34, %v7469_v33  ;;  %v7468_v25 = vadd.f32 %v7389_v58, %v7081_v7  ;;  %v17118_v28 = vld [vmem:[#allocation12_spill] sm:$0xff]  ;;  %v7042_v33 = vpop.f32.mrf.mxu0  ;;  %v17120_v58 = vld [vmem:[#allocation50_spill] sm:$0xff]  ;;  %17124 = vst [vmem:[#allocation11_spill] sm:$0xff] %v15752_v13 }
 0x3f7   : > { %v12252_v19 = vpop.f32.mrf.mxu1  ;;  %v6702_v18 = vadd.f32 %v17118_v28, %v6314_v41  ;;  %v6705_v22 = vadd.f32 %v15510_v37, %v6317_v12  ;;  %v15792_v29 = vld [vmem:[#allocation4 + $0x81] sm:$0xff] }
 0x3f8   : > { %7570 = vst.msk [vmem:[#allocation4 + $0xf1] sm:$0xff] %vm335_vm3, %v7537_v9  ;;  %v7540_v45 = vmax.f32 %v7508_v6, 0.0  ;;  %v7507_v4 = vadd.f32 %v15525_v34, %v7468_v25  ;;  %v7471_v56 = vadd.f32 %v12252_v19, %v7084_v36  ;;  %v6316_v36 = vadd.f32 %v17120_v58, %v17119_v17  ;;  %v12214_v6 = vpop.f32.mrf.mxu0  ;;  %v15800_v28 = vld [vmem:[#allocation4 + $0x80] sm:$0xff]  ;;  %v15832_v17 = vld [vmem:[#allocation4 + $0x68] sm:$0xff] }
 0x3f9   : > { %v7399_v50 = vpop.f32.mrf.mxu1  ;;  %v7090_v9 = vadd.f32 %v12211_v57, %v6703_v38  ;;  %v7089_v14 = vadd.f32 %v7042_v33, %v6702_v18  ;;  %v7092_v23 = vadd.f32 %v12214_v6, %v6705_v22  ;;  %17130 = vst [vmem:[#allocation20_spill] sm:$0xff] %v15800_v28  ;;  %v15808_v33 = vld [vmem:[#allocation4 + $0x79] sm:$0xff]  ;;  %17134 = vst [vmem:[#allocation33_spill] sm:$0xff] %v15832_v17  ;;  %v15856_v22 = vld [vmem:[#allocation4 + $0x51] sm:$0xff] }
 0x3fa   : > { %7573 = vst.msk [vmem:[#allocation4 + $0x111] sm:$0xff] %vm335_vm3, %v7540_v45  ;;  %v7539_v44 = vmax.f32 %v7507_v4, 0.0  ;;  %v7510_v20 = vadd.f32 %v15525_v34, %v7471_v56  ;;  %v7470_v48 = vadd.f32 %v7399_v50, %v7083_v31  ;;  %v6704_v19 = vadd.f32 %v15514_v8, %v6316_v36  ;;  %v7052_v56 = vpop.f32.mrf.mxu0  ;;  %v15840_v36 = vld [vmem:[#allocation4 + $0x61] sm:$0xff] }
 0x3fb   : > { %v12255_v10 = vpop.f32.mrf.mxu1  ;;  %v15848_v6 = vld [vmem:[#allocation4 + $0x60] sm:$0xff] }
 0x3fc   : > { %7572 = vst.msk [vmem:[#allocation4 + $0x109] sm:$0xff] %vm335_vm3, %v7539_v44  ;;  %v7542_v5 = vmax.f32 %v7510_v20, 0.0  ;;  %v7509_v27 = vadd.f32 %v15525_v34, %v7470_v48  ;;  %v7473_v11 = vadd.f32 %v12255_v10, %v7086_v55  ;;  %v7091_v35 = vadd.f32 %v7052_v56, %v6704_v19  ;;  %17136 = vst [vmem:[#allocation32_spill] sm:$0xff] %v15848_v6  ;;  %v15880_v19 = vld [vmem:[#allocation4 + $0x48] sm:$0xff]  ;;  %v15896_v56 = vld [vmem:[#allocation4 + $0x38] sm:$0xff] }
 0x3fd   : > { %v7409_v32 = vpop.f32.mrf.mxu1  ;;  %17140 = vst [vmem:[#allocation66_spill] sm:$0xff] %v15880_v19  ;;  %17142 = vst [vmem:[#allocation36_spill] sm:$0xff] %v15896_v56 }
 0x3fe   : > { %7575 = vst.msk [vmem:[#allocation4 + $0x129] sm:$0xff] %vm335_vm3, %v7542_v5  ;;  %v7541_v51 = vmax.f32 %v7509_v27, 0.0  ;;  %v7512_v61 = vadd.f32 %v15525_v34, %v7473_v11  ;;  %v7472_v7 = vadd.f32 %v7409_v32, %v7085_v3  ;;  %v15744_v11 = vld [vmem:[#allocation4 + $0xa9] sm:$0xff]  ;;  %v15768_v32 = vld [vmem:[#allocation4 + $0x98] sm:$0xff] }
 0x3ff   : > { %v12258_v24 = vpop.f32.mrf.mxu1  ;;  %17126 = vst [vmem:[#allocation27_spill] sm:$0xff] %v15768_v32 }
 0x400   : > { %7574 = vst.msk [vmem:[#allocation4 + $0x121] sm:$0xff] %vm335_vm3, %v7541_v51  ;;  %v7544_v49 = vmax.f32 %v7512_v61, 0.0  ;;  %v7511_v0 = vadd.f32 %v15525_v34, %v7472_v7  ;;  %v7475_v21 = vadd.f32 %v12258_v24, %v7088_v30  ;;  %v15776_v51 = vld [vmem:[#allocation4 + $0x91] sm:$0xff] }
 0x401   : > { %v7419_v25 = vpop.f32.mrf.mxu1  ;;  %v15784_v7 = vld [vmem:[#allocation4 + $0x90] sm:$0xff] }
 0x402   : > { %7577 = vst.msk [vmem:[#allocation4 + $0x141] sm:$0xff] %vm335_vm3, %v7544_v49  ;;  %v7543_v53 = vmax.f32 %v7511_v0, 0.0  ;;  %v7514_v1 = vadd.f32 %v15525_v34, %v7475_v21  ;;  %v7474_v47 = vadd.f32 %v7419_v25, %v7087_v2  ;;  %17128 = vst [vmem:[#allocation29_spill] sm:$0xff] %v15784_v7  ;;  %v15816_v2 = vld [vmem:[#allocation4 + $0x78] sm:$0xff]  ;;  %v15824_v0 = vld [vmem:[#allocation4 + $0x69] sm:$0xff] }
 0x403   : > { %v12261_v15 = vpop.f32.mrf.mxu1  ;;  %17132 = vst [vmem:[#allocation28_spill] sm:$0xff] %v15816_v2  ;;  %v15852_v25 = vld [vmem:[#allocation4 + $0x110] sm:$0xff] }
 0x404   : > { %7576 = vst.msk [vmem:[#allocation4 + $0x139] sm:$0xff] %vm335_vm3, %v7543_v53  ;;  %v7546_v31 = vmax.f32 %v7514_v1, 0.0  ;;  %v7513_v45 = vadd.f32 %v15525_v34, %v7474_v47  ;;  %v7477_v4 = vadd.f32 %v12261_v15, %v7090_v9  ;;  %v15844_v9 = vld [vmem:[#allocation4 + $0x111] sm:$0xff]  ;;  %17137 = vst [vmem:[#allocation64_spill] sm:$0xff] %v15852_v25  ;;  %v15860_v53 = vld [vmem:[#allocation4 + $0x109] sm:$0xff] }
 0x405   : > { %v7429_v42 = vpop.f32.mrf.mxu1  ;;  %v15812_v24 = vld [vmem:[#allocation4 + $0x129] sm:$0xff]  ;;  %v15876_v15 = vld [vmem:[#allocation4 + $0xf9] sm:$0xff] }
 0x406   : > { %7579 = vst.msk [vmem:[#allocation4 + $0x159] sm:$0xff] %vm335_vm3, %v7546_v31  ;;  %v7545_v37 = vmax.f32 %v7513_v45, 0.0  ;;  %v7516_v60 = vadd.f32 %v15525_v34, %v7477_v4  ;;  %v7476_v55 = vadd.f32 %v7429_v42, %v7089_v14  ;;  %v15864_v1 = vld [vmem:[#allocation4 + $0x50] sm:$0xff]  ;;  %v15868_v47 = vld [vmem:[#allocation4 + $0x108] sm:$0xff]  ;;  %v15884_v31 = vld [vmem:[#allocation4 + $0xf8] sm:$0xff] }
 0x407   : > { %v12264_v50 = vpop.f32.mrf.mxu1  ;;  %v15820_v49 = vld [vmem:[#allocation4 + $0x128] sm:$0xff]  ;;  %v15836_v58 = vld [vmem:[#allocation4 + $0x120] sm:$0xff]  ;;  %17138 = vst [vmem:[#allocation19_spill] sm:$0xff] %v15864_v1  ;;  %17139 = vst [vmem:[#allocation59_spill] sm:$0xff] %v15868_v47 }
 0x408   : > { %7578 = vst.msk [vmem:[#allocation4 + $0x151] sm:$0xff] %vm335_vm3, %v7545_v37  ;;  %v7548_v8 = vmax.f32 %v7516_v60, 0.0  ;;  %v7515_v59 = vadd.f32 %v15525_v34, %v7476_v55  ;;  %v7479_v44 = vadd.f32 %v12264_v50, %v7092_v23  ;;  %17133 = vst [vmem:[#allocation18_spill] sm:$0xff] %v15820_v49  ;;  %v15828_v21 = vld [vmem:[#allocation4 + $0x121] sm:$0xff]  ;;  %v15872_v14 = vld [vmem:[#allocation4 + $0x49] sm:$0xff] }
 0x409   : > { %v7439_v20 = vpop.f32.mrf.mxu1  ;;  %v15780_v61 = vld [vmem:[#allocation4 + $0x141] sm:$0xff]  ;;  %17135 = vst [vmem:[#allocation57_spill] sm:$0xff] %v15836_v58  ;;  %17141 = vst [vmem:[#allocation31_spill] sm:$0xff] %v15884_v31  ;;  %v15888_v45 = vld [vmem:[#allocation4 + $0x39] sm:$0xff] }
 0x40a   : > { %7581 = vst.msk [vmem:[#allocation4 + $0x171] sm:$0xff] %vm335_vm3, %v7548_v8  ;;  %v7547_v48 = vmax.f32 %v7515_v59, 0.0  ;;  %v7518_v63 = vadd.f32 %v15525_v34, %v7479_v44  ;;  %v7478_v16 = vadd.f32 %v7439_v20, %v7091_v35  ;;  %v15892_v4 = vld [vmem:[#allocation4 + $0xf1] sm:$0xff]  ;;  %v15908_v37 = vld [vmem:[#allocation4 + $0xe1] sm:$0xff]  ;;  %v15924_v35 = vld [vmem:[#allocation4 + $0xd9] sm:$0xff] }
 0x40b   : > { %v15788_v43 = vld [vmem:[#allocation4 + $0x140] sm:$0xff]  ;;  %v15804_v18 = vld [vmem:[#allocation4 + $0x138] sm:$0xff]  ;;  %v15900_v42 = vld [vmem:[#allocation4 + $0xf0] sm:$0xff]  ;;  %17145 = vst [vmem:[#allocation63_spill] sm:$0xff] %v15908_v37 }
 0x40c   : > { %7580 = vst.msk [vmem:[#allocation4 + $0x169] sm:$0xff] %vm335_vm3, %v7547_v48  ;;  %v7550_v52 = vmax.f32 %v7518_v63, 0.0  ;;  %v7517_v3 = vadd.f32 %v15525_v34, %v7478_v16  ;;  %v15736_v34 = vld [vmem:[#allocation4 + $0xb0] sm:$0xff]  ;;  %17129 = vst [vmem:[#allocation60_spill] sm:$0xff] %v15788_v43  ;;  %v15796_v12 = vld [vmem:[#allocation4 + $0x139] sm:$0xff] }
 0x40d   : > { %17122 = vst [vmem:[#allocation9_spill] sm:$0xff] %v15736_v34  ;;  %v15748_v62 = vld [vmem:[#allocation4 + $0x159] sm:$0xff]  ;;  %17131 = vst [vmem:[#allocation56_spill] sm:$0xff] %v15804_v18  ;;  %v15904_v23 = vld [vmem:[#allocation4 + $0x31] sm:$0xff] }
 0x40e   : > { %7583 = vst.msk [vmem:[#allocation4 + $0x189] sm:$0xff] %vm335_vm3, %v7550_v52  ;;  %v7549_v57 = vmax.f32 %v7517_v3, 0.0  ;;  %17143 = vst [vmem:[#allocation35_spill] sm:$0xff] %v15900_v42  ;;  %v15912_v60 = vld [vmem:[#allocation4 + $0x30] sm:$0xff]  ;;  %v15916_v55 = vld [vmem:[#allocation4 + $0xe0] sm:$0xff] }
 0x40f   : > { %v15756_v41 = vld [vmem:[#allocation4 + $0x158] sm:$0xff]  ;;  %v15772_v30 = vld [vmem:[#allocation4 + $0x150] sm:$0xff]  ;;  %17144 = vst [vmem:[#allocation61_spill] sm:$0xff] %v15904_v23  ;;  %17146 = vst [vmem:[#allocation70_spill] sm:$0xff] %v15912_v60 }
 0x410   : > { %7582 = vst.msk [vmem:[#allocation4 + $0x181] sm:$0xff] %vm335_vm3, %v7549_v57  ;;  %17125 = vst [vmem:[#allocation58_spill] sm:$0xff] %v15756_v41  ;;  %v15764_v38 = vld [vmem:[#allocation4 + $0x151] sm:$0xff]  ;;  %v15920_v50 = vld [vmem:[#allocation4 + $0x21] sm:$0xff] }
 0x411   : > { %v15720_v10 = vld [vmem:[#allocation4 + $0x171] sm:$0xff]  ;;  %17127 = vst [vmem:[#allocation17_spill] sm:$0xff] %v15772_v30  ;;  %17147 = vst [vmem:[#allocation22_spill] sm:$0xff] %v15916_v55  ;;  %v15928_v8 = vld [vmem:[#allocation4 + $0x20] sm:$0xff] }
 0x412   : > { %11059 = vmatprep.subr.msk.mxu0 %vm335_vm3, %v15720_v10  ;;  %17148 = vst [vmem:[#allocation68_spill] sm:$0xff] %v15920_v50  ;;  %17149 = vst [vmem:[#allocation13_spill] sm:$0xff] %v15924_v35  ;;  %v15932_v59 = vld [vmem:[#allocation4 + $0xd8] sm:$0xff]  ;;  %v15940_v20 = vld [vmem:[#allocation4 + $0xc9] sm:$0xff] }
 0x413   : > { %11060 = vmatpush3.xpose.msk.msra.mxu0 %vm335_vm3, %v15724_v54  ;;  %v15728_v26 = vld [vmem:[#allocation4 + $0x169] sm:$0xff]  ;;  %v15936_v44 = vld [vmem:[#allocation4 + $0x19] sm:$0xff]  ;;  %v15953_v3 = vld [vmem:[#allocation4 + $0xc1] sm:$0xff] }
 0x414   : > { %v15730_v5 = vld [vmem:[#allocation4 + $0x170] sm:$0xff]  ;;  %11061 = vmatprep.subr.msk.mxu0 %vm335_vm3, %v15728_v26  ;;  %v15740_v27 = vld [vmem:[#allocation4 + $0x168] sm:$0xff]  ;;  %17150 = vst [vmem:[#allocation34_spill] sm:$0xff] %v15936_v44  ;;  %v15944_v48 = vld [vmem:[#allocation4 + $0x18] sm:$0xff] }
 0x415   : > { %17121 = vst [vmem:[#allocation62_spill] sm:$0xff] %v15730_v5  ;;  %11093 = vmatprep.subr.msk.mxu1 %vm335_vm3, %v15730_v5  ;;  %17123 = vst [vmem:[#allocation10_spill] sm:$0xff] %v15740_v27  ;;  %v7618_v63 = vld [vmem:[#allocation4 + $0x9] sm:$0xff]  ;;  %v7617_v57 = vld [vmem:[#allocation4 + $0x1] sm:$0xff] }
 0x416   : > { %11094 = vmatpush3.xpose.msk.msra.mxu1 %vm335_vm3, %v15736_v34  ;;  %v15948_v16 = vld [vmem:[#allocation4 + $0xc8] sm:$0xff] }
 0x417   : > { %11095 = vmatprep.subr.msk.mxu1 %vm335_vm3, %v15740_v27  ;;  %11062 = vmatpush3.xpose.msk.msra.mxu0 %vm335_vm3, %v15744_v11  ;;  %17151 = vst [vmem:[#allocation38_spill] sm:$0xff] %v15948_v16  ;;  %v7585_v52 = vld [vmem:[#allocation4 + $0x8] sm:$0xff] }
 0x418   : > { %11063 = vmatprep.subr.msk.mxu0 %vm335_vm3, %v15748_v62 }
 0x41a   : > { %11096 = vmatpush3.xpose.msk.msra.mxu1 %vm335_vm3, %v15752_v13 }
 0x41b   : > { %11097 = vmatprep.subr.msk.mxu1 %vm335_vm3, %v15756_v41  ;;  %11064 = vmatpush3.xpose.msk.msra.mxu0 %vm335_vm3, %v15760_v46 }
 0x41c   : > { %11065 = vmatprep.subr.msk.mxu0 %vm335_vm3, %v15764_v38 }
 0x41e   : > { %11098 = vmatpush3.xpose.msk.msra.mxu1 %vm335_vm3, %v15768_v32 }
 0x41f   : > { %11099 = vmatprep.subr.msk.mxu1 %vm335_vm3, %v15772_v30  ;;  %11066 = vmatpush3.xpose.msk.msra.mxu0 %vm335_vm3, %v15776_v51 }
 0x420   : > { %11067 = vmatprep.subr.msk.mxu0 %vm335_vm3, %v15780_v61 }
 0x422   : > { %11100 = vmatpush3.xpose.msk.msra.mxu1 %vm335_vm3, %v15784_v7 }
 0x423   : > { %11101 = vmatprep.subr.msk.mxu1 %vm335_vm3, %v15788_v43  ;;  %11068 = vmatpush3.xpose.msk.msra.mxu0 %vm335_vm3, %v15792_v29 }
 0x424   : > { %11069 = vmatprep.subr.msk.mxu0 %vm335_vm3, %v15796_v12 }
 0x426   : > { %11102 = vmatpush3.xpose.msk.msra.mxu1 %vm335_vm3, %v15800_v28 }
 0x427   : > { %11103 = vmatprep.subr.msk.mxu1 %vm335_vm3, %v15804_v18  ;;  %11070 = vmatpush3.xpose.msk.msra.mxu0 %vm335_vm3, %v15808_v33 }
 0x428   : > { %11071 = vmatprep.subr.msk.mxu0 %vm335_vm3, %v15812_v24 }
 0x42a   : > { %11104 = vmatpush3.xpose.msk.msra.mxu1 %vm335_vm3, %v15816_v2 }
 0x42b   : > { %11105 = vmatprep.subr.msk.mxu1 %vm335_vm3, %v15820_v49  ;;  %11072 = vmatpush3.xpose.msk.msra.mxu0 %vm335_vm3, %v15824_v0 }
 0x42c   : > { %11073 = vmatprep.subr.msk.mxu0 %vm335_vm3, %v15828_v21 }
 0x42e   : > { %11106 = vmatpush3.xpose.msk.msra.mxu1 %vm335_vm3, %v15832_v17 }
 0x42f   : > { %11107 = vmatprep.subr.msk.mxu1 %vm335_vm3, %v15836_v58  ;;  %11074 = vmatpush3.xpose.msk.msra.mxu0 %vm335_vm3, %v15840_v36 }
 0x430   : > { %11075 = vmatprep.subr.msk.mxu0 %vm335_vm3, %v15844_v9 }
 0x432   : > { %11108 = vmatpush3.xpose.msk.msra.mxu1 %vm335_vm3, %v15848_v6 }
 0x433   : > { %11109 = vmatprep.subr.msk.mxu1 %vm335_vm3, %v15852_v25  ;;  %11076 = vmatpush3.xpose.msk.msra.mxu0 %vm335_vm3, %v15856_v22 }
 0x434   : > { %11077 = vmatprep.subr.msk.mxu0 %vm335_vm3, %v15860_v53 }
 0x436   : > { %11110 = vmatpush3.xpose.msk.msra.mxu1 %vm335_vm3, %v15864_v1 }
 0x437   : > { %11111 = vmatprep.subr.msk.mxu1 %vm335_vm3, %v15868_v47  ;;  %11078 = vmatpush3.xpose.msk.msra.mxu0 %vm335_vm3, %v15872_v14 }
 0x438   : > { %11079 = vmatprep.subr.msk.mxu0 %vm335_vm3, %v15876_v15 }
 0x43a   : > { %11112 = vmatpush3.xpose.msk.msra.mxu1 %vm335_vm3, %v15880_v19 }
 0x43b   : > { %11113 = vmatprep.subr.msk.mxu1 %vm335_vm3, %v15884_v31  ;;  %11080 = vmatpush3.xpose.msk.msra.mxu0 %vm335_vm3, %v15888_v45 }
 0x43c   : > { %11081 = vmatprep.subr.msk.mxu0 %vm335_vm3, %v15892_v4 }
 0x43e   : > { %11114 = vmatpush3.xpose.msk.msra.mxu1 %vm335_vm3, %v15896_v56 }
 0x43f   : > { %11115 = vmatprep.subr.msk.mxu1 %vm335_vm3, %v15900_v42  ;;  %11082 = vmatpush3.xpose.msk.msra.mxu0 %vm335_vm3, %v15904_v23  ;;  %v15988_v23 = vld [vmem:[#allocation4 + $0x16a] sm:$0xff] }
 0x440   : > { %11083 = vmatprep.subr.msk.mxu0 %vm335_vm3, %v15908_v37  ;;  %v15984_v37 = vld [vmem:[%s16578_s5 + $0x3] sm:$0x1] }
 0x442   : > { %11116 = vmatpush3.xpose.msk.msra.mxu1 %vm335_vm3, %v15912_v60 }
 0x443   : > { %11117 = vmatprep.subr.msk.mxu1 %vm335_vm3, %v15916_v55  ;;  %11084 = vmatpush3.xpose.msk.msra.mxu0 %vm335_vm3, %v15920_v50  ;;  %v15963_v50 = vld [vmem:[#allocation4 + $0x172] sm:$0xff] }
 0x444   : > { %11085 = vmatprep.subr.msk.mxu0 %vm335_vm3, %v15924_v35  ;;  %v7584_v35 = vld [vmem:[#allocation4] sm:$0xff] }
 0x446   : > { %11118 = vmatpush3.xpose.msk.msra.mxu1 %vm335_vm3, %v15928_v8 }
 0x447   : > { %11119 = vmatprep.subr.msk.mxu1 %vm335_vm3, %v15932_v59  ;;  %11086 = vmatpush3.xpose.msk.msra.mxu0 %vm335_vm3, %v15936_v44  ;;  %v15958_v44 = vld [vmem:[#allocation4 + $0xc0] sm:$0xff] }
 0x448   : > { %11087 = vmatprep.subr.msk.mxu0 %vm335_vm3, %v15940_v20  ;;  %17152 = vst [vmem:[#allocation49_spill] sm:$0xff] %v15958_v44 }
 0x44a   : > { %11120 = vmatpush3.xpose.msk.msra.mxu1 %vm335_vm3, %v15944_v48 }
 0x44b   : > { %11121 = vmatprep.subr.msk.mxu1 %vm335_vm3, %v15948_v16  ;;  %11088 = vmatpush3.xpose.msk.msra.mxu0 %vm335_vm3, %v7618_v63  ;;  %v15970_v63 = vld [vmem:[%s16578_s5 + $0x2] sm:$0x1] }
 0x44c   : > { %11089 = vmatprep.subr.msk.mxu0 %vm335_vm3, %v15953_v3 }
 0x44e   : > { %11122 = vmatpush3.xpose.msk.msra.mxu1 %vm335_vm3, %v7585_v52  ;;  %v15973_v52 = vld [vmem:[#allocation4 + $0x188] sm:$0xff] }
 0x44f   : > { %11123 = vmatprep.subr.msk.mxu1 %vm335_vm3, %v15958_v44  ;;  %11090 = vmatpush3.xpose.msk.msra.mxu0 %vm335_vm3, %v7617_v57  ;;  %17153 = vst [vmem:[#allocation15_spill] sm:$0xff] %v15973_v52  ;;  %v15979_v57 = vld [vmem:[#allocation4 + $0xb2] sm:$0xff] }
 0x450   : > { %11127 = vmatprep.subr.msk.mxu0 %vm335_vm3, %v15963_v50 }
 0x452   : > { %11124 = vmatpush3.xpose.msk.msra.mxu1 %vm335_vm3, %v7584_v35  ;;  %11092 = vmatmul.mubr.msk.f32.vlgmr.msra.gmra.mxu0 %vm335_vm3, %v15539_v39  ;;  %v15998_v39 = vld [vmem:[#allocation4 + $0x180] sm:$0xff]  ;;  %v16004_v35 = vld [vmem:[#allocation4 + $0xaa] sm:$0xff] }
 0x453   : > { %11161 = vmatprep.subr.msk.mxu1 %vm335_vm3, %v15973_v52  ;;  %11128 = vmatpush3.xpose.msk.msra.mxu0 %vm335_vm3, %v15979_v57  ;;  %17154 = vst [vmem:[#allocation65_spill] sm:$0xff] %v15998_v39  ;;  %v7992_v52 = vld [vmem:[#allocation4 + $0xa] sm:$0xff] }
 0x454   : > { %11159 = vmatprep.mubr.msk.f32.mxu0 %vm335_vm3, %v15970_v63  ;;  %11129 = vmatprep.subr.msk.mxu0 %vm335_vm3, %v15988_v23 }
 0x455   : > { %11126 = vmatmul.mubr.msk.f32.vlgmr.msra.gmra.mxu1 %vm335_vm3, %v15552_v40  ;;  %v16008_v40 = vld [vmem:[#allocation4 + $0x15a] sm:$0xff] }
 0x456   : > { %11162 = vmatpush3.xpose.msk.msra.mxu1 %vm335_vm3, %v15948_v16  ;;  %11193 = vmatprep.mubr.msk.f32.mxu1 %vm335_vm3, %v15984_v37  ;;  %v16016_v16 = vld [vmem:[#allocation4 + $0x9a] sm:$0xff] }
 0x457   : > { %11163 = vmatprep.subr.msk.mxu1 %vm335_vm3, %v15998_v39  ;;  %11130 = vmatpush3.xpose.msk.msra.mxu0 %vm335_vm3, %v16004_v35  ;;  %v16020_v39 = vld [vmem:[#allocation4 + $0x152] sm:$0xff] }
 0x458   : > { %11131 = vmatprep.subr.msk.mxu0 %vm335_vm3, %v16008_v40 }
 0x45a   : > { %11164 = vmatpush3.xpose.msk.msra.mxu1 %vm335_vm3, %v15958_v44  ;;  %v16028_v44 = vld [vmem:[#allocation4 + $0x92] sm:$0xff] }
 0x45b   : > { %11165 = vmatprep.subr.msk.mxu1 %vm335_vm3, %v15730_v5  ;;  %11132 = vmatpush3.xpose.msk.msra.mxu0 %vm335_vm3, %v16016_v16  ;;  %v16032_v5 = vld [vmem:[#allocation4 + $0x142] sm:$0xff] }
 0x45c   : > { %11133 = vmatprep.subr.msk.mxu0 %vm335_vm3, %v16020_v39 }
 0x45e   : > { %11166 = vmatpush3.xpose.msk.msra.mxu1 %vm335_vm3, %v15736_v34  ;;  %v16040_v34 = vld [vmem:[#allocation4 + $0x82] sm:$0xff] }
 0x45f   : > { %11167 = vmatprep.subr.msk.mxu1 %vm335_vm3, %v15740_v27  ;;  %11134 = vmatpush3.xpose.msk.msra.mxu0 %vm335_vm3, %v16028_v44  ;;  %v16044_v27 = vld [vmem:[#allocation4 + $0x13a] sm:$0xff] }
 0x460   : > { %11135 = vmatprep.subr.msk.mxu0 %vm335_vm3, %v16032_v5 }
 0x462   : > { %11168 = vmatpush3.xpose.msk.msra.mxu1 %vm335_vm3, %v15752_v13  ;;  %v16052_v13 = vld [vmem:[#allocation4 + $0x7a] sm:$0xff] }
 0x463   : > { %11169 = vmatprep.subr.msk.mxu1 %vm335_vm3, %v15756_v41  ;;  %11136 = vmatpush3.xpose.msk.msra.mxu0 %vm335_vm3, %v16040_v34  ;;  %v16056_v41 = vld [vmem:[#allocation4 + $0x12a] sm:$0xff] }
 0x464   : > { %11137 = vmatprep.subr.msk.mxu0 %vm335_vm3, %v16044_v27 }
 0x466   : > { %11170 = vmatpush3.xpose.msk.msra.mxu1 %vm335_vm3, %v15768_v32  ;;  %v16064_v32 = vld [vmem:[#allocation4 + $0x6a] sm:$0xff] }
 0x467   : > { %11171 = vmatprep.subr.msk.mxu1 %vm335_vm3, %v15772_v30  ;;  %11138 = vmatpush3.xpose.msk.msra.mxu0 %vm335_vm3, %v16052_v13  ;;  %v16068_v30 = vld [vmem:[#allocation4 + $0x122] sm:$0xff] }
 0x468   : > { %11139 = vmatprep.subr.msk.mxu0 %vm335_vm3, %v16056_v41 }
 0x46a   : > { %11172 = vmatpush3.xpose.msk.msra.mxu1 %vm335_vm3, %v15784_v7  ;;  %v16076_v7 = vld [vmem:[#allocation4 + $0x62] sm:$0xff] }
 0x46b   : > { %11173 = vmatprep.subr.msk.mxu1 %vm335_vm3, %v15788_v43  ;;  %11140 = vmatpush3.xpose.msk.msra.mxu0 %vm335_vm3, %v16064_v32  ;;  %v16080_v43 = vld [vmem:[#allocation4 + $0x112] sm:$0xff] }
 0x46c   : > { %11141 = vmatprep.subr.msk.mxu0 %vm335_vm3, %v16068_v30 }
 0x46e   : > { %11174 = vmatpush3.xpose.msk.msra.mxu1 %vm335_vm3, %v15800_v28  ;;  %v16088_v28 = vld [vmem:[#allocation4 + $0x52] sm:$0xff] }
 0x46f   : > { %11175 = vmatprep.subr.msk.mxu1 %vm335_vm3, %v15804_v18  ;;  %11142 = vmatpush3.xpose.msk.msra.mxu0 %vm335_vm3, %v16076_v7  ;;  %v16092_v18 = vld [vmem:[#allocation4 + $0x10a] sm:$0xff] }
 0x470   : > { %11143 = vmatprep.subr.msk.mxu0 %vm335_vm3, %v16080_v43  ;;  %17155 = vst [vmem:[#allocation51_spill] sm:$0xff] %v16092_v18 }
 0x472   : > { %11176 = vmatpush3.xpose.msk.msra.mxu1 %vm335_vm3, %v15816_v2  ;;  %v16100_v2 = vld [vmem:[#allocation4 + $0x4a] sm:$0xff] }
 0x473   : > { %11177 = vmatprep.subr.msk.mxu1 %vm335_vm3, %v15820_v49  ;;  %11144 = vmatpush3.xpose.msk.msra.mxu0 %vm335_vm3, %v16088_v28  ;;  %17156 = vst [vmem:[#allocation87_spill] sm:$0xff] %v16100_v2  ;;  %v16104_v49 = vld [vmem:[#allocation4 + $0xfa] sm:$0xff] }
 0x474   : > { %11145 = vmatprep.subr.msk.mxu0 %vm335_vm3, %v16092_v18  ;;  %17157 = vst [vmem:[#allocation21_spill] sm:$0xff] %v16104_v49 }
 0x476   : > { %11178 = vmatpush3.xpose.msk.msra.mxu1 %vm335_vm3, %v15832_v17  ;;  %v16112_v17 = vld [vmem:[#allocation4 + $0x3a] sm:$0xff] }
 0x477   : > { %11179 = vmatprep.subr.msk.mxu1 %vm335_vm3, %v15836_v58  ;;  %11146 = vmatpush3.xpose.msk.msra.mxu0 %vm335_vm3, %v16100_v2  ;;  %17158 = vst [vmem:[#allocation72_spill] sm:$0xff] %v16112_v17  ;;  %v16116_v58 = vld [vmem:[#allocation4 + $0xf2] sm:$0xff] }
 0x478   : > { %11147 = vmatprep.subr.msk.mxu0 %vm335_vm3, %v16104_v49  ;;  %17159 = vst [vmem:[#allocation90_spill] sm:$0xff] %v16116_v58 }
 0x47a   : > { %11180 = vmatpush3.xpose.msk.msra.mxu1 %vm335_vm3, %v15848_v6  ;;  %v16124_v6 = vld [vmem:[#allocation4 + $0x32] sm:$0xff] }
 0x47b   : > { %11181 = vmatprep.subr.msk.mxu1 %vm335_vm3, %v15852_v25  ;;  %11148 = vmatpush3.xpose.msk.msra.mxu0 %vm335_vm3, %v16112_v17  ;;  %17160 = vst [vmem:[#allocation25_spill] sm:$0xff] %v16124_v6  ;;  %v16128_v25 = vld [vmem:[#allocation4 + $0xe2] sm:$0xff] }
 0x47c   : > { %11149 = vmatprep.subr.msk.mxu0 %vm335_vm3, %v16116_v58 }
 0x47e   : > { %11182 = vmatpush3.xpose.msk.msra.mxu1 %vm335_vm3, %v15864_v1  ;;  %v16136_v1 = vld [vmem:[#allocation4 + $0x22] sm:$0xff] }
 0x47f   : > { %11183 = vmatprep.subr.msk.mxu1 %vm335_vm3, %v15868_v47  ;;  %11150 = vmatpush3.xpose.msk.msra.mxu0 %vm335_vm3, %v16124_v6  ;;  %v16140_v47 = vld [vmem:[#allocation4 + $0xda] sm:$0xff] }
 0x480   : > { %11151 = vmatprep.subr.msk.mxu0 %vm335_vm3, %v16128_v25 }
 0x482   : > { %11184 = vmatpush3.xpose.msk.msra.mxu1 %vm335_vm3, %v15880_v19  ;;  %v16148_v19 = vld [vmem:[#allocation4 + $0x1a] sm:$0xff] }
 0x483   : > { %11185 = vmatprep.subr.msk.mxu1 %vm335_vm3, %v15884_v31  ;;  %11152 = vmatpush3.xpose.msk.msra.mxu0 %vm335_vm3, %v16136_v1  ;;  %v16152_v31 = vld [vmem:[#allocation4 + $0xca] sm:$0xff] }
 0x484   : > { %11153 = vmatprep.subr.msk.mxu0 %vm335_vm3, %v16140_v47 }
 0x486   : > { %11186 = vmatpush3.xpose.msk.msra.mxu1 %vm335_vm3, %v15896_v56  ;;  %v7991_v56 = vld [vmem:[#allocation4 + $0x2] sm:$0xff] }
 0x487   : > { %11187 = vmatprep.subr.msk.mxu1 %vm335_vm3, %v15900_v42  ;;  %11154 = vmatpush3.xpose.msk.msra.mxu0 %vm335_vm3, %v16148_v19  ;;  %v16161_v42 = vld [vmem:[#allocation4 + $0xc2] sm:$0xff] }
 0x488   : > { %11155 = vmatprep.subr.msk.mxu0 %vm335_vm3, %v16152_v31 }
 0x48a   : > { %11188 = vmatpush3.xpose.msk.msra.mxu1 %vm335_vm3, %v15912_v60  ;;  %v16170_v60 = vld [vmem:[#allocation4 + $0x189] sm:$0xff] }
 0x48b   : > { %11189 = vmatprep.subr.msk.mxu1 %vm335_vm3, %v15916_v55  ;;  %11156 = vmatpush3.xpose.msk.msra.mxu0 %vm335_vm3, %v7992_v52  ;;  %v16177_v52 = vld [vmem:[%s16578_s5 + $0x4] sm:$0x1]  ;;  %v16181_v55 = vld [vmem:[#allocation4 + $0x18a] sm:$0xff] }
 0x48c   : > { %11157 = vmatprep.subr.msk.mxu0 %vm335_vm3, %v16161_v42 }
 0x48e   : > { %11190 = vmatpush3.xpose.msk.msra.mxu1 %vm335_vm3, %v15928_v8  ;;  %v16194_v8 = vld [vmem:[#allocation4 + $0x181] sm:$0xff] }
 0x48f   : > { %11191 = vmatprep.subr.msk.mxu1 %vm335_vm3, %v15932_v59  ;;  %11158 = vmatpush3.xpose.msk.msra.mxu0 %vm335_vm3, %v7991_v56  ;;  %v16190_v56 = vld [vmem:[%s16578_s5 + $0x5] sm:$0x1] }
 0x490   : > { %11195 = vmatprep.subr.msk.mxu0 %vm335_vm3, %v16170_v60 }
 0x492   : > { %11192 = vmatpush3.xpose.msk.msra.mxu1 %vm335_vm3, %v15944_v48  ;;  %11160 = vmatmul.mubr.msk.f32.vlgmr.msra.gmra.mxu0 %vm335_vm3, %v15970_v63  ;;  %v16204_v48 = vld [vmem:[#allocation4 + $0x182] sm:$0xff] }
 0x493   : > { %11229 = vmatprep.subr.msk.mxu1 %vm335_vm3, %v16181_v55  ;;  %11196 = vmatpush3.xpose.msk.msra.mxu0 %vm335_vm3, %v15940_v20  ;;  %v17162_v63 = vld [vmem:[#allocation63_spill] sm:$0xff] }
 0x494   : > { %11227 = vmatprep.mubr.msk.f32.mxu0 %vm335_vm3, %v16177_v52  ;;  %11197 = vmatprep.subr.msk.mxu0 %vm335_vm3, %v16194_v8 }
 0x495   : > { %11194 = vmatmul.mubr.msk.f32.vlgmr.msra.gmra.mxu1 %vm335_vm3, %v15984_v37  ;;  %v17161_v37 = vld [vmem:[#allocation61_spill] sm:$0xff] }
 0x496   : > { %11230 = vmatpush3.xpose.msk.msra.mxu1 %vm335_vm3, %v16152_v31  ;;  %11261 = vmatprep.mubr.msk.f32.mxu1 %vm335_vm3, %v16190_v56 }
 0x497   : > { %11231 = vmatprep.subr.msk.mxu1 %vm335_vm3, %v16204_v48  ;;  %11198 = vmatpush3.xpose.msk.msra.mxu0 %vm335_vm3, %v15953_v3 }
 0x498   : > { %11199 = vmatprep.subr.msk.mxu0 %vm335_vm3, %v15720_v10 }
 0x49a   : > { %11232 = vmatpush3.xpose.msk.msra.mxu1 %vm335_vm3, %v16161_v42 }
 0x49b   : > { %11233 = vmatprep.subr.msk.mxu1 %vm335_vm3, %v15963_v50  ;;  %11200 = vmatpush3.xpose.msk.msra.mxu0 %vm335_vm3, %v15724_v54 }
 0x49c   : > { %11201 = vmatprep.subr.msk.mxu0 %vm335_vm3, %v15728_v26 }
 0x49e   : > { %11234 = vmatpush3.xpose.msk.msra.mxu1 %vm335_vm3, %v15979_v57 }
 0x49f   : > { %11235 = vmatprep.subr.msk.mxu1 %vm335_vm3, %v15988_v23  ;;  %11202 = vmatpush3.xpose.msk.msra.mxu0 %vm335_vm3, %v15744_v11 }
 0x4a0   : > { %11203 = vmatprep.subr.msk.mxu0 %vm335_vm3, %v15748_v62 }
 0x4a2   : > { %11236 = vmatpush3.xpose.msk.msra.mxu1 %vm335_vm3, %v16004_v35 }
 0x4a3   : > { %11237 = vmatprep.subr.msk.mxu1 %vm335_vm3, %v16008_v40  ;;  %11204 = vmatpush3.xpose.msk.msra.mxu0 %vm335_vm3, %v15760_v46 }
 0x4a4   : > { %11205 = vmatprep.subr.msk.mxu0 %vm335_vm3, %v15764_v38 }
 0x4a6   : > { %11238 = vmatpush3.xpose.msk.msra.mxu1 %vm335_vm3, %v16016_v16 }
 0x4a7   : > { %11239 = vmatprep.subr.msk.mxu1 %vm335_vm3, %v16020_v39  ;;  %11206 = vmatpush3.xpose.msk.msra.mxu0 %vm335_vm3, %v15776_v51 }
 0x4a8   : > { %11207 = vmatprep.subr.msk.mxu0 %vm335_vm3, %v15780_v61 }
 0x4aa   : > { %11240 = vmatpush3.xpose.msk.msra.mxu1 %vm335_vm3, %v16028_v44 }
 0x4ab   : > { %11241 = vmatprep.subr.msk.mxu1 %vm335_vm3, %v16032_v5  ;;  %11208 = vmatpush3.xpose.msk.msra.mxu0 %vm335_vm3, %v15792_v29 }
 0x4ac   : > { %11209 = vmatprep.subr.msk.mxu0 %vm335_vm3, %v15796_v12 }
 0x4ae   : > { %11242 = vmatpush3.xpose.msk.msra.mxu1 %vm335_vm3, %v16040_v34 }
 0x4af   : > { %11243 = vmatprep.subr.msk.mxu1 %vm335_vm3, %v16044_v27  ;;  %11210 = vmatpush3.xpose.msk.msra.mxu0 %vm335_vm3, %v15808_v33 }
 0x4b0   : > { %11211 = vmatprep.subr.msk.mxu0 %vm335_vm3, %v15812_v24 }
 0x4b2   : > { %11244 = vmatpush3.xpose.msk.msra.mxu1 %vm335_vm3, %v16052_v13 }
 0x4b3   : > { %11245 = vmatprep.subr.msk.mxu1 %vm335_vm3, %v16056_v41  ;;  %11212 = vmatpush3.xpose.msk.msra.mxu0 %vm335_vm3, %v15824_v0 }
 0x4b4   : > { %11213 = vmatprep.subr.msk.mxu0 %vm335_vm3, %v15828_v21 }
 0x4b6   : > { %11246 = vmatpush3.xpose.msk.msra.mxu1 %vm335_vm3, %v16064_v32 }
 0x4b7   : > { %11247 = vmatprep.subr.msk.mxu1 %vm335_vm3, %v16068_v30  ;;  %11214 = vmatpush3.xpose.msk.msra.mxu0 %vm335_vm3, %v15840_v36 }
 0x4b8   : > { %11215 = vmatprep.subr.msk.mxu0 %vm335_vm3, %v15844_v9 }
 0x4ba   : > { %11248 = vmatpush3.xpose.msk.msra.mxu1 %vm335_vm3, %v16076_v7 }
 0x4bb   : > { %11249 = vmatprep.subr.msk.mxu1 %vm335_vm3, %v16080_v43  ;;  %11216 = vmatpush3.xpose.msk.msra.mxu0 %vm335_vm3, %v15856_v22 }
 0x4bc   : > { %11217 = vmatprep.subr.msk.mxu0 %vm335_vm3, %v15860_v53 }
 0x4be   : > { %11250 = vmatpush3.xpose.msk.msra.mxu1 %vm335_vm3, %v16088_v28 }
 0x4bf   : > { %11251 = vmatprep.subr.msk.mxu1 %vm335_vm3, %v16092_v18  ;;  %11218 = vmatpush3.xpose.msk.msra.mxu0 %vm335_vm3, %v15872_v14  ;;  %v8846_v18 = vld [vmem:[#allocation4 + $0x198] sm:$0xff] }
 0x4c0   : > { %11219 = vmatprep.subr.msk.mxu0 %vm335_vm3, %v15876_v15 }
 0x4c2   : > { %11252 = vmatpush3.xpose.msk.msra.mxu1 %vm335_vm3, %v16100_v2  ;;  %v17164_v2 = vld [vmem:[#allocation13_spill] sm:$0xff] }
 0x4c3   : > { %11253 = vmatprep.subr.msk.mxu1 %vm335_vm3, %v16104_v49  ;;  %11220 = vmatpush3.xpose.msk.msra.mxu0 %vm335_vm3, %v15888_v45  ;;  %v17163_v49 = vld [vmem:[#allocation68_spill] sm:$0xff] }
 0x4c4   : > { %11221 = vmatprep.subr.msk.mxu0 %vm335_vm3, %v15892_v4 }
 0x4c6   : > { %11254 = vmatpush3.xpose.msk.msra.mxu1 %vm335_vm3, %v16112_v17  ;;  %v17165_v17 = vld [vmem:[#allocation34_spill] sm:$0xff] }
 0x4c7   : > { %11255 = vmatprep.subr.msk.mxu1 %vm335_vm3, %v16116_v58  ;;  %11222 = vmatpush3.xpose.msk.msra.mxu0 %vm335_vm3, %v17161_v37  ;;  %v8847_v58 = vld [vmem:[#allocation4 + $0x1a0] sm:$0xff] }
 0x4c8   : > { %11223 = vmatprep.subr.msk.mxu0 %vm335_vm3, %v17162_v63 }
 0x4ca   : > { %11256 = vmatpush3.xpose.msk.msra.mxu1 %vm335_vm3, %v16124_v6  ;;  %v9053_v6 = vld [vmem:[#allocation4 + $0x1a1] sm:$0xff] }
 0x4cb   : > { %11257 = vmatprep.subr.msk.mxu1 %vm335_vm3, %v16128_v25  ;;  %11224 = vmatpush3.xpose.msk.msra.mxu0 %vm335_vm3, %v17163_v49  ;;  %v16328_v49 = vld [vmem:[%s16578_s5 + $0x6] sm:$0x1] }
 0x4cc   : > { %11225 = vmatprep.subr.msk.mxu0 %vm335_vm3, %v17164_v2 }
 0x4ce   : > { %11258 = vmatpush3.xpose.msk.msra.mxu1 %vm335_vm3, %v16136_v1  ;;  %v9052_v1 = vld [vmem:[#allocation4 + $0x199] sm:$0xff] }
 0x4cf   : > { %11259 = vmatprep.subr.msk.mxu1 %vm335_vm3, %v16140_v47  ;;  %11226 = vmatpush3.xpose.msk.msra.mxu0 %vm335_vm3, %v17165_v17  ;;  %v16338_v17 = vld [vmem:[%s16578_s5 + $0x7] sm:$0x1] }
 0x4d0   : > { %11263 = vmatprep.subr.msk.mxu0 %vm335_vm3, %v8847_v58  ;;  %v17166_v58 = vld [vmem:[#allocation22_spill] sm:$0xff] }
 0x4d2   : > { %11260 = vmatpush3.xpose.msk.msra.mxu1 %vm335_vm3, %v16148_v19  ;;  %11228 = vmatmul.mubr.msk.f32.vlgmr.msra.gmra.mxu0 %vm335_vm3, %v16177_v52  ;;  %v17169_v19 = vld [vmem:[#allocation65_spill] sm:$0xff]  ;;  %v17171_v52 = vld [vmem:[#allocation62_spill] sm:$0xff] }
 0x4d3   : > { %11297 = vmatprep.subr.msk.mxu1 %vm335_vm3, %v9053_v6  ;;  %11264 = vmatpush3.xpose.msk.msra.mxu0 %vm335_vm3, %v17166_v58  ;;  %v17167_v6 = vld [vmem:[#allocation15_spill] sm:$0xff] }
 0x4d4   : > { %11295 = vmatprep.mubr.msk.f32.mxu0 %vm335_vm3, %v16328_v49  ;;  %11265 = vmatprep.subr.msk.mxu0 %vm335_vm3, %v8846_v18  ;;  %v17168_v18 = vld [vmem:[#allocation38_spill] sm:$0xff] }
 0x4d5   : > { %11262 = vmatmul.mubr.msk.f32.vlgmr.msra.gmra.mxu1 %vm335_vm3, %v16190_v56  ;;  %v17175_v56 = vld [vmem:[#allocation58_spill] sm:$0xff] }
 0x4d6   : > { %11298 = vmatpush3.xpose.msk.msra.mxu1 %vm335_vm3, %v17162_v63  ;;  %11329 = vmatprep.mubr.msk.f32.mxu1 %vm335_vm3, %v16338_v17 }
 0x4d7   : > { %11299 = vmatprep.subr.msk.mxu1 %vm335_vm3, %v9052_v1  ;;  %11266 = vmatpush3.xpose.msk.msra.mxu0 %vm335_vm3, %v15932_v59  ;;  %v17170_v59 = vld [vmem:[#allocation49_spill] sm:$0xff] }
 0x4d8   : > { %11267 = vmatprep.subr.msk.mxu0 %vm335_vm3, %v17167_v6 }
 0x4da   : > { %11300 = vmatpush3.xpose.msk.msra.mxu1 %vm335_vm3, %v17164_v2  ;;  %v17172_v2 = vld [vmem:[#allocation9_spill] sm:$0xff] }
 0x4db   : > { %11301 = vmatprep.subr.msk.mxu1 %vm335_vm3, %v16170_v60  ;;  %11268 = vmatpush3.xpose.msk.msra.mxu0 %vm335_vm3, %v17168_v18  ;;  %v17173_v60 = vld [vmem:[#allocation10_spill] sm:$0xff] }
 0x4dc   : > { %11269 = vmatprep.subr.msk.mxu0 %vm335_vm3, %v17169_v19 }
 0x4de   : > { %11302 = vmatpush3.xpose.msk.msra.mxu1 %vm335_vm3, %v15940_v20  ;;  %v17174_v20 = vld [vmem:[#allocation11_spill] sm:$0xff] }
 0x4df   : > { %11303 = vmatprep.subr.msk.mxu1 %vm335_vm3, %v16194_v8  ;;  %11270 = vmatpush3.xpose.msk.msra.mxu0 %vm335_vm3, %v17170_v59 }
 0x4e0   : > { %11271 = vmatprep.subr.msk.mxu0 %vm335_vm3, %v17171_v52 }
 0x4e2   : > { %11304 = vmatpush3.xpose.msk.msra.mxu1 %vm335_vm3, %v15953_v3  ;;  %v17177_v3 = vld [vmem:[#allocation17_spill] sm:$0xff] }
 0x4e3   : > { %11305 = vmatprep.subr.msk.mxu1 %vm335_vm3, %v15720_v10  ;;  %11272 = vmatpush3.xpose.msk.msra.mxu0 %vm335_vm3, %v17172_v2  ;;  %v17176_v10 = vld [vmem:[#allocation27_spill] sm:$0xff]  ;;  %v12375_v2 = vmov 1966171168  }
 0x4e4   : > { %11273 = vmatprep.subr.msk.mxu0 %vm335_vm3, %v17173_v60  ;;  %v9450_v60 = vunpack.c.l.s4 %v12375_v2 }
 0x4e6   : > { %11306 = vmatpush3.xpose.msk.msra.mxu1 %vm335_vm3, %v15724_v54  ;;  %v17178_v54 = vld [vmem:[#allocation29_spill] sm:$0xff] }
 0x4e7   : > { %11307 = vmatprep.subr.msk.mxu1 %vm335_vm3, %v15728_v26  ;;  %11274 = vmatpush3.xpose.msk.msra.mxu0 %vm335_vm3, %v17174_v20  ;;  %v17179_v26 = vld [vmem:[#allocation60_spill] sm:$0xff] }
 0x4e8   : > { %11275 = vmatprep.subr.msk.mxu0 %vm335_vm3, %v17175_v56 }
 0x4ea   : > { %11308 = vmatpush3.xpose.msk.msra.mxu1 %vm335_vm3, %v15744_v11  ;;  %v17180_v11 = vld [vmem:[#allocation20_spill] sm:$0xff] }
 0x4eb   : > { %11309 = vmatprep.subr.msk.mxu1 %vm335_vm3, %v15748_v62  ;;  %11276 = vmatpush3.xpose.msk.msra.mxu0 %vm335_vm3, %v17176_v10  ;;  %v17181_v62 = vld [vmem:[#allocation56_spill] sm:$0xff] }
 0x4ec   : > { %11277 = vmatprep.subr.msk.mxu0 %vm335_vm3, %v17177_v3 }
 0x4ee   : > { %11310 = vmatpush3.xpose.msk.msra.mxu1 %vm335_vm3, %v15760_v46  ;;  %v17182_v46 = vld [vmem:[#allocation28_spill] sm:$0xff] }
 0x4ef   : > { %11311 = vmatprep.subr.msk.mxu1 %vm335_vm3, %v15764_v38  ;;  %11278 = vmatpush3.xpose.msk.msra.mxu0 %vm335_vm3, %v17178_v54  ;;  %v17183_v38 = vld [vmem:[#allocation18_spill] sm:$0xff] }
 0x4f0   : > { %11279 = vmatprep.subr.msk.mxu0 %vm335_vm3, %v17179_v26  ;;  %v9451_v26 = vunpack.c.0.s8 %v9450_v60 }
 0x4f2   : > { %11312 = vmatpush3.xpose.msk.msra.mxu1 %vm335_vm3, %v15776_v51  ;;  %v17184_v51 = vld [vmem:[#allocation33_spill] sm:$0xff] }
 0x4f3   : > { %11313 = vmatprep.subr.msk.mxu1 %vm335_vm3, %v15780_v61  ;;  %11280 = vmatpush3.xpose.msk.msra.mxu0 %vm335_vm3, %v17180_v11  ;;  %v17185_v61 = vld [vmem:[#allocation57_spill] sm:$0xff] }
 0x4f4   : > { %11281 = vmatprep.subr.msk.mxu0 %vm335_vm3, %v17181_v62 }
 0x4f6   : > { %11314 = vmatpush3.xpose.msk.msra.mxu1 %vm335_vm3, %v15792_v29  ;;  %v17186_v29 = vld [vmem:[#allocation32_spill] sm:$0xff] }
 0x4f7   : > { %11315 = vmatprep.subr.msk.mxu1 %vm335_vm3, %v15796_v12  ;;  %11282 = vmatpush3.xpose.msk.msra.mxu0 %vm335_vm3, %v17182_v46  ;;  %v17187_v12 = vld [vmem:[#allocation64_spill] sm:$0xff] }
 0x4f8   : > { %11283 = vmatprep.subr.msk.mxu0 %vm335_vm3, %v17183_v38 }
 0x4fa   : > { %11316 = vmatpush3.xpose.msk.msra.mxu1 %vm335_vm3, %v15808_v33  ;;  %v17188_v33 = vld [vmem:[#allocation19_spill] sm:$0xff] }
 0x4fb   : > { %11317 = vmatprep.subr.msk.mxu1 %vm335_vm3, %v15812_v24  ;;  %11284 = vmatpush3.xpose.msk.msra.mxu0 %vm335_vm3, %v17184_v51  ;;  %v17189_v24 = vld [vmem:[#allocation59_spill] sm:$0xff] }
 0x4fc   : > { %11285 = vmatprep.subr.msk.mxu0 %vm335_vm3, %v17185_v61 }
 0x4fe   : > { %11318 = vmatpush3.xpose.msk.msra.mxu1 %vm335_vm3, %v15824_v0  ;;  %v17190_v0 = vld [vmem:[#allocation66_spill] sm:$0xff] }
 0x4ff   : > { %11319 = vmatprep.subr.msk.mxu1 %vm335_vm3, %v15828_v21  ;;  %11286 = vmatpush3.xpose.msk.msra.mxu0 %vm335_vm3, %v17186_v29  ;;  %v17191_v21 = vld [vmem:[#allocation31_spill] sm:$0xff] }
 0x500   : > { %11287 = vmatprep.subr.msk.mxu0 %vm335_vm3, %v17187_v12 }
 0x502   : > { %11320 = vmatpush3.xpose.msk.msra.mxu1 %vm335_vm3, %v15840_v36  ;;  %v17192_v36 = vld [vmem:[#allocation36_spill] sm:$0xff] }
 0x503   : > { %11321 = vmatprep.subr.msk.mxu1 %vm335_vm3, %v15844_v9  ;;  %11288 = vmatpush3.xpose.msk.msra.mxu0 %vm335_vm3, %v17188_v33  ;;  %v17193_v9 = vld [vmem:[#allocation35_spill] sm:$0xff] }
 0x504   : > { %11289 = vmatprep.subr.msk.mxu0 %vm335_vm3, %v17189_v24 }
 0x506   : > { %11322 = vmatpush3.xpose.msk.msra.mxu1 %vm335_vm3, %v15856_v22  ;;  %v9259_v22 = vld [vmem:[#allocation4 + $0x1a2] sm:$0xff] }
 0x507   : > { %11323 = vmatprep.subr.msk.mxu1 %vm335_vm3, %v15860_v53  ;;  %11290 = vmatpush3.xpose.msk.msra.mxu0 %vm335_vm3, %v17190_v0  ;;  %v17194_v53 = vld [vmem:[#allocation70_spill] sm:$0xff] }
 0x508   : > { %11291 = vmatprep.subr.msk.mxu0 %vm335_vm3, %v17191_v21 }
 0x50a   : > { %11324 = vmatpush3.xpose.msk.msra.mxu1 %vm335_vm3, %v15872_v14  ;;  %v10424_v14 = vld [vmem:[%s16578_s5 + $0x8] sm:$0x1] }
 0x50b   : > { %11325 = vmatprep.subr.msk.mxu1 %vm335_vm3, %v15876_v15  ;;  %11292 = vmatpush3.xpose.msk.msra.mxu0 %vm335_vm3, %v17192_v36  ;;  %v9258_v15 = vld [vmem:[#allocation4 + $0x19a] sm:$0xff] }
 0x50c   : > { %11293 = vmatprep.subr.msk.mxu0 %vm335_vm3, %v17193_v9 }
 0x50e   : > { %11326 = vmatpush3.xpose.msk.msra.mxu1 %vm335_vm3, %v15888_v45  ;;  %v12374_v45 = vmov 0  }
 0x50f   : > { %11327 = vmatprep.subr.msk.mxu1 %vm335_vm3, %v15892_v4  ;;  %11294 = vmatpush3.xpose.msk.msra.mxu0 %vm335_vm3, %v17194_v53  ;;  %v9434_v4 = vld [vmem:[#allocation5] sm:$0x1] }
 0x510   : > { %11331 = vmatprep.subr.msk.mxu0 %vm335_vm3, %v9259_v22  ;;  %12309 = vset.pattern.permute.xlu0 %v12374_v45 }
 0x511   : > { %9437 = vperm.xlu0 %12309, %v9434_v4  }
 0x512   : > { %11328 = vmatpush3.xpose.msk.msra.mxu1 %vm335_vm3, %v17161_v37  ;;  %11296 = vmatmul.mubr.msk.f32.vlgmr.msra.gmra.mxu0 %vm335_vm3, %v16328_v49 }
 0x513   : > { %11332 = vmatpush3.xpose.msk.msra.mxu0 %vm335_vm3, %v16128_v25  ;;  %11363 = vmatprep.mubr.msk.f32.mxu0 %vm335_vm3, %v10424_v14 }
 0x514   : > { %11333 = vmatprep.subr.msk.mxu0 %vm335_vm3, %v9258_v15 }
 0x515   : > { %11330 = vmatmul.mubr.msk.f32.vlgmr.msra.gmra.mxu1 %vm335_vm3, %v16338_v17 }
 0x517   : > { %11334 = vmatpush3.xpose.msk.msra.mxu0 %vm335_vm3, %v16140_v47 }
 0x518   : > { %11335 = vmatprep.subr.msk.mxu0 %vm335_vm3, %v16181_v55 }
 0x51b   : > { %11336 = vmatpush3.xpose.msk.msra.mxu0 %vm335_vm3, %v16152_v31 }
 0x51c   : > { %11337 = vmatprep.subr.msk.mxu0 %vm335_vm3, %v16204_v48  ;;  %v9440_v48 = vlaneseq }
 0x51e   : > { %v9441_v58 = vshrl.u32 %v9440_v48, 7  ;;  %vm9466_vm5 = vcmp.lt.s32.totalorder %v9440_v48, 256 }
 0x51f   : > { %11338 = vmatpush3.xpose.msk.msra.mxu0 %vm335_vm3, %v16161_v42 }
 0x520   : > { %11339 = vmatprep.subr.msk.mxu0 %vm335_vm3, %v15963_v50  ;;  %v9442_v52 = vsub.s32 0, %v9441_v58  ;;  %v9454_v51 = vsub.s32 %v9451_v26, %v9441_v58 }
 0x523   : > { %11340 = vmatpush3.xpose.msk.msra.mxu0 %vm335_vm3, %v15979_v57 }
 0x524   : > { %11341 = vmatprep.subr.msk.mxu0 %vm335_vm3, %v15988_v23 }
 0x527   : > { %11342 = vmatpush3.xpose.msk.msra.mxu0 %vm335_vm3, %v16004_v35 }
 0x528   : > { %11343 = vmatprep.subr.msk.mxu0 %vm335_vm3, %v16008_v40 }
 0x52b   : > { %11344 = vmatpush3.xpose.msk.msra.mxu0 %vm335_vm3, %v16016_v16 }
 0x52c   : > { %11345 = vmatprep.subr.msk.mxu0 %vm335_vm3, %v16020_v39 }
 0x52f   : > { %11346 = vmatpush3.xpose.msk.msra.mxu0 %vm335_vm3, %v16028_v44 }
 0x530   : > { %11347 = vmatprep.subr.msk.mxu0 %vm335_vm3, %v16032_v5  ;;  %v17195_v5 = vld [vmem:[#allocation51_spill] sm:$0xff] }
 0x533   : > { %11348 = vmatpush3.xpose.msk.msra.mxu0 %vm335_vm3, %v16040_v34  ;;  %v17196_v34 = vld [vmem:[#allocation87_spill] sm:$0xff] }
 0x534   : > { %11349 = vmatprep.subr.msk.mxu0 %vm335_vm3, %v16044_v27  ;;  %v17197_v27 = vld [vmem:[#allocation21_spill] sm:$0xff] }
 0x537   : > { %11350 = vmatpush3.xpose.msk.msra.mxu0 %vm335_vm3, %v16052_v13  ;;  %v17198_v13 = vld [vmem:[#allocation72_spill] sm:$0xff] }
 0x538   : > { %11351 = vmatprep.subr.msk.mxu0 %vm335_vm3, %v16056_v41  ;;  %v17199_v41 = vld [vmem:[#allocation90_spill] sm:$0xff] }
 0x53b   : > { %11352 = vmatpush3.xpose.msk.msra.mxu0 %vm335_vm3, %v16064_v32  ;;  %v17200_v32 = vld [vmem:[#allocation25_spill] sm:$0xff] }
 0x53c   : > { %11353 = vmatprep.subr.msk.mxu0 %vm335_vm3, %v16068_v30  ;;  %v7816_v30 = vpop.f32.mrf.mxu0 }
 0x53f   : > { %11354 = vmatpush3.xpose.msk.msra.mxu0 %vm335_vm3, %v16076_v7  ;;  %v7818_v7 = vpop.f32.mrf.mxu0 }
 0x540   : > { %11355 = vmatprep.subr.msk.mxu0 %vm335_vm3, %v16080_v43  ;;  %v7986_v43 = vpop.f32.mrf.mxu1 }
 0x541   : > { %v7987_v47 = vadd.f32 %v7986_v43, %v7816_v30 }
 0x542   : > { %v7988_v25 = vpop.f32.mrf.mxu1 }
 0x543   : > { %11356 = vmatpush3.xpose.msk.msra.mxu0 %vm335_vm3, %v16088_v28  ;;  %v7989_v23 = vadd.f32 %v7988_v25, %v7818_v7 }
 0x544   : > { %11357 = vmatprep.subr.msk.mxu0 %vm335_vm3, %v17195_v5 }
 0x547   : > { %11358 = vmatpush3.xpose.msk.msra.mxu0 %vm335_vm3, %v17196_v34 }
 0x548   : > { %11359 = vmatprep.subr.msk.mxu0 %vm335_vm3, %v17197_v27 }
 0x54b   : > { %11360 = vmatpush3.xpose.msk.msra.mxu0 %vm335_vm3, %v17198_v13 }
 0x54c   : > { %11361 = vmatprep.subr.msk.mxu0 %vm335_vm3, %v17199_v41 }
 0x54f   : > { %11362 = vmatpush3.xpose.msk.msra.mxu0 %vm335_vm3, %v17200_v32 }
 0x552   : > { %11364 = vmatmul.mubr.msk.f32.vlgmr.msra.gmra.mxu0 %vm335_vm3, %v10424_v14  ;;  %v8190_v28 = vpop.f32.mrf.mxu0 }
 0x553   : > { %v8195_v55 = vadd.f32 %v8190_v28, %v7987_v47 }
 0x554   : > { %v8192_v31 = vpop.f32.mrf.mxu0 }
 0x555   : > { %v8396_v42 = vpop.f32.mrf.mxu1  ;;  %v8196_v44 = vadd.f32 %v8192_v31, %v7989_v23 }
 0x556   : > { %v8401_v57 = vadd.f32 %v8396_v42, %v8195_v55 }
 0x557   : > { %v8398_v16 = vpop.f32.mrf.mxu1 }
 0x558   : > { %v8402_v40 = vadd.f32 %v8398_v16, %v8196_v44 }
 0x58c   : > { %v9438_v56 = vpop.permute.xlu0 %9437 }
 0x58d   : > { %v9443_v11 = vrot.slane %v9438_v56, %v9442_v52 }
 0x592   : > { %v8602_v50 = vpop.f32.mrf.mxu0 }
 0x593   : > { %v8607_v8 = vadd.f32 %v8602_v50, %v8401_v57 }
 0x594   : > { %v8604_v39 = vpop.f32.mrf.mxu0 }
 0x595   : > { %v8808_v35 = vpop.f32.mrf.mxu1  ;;  %v8608_v63 = vadd.f32 %v8604_v39, %v8402_v40 }
 0x596   : > { %v8813_v17 = vadd.f32 %v8808_v35, %v8607_v8 }
 0x597   : > { %v8810_v49 = vpop.f32.mrf.mxu1 }
 0x598   : > { %v8814_v18 = vadd.f32 %v8810_v49, %v8608_v63 }
 0x5d2   : > { %v9015_v37 = vpop.f32.mrf.mxu0 }
 0x5d3   : > { %v9020_v19 = vadd.f32 %v9015_v37, %v8813_v17 }
 0x5d4   : > { %v9017_v1 = vpop.f32.mrf.mxu0 }
 0x5d5   : > { %v9221_v6 = vpop.f32.mrf.mxu1  ;;  %v9021_v59 = vadd.f32 %v9017_v1, %v8814_v18 }
 0x5d6   : > { %v9226_v10 = vadd.f32 %v9221_v6, %v9020_v19 }
 0x5d7   : > { %v9223_v20 = vpop.f32.mrf.mxu1 }
 0x5d8   : > { %v9227_v54 = vadd.f32 %v9223_v20, %v9021_v59 }
 0x612   : > { %v9427_v3 = vpop.f32.mrf.mxu0 }
 0x613   : > { %v9432_v62 = vadd.f32 %v9427_v3, %v9226_v10 }
 0x614   : > { %v9429_v46 = vpop.f32.mrf.mxu0 }
 0x615   : > { %v9433_v38 = vadd.f32 %v9429_v46, %v9227_v54  ;;  %v9444_v61 = vadd.f32 %v9443_v11, %v9432_v62 }
 0x617   : > { %v9445_v29 = vadd.f32 %v9443_v11, %v9433_v38 }
 0x619   : > { %v9448_v12 = vcombine.low %v9444_v61, %v9445_v29 }
 0x61b   : > { %v9455_v33 = vrot.slane %v9448_v12, %v9454_v51 }
 0x61d   : > { %v9462_v24 = vrot.slane %v9455_v33, %v9454_v51 }
 0x61f   : > { %9468 = vst.msk [vmem:[%s273_s22] sm:$0x3] %vm9466_vm5, %v9462_v24 }
 0x620   : > { %12324 = shalt.err (!%p12321_p3)
}
 0x621   : > { %s12325_s16 = scalar_lea.hbm %s9482_s30, 32  ;;  %s12329_s19 = scalar_lea.hbm %s16580_s7, 64 }
 0x622   : > { %p12326_p4 = scmp.ne.s32.totalorder %s9482_s30, %s12325_s16  ;;  %p12330_p9 = scmp.lt.s32.totalorder %s9482_s30, %s16580_s7 }
 0x623   : > { %p12331_p10 = scmp.lt.s32.totalorder %s12329_s19, %s12325_s16 }
 0x624   : > { %p12327_p7 = pnand %p12326_p4, %p12458_p5 }
 0x625   : > { %p12332_p11 = por %p12331_p10, %p12330_p9 }
 0x626   : > { %p12328_p8 = pneg %p12327_p7 }
 0x628   : > { %p12333_p12 = pnand %p12332_p11, %p12328_p8 }
 0x62a   : > { %12336 = shalt.err (!%p12333_p12)
}
 0x62b   : > { %12267 = dma.vmem_to_hbm [thread:$0]  (%p12458_p5), %s9485_s23, 32, %s9482_s30, %s9470_s9  }
 0x62c PF: > { %p12273_p13 = scmp.ge.s32.totalorder %s12371_s29, 2  ;;  %s9496_s22 = sand.u32 1, %s12359_s26  }
 0x62d   : > { %s9497_s24 = scalar_lea.sflag [#allocation7], %s9496_s22 }
 0x62e   : > { %p12270_p0 = pnand %p12273_p13, %p12462_p6 }
 0x630   : > { %p12271_p1 = pneg %p12270_p0 }
 0x632   : > { %12354 = dma.done.wait (%p12271_p1), %s9497_s24, 32  }
 0x633   : > { %12356 = vsyncadd (%p12271_p1), %s9497_s24, 4294967264  ;;  %p19_p2 = scmp.ge.s32.totalorder %s12445_s8, 4   ;;  %s17201_s26 = smov %s12363_s27 }
 0x634   : > { %s17202_s27 = smov %s12367_s28  ;;  %s17203_s28 = smov %s12456_s11 }
 0x635   : > { %s17204_s29 = smov %s12445_s8  ;;  %21 = sbr.rel (!%p19_p2) target bundleno = 6 (0x6), region = 113 }
 0x63a   :  { %9502 = vsyncpa [#allocation7], 1 }
 0x63b   :  { %9504 = vsyncpa [#allocation7 + $0x1], 1 }

</bundles_post_ra>
